<compile_context>
chip_gen: v7x
topology: tpu7x:2x2x1
jax: 0.10.0
libtpu: 0.0.40
codegen_flags: <defaults>
</compile_context>

<pallas_src>
import functools

import jax
import jax.numpy as jnp
from jax.experimental import pallas as pl
from jax.experimental.pallas import tpu as pltpu

HIDDEN = 1024      # T5-XL encoder hidden size
MID = 512
OUT = 3
OUT_PAD = 128      # lane-dense padded output width
NEG_SLOPE = 0.01   # torch.nn.LeakyReLU default
TM = 512           # M-tile (multiple of 16 for bf16 sublane packing)


def _head_kernel(x_ref, w1_ref, b1_ref, w2_ref, b2_ref, o_ref):
    """Fused Linear -> LeakyReLU -> Linear on one (TM, 1024) token tile.

    x_ref : (TM, 1024)  bf16 token embeddings
    w1_ref: (1024, 512) bf16,  b1_ref: (1, 512)  f32
    w2_ref: (512, 128)  bf16,  b2_ref: (1, 128)  f32  (zero-padded past col 3)
    o_ref : (TM, 128)   f32
    """
    x = x_ref[...]
    # First matmul: bf16 operands, f32 MXU accumulation.
    h = jnp.dot(x, w1_ref[...], preferred_element_type=jnp.float32)
    h = h + b1_ref[...]
    # LeakyReLU (negative_slope = 0.01), f32 on the VPU.
    h = jnp.where(h > 0, h, NEG_SLOPE * h)
    # Second matmul into the lane-dense padded output.
    y = jnp.dot(h.astype(jnp.bfloat16), w2_ref[...],
                preferred_element_type=jnp.float32)
    y = y + b2_ref[...]
    o_ref[...] = y.astype(o_ref.dtype)


@functools.partial(jax.jit, static_argnames=("tm",))
def t5linear_head(x_flat, w1, b1, w2, b2, *, tm=TM):
    """x_flat: (M, 1024) float -> (M, 3) float32, via a tiled Pallas kernel."""
    M = x_flat.shape[0]
    num_tiles = pl.cdiv(M, tm)
    M_pad = num_tiles * tm

    # Pad the token dim up to a whole number of tiles; pad rows are sliced off.
    x_pad = jnp.zeros((M_pad, HIDDEN), jnp.bfloat16).at[:M].set(
        x_flat.astype(jnp.bfloat16))

    # Lane-dense output: zero-pad w2/b2 from 3 -> 128 columns.
    w2_pad = jnp.zeros((MID, OUT_PAD), jnp.bfloat16).at[:, :OUT].set(
        w2.astype(jnp.bfloat16))
    b2_pad = jnp.zeros((1, OUT_PAD), jnp.float32).at[:, :OUT].set(
        b2.astype(jnp.float32))

    w1_bf = w1.astype(jnp.bfloat16)
    b1_f32 = b1.astype(jnp.float32)

    flops = 2 * M_pad * HIDDEN * MID + 2 * M_pad * MID * OUT_PAD
    bytes_accessed = (M_pad * HIDDEN * 2          # x (bf16)
                      + HIDDEN * MID * 2          # w1 (bf16)
                      + MID * 4                   # b1 (f32)
                      + MID * OUT_PAD * 2         # w2 (bf16)
                      + OUT_PAD * 4               # b2 (f32)
                      + M_pad * OUT_PAD * 4)      # out (f32)

    y_pad = pl.pallas_call(
        _head_kernel,
        out_shape=jax.ShapeDtypeStruct((M_pad, OUT_PAD), jnp.float32),
        grid=(num_tiles,),
        in_specs=[
            pl.BlockSpec((tm, HIDDEN), lambda i: (i, 0)),       # x tile streams
            pl.BlockSpec((HIDDEN, MID), lambda i: (0, 0)),      # weights resident
            pl.BlockSpec((1, MID), lambda i: (0, 0)),
            pl.BlockSpec((MID, OUT_PAD), lambda i: (0, 0)),
            pl.BlockSpec((1, OUT_PAD), lambda i: (0, 0)),
        ],
        out_specs=pl.BlockSpec((tm, OUT_PAD), lambda i: (i, 0)),
        compiler_params=pltpu.CompilerParams(
            dimension_semantics=("parallel",),
            vmem_limit_bytes=32 * 1024 * 1024,
        ),
        cost_estimate=pl.CostEstimate(
            flops=flops, transcendentals=0, bytes_accessed=bytes_accessed),
    )(x_pad, w1_bf, b1_f32, w2_pad, b2_pad)

    return y_pad[:M, :OUT]


def t5linear_forward(input_ids, emb_table, w1, b1, w2, b2):
    """Full forward: embed -> drop last token -> fused MLP head in Pallas."""
    # Stand-in for the T5 encoder: deterministic embedding lookup (JAX glue).
    emb = emb_table[input_ids]          # (B, S, 1024)
    emb = emb[:, :-1, :]                # emb[:, :-1, :]  -> (B, S-1, 1024)
    B, Sm1, H = emb.shape
    x_flat = emb.reshape(B * Sm1, H)
    y_flat = t5linear_head(x_flat, w1, b1, w2, b2)   # (B*(S-1), 3)
    return y_flat.reshape(B, Sm1, OUT)


if __name__ == "__main__":
    key = jax.random.PRNGKey(0)
    k_emb, k_w1, k_b1, k_w2, k_b2, k_ids = jax.random.split(key, 6)

    B, S = 2, 8
    VOCAB = 32  # small synthetic vocab

    # Deterministic synthetic parameters.
    emb_table = jax.random.normal(k_emb, (VOCAB, HIDDEN), dtype=jnp.float32) * 0.02
    w1 = jax.random.normal(k_w1, (HIDDEN, MID), dtype=jnp.float32) * (1.0 / HIDDEN ** 0.5)
    b1 = jax.random.normal(k_b1, (1, MID), dtype=jnp.float32) * 0.01
    w2 = jax.random.normal(k_w2, (MID, OUT), dtype=jnp.float32) * (1.0 / MID ** 0.5)
    b2 = jax.random.normal(k_b2, (1, OUT), dtype=jnp.float32) * 0.01

    input_ids = jax.random.randint(k_ids, (B, S), 0, VOCAB, dtype=jnp.int32)

    out = t5linear_forward(input_ids, emb_table, w1, b1, w2, b2)
    out = jax.block_until_ready(out)

    # Reference in plain JAX with the same bf16-operand / f32-accumulate math.
    emb = emb_table[input_ids][:, :-1, :]
    x_bf = emb.astype(jnp.bfloat16)
    h_ref = jnp.dot(x_bf, w1.astype(jnp.bfloat16),
                    preferred_element_type=jnp.float32) + b1[0]
    h_ref = jnp.where(h_ref > 0, h_ref, NEG_SLOPE * h_ref)
    y_ref = jnp.dot(h_ref.astype(jnp.bfloat16), w2.astype(jnp.bfloat16),
                    preferred_element_type=jnp.float32) + b2[0]

    assert out.shape == (B, S - 1, OUT)
    assert jnp.allclose(out, y_ref, atol=1e-3, rtol=1e-3), (
        float(jnp.max(jnp.abs(out - y_ref))))

    print("KERNEL_OK")
</pallas_src>

<mosaic_0001>
module attributes {stable_mosaic.version = 11 : i64} {
  func.func @_head_kernel(%arg0: i32, %arg1: memref<512x1024xbf16, #tpu.memory_space<vmem>>, %arg2: memref<1024x512xbf16, #tpu.memory_space<vmem>>, %arg3: memref<1x512xf32, #tpu.memory_space<vmem>>, %arg4: memref<512x128xbf16, #tpu.memory_space<vmem>>, %arg5: memref<1x128xf32, #tpu.memory_space<vmem>>, %arg6: memref<512x128xf32, #tpu.memory_space<vmem>>) attributes {dimension_semantics = [#tpu.dimension_semantics<parallel>], iteration_bounds = array<i64: 1>, scalar_prefetch = 0 : i64, scratch_operands = 0 : i64, tpu.core_type = #tpu.core_type<tc>, window_params = [{transform_indices = @transform_0, window_bounds = array<i64: 512, 1024>}, {pipeline_mode = #tpu.pipeline_mode<synchronous>, transform_indices = @transform_1, window_bounds = array<i64: 1024, 512>}, {pipeline_mode = #tpu.pipeline_mode<synchronous>, transform_indices = @transform_2, window_bounds = array<i64: 1, 512>}, {pipeline_mode = #tpu.pipeline_mode<synchronous>, transform_indices = @transform_3, window_bounds = array<i64: 512, 128>}, {pipeline_mode = #tpu.pipeline_mode<synchronous>, transform_indices = @transform_4, window_bounds = array<i64: 1, 128>}, {transform_indices = @transform_5, window_bounds = array<i64: 512, 128>}]} {
    %c0 = arith.constant 0 : index
    %c0_0 = arith.constant 0 : index
    %0 = vector.load %arg1[%c0, %c0_0] : memref<512x1024xbf16, #tpu.memory_space<vmem>>, vector<512x1024xbf16>
    %c0_1 = arith.constant 0 : index
    %c0_2 = arith.constant 0 : index
    %1 = vector.load %arg2[%c0_1, %c0_2] : memref<1024x512xbf16, #tpu.memory_space<vmem>>, vector<1024x512xbf16>
    %cst = arith.constant dense<0.000000e+00> : vector<512x512xf32>
    %2 = tpu.matmul %0, %1, %cst {dimension_numbers = #tpu.dot_dimension_numbers<[1], [0], [0], [1], [0, 0, 1, 1], [], []>} : vector<512x1024xbf16>, vector<1024x512xbf16>, vector<512x512xf32> -> vector<512x512xf32>
    %c0_3 = arith.constant 0 : index
    %c0_4 = arith.constant 0 : index
    %3 = vector.load %arg3[%c0_3, %c0_4] : memref<1x512xf32, #tpu.memory_space<vmem>>, vector<1x512xf32>
    %4 = vector.broadcast %3 : vector<1x512xf32> to vector<512x512xf32>
    %5 = arith.addf %2, %4 : vector<512x512xf32>
    %cst_5 = arith.constant 0.000000e+00 : f32
    %6 = vector.broadcast %cst_5 : f32 to vector<512x512xf32>
    %7 = arith.cmpf ogt, %5, %6 : vector<512x512xf32>
    %cst_6 = arith.constant 0.00999999977 : f32
    %8 = vector.broadcast %cst_6 : f32 to vector<512x512xf32>
    %9 = arith.mulf %8, %5 : vector<512x512xf32>
    %10 = arith.select %7, %5, %9 : vector<512x512xi1>, vector<512x512xf32>
    %11 = arith.truncf %10 : vector<512x512xf32> to vector<512x512xbf16>
    %c0_7 = arith.constant 0 : index
    %c0_8 = arith.constant 0 : index
    %12 = vector.load %arg4[%c0_7, %c0_8] : memref<512x128xbf16, #tpu.memory_space<vmem>>, vector<512x128xbf16>
    %cst_9 = arith.constant dense<0.000000e+00> : vector<512x128xf32>
    %13 = tpu.matmul %11, %12, %cst_9 {dimension_numbers = #tpu.dot_dimension_numbers<[1], [0], [0], [1], [0, 0, 1, 1], [], []>} : vector<512x512xbf16>, vector<512x128xbf16>, vector<512x128xf32> -> vector<512x128xf32>
    %c0_10 = arith.constant 0 : index
    %c0_11 = arith.constant 0 : index
    %14 = vector.load %arg5[%c0_10, %c0_11] : memref<1x128xf32, #tpu.memory_space<vmem>>, vector<1x128xf32>
    %15 = vector.broadcast %14 : vector<1x128xf32> to vector<512x128xf32>
    %16 = arith.addf %13, %15 : vector<512x128xf32>
    %c0_12 = arith.constant 0 : index
    %c0_13 = arith.constant 0 : index
    %17 = vector.load %arg6[%c0_12, %c0_13] : memref<512x128xf32, #tpu.memory_space<vmem>>, vector<512x128xf32>
    tpu.vector_store %arg6[%c0_12, %c0_13], %16 {strides = array<i32>} : memref<512x128xf32, #tpu.memory_space<vmem>>, vector<512x128xf32>,
    return
  }
  func.func @transform_0(%arg0: i32) -> (i32, i32) {
    %c0_i32 = arith.constant 0 : i32
    %c0_i32_0 = arith.constant 0 : i32
    return %arg0, %c0_i32 : i32, i32
  }
  func.func @transform_1(%arg0: i32) -> (i32, i32) {
    %c0_i32 = arith.constant 0 : i32
    %c0_i32_0 = arith.constant 0 : i32
    %c0_i32_1 = arith.constant 0 : i32
    return %c0_i32, %c0_i32_0 : i32, i32
  }
  func.func @transform_2(%arg0: i32) -> (i32, i32) {
    %c0_i32 = arith.constant 0 : i32
    %c0_i32_0 = arith.constant 0 : i32
    %c0_i32_1 = arith.constant 0 : i32
    return %c0_i32, %c0_i32_0 : i32, i32
  }
  func.func @transform_3(%arg0: i32) -> (i32, i32) {
    %c0_i32 = arith.constant 0 : i32
    %c0_i32_0 = arith.constant 0 : i32
    %c0_i32_1 = arith.constant 0 : i32
    return %c0_i32, %c0_i32_0 : i32, i32
  }
  func.func @transform_4(%arg0: i32) -> (i32, i32) {
    %c0_i32 = arith.constant 0 : i32
    %c0_i32_0 = arith.constant 0 : i32
    %c0_i32_1 = arith.constant 0 : i32
    return %c0_i32, %c0_i32_0 : i32, i32
  }
  func.func @transform_5(%arg0: i32) -> (i32, i32) {
    %c0_i32 = arith.constant 0 : i32
    %c0_i32_0 = arith.constant 0 : i32
    return %arg0, %c0_i32 : i32, i32
  }
}

</mosaic_0001>

<bundles_post_ra>
// kernel: t5linear_head.1
= control target key start
LH: loop header
LB: loop body
LE: loop exit
PB: predicated region body
PF: predicated region fallthrough
CT: control target
= control target key end

     0   :  { %s14125_s1 = inlined_call_operand.vmem [shape: bf16[1024,512], index: 1, kind: input, shape index: {}]   ;;  %s14126_s0 = inlined_call_operand.vmem [shape: bf16[512,1024], index: 0, kind: input, shape index: {}]   ;;  %s14127_s3 = inlined_call_operand.vmem [shape: bf16[512,128], index: 3, kind: input, shape index: {}]   ;;  %s14128_s2 = inlined_call_operand.vmem [shape: f32[1,512], index: 2, kind: input, shape index: {}]   ;;  %s14129_s4 = inlined_call_operand.vmem [shape: f32[1,128], index: 4, kind: input, shape index: {}]   ;;  %s14130_s5 = inlined_call_operand.vmem [shape: f32[512,128], index: 5, kind: output, shape index: {}]  }
   0x1   :  { %v9506_v0 = vld [vmem:[%s14125_s1 + $0x4] ss:$16 sps:$4 sm:$0xff]   ;;  %v9510_v2 = vld [vmem:[%s14125_s1] ss:$16 sps:$4 sm:$0xff]   ;;  %v22_v49 = vld [vmem:[%s14126_s0 + $0x8] sm:$0xff] }
   0x2   :  { %v9508_v1 = vld [vmem:[%s14125_s1 + $0x204] ss:$16 sps:$4 sm:$0xff]   ;;  %3115 = vmatprep.subr.bf16.mxu1 %v9506_v0  ;;  %v9511_v3 = vld [vmem:[%s14125_s1 + $0x200] ss:$16 sps:$4 sm:$0xff]   ;;  %v26_v50 = vld [vmem:[%s14126_s0 + $0x28] sm:$0xff] }
   0x3   :  { %3468 = vmatprep.subr.bf16.mxu0 %v9508_v1  ;;  %v9512_v4 = vld [vmem:[%s14125_s1 + $0x24] ss:$16 sps:$4 sm:$0xff]   ;;  %3116 = vmatpush1.bf16.msra.mxu1 %v9510_v2  ;;  %v9516_v6 = vld [vmem:[%s14125_s1 + $0x20] ss:$16 sps:$4 sm:$0xff]   ;;  %v10118_v55 = vcombine.high %v22_v49, %v26_v50 }
   0x4   :  { %3469 = vmatpush1.bf16.msra.mxu0 %v9511_v3  ;;  %v9514_v5 = vld [vmem:[%s14125_s1 + $0x224] ss:$16 sps:$4 sm:$0xff]   ;;  %3117 = vmatprep.subr.bf16.mxu1 %v9512_v4  ;;  %v9517_v7 = vld [vmem:[%s14125_s1 + $0x220] ss:$16 sps:$4 sm:$0xff]  }
   0x5   :  { %3470 = vmatprep.subr.bf16.mxu0 %v9514_v5  ;;  %v9518_v8 = vld [vmem:[%s14125_s1 + $0x44] ss:$16 sps:$4 sm:$0xff]   ;;  %v9522_v10 = vld [vmem:[%s14125_s1 + $0x40] ss:$16 sps:$4 sm:$0xff]   ;;  %14338 = vst [vmem:[#allocation2_spill] sm:$0xff] %v10118_v55  ;;  %3500 = vmatprep.mubr.bf16.mxu0 %v10118_v55 }
   0x6   :  { %v9520_v9 = vld [vmem:[%s14125_s1 + $0x244] ss:$16 sps:$4 sm:$0xff]   ;;  %v9523_v11 = vld [vmem:[%s14125_s1 + $0x240] ss:$16 sps:$4 sm:$0xff]  }
   0x7   :  { %3118 = vmatpush1.bf16.msra.mxu1 %v9516_v6  ;;  %v9524_v12 = vld [vmem:[%s14125_s1 + $0x64] ss:$16 sps:$4 sm:$0xff]   ;;  %v9528_v14 = vld [vmem:[%s14125_s1 + $0x60] ss:$16 sps:$4 sm:$0xff]   ;;  %v9604_v6 = vld [vmem:[%s14125_s1 + $0xc] ss:$16 sps:$4 sm:$0xff]  }
   0x8   :  { %3471 = vmatpush1.bf16.msra.mxu0 %v9517_v7  ;;  %3119 = vmatprep.subr.bf16.mxu1 %v9518_v8  ;;  %v9526_v13 = vld [vmem:[%s14125_s1 + $0x264] ss:$16 sps:$4 sm:$0xff]   ;;  %v9529_v15 = vld [vmem:[%s14125_s1 + $0x260] ss:$16 sps:$4 sm:$0xff]  }
   0x9   :  { %3472 = vmatprep.subr.bf16.mxu0 %v9520_v9  ;;  %v9530_v16 = vld [vmem:[%s14125_s1 + $0x84] ss:$16 sps:$4 sm:$0xff]   ;;  %v9534_v18 = vld [vmem:[%s14125_s1 + $0x80] ss:$16 sps:$4 sm:$0xff]   ;;  %v30_v9 = vld [vmem:[%s14126_s0 + $0x48] sm:$0xff] }
   0xa   :  { %v9532_v17 = vld [vmem:[%s14125_s1 + $0x284] ss:$16 sps:$4 sm:$0xff]   ;;  %v9535_v19 = vld [vmem:[%s14125_s1 + $0x280] ss:$16 sps:$4 sm:$0xff]  }
   0xb   :  { %3120 = vmatpush1.bf16.msra.mxu1 %v9522_v10  ;;  %v9536_v20 = vld [vmem:[%s14125_s1 + $0xa4] ss:$16 sps:$4 sm:$0xff]   ;;  %v9540_v22 = vld [vmem:[%s14125_s1 + $0xa0] ss:$16 sps:$4 sm:$0xff]   ;;  %v34_v10 = vld [vmem:[%s14126_s0 + $0x68] sm:$0xff] }
   0xc   :  { %3473 = vmatpush1.bf16.msra.mxu0 %v9523_v11  ;;  %3121 = vmatprep.subr.bf16.mxu1 %v9524_v12  ;;  %v9538_v21 = vld [vmem:[%s14125_s1 + $0x2a4] ss:$16 sps:$4 sm:$0xff]   ;;  %v9541_v23 = vld [vmem:[%s14125_s1 + $0x2a0] ss:$16 sps:$4 sm:$0xff]   ;;  %v10181_v12 = vcombine.low %v22_v49, %v26_v50  ;;  %v9620_v49 = vld [vmem:[%s14125_s1 + $0xc8] ss:$16 sps:$4 sm:$0xff]  }
   0xd   :  { %3474 = vmatprep.subr.bf16.mxu0 %v9526_v13  ;;  %v9542_v24 = vld [vmem:[%s14125_s1 + $0xc4] ss:$16 sps:$4 sm:$0xff]   ;;  %v9546_v26 = vld [vmem:[%s14125_s1 + $0xc0] ss:$16 sps:$4 sm:$0xff]   ;;  %v9602_v13 = vld [vmem:[%s14125_s1 + $0x8] ss:$16 sps:$4 sm:$0xff]  }
   0xe   :  { %v9544_v25 = vld [vmem:[%s14125_s1 + $0x2c4] ss:$16 sps:$4 sm:$0xff]   ;;  %v9547_v27 = vld [vmem:[%s14125_s1 + $0x2c0] ss:$16 sps:$4 sm:$0xff]   ;;  %14339 = vst [vmem:[#allocation3_spill] sm:$0xff] %v10181_v12 }
   0xf   :  { %3122 = vmatpush1.bf16.msra.mxu1 %v9528_v14  ;;  %v9548_v28 = vld [vmem:[%s14125_s1 + $0xe4] ss:$16 sps:$4 sm:$0xff]   ;;  %v9552_v30 = vld [vmem:[%s14125_s1 + $0xe0] ss:$16 sps:$4 sm:$0xff]  }
  0x10   :  { %3475 = vmatpush1.bf16.msra.mxu0 %v9529_v15  ;;  %3123 = vmatprep.subr.bf16.mxu1 %v9530_v16  ;;  %v9550_v29 = vld [vmem:[%s14125_s1 + $0x2e4] ss:$16 sps:$4 sm:$0xff]   ;;  %v9553_v31 = vld [vmem:[%s14125_s1 + $0x2e0] ss:$16 sps:$4 sm:$0xff]   ;;  %v10188_v15 = vcombine.high %v30_v9, %v34_v10  ;;  %v9607_v16 = vld [vmem:[%s14125_s1 + $0x2c] ss:$16 sps:$4 sm:$0xff]  }
  0x11   :  { %3476 = vmatprep.subr.bf16.mxu0 %v9532_v17  ;;  %v9554_v32 = vld [vmem:[%s14125_s1 + $0x104] ss:$16 sps:$4 sm:$0xff]   ;;  %v9558_v34 = vld [vmem:[%s14125_s1 + $0x100] ss:$16 sps:$4 sm:$0xff]  }
  0x12   :  { %v9556_v33 = vld [vmem:[%s14125_s1 + $0x304] ss:$16 sps:$4 sm:$0xff]   ;;  %v9559_v35 = vld [vmem:[%s14125_s1 + $0x300] ss:$16 sps:$4 sm:$0xff]   ;;  %14340 = vst [vmem:[#allocation4_spill] sm:$0xff] %v10188_v15 }
  0x13   :  { %3124 = vmatpush1.bf16.msra.mxu1 %v9534_v18  ;;  %v9560_v36 = vld [vmem:[%s14125_s1 + $0x124] ss:$16 sps:$4 sm:$0xff]   ;;  %v9564_v38 = vld [vmem:[%s14125_s1 + $0x120] ss:$16 sps:$4 sm:$0xff]  }
  0x14   :  { %3477 = vmatpush1.bf16.msra.mxu0 %v9535_v19  ;;  %3125 = vmatprep.subr.bf16.mxu1 %v9536_v20  ;;  %v9562_v37 = vld [vmem:[%s14125_s1 + $0x324] ss:$16 sps:$4 sm:$0xff]   ;;  %v9565_v39 = vld [vmem:[%s14125_s1 + $0x320] ss:$16 sps:$4 sm:$0xff]   ;;  %v9605_v19 = vld [vmem:[%s14125_s1 + $0x28] ss:$16 sps:$4 sm:$0xff]  }
  0x15   :  { %3478 = vmatprep.subr.bf16.mxu0 %v9538_v21  ;;  %v9566_v40 = vld [vmem:[%s14125_s1 + $0x144] ss:$16 sps:$4 sm:$0xff]   ;;  %v9570_v42 = vld [vmem:[%s14125_s1 + $0x140] ss:$16 sps:$4 sm:$0xff]   ;;  %v38_v20 = vld [vmem:[%s14126_s0 + $0x88] sm:$0xff] }
  0x16   :  { %v9568_v41 = vld [vmem:[%s14125_s1 + $0x344] ss:$16 sps:$4 sm:$0xff]   ;;  %v9571_v43 = vld [vmem:[%s14125_s1 + $0x340] ss:$16 sps:$4 sm:$0xff]   ;;  %v42_v21 = vld [vmem:[%s14126_s0 + $0xa8] sm:$0xff] }
  0x17   :  { %3126 = vmatpush1.bf16.msra.mxu1 %v9540_v22  ;;  %v9572_v44 = vld [vmem:[%s14125_s1 + $0x164] ss:$16 sps:$4 sm:$0xff]   ;;  %v9576_v46 = vld [vmem:[%s14125_s1 + $0x160] ss:$16 sps:$4 sm:$0xff]   ;;  %v9610_v22 = vld [vmem:[%s14125_s1 + $0x4c] ss:$16 sps:$4 sm:$0xff]  }
  0x18   :  { %3479 = vmatpush1.bf16.msra.mxu0 %v9541_v23  ;;  %3127 = vmatprep.subr.bf16.mxu1 %v9542_v24  ;;  %v9574_v45 = vld [vmem:[%s14125_s1 + $0x364] ss:$16 sps:$4 sm:$0xff]   ;;  %v9577_v51 = vld [vmem:[%s14125_s1 + $0x360] ss:$16 sps:$4 sm:$0xff]   ;;  %v10217_v24 = vcombine.low %v30_v9, %v34_v10 }
  0x19   :  { %3480 = vmatprep.subr.bf16.mxu0 %v9544_v25  ;;  %v21_v47 = vld [vmem:[%s14126_s0] sm:$0xff] }
  0x1a   :  { %v25_v48 = vld [vmem:[%s14126_s0 + $0x20] sm:$0xff]  ;;  %14341 = vst [vmem:[#allocation5_spill] sm:$0xff] %v10217_v24 }
  0x1b   :  { %3128 = vmatpush1.bf16.msra.mxu1 %v9546_v26  ;;  %v10110_v52 = vcombine.high %v21_v47, %v25_v48  ;;  %v9578_v53 = vld [vmem:[%s14125_s1 + $0x184] ss:$16 sps:$4 sm:$0xff]   ;;  %v9582_v56 = vld [vmem:[%s14125_s1 + $0x180] ss:$16 sps:$4 sm:$0xff]   ;;  %v10179_v11 = vcombine.low %v21_v47, %v25_v48  ;;  %v10221_v26 = vcombine.high %v38_v20, %v42_v21 }
  0x1c   :  { %3481 = vmatpush1.bf16.msra.mxu0 %v9547_v27  ;;  %3129 = vmatprep.subr.bf16.mxu1 %v9548_v28  ;;  %v9580_v54 = vld [vmem:[%s14125_s1 + $0x384] ss:$16 sps:$4 sm:$0xff]   ;;  %v9583_v57 = vld [vmem:[%s14125_s1 + $0x380] ss:$16 sps:$4 sm:$0xff]   ;;  %v9608_v27 = vld [vmem:[%s14125_s1 + $0x48] ss:$16 sps:$4 sm:$0xff]  }
  0x1d   :  { %3482 = vmatprep.subr.bf16.mxu0 %v9550_v29  ;;  %3147 = vmatprep.mubr.bf16.mxu1 %v10110_v52  ;;  %v9584_v58 = vld [vmem:[%s14125_s1 + $0x1a4] ss:$16 sps:$4 sm:$0xff]   ;;  %v9588_v60 = vld [vmem:[%s14125_s1 + $0x1a0] ss:$16 sps:$4 sm:$0xff]   ;;  %14342 = vst [vmem:[#allocation6_spill] sm:$0xff] %v10221_v26 }
  0x1e   :  { %v9586_v59 = vld [vmem:[%s14125_s1 + $0x3a4] ss:$16 sps:$4 sm:$0xff]   ;;  %v9589_v61 = vld [vmem:[%s14125_s1 + $0x3a0] ss:$16 sps:$4 sm:$0xff]   ;;  %v9613_v28 = vld [vmem:[%s14125_s1 + $0x6c] ss:$16 sps:$4 sm:$0xff]  }
  0x1f   :  { %3130 = vmatpush1.bf16.msra.mxu1 %v9552_v30  ;;  %v9590_v62 = vld [vmem:[%s14125_s1 + $0x1c4] ss:$16 sps:$4 sm:$0xff]   ;;  %v9594_v0 = vld [vmem:[%s14125_s1 + $0x1c0] ss:$16 sps:$4 sm:$0xff]  }
  0x20   :  { %3483 = vmatpush1.bf16.msra.mxu0 %v9553_v31  ;;  %3131 = vmatprep.subr.bf16.mxu1 %v9554_v32  ;;  %v9592_v63 = vld [vmem:[%s14125_s1 + $0x3c4] ss:$16 sps:$4 sm:$0xff]   ;;  %v9595_v1 = vld [vmem:[%s14125_s1 + $0x3c0] ss:$16 sps:$4 sm:$0xff]   ;;  %v46_v31 = vld [vmem:[%s14126_s0 + $0xc8] sm:$0xff] }
  0x21   :  { %3484 = vmatprep.subr.bf16.mxu0 %v9556_v33  ;;  %v9596_v2 = vld [vmem:[%s14125_s1 + $0x1e4] ss:$16 sps:$4 sm:$0xff]   ;;  %v9600_v4 = vld [vmem:[%s14125_s1 + $0x1e0] ss:$16 sps:$4 sm:$0xff]   ;;  %v50_v32 = vld [vmem:[%s14126_s0 + $0xe8] sm:$0xff] }
  0x22   :  { %v9598_v3 = vld [vmem:[%s14125_s1 + $0x3e4] ss:$16 sps:$4 sm:$0xff]   ;;  %v9601_v5 = vld [vmem:[%s14125_s1 + $0x3e0] ss:$16 sps:$4 sm:$0xff]   ;;  %v9611_v33 = vld [vmem:[%s14125_s1 + $0x68] ss:$16 sps:$4 sm:$0xff]   ;;  %v10289_v48 = vcombine.low %v46_v31, %v50_v32 }
  0x23   :  { %3132 = vmatpush1.bf16.msra.mxu1 %v9558_v34  ;;  %v29_v7 = vld [vmem:[%s14126_s0 + $0x40] sm:$0xff]  ;;  %v9616_v34 = vld [vmem:[%s14125_s1 + $0x8c] ss:$16 sps:$4 sm:$0xff]  }
  0x24   :  { %3485 = vmatpush1.bf16.msra.mxu0 %v9559_v35  ;;  %3133 = vmatprep.subr.bf16.mxu1 %v9560_v36  ;;  %v33_v8 = vld [vmem:[%s14126_s0 + $0x60] sm:$0xff]  ;;  %v10253_v36 = vcombine.low %v38_v20, %v42_v21  ;;  %14345 = vst [vmem:[#allocation9_spill] sm:$0xff] %v10289_v48  ;;  %v78_v20 = vld [vmem:[%s14126_s0 + $0x1c8] sm:$0xff] }
  0x25   :  { %3486 = vmatprep.subr.bf16.mxu0 %v9562_v37  ;;  %v10186_v14 = vcombine.high %v29_v7, %v33_v8  ;;  %v37_v17 = vld [vmem:[%s14126_s0 + $0x80] sm:$0xff]  ;;  %v10215_v23 = vcombine.low %v29_v7, %v33_v8  ;;  %v9614_v37 = vld [vmem:[%s14125_s1 + $0x88] ss:$16 sps:$4 sm:$0xff]   ;;  %v9634_v8 = vld [vmem:[%s14125_s1 + $0x14c] ss:$16 sps:$4 sm:$0xff]  }
  0x26   :  { %v41_v18 = vld [vmem:[%s14126_s0 + $0xa0] sm:$0xff]  ;;  %14343 = vst [vmem:[#allocation7_spill] sm:$0xff] %v10253_v36  ;;  %v9629_v7 = vld [vmem:[%s14125_s1 + $0x128] ss:$16 sps:$4 sm:$0xff]  }
  0x27   :  { %3134 = vmatpush1.bf16.msra.mxu1 %v9564_v38  ;;  %v10219_v25 = vcombine.high %v37_v17, %v41_v18  ;;  %v45_v29 = vld [vmem:[%s14126_s0 + $0xc0] sm:$0xff]  ;;  %v10251_v35 = vcombine.low %v37_v17, %v41_v18  ;;  %v82_v21 = vld [vmem:[%s14126_s0 + $0x1e8] sm:$0xff] }
  0x28   :  { %3487 = vmatpush1.bf16.msra.mxu0 %v9565_v39  ;;  %3135 = vmatprep.subr.bf16.mxu1 %v9566_v40  ;;  %v49_v30 = vld [vmem:[%s14126_s0 + $0xe0] sm:$0xff]  ;;  %v10260_v39 = vcombine.high %v46_v31, %v50_v32  ;;  %v9619_v40 = vld [vmem:[%s14125_s1 + $0xac] ss:$16 sps:$4 sm:$0xff]   ;;  %v9635_v31 = vld [vmem:[%s14125_s1 + $0x168] ss:$16 sps:$4 sm:$0xff]  }
  0x29   :  { %3488 = vmatprep.subr.bf16.mxu0 %v9568_v41  ;;  %v10258_v38 = vcombine.high %v45_v29, %v49_v30  ;;  %v53_v41 = vld [vmem:[%s14126_s0 + $0x100] sm:$0xff]  ;;  %v10287_v47 = vcombine.low %v45_v29, %v49_v30  ;;  %v10392_v29 = vcombine.high %v78_v20, %v82_v21  ;;  %v9637_v32 = vld [vmem:[%s14125_s1 + $0x16c] ss:$16 sps:$4 sm:$0xff]  }
  0x2a   :  { %14344 = vst [vmem:[#allocation8_spill] sm:$0xff] %v10260_v39  ;;  %v77_v18 = vld [vmem:[%s14126_s0 + $0x1c0] sm:$0xff] }
  0x2b   :  { %3136 = vmatpush1.bf16.msra.mxu1 %v9570_v42  ;;  %v57_v42 = vld [vmem:[%s14126_s0 + $0x120] sm:$0xff]  ;;  %14352 = vst [vmem:[#allocation16_spill] sm:$0xff] %v10392_v29 }
  0x2c   :  { %3489 = vmatpush1.bf16.msra.mxu0 %v9571_v43  ;;  %3137 = vmatprep.subr.bf16.mxu1 %v9572_v44  ;;  %v54_v43 = vld [vmem:[%s14126_s0 + $0x108] sm:$0xff]  ;;  %v10294_v50 = vcombine.high %v53_v41, %v57_v42  ;;  %v85_v30 = vld [vmem:[%s14126_s0 + $0x200] sm:$0xff] }
  0x2d   :  { %3490 = vmatprep.subr.bf16.mxu0 %v9574_v45  ;;  %v58_v44 = vld [vmem:[%s14126_s0 + $0x128] sm:$0xff]  ;;  %v237_v55 = vld [vmem:[%s14126_s0 + $0x6c0] sm:$0xff] }
  0x2e   :  { %v9617_v45 = vld [vmem:[%s14125_s1 + $0xa8] ss:$16 sps:$4 sm:$0xff]  }
  0x2f   :  { %3138 = vmatpush1.bf16.msra.mxu1 %v9576_v46  ;;  %v9622_v46 = vld [vmem:[%s14125_s1 + $0xcc] ss:$16 sps:$4 sm:$0xff]  }
  0x30   :  { %3491 = vmatpush1.bf16.msra.mxu0 %v9577_v51  ;;  %3139 = vmatprep.subr.bf16.mxu1 %v9578_v53  ;;  %v10296_v51 = vcombine.high %v54_v43, %v58_v44  ;;  %v9625_v53 = vld [vmem:[%s14125_s1 + $0xec] ss:$16 sps:$4 sm:$0xff]  }
  0x31   :  { %3492 = vmatprep.subr.bf16.mxu0 %v9580_v54  ;;  %v61_v54 = vld [vmem:[%s14126_s0 + $0x140] sm:$0xff] }
  0x32   :  { %14346 = vst [vmem:[#allocation10_spill] sm:$0xff] %v10296_v51 }
  0x33   :  { %3140 = vmatpush1.bf16.msra.mxu1 %v9582_v56  ;;  %v65_v56 = vld [vmem:[%s14126_s0 + $0x160] sm:$0xff] }
  0x34   :  { %3493 = vmatpush1.bf16.msra.mxu0 %v9583_v57  ;;  %3141 = vmatprep.subr.bf16.mxu1 %v9584_v58  ;;  %v62_v57 = vld [vmem:[%s14126_s0 + $0x148] sm:$0xff]  ;;  %v10359_v9 = vcombine.low %v61_v54, %v65_v56 }
  0x35   :  { %3494 = vmatprep.subr.bf16.mxu0 %v9586_v59  ;;  %v66_v58 = vld [vmem:[%s14126_s0 + $0x168] sm:$0xff] }
  0x36   :  { %v9623_v59 = vld [vmem:[%s14125_s1 + $0xe8] ss:$16 sps:$4 sm:$0xff]   ;;  %v10361_v10 = vcombine.low %v62_v57, %v66_v58 }
  0x37   :  { %3142 = vmatpush1.bf16.msra.mxu1 %v9588_v60  ;;  %v9628_v60 = vld [vmem:[%s14125_s1 + $0x10c] ss:$16 sps:$4 sm:$0xff]  }
  0x38   :  { %3495 = vmatpush1.bf16.msra.mxu0 %v9589_v61  ;;  %3143 = vmatprep.subr.bf16.mxu1 %v9590_v62  ;;  %v10323_v61 = vcombine.low %v53_v41, %v57_v42  ;;  %v10325_v62 = vcombine.low %v54_v43, %v58_v44  ;;  %14349 = vst [vmem:[#allocation13_spill] sm:$0xff] %v10361_v10  ;;  %v93_v44 = vld [vmem:[%s14126_s0 + $0x240] sm:$0xff] }
  0x39   :  { %3496 = vmatprep.subr.bf16.mxu0 %v9592_v63  ;;  %v9626_v63 = vld [vmem:[%s14125_s1 + $0x108] ss:$16 sps:$4 sm:$0xff]   ;;  %v10418_v41 = vcombine.low %v78_v20, %v82_v21  ;;  %v9649_v20 = vld [vmem:[%s14125_s1 + $0x444] ss:$16 sps:$4 sm:$0xff]   ;;  %v9647_v21 = vld [vmem:[%s14125_s1 + $0x440] ss:$16 sps:$4 sm:$0xff]  }
  0x3a   :  { %14347 = vst [vmem:[#allocation11_spill] sm:$0xff] %v10325_v62 }
  0x3b   :  { %3144 = vmatpush1.bf16.msra.mxu1 %v9594_v0  ;;  %v10330_v0 = vcombine.high %v61_v54, %v65_v56  ;;  %14353 = vst [vmem:[#allocation17_spill] sm:$0xff] %v10418_v41 }
  0x3c   :  { %3497 = vmatpush1.bf16.msra.mxu0 %v9595_v1  ;;  %3145 = vmatprep.subr.bf16.mxu1 %v9596_v2  ;;  %v10332_v1 = vcombine.high %v62_v57, %v66_v58  ;;  %v9631_v2 = vld [vmem:[%s14125_s1 + $0x12c] ss:$16 sps:$4 sm:$0xff]   ;;  %v9640_v58 = vld [vmem:[%s14125_s1 + $0x404] ss:$16 sps:$4 sm:$0xff]  }
  0x3d   :  { %3498 = vmatprep.subr.bf16.mxu0 %v9598_v3  ;;  %v69_v3 = vld [vmem:[%s14126_s0 + $0x180] sm:$0xff] }
  0x3e   :  { %14348 = vst [vmem:[#allocation12_spill] sm:$0xff] %v10332_v1 }
  0x3f   :  { %3146 = vmatpush1.bf16.msra.mxu1 %v9600_v4  ;;  %v73_v4 = vld [vmem:[%s14126_s0 + $0x1a0] sm:$0xff] }
  0x40   :  { %3499 = vmatpush1.bf16.msra.mxu0 %v9601_v5  ;;  %4527 = vmatprep.subr.bf16.mxu1 %v9604_v6  ;;  %v70_v5 = vld [vmem:[%s14126_s0 + $0x188] sm:$0xff] }
  0x41   :  { %v74_v6 = vld [vmem:[%s14126_s0 + $0x1a8] sm:$0xff]  ;;  %3821 = vmatprep.subr.bf16.mxu0 %v9640_v58  ;;  %v9655_v58 = vld [vmem:[%s14125_s1 + $0x484] ss:$16 sps:$4 sm:$0xff]  }
  0x42   :  { %3148 = vmatmul.mubr.bf16.vlgmr.msra.gmra.mrb[0].mxu1 %v10179_v11  ;;  %v10368_v17 = vcombine.high %v70_v5, %v74_v6 }
  0x43   :  { %3501 = vmatmul.mubr.bf16.vlgmr.msra.gmra.mrb[0].mxu0 %v10181_v12  ;;  %4528 = vmatpush1.bf16.msra.mxu1 %v9602_v13  ;;  %v9632_v13 = vld [vmem:[%s14125_s1 + $0x148] ss:$16 sps:$4 sm:$0xff]  }
  0x44   :  { %3157 = vmatprep.mubr.bf16.mxu1 %v10186_v14  ;;  %3510 = vmatprep.mubr.bf16.mxu0 %v10188_v15  ;;  %14350 = vst [vmem:[#allocation14_spill] sm:$0xff] %v10368_v17  ;;  %v229_v15 = vld [vmem:[%s14126_s0 + $0x680] sm:$0xff] }
  0x45   :  { %4529 = vmatprep.subr.bf16.mxu1 %v9607_v16  ;;  %v10366_v16 = vcombine.high %v69_v3, %v73_v4 }
  0x47   :  { %4530 = vmatpush1.bf16.msra.mxu1 %v9605_v19  ;;  %v81_v19 = vld [vmem:[%s14126_s0 + $0x1e0] sm:$0xff] }
  0x48   :  { %4531 = vmatprep.subr.bf16.mxu1 %v9610_v22  ;;  %v10386_v22 = vcombine.low %v69_v3, %v73_v4  ;;  %v105_v3 = vld [vmem:[%s14126_s0 + $0x2a0] sm:$0xff]  ;;  %v102_v4 = vld [vmem:[%s14126_s0 + $0x288] sm:$0xff] }
  0x4a   :  { %3158 = vmatmul.mubr.bf16.gmra.mrb[4].mxu1 %v10215_v23 }
  0x4b   :  { %3511 = vmatmul.mubr.bf16.gmra.mrb[4].mxu0 %v10217_v24  ;;  %3167 = vmatprep.mubr.bf16.mxu1 %v10219_v25 }
  0x4c   :  { %3520 = vmatprep.mubr.bf16.mxu0 %v10221_v26  ;;  %4532 = vmatpush1.bf16.msra.mxu1 %v9608_v27  ;;  %v10388_v27 = vcombine.low %v70_v5, %v74_v6  ;;  %v9646_v5 = vld [vmem:[%s14125_s1 + $0x424] ss:$16 sps:$4 sm:$0xff]   ;;  %v106_v6 = vld [vmem:[%s14126_s0 + $0x2a8] sm:$0xff] }
  0x4d   :  { %4533 = vmatprep.subr.bf16.mxu1 %v9613_v28  ;;  %v10390_v28 = vcombine.high %v77_v18, %v81_v19  ;;  %v221_v26 = vld [vmem:[%s14126_s0 + $0x640] sm:$0xff] }
  0x4e   :  { %14351 = vst [vmem:[#allocation15_spill] sm:$0xff] %v10388_v27 }
  0x50   :  { %4534 = vmatpush1.bf16.msra.mxu1 %v9611_v33  ;;  %v89_v33 = vld [vmem:[%s14126_s0 + $0x220] sm:$0xff] }
  0x51   :  { %4535 = vmatprep.subr.bf16.mxu1 %v9616_v34  ;;  %v86_v34 = vld [vmem:[%s14126_s0 + $0x208] sm:$0xff]  ;;  %v10420_v42 = vcombine.high %v85_v30, %v89_v33 }
  0x52   :  { %3168 = vmatmul.mubr.bf16.gmra.mrb[8].mxu1 %v10251_v35 }
  0x53   :  { %3521 = vmatmul.mubr.bf16.gmra.mrb[8].mxu0 %v10253_v36  ;;  %3177 = vmatprep.mubr.bf16.mxu1 %v10258_v38 }
  0x54   :  { %3530 = vmatprep.mubr.bf16.mxu0 %v10260_v39  ;;  %4536 = vmatpush1.bf16.msra.mxu1 %v9614_v37  ;;  %v90_v37 = vld [vmem:[%s14126_s0 + $0x228] sm:$0xff]  ;;  %v213_v39 = vld [vmem:[%s14126_s0 + $0x600] sm:$0xff] }
  0x55   :  { %4537 = vmatprep.subr.bf16.mxu1 %v9619_v40  ;;  %v10416_v40 = vcombine.low %v77_v18, %v81_v19  ;;  %v10422_v43 = vcombine.high %v86_v34, %v90_v37  ;;  %v10442_v54 = vcombine.low %v86_v34, %v90_v37  ;;  %v10488_v19 = vcombine.high %v102_v4, %v106_v6  ;;  %v114_v34 = vld [vmem:[%s14126_s0 + $0x2e8] sm:$0xff]  ;;  %v9650_v37 = vld [vmem:[%s14125_s1 + $0x460] ss:$16 sps:$4 sm:$0xff]  }
  0x57   :  { %14354 = vst [vmem:[#allocation18_spill] sm:$0xff] %v10422_v43  ;;  %14355 = vst [vmem:[#allocation19_spill] sm:$0xff] %v10442_v54 }
  0x58   :  { %4538 = vmatpush1.bf16.msra.mxu1 %v9617_v45  ;;  %v97_v45 = vld [vmem:[%s14126_s0 + $0x260] sm:$0xff]  ;;  %14358 = vst [vmem:[#allocation22_spill] sm:$0xff] %v10488_v19 }
  0x59   :  { %4539 = vmatprep.subr.bf16.mxu1 %v9622_v46  ;;  %v94_v46 = vld [vmem:[%s14126_s0 + $0x248] sm:$0xff]  ;;  %v10444_v56 = vcombine.high %v93_v44, %v97_v45 }
  0x5a   :  { %3178 = vmatmul.mubr.bf16.gmra.mrb[12].mxu1 %v10287_v47 }
  0x5b   :  { %3531 = vmatmul.mubr.bf16.gmra.mrb[12].mxu0 %v10289_v48  ;;  %3187 = vmatprep.mubr.bf16.mxu1 %v10294_v50 }
  0x5c   :  { %3540 = vmatprep.mubr.bf16.mxu0 %v10296_v51  ;;  %4540 = vmatpush1.bf16.msra.mxu1 %v9620_v49  ;;  %v98_v49 = vld [vmem:[%s14126_s0 + $0x268] sm:$0xff]  ;;  %v205_v51 = vld [vmem:[%s14126_s0 + $0x5c0] sm:$0xff] }
  0x5d   :  { %4541 = vmatprep.subr.bf16.mxu1 %v9625_v53  ;;  %v10440_v53 = vcombine.low %v85_v30, %v89_v33  ;;  %v10446_v57 = vcombine.high %v94_v46, %v98_v49  ;;  %v109_v30 = vld [vmem:[%s14126_s0 + $0x2c0] sm:$0xff]  ;;  %v110_v33 = vld [vmem:[%s14126_s0 + $0x2c8] sm:$0xff] }
  0x5f   :  { %14356 = vst [vmem:[#allocation20_spill] sm:$0xff] %v10446_v57 }
  0x60   :  { %4542 = vmatpush1.bf16.msra.mxu1 %v9623_v59  ;;  %v9638_v59 = vld [vmem:[%s14125_s1 + $0x400] ss:$16 sps:$4 sm:$0xff]  }
  0x61   :  { %4543 = vmatprep.subr.bf16.mxu1 %v9628_v60  ;;  %v101_v60 = vld [vmem:[%s14126_s0 + $0x280] sm:$0xff]  ;;  %3822 = vmatpush1.bf16.msra.mxu0 %v9638_v59 }
  0x62   :  { %3188 = vmatmul.mubr.bf16.gmra.mrb[16].mxu1 %v10323_v61  ;;  %3823 = vmatprep.subr.bf16.mxu0 %v9646_v5  ;;  %v10486_v18 = vcombine.high %v101_v60, %v105_v3  ;;  %v9653_v59 = vld [vmem:[%s14125_s1 + $0x480] ss:$16 sps:$4 sm:$0xff]   ;;  %v122_v5 = vld [vmem:[%s14126_s0 + $0x328] sm:$0xff] }
  0x63   :  { %3541 = vmatmul.mubr.bf16.gmra.mrb[16].mxu0 %v10325_v62  ;;  %3197 = vmatprep.mubr.bf16.mxu1 %v10330_v0 }
  0x64   :  { %3550 = vmatprep.mubr.bf16.mxu0 %v10332_v1  ;;  %4544 = vmatpush1.bf16.msra.mxu1 %v9626_v63  ;;  %v9641_v63 = vld [vmem:[%s14125_s1 + $0x188] ss:$16 sps:$4 sm:$0xff]   ;;  %v197_v1 = vld [vmem:[%s14126_s0 + $0x580] sm:$0xff] }
  0x65   :  { %4545 = vmatprep.subr.bf16.mxu1 %v9631_v2  ;;  %v9643_v2 = vld [vmem:[%s14125_s1 + $0x18c] ss:$16 sps:$4 sm:$0xff]  }
  0x68   :  { %4546 = vmatpush1.bf16.msra.mxu1 %v9629_v7  ;;  %v9644_v7 = vld [vmem:[%s14125_s1 + $0x420] ss:$16 sps:$4 sm:$0xff]  }
  0x69   :  { %4547 = vmatprep.subr.bf16.mxu1 %v9634_v8  ;;  %v10482_v8 = vcombine.low %v93_v44, %v97_v45  ;;  %3824 = vmatpush1.bf16.msra.mxu0 %v9644_v7  ;;  %v10518_v44 = vcombine.low %v101_v60, %v105_v3  ;;  %v10520_v45 = vcombine.low %v102_v4, %v106_v6  ;;  %v117_v60 = vld [vmem:[%s14126_s0 + $0x300] sm:$0xff]  ;;  %v9656_v3 = vld [vmem:[%s14125_s1 + $0x1a8] ss:$16 sps:$4 sm:$0xff]   ;;  %v9658_v4 = vld [vmem:[%s14125_s1 + $0x1ac] ss:$16 sps:$4 sm:$0xff]  }
  0x6a   :  { %3198 = vmatmul.mubr.bf16.gmra.mrb[20].mxu1 %v10359_v9  ;;  %3825 = vmatprep.subr.bf16.mxu0 %v9649_v20  ;;  %v9661_v6 = vld [vmem:[%s14125_s1 + $0x4a4] ss:$16 sps:$4 sm:$0xff]   ;;  %v9659_v7 = vld [vmem:[%s14125_s1 + $0x4a0] ss:$16 sps:$4 sm:$0xff]  }
  0x6b   :  { %3551 = vmatmul.mubr.bf16.gmra.mrb[20].mxu0 %v10361_v10  ;;  %3207 = vmatprep.mubr.bf16.mxu1 %v10366_v16  ;;  %14359 = vst [vmem:[#allocation23_spill] sm:$0xff] %v10520_v45 }
  0x6c   :  { %3560 = vmatprep.mubr.bf16.mxu0 %v10368_v17  ;;  %4548 = vmatpush1.bf16.msra.mxu1 %v9632_v13  ;;  %v10484_v13 = vcombine.low %v94_v46, %v98_v49  ;;  %v10524_v49 = vcombine.high %v110_v33, %v114_v34  ;;  %v189_v17 = vld [vmem:[%s14126_s0 + $0x540] sm:$0xff] }
  0x6d   :  { %4549 = vmatprep.subr.bf16.mxu1 %v9637_v32  ;;  %v9652_v32 = vld [vmem:[%s14125_s1 + $0x464] ss:$16 sps:$4 sm:$0xff]   ;;  %3826 = vmatpush1.bf16.msra.mxu0 %v9647_v21  ;;  %v10562_v21 = vcombine.low %v110_v33, %v114_v34  ;;  %v126_v33 = vld [vmem:[%s14126_s0 + $0x348] sm:$0xff] }
  0x6e   :  { %14357 = vst [vmem:[#allocation21_spill] sm:$0xff] %v10484_v13  ;;  %3827 = vmatprep.subr.bf16.mxu0 %v9652_v32  ;;  %14360 = vst [vmem:[#allocation24_spill] sm:$0xff] %v10524_v49  ;;  %v130_v34 = vld [vmem:[%s14126_s0 + $0x368] sm:$0xff] }
  0x6f   :  { %14361 = vst [vmem:[#allocation25_spill] sm:$0xff] %v10562_v21 }
  0x70   :  { %4550 = vmatpush1.bf16.msra.mxu1 %v9635_v31  ;;  %v113_v31 = vld [vmem:[%s14126_s0 + $0x2e0] sm:$0xff] }
  0x71   :  { %4551 = vmatprep.subr.bf16.mxu1 %v9643_v2  ;;  %v10522_v46 = vcombine.high %v109_v30, %v113_v31  ;;  %3828 = vmatpush1.bf16.msra.mxu0 %v9650_v37  ;;  %v118_v2 = vld [vmem:[%s14126_s0 + $0x308] sm:$0xff]  ;;  %v10560_v20 = vcombine.low %v109_v30, %v113_v31  ;;  %v125_v30 = vld [vmem:[%s14126_s0 + $0x340] sm:$0xff] }
  0x72   :  { %3208 = vmatmul.mubr.bf16.gmra.mrb[24].mxu1 %v10386_v22  ;;  %3829 = vmatprep.subr.bf16.mxu0 %v9655_v58  ;;  %v10566_v37 = vcombine.high %v118_v2, %v122_v5  ;;  %v9664_v58 = vld [vmem:[%s14125_s1 + $0x4c4] ss:$16 sps:$4 sm:$0xff]  }
  0x73   :  { %3561 = vmatmul.mubr.bf16.gmra.mrb[24].mxu0 %v10388_v27  ;;  %3217 = vmatprep.mubr.bf16.mxu1 %v10390_v28  ;;  %v129_v31 = vld [vmem:[%s14126_s0 + $0x360] sm:$0xff] }
  0x74   :  { %3570 = vmatprep.mubr.bf16.mxu0 %v10392_v29  ;;  %4552 = vmatpush1.bf16.msra.mxu1 %v9641_v63  ;;  %v121_v63 = vld [vmem:[%s14126_s0 + $0x320] sm:$0xff]  ;;  %14362 = vst [vmem:[#allocation26_spill] sm:$0xff] %v10566_v37 }
  0x75   :  { %4553 = vmatprep.subr.bf16.mxu1 %v9658_v4  ;;  %3830 = vmatpush1.bf16.msra.mxu0 %v9653_v59  ;;  %v10564_v32 = vcombine.high %v117_v60, %v121_v63  ;;  %v9662_v59 = vld [vmem:[%s14125_s1 + $0x4c0] ss:$16 sps:$4 sm:$0xff]  }
  0x76   :  { %3831 = vmatprep.subr.bf16.mxu0 %v9661_v6  ;;  %v9665_v4 = vld [vmem:[%s14125_s1 + $0x4e0] ss:$16 sps:$4 sm:$0xff]   ;;  %v10596_v6 = vcombine.low %v117_v60, %v121_v63  ;;  %v9671_v60 = vld [vmem:[%s14125_s1 + $0x1c8] ss:$16 sps:$4 sm:$0xff]   ;;  %v9673_v63 = vld [vmem:[%s14125_s1 + $0x1cc] ss:$16 sps:$4 sm:$0xff]  }
  0x77   :  { %v181_v29 = vld [vmem:[%s14126_s0 + $0x500] sm:$0xff] }
  0x78   :  { %4554 = vmatpush1.bf16.msra.mxu1 %v9656_v3  ;;  %v9667_v3 = vld [vmem:[%s14125_s1 + $0x4e4] ss:$16 sps:$4 sm:$0xff]  }
  0x79   :  { %3832 = vmatpush1.bf16.msra.mxu0 %v9659_v7  ;;  %v10598_v7 = vcombine.low %v118_v2, %v122_v5  ;;  %v133_v2 = vld [vmem:[%s14126_s0 + $0x380] sm:$0xff]  ;;  %4555 = vmatprep.subr.bf16.mxu1 %v9673_v63 }
  0x7a   :  { %3218 = vmatmul.mubr.bf16.gmra.mrb[28].mxu1 %v10416_v40  ;;  %3833 = vmatprep.subr.bf16.mxu0 %v9664_v58  ;;  %v9670_v58 = vld [vmem:[%s14125_s1 + $0x504] ss:$16 sps:$4 sm:$0xff]  }
  0x7b   :  { %3571 = vmatmul.mubr.bf16.gmra.mrb[28].mxu0 %v10418_v41  ;;  %3227 = vmatprep.mubr.bf16.mxu1 %v10420_v42  ;;  %14363 = vst [vmem:[#allocation27_spill] sm:$0xff] %v10598_v7  ;;  %v137_v5 = vld [vmem:[%s14126_s0 + $0x3a0] sm:$0xff] }
  0x7c   :  { %3580 = vmatprep.mubr.bf16.mxu0 %v10422_v43  ;;  %4556 = vmatpush1.bf16.msra.mxu1 %v9671_v60  ;;  %v10674_v60 = vcombine.low %v133_v2, %v137_v5 }
  0x7d   :  { %3834 = vmatpush1.bf16.msra.mxu0 %v9662_v59  ;;  %v9668_v59 = vld [vmem:[%s14125_s1 + $0x500] ss:$16 sps:$4 sm:$0xff]  }
  0x7e   :  { %3835 = vmatprep.subr.bf16.mxu0 %v9667_v3  ;;  %v134_v3 = vld [vmem:[%s14126_s0 + $0x388] sm:$0xff] }
  0x81   :  { %3836 = vmatpush1.bf16.msra.mxu0 %v9665_v4  ;;  %v138_v4 = vld [vmem:[%s14126_s0 + $0x3a8] sm:$0xff] }
  0x82   :  { %3228 = vmatmul.mubr.bf16.gmra.mrb[32].mxu1 %v10440_v53  ;;  %3837 = vmatprep.subr.bf16.mxu0 %v9670_v58  ;;  %v9679_v58 = vld [vmem:[%s14125_s1 + $0x544] ss:$16 sps:$4 sm:$0xff]   ;;  %v10676_v63 = vcombine.low %v134_v3, %v138_v4 }
  0x83   :  { %3581 = vmatmul.mubr.bf16.gmra.mrb[32].mxu0 %v10442_v54  ;;  %3237 = vmatprep.mubr.bf16.mxu1 %v10444_v56 }
  0x84   :  { %3590 = vmatprep.mubr.bf16.mxu0 %v10446_v57  ;;  %14367 = vst [vmem:[#allocation31_spill] sm:$0xff] %v10676_v63 }
  0x85   :  { %3838 = vmatpush1.bf16.msra.mxu0 %v9668_v59  ;;  %v9677_v59 = vld [vmem:[%s14125_s1 + $0x540] ss:$16 sps:$4 sm:$0xff]  }
  0x8a   :  { %3238 = vmatmul.mubr.bf16.gmra.mrb[36].mxu1 %v10482_v8 }
  0x8b   :  { %3591 = vmatmul.mubr.bf16.gmra.mrb[36].mxu0 %v10484_v13  ;;  %3247 = vmatprep.mubr.bf16.mxu1 %v10486_v18  ;;  %v10644_v13 = vcombine.high %v134_v3, %v138_v4  ;;  %v149_v3 = vld [vmem:[%s14126_s0 + $0x400] sm:$0xff] }
  0x8c   :  { %3600 = vmatprep.mubr.bf16.mxu0 %v10488_v19  ;;  %v10642_v19 = vcombine.high %v133_v2, %v137_v5  ;;  %v9686_v2 = vld [vmem:[%s14125_s1 + $0x1e8] ss:$16 sps:$4 sm:$0xff]   ;;  %v9688_v5 = vld [vmem:[%s14125_s1 + $0x1ec] ss:$16 sps:$4 sm:$0xff]   ;;  %v153_v4 = vld [vmem:[%s14126_s0 + $0x420] sm:$0xff] }
  0x8d   :  { %14366 = vst [vmem:[#allocation30_spill] sm:$0xff] %v10644_v13  ;;  %4557 = vmatprep.subr.bf16.mxu1 %v9688_v5  ;;  %v10720_v43 = vcombine.high %v149_v3, %v153_v4 }
  0x8e   :  { %4558 = vmatpush1.bf16.msra.mxu1 %v9686_v2  ;;  %v10752_v2 = vcombine.low %v149_v3, %v153_v4  ;;  %v165_v3 = vld [vmem:[%s14126_s0 + $0x480] sm:$0xff] }
  0x8f   :  { %v169_v4 = vld [vmem:[%s14126_s0 + $0x4a0] sm:$0xff] }
  0x92   :  { %3248 = vmatmul.mubr.bf16.gmra.mrb[40].mxu1 %v10518_v44 }
  0x93   :  { %3601 = vmatmul.mubr.bf16.gmra.mrb[40].mxu0 %v10520_v45  ;;  %3257 = vmatprep.mubr.bf16.mxu1 %v10522_v46  ;;  %v10640_v45 = vcombine.low %v126_v33, %v130_v34 }
  0x94   :  { %3610 = vmatprep.mubr.bf16.mxu0 %v10524_v49  ;;  %v10602_v49 = vcombine.high %v126_v33, %v130_v34  ;;  %v146_v33 = vld [vmem:[%s14126_s0 + $0x3e8] sm:$0xff]  ;;  %v9682_v34 = vld [vmem:[%s14125_s1 + $0x564] ss:$16 sps:$4 sm:$0xff]  }
  0x95   :  { %14365 = vst [vmem:[#allocation29_spill] sm:$0xff] %v10640_v45 }
  0x96   :  { %14364 = vst [vmem:[#allocation28_spill] sm:$0xff] %v10602_v49 }
  0x9a   :  { %3258 = vmatmul.mubr.bf16.gmra.mrb[44].mxu1 %v10560_v20 }
  0x9b   :  { %3611 = vmatmul.mubr.bf16.gmra.mrb[44].mxu0 %v10562_v21  ;;  %3267 = vmatprep.mubr.bf16.mxu1 %v10564_v32  ;;  %v10600_v21 = vcombine.high %v125_v30, %v129_v31 }
  0x9c   :  { %3620 = vmatprep.mubr.bf16.mxu0 %v10566_v37  ;;  %v10638_v37 = vcombine.low %v125_v30, %v129_v31  ;;  %v145_v30 = vld [vmem:[%s14126_s0 + $0x3e0] sm:$0xff]  ;;  %v142_v31 = vld [vmem:[%s14126_s0 + $0x3c8] sm:$0xff] }
  0x9d   :  { %v10718_v54 = vcombine.low %v142_v31, %v146_v33 }
  0x9f   :  { %14369 = vst [vmem:[#allocation33_spill] sm:$0xff] %v10718_v54 }
  0xa2   :  { %3268 = vmatmul.mubr.bf16.gmra.mrb[48].mxu1 %v10596_v6 }
  0xa3   :  { %3621 = vmatmul.mubr.bf16.gmra.mrb[48].mxu0 %v10598_v7  ;;  %3277 = vmatprep.mubr.bf16.mxu1 %v10600_v21  ;;  %v9674_v7 = vld [vmem:[%s14125_s1 + $0x520] ss:$16 sps:$4 sm:$0xff]  }
  0xa4   :  { %3630 = vmatprep.mubr.bf16.mxu0 %v10602_v49  ;;  %v9676_v49 = vld [vmem:[%s14125_s1 + $0x524] ss:$16 sps:$4 sm:$0xff]  }
  0xa5   :  { %3839 = vmatprep.subr.bf16.mxu0 %v9676_v49  ;;  %v141_v49 = vld [vmem:[%s14126_s0 + $0x3c0] sm:$0xff] }
  0xa6   :  { %3840 = vmatpush1.bf16.msra.mxu0 %v9674_v7  ;;  %v9680_v7 = vld [vmem:[%s14125_s1 + $0x560] ss:$16 sps:$4 sm:$0xff]   ;;  %v10716_v57 = vcombine.low %v141_v49, %v145_v30 }
  0xa7   :  { %3841 = vmatprep.subr.bf16.mxu0 %v9679_v58  ;;  %v9685_v58 = vld [vmem:[%s14125_s1 + $0x584] ss:$16 sps:$4 sm:$0xff]  }
  0xaa   :  { %3278 = vmatmul.mubr.bf16.gmra.mrb[52].mxu1 %v10638_v37  ;;  %3842 = vmatpush1.bf16.msra.mxu0 %v9677_v59  ;;  %v9683_v59 = vld [vmem:[%s14125_s1 + $0x580] ss:$16 sps:$4 sm:$0xff]  }
  0xab   :  { %3631 = vmatmul.mubr.bf16.gmra.mrb[52].mxu0 %v10640_v45  ;;  %3287 = vmatprep.mubr.bf16.mxu1 %v10642_v19  ;;  %v10680_v45 = vcombine.high %v142_v31, %v146_v33  ;;  %v162_v31 = vld [vmem:[%s14126_s0 + $0x468] sm:$0xff]  ;;  %v9697_v33 = vld [vmem:[%s14125_s1 + $0x5e4] ss:$16 sps:$4 sm:$0xff]  }
  0xac   :  { %3640 = vmatprep.mubr.bf16.mxu0 %v10644_v13  ;;  %3843 = vmatprep.subr.bf16.mxu0 %v9682_v34  ;;  %v10678_v13 = vcombine.high %v141_v49, %v145_v30  ;;  %v150_v34 = vld [vmem:[%s14126_s0 + $0x408] sm:$0xff]  ;;  %v161_v49 = vld [vmem:[%s14126_s0 + $0x460] sm:$0xff] }
  0xad   :  { %14368 = vst [vmem:[#allocation32_spill] sm:$0xff] %v10680_v45  ;;  %v158_v30 = vld [vmem:[%s14126_s0 + $0x448] sm:$0xff] }
  0xae   :  { %3844 = vmatpush1.bf16.msra.mxu0 %v9680_v7  ;;  %v154_v7 = vld [vmem:[%s14126_s0 + $0x428] sm:$0xff] }
  0xaf   :  { %3845 = vmatprep.subr.bf16.mxu0 %v9685_v58  ;;  %v10722_v41 = vcombine.high %v150_v34, %v154_v7  ;;  %v9694_v58 = vld [vmem:[%s14125_s1 + $0x5c4] ss:$16 sps:$4 sm:$0xff]   ;;  %v10754_v5 = vcombine.low %v150_v34, %v154_v7  ;;  %v166_v34 = vld [vmem:[%s14126_s0 + $0x488] sm:$0xff] }
  0xb0   :  { %v170_v7 = vld [vmem:[%s14126_s0 + $0x4a8] sm:$0xff] }
  0xb1   :  { %14370 = vst [vmem:[#allocation34_spill] sm:$0xff] %v10722_v41  ;;  %14371 = vst [vmem:[#allocation35_spill] sm:$0xff] %v10754_v5 }
  0xb2   :  { %3288 = vmatmul.mubr.bf16.gmra.mrb[56].mxu1 %v10674_v60  ;;  %3846 = vmatpush1.bf16.msra.mxu0 %v9683_v59  ;;  %v9692_v59 = vld [vmem:[%s14125_s1 + $0x5c0] ss:$16 sps:$4 sm:$0xff]  }
  0xb3   :  { %3641 = vmatmul.mubr.bf16.gmra.mrb[56].mxu0 %v10676_v63  ;;  %3297 = vmatprep.mubr.bf16.mxu1 %v10678_v13  ;;  %v9689_v63 = vld [vmem:[%s14125_s1 + $0x5a0] ss:$16 sps:$4 sm:$0xff]  }
  0xb4   :  { %3650 = vmatprep.mubr.bf16.mxu0 %v10680_v45  ;;  %v9691_v45 = vld [vmem:[%s14125_s1 + $0x5a4] ss:$16 sps:$4 sm:$0xff]  }
  0xb5   :  { %3847 = vmatprep.subr.bf16.mxu0 %v9691_v45  ;;  %v157_v45 = vld [vmem:[%s14126_s0 + $0x440] sm:$0xff] }
  0xb6   :  { %3848 = vmatpush1.bf16.msra.mxu0 %v9689_v63  ;;  %v9695_v63 = vld [vmem:[%s14125_s1 + $0x5e0] ss:$16 sps:$4 sm:$0xff]  }
  0xb7   :  { %3849 = vmatprep.subr.bf16.mxu0 %v9694_v58  ;;  %v9700_v58 = vld [vmem:[%s14125_s1 + $0x20c] ss:$16 sps:$4 sm:$0xff]  }
  0xb8   :  { %4880 = vmatprep.subr.bf16.mxu1 %v9700_v58  ;;  %v173_v58 = vld [vmem:[%s14126_s0 + $0x4c0] sm:$0xff] }
  0xba   :  { %3298 = vmatmul.mubr.bf16.gmra.mrb[60].mxu1 %v10716_v57  ;;  %3850 = vmatpush1.bf16.msra.mxu0 %v9692_v59  ;;  %v10779_v59 = vcombine.low %v157_v45, %v161_v49 }
  0xbb   :  { %3651 = vmatmul.mubr.bf16.gmra.mrb[60].mxu0 %v10718_v54  ;;  %3307 = vmatprep.mubr.bf16.mxu1 %v10720_v43  ;;  %v10758_v54 = vcombine.high %v158_v30, %v162_v31 }
  0xbc   :  { %3660 = vmatprep.mubr.bf16.mxu0 %v10722_v41  ;;  %3851 = vmatprep.subr.bf16.mxu0 %v9697_v33  ;;  %v10756_v41 = vcombine.high %v157_v45, %v161_v49  ;;  %v10781_v33 = vcombine.low %v158_v30, %v162_v31  ;;  %v177_v45 = vld [vmem:[%s14126_s0 + $0x4e0] sm:$0xff]  ;;  %v174_v49 = vld [vmem:[%s14126_s0 + $0x4c8] sm:$0xff]  ;;  %v10803_v31 = vcombine.low %v165_v3, %v169_v4 }
  0xbd   :  { %14372 = vst [vmem:[#allocation36_spill] sm:$0xff] %v10758_v54  ;;  %v178_v30 = vld [vmem:[%s14126_s0 + $0x4e8] sm:$0xff] }
  0xbe   :  { %3852 = vmatpush1.bf16.msra.mxu0 %v9695_v63  ;;  %14373 = vst [vmem:[#allocation37_spill] sm:$0xff] %v10781_v33  ;;  %v10783_v63 = vcombine.high %v165_v3, %v169_v4  ;;  %v185_v3 = vld [vmem:[%s14126_s0 + $0x520] sm:$0xff]  ;;  %v182_v4 = vld [vmem:[%s14126_s0 + $0x508] sm:$0xff] }
  0xc2   :  { %3308 = vmatmul.mubr.bf16.gmra.mrb[64].mxu1 %v10752_v2 }
  0xc3   :  { %3661 = vmatmul.mubr.bf16.gmra.mrb[64].mxu0 %v10754_v5  ;;  %3317 = vmatprep.mubr.bf16.mxu1 %v10756_v41  ;;  %v10809_v5 = vcombine.high %v174_v49, %v178_v30 }
  0xc4   :  { %3670 = vmatprep.mubr.bf16.mxu0 %v10758_v54  ;;  %v10785_v54 = vcombine.high %v166_v34, %v170_v7 }
  0xc5   :  { %14376 = vst [vmem:[#allocation40_spill] sm:$0xff] %v10809_v5 }
  0xc6   :  { %14374 = vst [vmem:[#allocation38_spill] sm:$0xff] %v10785_v54 }
  0xca   :  { %3318 = vmatmul.mubr.bf16.gmra.mrb[68].mxu1 %v10779_v59 }
  0xcb   :  { %3671 = vmatmul.mubr.bf16.gmra.mrb[68].mxu0 %v10781_v33  ;;  %3327 = vmatprep.mubr.bf16.mxu1 %v10783_v63  ;;  %v10805_v33 = vcombine.low %v166_v34, %v170_v7  ;;  %v186_v34 = vld [vmem:[%s14126_s0 + $0x528] sm:$0xff]  ;;  %v10827_v7 = vcombine.low %v173_v58, %v177_v45 }
  0xcc   :  { %3680 = vmatprep.mubr.bf16.mxu0 %v10785_v54  ;;  %v10807_v54 = vcombine.high %v173_v58, %v177_v45  ;;  %v10833_v27 = vcombine.high %v182_v4, %v186_v34  ;;  %v193_v58 = vld [vmem:[%s14126_s0 + $0x560] sm:$0xff]  ;;  %v190_v45 = vld [vmem:[%s14126_s0 + $0x548] sm:$0xff] }
  0xcd   :  { %14375 = vst [vmem:[#allocation39_spill] sm:$0xff] %v10805_v33 }
  0xce   :  { %14378 = vst [vmem:[#allocation42_spill] sm:$0xff] %v10833_v27 }
  0xd2   :  { %3328 = vmatmul.mubr.bf16.gmra.mrb[72].mxu1 %v10803_v31 }
  0xd3   :  { %3681 = vmatmul.mubr.bf16.gmra.mrb[72].mxu0 %v10805_v33  ;;  %3337 = vmatprep.mubr.bf16.mxu1 %v10807_v54  ;;  %v10829_v33 = vcombine.low %v174_v49, %v178_v30  ;;  %v194_v49 = vld [vmem:[%s14126_s0 + $0x568] sm:$0xff]  ;;  %v10851_v30 = vcombine.low %v181_v29, %v185_v3 }
  0xd4   :  { %3690 = vmatprep.mubr.bf16.mxu0 %v10809_v5  ;;  %v10831_v5 = vcombine.high %v181_v29, %v185_v3  ;;  %v10857_v10 = vcombine.high %v190_v45, %v194_v49  ;;  %v201_v29 = vld [vmem:[%s14126_s0 + $0x5a0] sm:$0xff]  ;;  %v198_v3 = vld [vmem:[%s14126_s0 + $0x588] sm:$0xff] }
  0xd5   :  { %14377 = vst [vmem:[#allocation41_spill] sm:$0xff] %v10829_v33 }
  0xd6   :  { %14380 = vst [vmem:[#allocation44_spill] sm:$0xff] %v10857_v10 }
  0xda   :  { %3338 = vmatmul.mubr.bf16.gmra.mrb[76].mxu1 %v10827_v7 }
  0xdb   :  { %3691 = vmatmul.mubr.bf16.gmra.mrb[76].mxu0 %v10829_v33  ;;  %3347 = vmatprep.mubr.bf16.mxu1 %v10831_v5  ;;  %v10853_v33 = vcombine.low %v182_v4, %v186_v34  ;;  %v202_v4 = vld [vmem:[%s14126_s0 + $0x5a8] sm:$0xff]  ;;  %v10875_v34 = vcombine.low %v189_v17, %v193_v58 }
  0xdc   :  { %3700 = vmatprep.mubr.bf16.mxu0 %v10833_v27  ;;  %v10855_v27 = vcombine.high %v189_v17, %v193_v58  ;;  %v10881_v62 = vcombine.high %v198_v3, %v202_v4  ;;  %v209_v17 = vld [vmem:[%s14126_s0 + $0x5e0] sm:$0xff]  ;;  %v206_v58 = vld [vmem:[%s14126_s0 + $0x5c8] sm:$0xff] }
  0xdd   :  { %14379 = vst [vmem:[#allocation43_spill] sm:$0xff] %v10853_v33 }
  0xde   :  { %14382 = vst [vmem:[#allocation46_spill] sm:$0xff] %v10881_v62 }
  0xe2   :  { %3348 = vmatmul.mubr.bf16.gmra.mrb[80].mxu1 %v10851_v30 }
  0xe3   :  { %3701 = vmatmul.mubr.bf16.gmra.mrb[80].mxu0 %v10853_v33  ;;  %3357 = vmatprep.mubr.bf16.mxu1 %v10855_v27  ;;  %v10877_v33 = vcombine.low %v190_v45, %v194_v49  ;;  %v210_v45 = vld [vmem:[%s14126_s0 + $0x5e8] sm:$0xff]  ;;  %v10899_v49 = vcombine.low %v197_v1, %v201_v29 }
  0xe4   :  { %3710 = vmatprep.mubr.bf16.mxu0 %v10857_v10  ;;  %v10879_v10 = vcombine.high %v197_v1, %v201_v29  ;;  %v10905_v48 = vcombine.high %v206_v58, %v210_v45  ;;  %v217_v1 = vld [vmem:[%s14126_s0 + $0x620] sm:$0xff]  ;;  %v214_v29 = vld [vmem:[%s14126_s0 + $0x608] sm:$0xff] }
  0xe5   :  { %14381 = vst [vmem:[#allocation45_spill] sm:$0xff] %v10877_v33 }
  0xe6   :  { %14384 = vst [vmem:[#allocation48_spill] sm:$0xff] %v10905_v48 }
  0xea   :  { %3358 = vmatmul.mubr.bf16.gmra.mrb[84].mxu1 %v10875_v34 }
  0xeb   :  { %3711 = vmatmul.mubr.bf16.gmra.mrb[84].mxu0 %v10877_v33  ;;  %3367 = vmatprep.mubr.bf16.mxu1 %v10879_v10  ;;  %v10901_v33 = vcombine.low %v198_v3, %v202_v4  ;;  %v218_v3 = vld [vmem:[%s14126_s0 + $0x628] sm:$0xff]  ;;  %v10923_v4 = vcombine.low %v205_v51, %v209_v17 }
  0xec   :  { %3720 = vmatprep.mubr.bf16.mxu0 %v10881_v62  ;;  %v10903_v62 = vcombine.high %v205_v51, %v209_v17  ;;  %v10929_v36 = vcombine.high %v214_v29, %v218_v3  ;;  %v225_v51 = vld [vmem:[%s14126_s0 + $0x660] sm:$0xff]  ;;  %v222_v17 = vld [vmem:[%s14126_s0 + $0x648] sm:$0xff] }
  0xed   :  { %14383 = vst [vmem:[#allocation47_spill] sm:$0xff] %v10901_v33 }
  0xee   :  { %14387 = vst [vmem:[#allocation51_spill] sm:$0xff] %v10929_v36 }
  0xf2   :  { %3368 = vmatmul.mubr.bf16.gmra.mrb[88].mxu1 %v10899_v49 }
  0xf3   :  { %3721 = vmatmul.mubr.bf16.gmra.mrb[88].mxu0 %v10901_v33  ;;  %3377 = vmatprep.mubr.bf16.mxu1 %v10903_v62  ;;  %v10925_v33 = vcombine.low %v206_v58, %v210_v45  ;;  %v226_v58 = vld [vmem:[%s14126_s0 + $0x668] sm:$0xff]  ;;  %v10947_v45 = vcombine.low %v213_v39, %v217_v1 }
  0xf4   :  { %3730 = vmatprep.mubr.bf16.mxu0 %v10905_v48  ;;  %v10927_v48 = vcombine.high %v213_v39, %v217_v1  ;;  %v10953_v24 = vcombine.high %v222_v17, %v226_v58  ;;  %v233_v39 = vld [vmem:[%s14126_s0 + $0x6a0] sm:$0xff]  ;;  %v230_v1 = vld [vmem:[%s14126_s0 + $0x688] sm:$0xff] }
  0xf5   :  { %14385 = vst [vmem:[#allocation49_spill] sm:$0xff] %v10925_v33  ;;  %14388 = vst [vmem:[#allocation52_spill] sm:$0xff] %v10947_v45 }
  0xf6   :  { %14386 = vst [vmem:[#allocation50_spill] sm:$0xff] %v10927_v48  ;;  %14391 = vst [vmem:[#allocation55_spill] sm:$0xff] %v10953_v24 }
  0xfa   :  { %3378 = vmatmul.mubr.bf16.gmra.mrb[92].mxu1 %v10923_v4 }
  0xfb   :  { %3731 = vmatmul.mubr.bf16.gmra.mrb[92].mxu0 %v10925_v33  ;;  %3387 = vmatprep.mubr.bf16.mxu1 %v10927_v48  ;;  %v10949_v33 = vcombine.low %v214_v29, %v218_v3  ;;  %v234_v29 = vld [vmem:[%s14126_s0 + $0x6a8] sm:$0xff]  ;;  %v10971_v3 = vcombine.low %v221_v26, %v225_v51 }
  0xfc   :  { %3740 = vmatprep.mubr.bf16.mxu0 %v10929_v36  ;;  %v10951_v36 = vcombine.high %v221_v26, %v225_v51  ;;  %v10977_v12 = vcombine.high %v230_v1, %v234_v29  ;;  %v241_v26 = vld [vmem:[%s14126_s0 + $0x6e0] sm:$0xff]  ;;  %v238_v51 = vld [vmem:[%s14126_s0 + $0x6c8] sm:$0xff] }
  0xfd   :  { %14389 = vst [vmem:[#allocation53_spill] sm:$0xff] %v10949_v33  ;;  %14392 = vst [vmem:[#allocation56_spill] sm:$0xff] %v10971_v3 }
  0xfe   :  { %14390 = vst [vmem:[#allocation54_spill] sm:$0xff] %v10951_v36  ;;  %14395 = vst [vmem:[#allocation59_spill] sm:$0xff] %v10977_v12 }
 0x102   :  { %3388 = vmatmul.mubr.bf16.gmra.mrb[96].mxu1 %v10947_v45 }
 0x103   :  { %3741 = vmatmul.mubr.bf16.gmra.mrb[96].mxu0 %v10949_v33  ;;  %3397 = vmatprep.mubr.bf16.mxu1 %v10951_v36  ;;  %v10973_v33 = vcombine.low %v222_v17, %v226_v58  ;;  %v242_v17 = vld [vmem:[%s14126_s0 + $0x6e8] sm:$0xff]  ;;  %v10995_v58 = vcombine.low %v229_v15, %v233_v39 }
 0x104   :  { %3750 = vmatprep.mubr.bf16.mxu0 %v10953_v24  ;;  %v10975_v24 = vcombine.high %v229_v15, %v233_v39  ;;  %v249_v15 = vld [vmem:[%s14126_s0 + $0x720] sm:$0xff]  ;;  %v246_v39 = vld [vmem:[%s14126_s0 + $0x708] sm:$0xff] }
 0x105   :  { %14393 = vst [vmem:[#allocation57_spill] sm:$0xff] %v10973_v33  ;;  %14396 = vst [vmem:[#allocation60_spill] sm:$0xff] %v10995_v58 }
 0x106   :  { %14394 = vst [vmem:[#allocation58_spill] sm:$0xff] %v10975_v24 }
 0x10a   :  { %3398 = vmatmul.mubr.bf16.gmra.mrb[100].mxu1 %v10971_v3  ;;  %v245_v3 = vld [vmem:[%s14126_s0 + $0x700] sm:$0xff] }
 0x10b   :  { %3751 = vmatmul.mubr.bf16.gmra.mrb[100].mxu0 %v10973_v33  ;;  %3407 = vmatprep.mubr.bf16.mxu1 %v10975_v24  ;;  %v10997_v33 = vcombine.low %v230_v1, %v234_v29  ;;  %v11001_v24 = vcombine.high %v238_v51, %v242_v17  ;;  %v250_v1 = vld [vmem:[%s14126_s0 + $0x728] sm:$0xff]  ;;  %v11029_v36 = vcombine.high %v245_v3, %v249_v15 }
 0x10c   :  { %3760 = vmatprep.mubr.bf16.mxu0 %v10977_v12  ;;  %v10999_v12 = vcombine.high %v237_v55, %v241_v26  ;;  %v11031_v45 = vcombine.high %v246_v39, %v250_v1 }
 0x10d   :  { %14397 = vst [vmem:[#allocation61_spill] sm:$0xff] %v10997_v33  ;;  %14399 = vst [vmem:[#allocation63_spill] sm:$0xff] %v11001_v24 }
 0x10e   :  { %14398 = vst [vmem:[#allocation62_spill] sm:$0xff] %v10999_v12  ;;  %14405 = vst [vmem:[#allocation69_spill] sm:$0xff] %v11029_v36 }
 0x10f   :  { %14406 = vst [vmem:[#allocation70_spill] sm:$0xff] %v11031_v45 }
 0x112   :  { %3408 = vmatmul.mubr.bf16.gmra.mrb[104].mxu1 %v10995_v58 }
 0x113   :  { %3761 = vmatmul.mubr.bf16.gmra.mrb[104].mxu0 %v10997_v33  ;;  %3417 = vmatprep.mubr.bf16.mxu1 %v10999_v12  ;;  %v11025_v12 = vcombine.low %v238_v51, %v242_v17  ;;  %v254_v51 = vld [vmem:[%s14126_s0 + $0x748] sm:$0xff] }
 0x114   :  { %3770 = vmatprep.mubr.bf16.mxu0 %v11001_v24  ;;  %v11023_v24 = vcombine.low %v237_v55, %v241_v26  ;;  %v253_v55 = vld [vmem:[%s14126_s0 + $0x740] sm:$0xff]  ;;  %v258_v17 = vld [vmem:[%s14126_s0 + $0x768] sm:$0xff] }
 0x115   :  { %v11019_v29 = vpop.f32.mrb[0].mxu1  ;;  %14403 = vst [vmem:[#allocation67_spill] sm:$0xff] %v11025_v12  ;;  %v257_v26 = vld [vmem:[%s14126_s0 + $0x760] sm:$0xff] }
 0x116   :  { %14400 = vst [vmem:[#allocation64_spill] sm:$0xff] %v11019_v29  ;;  %v11021_v33 = vpop.f32.mrb[1].mxu1  ;;  %14402 = vst [vmem:[#allocation66_spill] sm:$0xff] %v11023_v24  ;;  %v11061_v29 = vcombine.high %v253_v55, %v257_v26 }
 0x117   :  { %14401 = vst [vmem:[#allocation65_spill] sm:$0xff] %v11021_v33  ;;  %v11027_v58 = vpop.f32.mrb[2].mxu1 }
 0x118   :  { %14404 = vst [vmem:[#allocation68_spill] sm:$0xff] %v11027_v58  ;;  %v11033_v48 = vpop.f32.mrb[3].mxu1  ;;  %v11057_v58 = vcombine.low %v246_v39, %v250_v1  ;;  %14413 = vst [vmem:[#allocation77_spill] sm:$0xff] %v11061_v29  ;;  %v262_v39 = vld [vmem:[%s14126_s0 + $0x788] sm:$0xff] }
 0x119   :  { %14407 = vst [vmem:[#allocation71_spill] sm:$0xff] %v11033_v48  ;;  %v266_v1 = vld [vmem:[%s14126_s0 + $0x7a8] sm:$0xff] }
 0x11a   :  { %3418 = vmatmul.mubr.bf16.gmra.mrb[108].mxu1 %v11023_v24  ;;  %14411 = vst [vmem:[#allocation75_spill] sm:$0xff] %v11057_v58 }
 0x11b   :  { %3771 = vmatmul.mubr.bf16.gmra.mrb[108].mxu0 %v11025_v12  ;;  %3427 = vmatprep.mubr.bf16.mxu1 %v11029_v36  ;;  %v11063_v36 = vcombine.high %v254_v51, %v258_v17 }
 0x11c   :  { %3780 = vmatprep.mubr.bf16.mxu0 %v11031_v45  ;;  %v11055_v45 = vcombine.low %v245_v3, %v249_v15  ;;  %v261_v3 = vld [vmem:[%s14126_s0 + $0x780] sm:$0xff] }
 0x11d   :  { %v11051_v12 = vpop.f32.mrb[4].mxu1  ;;  %14414 = vst [vmem:[#allocation78_spill] sm:$0xff] %v11063_v36  ;;  %v265_v15 = vld [vmem:[%s14126_s0 + $0x7a0] sm:$0xff] }
 0x11e   :  { %14408 = vst [vmem:[#allocation72_spill] sm:$0xff] %v11051_v12  ;;  %v11053_v48 = vpop.f32.mrb[5].mxu1  ;;  %14410 = vst [vmem:[#allocation74_spill] sm:$0xff] %v11055_v45  ;;  %v11093_v12 = vcombine.high %v261_v3, %v265_v15 }
 0x11f   :  { %14409 = vst [vmem:[#allocation73_spill] sm:$0xff] %v11053_v48  ;;  %v11059_v33 = vpop.f32.mrb[6].mxu1 }
 0x120   :  { %14412 = vst [vmem:[#allocation76_spill] sm:$0xff] %v11059_v33  ;;  %v11065_v24 = vpop.f32.mrb[7].mxu1  ;;  %v11089_v33 = vcombine.low %v254_v51, %v258_v17  ;;  %14421 = vst [vmem:[#allocation85_spill] sm:$0xff] %v11093_v12  ;;  %v270_v51 = vld [vmem:[%s14126_s0 + $0x7c8] sm:$0xff] }
 0x121   :  { %14415 = vst [vmem:[#allocation79_spill] sm:$0xff] %v11065_v24  ;;  %v274_v17 = vld [vmem:[%s14126_s0 + $0x7e8] sm:$0xff] }
 0x122   :  { %3428 = vmatmul.mubr.bf16.gmra.mrb[112].mxu1 %v11055_v45  ;;  %14419 = vst [vmem:[#allocation83_spill] sm:$0xff] %v11089_v33 }
 0x123   :  { %3781 = vmatmul.mubr.bf16.gmra.mrb[112].mxu0 %v11057_v58  ;;  %3437 = vmatprep.mubr.bf16.mxu1 %v11061_v29  ;;  %v11095_v29 = vcombine.high %v262_v39, %v266_v1 }
 0x124   :  { %3790 = vmatprep.mubr.bf16.mxu0 %v11063_v36  ;;  %v11087_v36 = vcombine.low %v253_v55, %v257_v26  ;;  %v269_v55 = vld [vmem:[%s14126_s0 + $0x7c0] sm:$0xff] }
 0x125   :  { %v11083_v58 = vpop.f32.mrb[8].mxu1  ;;  %14422 = vst [vmem:[#allocation86_spill] sm:$0xff] %v11095_v29  ;;  %v273_v26 = vld [vmem:[%s14126_s0 + $0x7e0] sm:$0xff] }
 0x126   :  { %14416 = vst [vmem:[#allocation80_spill] sm:$0xff] %v11083_v58  ;;  %v11085_v24 = vpop.f32.mrb[9].mxu1  ;;  %14418 = vst [vmem:[#allocation82_spill] sm:$0xff] %v11087_v36  ;;  %v11125_v58 = vcombine.high %v269_v55, %v273_v26 }
 0x127   :  { %14417 = vst [vmem:[#allocation81_spill] sm:$0xff] %v11085_v24  ;;  %v11091_v48 = vpop.f32.mrb[10].mxu1 }
 0x128   :  { %14420 = vst [vmem:[#allocation84_spill] sm:$0xff] %v11091_v48  ;;  %v11097_v45 = vpop.f32.mrb[11].mxu1  ;;  %v11121_v48 = vcombine.low %v262_v39, %v266_v1 }
 0x129   :  { %14423 = vst [vmem:[#allocation87_spill] sm:$0xff] %v11097_v45 }
 0x12a   :  { %3438 = vmatmul.mubr.bf16.gmra.mrb[116].mxu1 %v11087_v36  ;;  %14425 = vst [vmem:[#allocation89_spill] sm:$0xff] %v11121_v48 }
 0x12b   :  { %3791 = vmatmul.mubr.bf16.gmra.mrb[116].mxu0 %v11089_v33  ;;  %3447 = vmatprep.mubr.bf16.mxu1 %v11093_v12  ;;  %v11127_v12 = vcombine.high %v270_v51, %v274_v17 }
 0x12c   :  { %3800 = vmatprep.mubr.bf16.mxu0 %v11095_v29  ;;  %v11119_v29 = vcombine.low %v261_v3, %v265_v15  ;;  %v23_v3 = vld [vmem:[%s14126_s0 + $0x10] sm:$0xff] }
 0x12d   :  { %v11115_v33 = vpop.f32.mrb[12].mxu1  ;;  %14427 = vst [vmem:[#allocation91_spill] sm:$0xff] %v11127_v12  ;;  %v27_v15 = vld [vmem:[%s14126_s0 + $0x30] sm:$0xff] }
 0x12e   :  { %v11117_v45 = vpop.f32.mrb[13].mxu1 }
 0x12f   :  { %14424 = vst [vmem:[#allocation88_spill] sm:$0xff] %v11117_v45  ;;  %v11123_v24 = vpop.f32.mrb[14].mxu1  ;;  %v11151_v45 = vcombine.high %v23_v3, %v27_v15 }
 0x130   :  { %14426 = vst [vmem:[#allocation90_spill] sm:$0xff] %v11123_v24  ;;  %v11129_v36 = vpop.f32.mrb[15].mxu1  ;;  %v11147_v24 = vcombine.low %v270_v51, %v274_v17 }
 0x131   :  { %14428 = vst [vmem:[#allocation92_spill] sm:$0xff] %v11129_v36  ;;  %v11145_v36 = vcombine.low %v269_v55, %v273_v26  ;;  %14432 = vst [vmem:[#allocation96_spill] sm:$0xff] %v11151_v45  ;;  %v31_v55 = vld [vmem:[%s14126_s0 + $0x50] sm:$0xff] }
 0x132   :  { %3448 = vmatmul.mubr.bf16.gmra.mrb[120].mxu1 %v11119_v29  ;;  %14430 = vst [vmem:[#allocation94_spill] sm:$0xff] %v11147_v24  ;;  %v35_v26 = vld [vmem:[%s14126_s0 + $0x70] sm:$0xff] }
 0x133   :  { %3801 = vmatmul.mubr.bf16.gmra.mrb[120].mxu0 %v11121_v48  ;;  %3457 = vmatprep.mubr.bf16.mxu1 %v11125_v58 }
 0x134   :  { %3810 = vmatprep.mubr.bf16.mxu0 %v11127_v12 }
 0x135   :  { %v11141_v39 = vpop.f32.mrb[16].mxu1 }
 0x136   :  { %v11143_v1 = vpop.f32.mrb[17].mxu1 }
 0x137   :  { %14429 = vst [vmem:[#allocation93_spill] sm:$0xff] %v11143_v1  ;;  %v11149_v48 = vpop.f32.mrb[18].mxu1  ;;  %v9703_v1 = vld [vmem:[%s14125_s1 + $0x22c] ss:$16 sps:$4 sm:$0xff]  }
 0x138   :  { %14431 = vst [vmem:[#allocation95_spill] sm:$0xff] %v11149_v48  ;;  %v11153_v12 = vpop.f32.mrb[19].mxu1 }
 0x139   :  { %14433 = vst [vmem:[#allocation97_spill] sm:$0xff] %v11153_v12  ;;  %v11169_v12 = vcombine.low %v23_v3, %v27_v15  ;;  %v9701_v3 = vld [vmem:[%s14125_s1 + $0x228] ss:$16 sps:$4 sm:$0xff]   ;;  %v39_v15 = vld [vmem:[%s14126_s0 + $0x90] sm:$0xff] }
 0x13a   :  { %3458 = vmatmul.mubr.bf16.gmra.mrb[124].mxu1 %v11145_v36 }
 0x13b   :  { %3811 = vmatmul.mubr.bf16.gmra.mrb[124].mxu0 %v11147_v24  ;;  %4559 = vmatprep.mubr.bf16.mxu1 %v10110_v52  ;;  %14435 = vst [vmem:[#allocation99_spill] sm:$0xff] %v11169_v12  ;;  %v9698_v52 = vld [vmem:[%s14125_s1 + $0x208] ss:$16 sps:$4 sm:$0xff]  }
 0x13c   :  { %3853 = vmatprep.mubr.bf16.mxu0 %v11151_v45  ;;  %v11176_v45 = vcombine.high %v31_v55, %v35_v26 }
 0x13d   :  { %v11165_v51 = vpop.f32.mrb[20].mxu1 }
 0x13e   :  { %v11167_v17 = vpop.f32.mrb[21].mxu1  ;;  %14437 = vst [vmem:[#allocation101_spill] sm:$0xff] %v11176_v45 }
 0x13f   :  { %14434 = vst [vmem:[#allocation98_spill] sm:$0xff] %v11167_v17  ;;  %v11171_v48 = vpop.f32.mrb[22].mxu1 }
 0x140   :  { %14436 = vst [vmem:[#allocation100_spill] sm:$0xff] %v11171_v48  ;;  %v11178_v24 = vpop.f32.mrb[23].mxu1 }
 0x141   :  { %14438 = vst [vmem:[#allocation102_spill] sm:$0xff] %v11178_v24  ;;  %v43_v24 = vld [vmem:[%s14126_s0 + $0xb0] sm:$0xff] }
 0x142   :  { %4560 = vmatmul.mubr.bf16.vlgmr.msra.gmra.mrb[128].mxu1 %v10179_v11  ;;  %v9706_v11 = vld [vmem:[%s14125_s1 + $0x24c] ss:$16 sps:$4 sm:$0xff]   ;;  %v11207_v48 = vcombine.high %v39_v15, %v43_v24 }
 0x143   :  { %3854 = vmatmul.mubr.bf16.vlgmr.msra.gmra.mrb[0].mxu0 %v11169_v12  ;;  %4881 = vmatpush1.bf16.msra.mxu1 %v9698_v52  ;;  %v11203_v12 = vcombine.low %v31_v55, %v35_v26  ;;  %v47_v55 = vld [vmem:[%s14126_s0 + $0xd0] sm:$0xff] }
 0x144   :  { %3863 = vmatprep.mubr.bf16.mxu0 %v11176_v45  ;;  %4569 = vmatprep.mubr.bf16.mxu1 %v10186_v14  ;;  %14441 = vst [vmem:[#allocation105_spill] sm:$0xff] %v11207_v48  ;;  %v51_v26 = vld [vmem:[%s14126_s0 + $0xf0] sm:$0xff] }
 0x145   :  { %4882 = vmatprep.subr.bf16.mxu1 %v9703_v1  ;;  %v11199_v52 = vpop.f32.mrb[24].mxu1  ;;  %14440 = vst [vmem:[#allocation104_spill] sm:$0xff] %v11203_v12  ;;  %v9704_v1 = vld [vmem:[%s14125_s1 + $0x248] ss:$16 sps:$4 sm:$0xff]  }
 0x146   :  { %14439 = vst [vmem:[#allocation103_spill] sm:$0xff] %v11199_v52  ;;  %v11201_v45 = vpop.f32.mrb[25].mxu1  ;;  %v9709_v52 = vld [vmem:[%s14125_s1 + $0x26c] ss:$16 sps:$4 sm:$0xff]  }
 0x147   :  { %v11205_v14 = vpop.f32.mrb[26].mxu1  ;;  %4883 = vmatpush1.bf16.msra.mxu1 %v9701_v3  ;;  %v9707_v3 = vld [vmem:[%s14125_s1 + $0x268] ss:$16 sps:$4 sm:$0xff]  }
 0x148   :  { %v11209_v17 = vpop.f32.mrb[27].mxu1  ;;  %4884 = vmatprep.subr.bf16.mxu1 %v9706_v11 }
 0x149   :  { %14442 = vst [vmem:[#allocation106_spill] sm:$0xff] %v11209_v17  ;;  %v11241_v17 = vcombine.high %v47_v55, %v51_v26 }
 0x14a   :  { %4570 = vmatmul.mubr.bf16.gmra.mrb[132].mxu1 %v10215_v23  ;;  %v9712_v23 = vld [vmem:[%s14125_s1 + $0x28c] ss:$16 sps:$4 sm:$0xff]  }
 0x14b   :  { %3864 = vmatmul.mubr.bf16.gmra.mrb[4].mxu0 %v11203_v12  ;;  %4579 = vmatprep.mubr.bf16.mxu1 %v10219_v25  ;;  %14445 = vst [vmem:[#allocation109_spill] sm:$0xff] %v11241_v17 }
 0x14c   :  { %3873 = vmatprep.mubr.bf16.mxu0 %v11207_v48  ;;  %4885 = vmatpush1.bf16.msra.mxu1 %v9704_v1  ;;  %v11237_v48 = vcombine.low %v39_v15, %v43_v24  ;;  %v55_v24 = vld [vmem:[%s14126_s0 + $0x110] sm:$0xff] }
 0x14d   :  { %v11230_v11 = vpop.f32.mrb[28].mxu1  ;;  %4886 = vmatprep.subr.bf16.mxu1 %v9709_v52  ;;  %v9715_v52 = vld [vmem:[%s14125_s1 + $0x2ac] ss:$16 sps:$4 sm:$0xff]   ;;  %v59_v15 = vld [vmem:[%s14126_s0 + $0x130] sm:$0xff] }
 0x14e   :  { %14443 = vst [vmem:[#allocation107_spill] sm:$0xff] %v11230_v11  ;;  %v11235_v25 = vpop.f32.mrb[29].mxu1  ;;  %14444 = vst [vmem:[#allocation108_spill] sm:$0xff] %v11237_v48  ;;  %v9710_v11 = vld [vmem:[%s14125_s1 + $0x288] ss:$16 sps:$4 sm:$0xff]  }
 0x14f   :  { %v11239_v12 = vpop.f32.mrb[30].mxu1 }
 0x150   :  { %v11243_v1 = vpop.f32.mrb[31].mxu1  ;;  %4887 = vmatpush1.bf16.msra.mxu1 %v9707_v3  ;;  %v9713_v3 = vld [vmem:[%s14125_s1 + $0x2a8] ss:$16 sps:$4 sm:$0xff]  }
 0x151   :  { %14446 = vst [vmem:[#allocation110_spill] sm:$0xff] %v11243_v1  ;;  %4888 = vmatprep.subr.bf16.mxu1 %v9712_v23  ;;  %v11275_v1 = vcombine.high %v55_v24, %v59_v15 }
 0x152   :  { %4580 = vmatmul.mubr.bf16.gmra.mrb[136].mxu1 %v10251_v35  ;;  %v9718_v35 = vld [vmem:[%s14125_s1 + $0x2cc] ss:$16 sps:$4 sm:$0xff]  }
 0x153   :  { %3874 = vmatmul.mubr.bf16.gmra.mrb[8].mxu0 %v11237_v48  ;;  %4589 = vmatprep.mubr.bf16.mxu1 %v10258_v38  ;;  %14449 = vst [vmem:[#allocation113_spill] sm:$0xff] %v11275_v1 }
 0x154   :  { %3883 = vmatprep.mubr.bf16.mxu0 %v11241_v17  ;;  %4889 = vmatpush1.bf16.msra.mxu1 %v9710_v11  ;;  %v11271_v17 = vcombine.low %v47_v55, %v51_v26  ;;  %v63_v55 = vld [vmem:[%s14126_s0 + $0x150] sm:$0xff] }
 0x155   :  { %v11264_v23 = vpop.f32.mrb[32].mxu1  ;;  %4890 = vmatprep.subr.bf16.mxu1 %v9715_v52  ;;  %v9721_v52 = vld [vmem:[%s14125_s1 + $0x2ec] ss:$16 sps:$4 sm:$0xff]   ;;  %v67_v26 = vld [vmem:[%s14126_s0 + $0x170] sm:$0xff] }
 0x156   :  { %14447 = vst [vmem:[#allocation111_spill] sm:$0xff] %v11264_v23  ;;  %v11269_v38 = vpop.f32.mrb[33].mxu1  ;;  %14448 = vst [vmem:[#allocation112_spill] sm:$0xff] %v11271_v17  ;;  %v9716_v23 = vld [vmem:[%s14125_s1 + $0x2c8] ss:$16 sps:$4 sm:$0xff]  }
 0x157   :  { %v11273_v48 = vpop.f32.mrb[34].mxu1 }
 0x158   :  { %v11277_v11 = vpop.f32.mrb[35].mxu1  ;;  %4891 = vmatpush1.bf16.msra.mxu1 %v9713_v3  ;;  %v9719_v3 = vld [vmem:[%s14125_s1 + $0x2e8] ss:$16 sps:$4 sm:$0xff]  }
 0x159   :  { %14450 = vst [vmem:[#allocation114_spill] sm:$0xff] %v11277_v11  ;;  %4892 = vmatprep.subr.bf16.mxu1 %v9718_v35  ;;  %v11309_v11 = vcombine.high %v63_v55, %v67_v26 }
 0x15a   :  { %4590 = vmatmul.mubr.bf16.gmra.mrb[140].mxu1 %v10287_v47  ;;  %v9724_v47 = vld [vmem:[%s14125_s1 + $0x30c] ss:$16 sps:$4 sm:$0xff]  }
 0x15b   :  { %3884 = vmatmul.mubr.bf16.gmra.mrb[12].mxu0 %v11271_v17  ;;  %4599 = vmatprep.mubr.bf16.mxu1 %v10294_v50  ;;  %14453 = vst [vmem:[#allocation117_spill] sm:$0xff] %v11309_v11 }
 0x15c   :  { %3893 = vmatprep.mubr.bf16.mxu0 %v11275_v1  ;;  %4893 = vmatpush1.bf16.msra.mxu1 %v9716_v23  ;;  %v11305_v1 = vcombine.low %v55_v24, %v59_v15  ;;  %v71_v24 = vld [vmem:[%s14126_s0 + $0x190] sm:$0xff] }
 0x15d   :  { %v11298_v35 = vpop.f32.mrb[36].mxu1  ;;  %4894 = vmatprep.subr.bf16.mxu1 %v9721_v52  ;;  %v9727_v52 = vld [vmem:[%s14125_s1 + $0x32c] ss:$16 sps:$4 sm:$0xff]   ;;  %v75_v15 = vld [vmem:[%s14126_s0 + $0x1b0] sm:$0xff] }
 0x15e   :  { %14451 = vst [vmem:[#allocation115_spill] sm:$0xff] %v11298_v35  ;;  %v11303_v50 = vpop.f32.mrb[37].mxu1  ;;  %14452 = vst [vmem:[#allocation116_spill] sm:$0xff] %v11305_v1  ;;  %v9722_v35 = vld [vmem:[%s14125_s1 + $0x308] ss:$16 sps:$4 sm:$0xff]  }
 0x15f   :  { %v11307_v17 = vpop.f32.mrb[38].mxu1 }
 0x160   :  { %v11311_v23 = vpop.f32.mrb[39].mxu1  ;;  %4895 = vmatpush1.bf16.msra.mxu1 %v9719_v3  ;;  %v9725_v3 = vld [vmem:[%s14125_s1 + $0x328] ss:$16 sps:$4 sm:$0xff]  }
 0x161   :  { %14454 = vst [vmem:[#allocation118_spill] sm:$0xff] %v11311_v23  ;;  %4896 = vmatprep.subr.bf16.mxu1 %v9724_v47  ;;  %v11343_v23 = vcombine.high %v71_v24, %v75_v15 }
 0x162   :  { %4600 = vmatmul.mubr.bf16.gmra.mrb[144].mxu1 %v10323_v61  ;;  %v9730_v61 = vld [vmem:[%s14125_s1 + $0x34c] ss:$16 sps:$4 sm:$0xff]  }
 0x163   :  { %3894 = vmatmul.mubr.bf16.gmra.mrb[16].mxu0 %v11305_v1  ;;  %4609 = vmatprep.mubr.bf16.mxu1 %v10330_v0  ;;  %14456 = vst [vmem:[#allocation120_spill] sm:$0xff] %v11343_v23 }
 0x164   :  { %3903 = vmatprep.mubr.bf16.mxu0 %v11309_v11  ;;  %4897 = vmatpush1.bf16.msra.mxu1 %v9722_v35  ;;  %v11339_v11 = vcombine.low %v63_v55, %v67_v26  ;;  %v79_v55 = vld [vmem:[%s14126_s0 + $0x1d0] sm:$0xff] }
 0x165   :  { %v11332_v47 = vpop.f32.mrb[40].mxu1  ;;  %4898 = vmatprep.subr.bf16.mxu1 %v9727_v52  ;;  %v83_v26 = vld [vmem:[%s14126_s0 + $0x1f0] sm:$0xff] }
 0x166   :  { %14455 = vst [vmem:[#allocation119_spill] sm:$0xff] %v11332_v47  ;;  %v11337_v0 = vpop.f32.mrb[41].mxu1  ;;  %v9728_v47 = vld [vmem:[%s14125_s1 + $0x348] ss:$16 sps:$4 sm:$0xff]  }
 0x167   :  { %v11341_v1 = vpop.f32.mrb[42].mxu1 }
 0x168   :  { %v11345_v35 = vpop.f32.mrb[43].mxu1  ;;  %4899 = vmatpush1.bf16.msra.mxu1 %v9725_v3 }
 0x169   :  { %4900 = vmatprep.subr.bf16.mxu1 %v9730_v61  ;;  %v11364_v61 = vcombine.low %v71_v24, %v75_v15  ;;  %v87_v24 = vld [vmem:[%s14126_s0 + $0x210] sm:$0xff] }
 0x16a   :  { %4610 = vmatmul.mubr.bf16.gmra.mrb[148].mxu1 %v10359_v9 }
 0x16b   :  { %3904 = vmatmul.mubr.bf16.gmra.mrb[20].mxu0 %v11339_v11  ;;  %4619 = vmatprep.mubr.bf16.mxu1 %v10366_v16  ;;  %14458 = vst [vmem:[#allocation122_spill] sm:$0xff] %v11364_v61 }
 0x16c   :  { %3913 = vmatprep.mubr.bf16.mxu0 %v11343_v23  ;;  %4901 = vmatpush1.bf16.msra.mxu1 %v9728_v47  ;;  %v11368_v23 = vcombine.high %v79_v55, %v83_v26  ;;  %v9731_v47 = vld [vmem:[%s14125_s1 + $0x368] ss:$16 sps:$4 sm:$0xff]  }
 0x16d   :  { %v11360_v52 = vpop.f32.mrb[44].mxu1 }
 0x16e   :  { %v11362_v3 = vpop.f32.mrb[45].mxu1  ;;  %14460 = vst [vmem:[#allocation124_spill] sm:$0xff] %v11368_v23 }
 0x16f   :  { %14457 = vst [vmem:[#allocation121_spill] sm:$0xff] %v11362_v3  ;;  %v11366_v9 = vpop.f32.mrb[46].mxu1  ;;  %v9733_v3 = vld [vmem:[%s14125_s1 + $0x36c] ss:$16 sps:$4 sm:$0xff]  }
 0x170   :  { %14459 = vst [vmem:[#allocation123_spill] sm:$0xff] %v11366_v9  ;;  %v11370_v16 = vpop.f32.mrb[47].mxu1  ;;  %4902 = vmatprep.subr.bf16.mxu1 %v9733_v3  ;;  %v95_v3 = vld [vmem:[%s14126_s0 + $0x250] sm:$0xff] }
 0x171   :  { %14461 = vst [vmem:[#allocation125_spill] sm:$0xff] %v11370_v16  ;;  %4903 = vmatpush1.bf16.msra.mxu1 %v9731_v47  ;;  %v11392_v16 = vcombine.low %v79_v55, %v83_v26  ;;  %v99_v55 = vld [vmem:[%s14126_s0 + $0x270] sm:$0xff] }
 0x172   :  { %4620 = vmatmul.mubr.bf16.gmra.mrb[152].mxu1 %v10386_v22  ;;  %v91_v22 = vld [vmem:[%s14126_s0 + $0x230] sm:$0xff] }
 0x173   :  { %3914 = vmatmul.mubr.bf16.gmra.mrb[24].mxu0 %v11364_v61  ;;  %4629 = vmatprep.mubr.bf16.mxu1 %v10390_v28  ;;  %14462 = vst [vmem:[#allocation126_spill] sm:$0xff] %v11392_v16 }
 0x174   :  { %3923 = vmatprep.mubr.bf16.mxu0 %v11368_v23  ;;  %v11396_v23 = vcombine.high %v87_v24, %v91_v22 }
 0x175   :  { %v11388_v15 = vpop.f32.mrb[48].mxu1 }
 0x176   :  { %v11390_v61 = vpop.f32.mrb[49].mxu1  ;;  %14464 = vst [vmem:[#allocation128_spill] sm:$0xff] %v11396_v23 }
 0x177   :  { %v11394_v9 = vpop.f32.mrb[50].mxu1 }
 0x178   :  { %14463 = vst [vmem:[#allocation127_spill] sm:$0xff] %v11394_v9  ;;  %v11398_v28 = vpop.f32.mrb[51].mxu1  ;;  %v9734_v9 = vld [vmem:[%s14125_s1 + $0x600] ss:$16 sps:$4 sm:$0xff]  }
 0x179   :  { %14465 = vst [vmem:[#allocation129_spill] sm:$0xff] %v11398_v28  ;;  %v11414_v28 = vcombine.low %v87_v24, %v91_v22  ;;  %v9737_v24 = vld [vmem:[%s14125_s1 + $0x388] ss:$16 sps:$4 sm:$0xff]   ;;  %v9739_v22 = vld [vmem:[%s14125_s1 + $0x38c] ss:$16 sps:$4 sm:$0xff]  }
 0x17a   :  { %4630 = vmatmul.mubr.bf16.gmra.mrb[156].mxu1 %v10416_v40  ;;  %v11418_v40 = vcombine.high %v95_v3, %v99_v55  ;;  %4904 = vmatprep.subr.bf16.mxu1 %v9739_v22 }
 0x17b   :  { %3924 = vmatmul.mubr.bf16.gmra.mrb[28].mxu0 %v11392_v16  ;;  %4639 = vmatprep.mubr.bf16.mxu1 %v10420_v42  ;;  %14468 = vst [vmem:[#allocation132_spill] sm:$0xff] %v11414_v28  ;;  %v9736_v42 = vld [vmem:[%s14125_s1 + $0x604] ss:$16 sps:$4 sm:$0xff]  }
 0x17c   :  { %3933 = vmatprep.mubr.bf16.mxu0 %v11396_v23  ;;  %14470 = vst [vmem:[#allocation134_spill] sm:$0xff] %v11418_v40  ;;  %4174 = vmatprep.subr.bf16.mxu0 %v9736_v42 }
 0x17d   :  { %v11410_v26 = vpop.f32.mrb[52].mxu1  ;;  %4175 = vmatpush1.bf16.msra.mxu0 %v9734_v9  ;;  %4905 = vmatpush1.bf16.msra.mxu1 %v9737_v24  ;;  %v9745_v9 = vld [vmem:[%s14125_s1 + $0x644] ss:$16 sps:$4 sm:$0xff]   ;;  %v9743_v24 = vld [vmem:[%s14125_s1 + $0x640] ss:$16 sps:$4 sm:$0xff]  }
 0x17e   :  { %14466 = vst [vmem:[#allocation130_spill] sm:$0xff] %v11410_v26  ;;  %v11412_v47 = vpop.f32.mrb[53].mxu1 }
 0x17f   :  { %14467 = vst [vmem:[#allocation131_spill] sm:$0xff] %v11412_v47  ;;  %v11416_v16 = vpop.f32.mrb[54].mxu1  ;;  %v11454_v47 = vcombine.low %v95_v3, %v99_v55  ;;  %v115_v3 = vld [vmem:[%s14126_s0 + $0x2f0] sm:$0xff] }
 0x180   :  { %14469 = vst [vmem:[#allocation133_spill] sm:$0xff] %v11416_v16  ;;  %v11420_v23 = vpop.f32.mrb[55].mxu1  ;;  %v9748_v55 = vld [vmem:[%s14125_s1 + $0x664] ss:$16 sps:$4 sm:$0xff]  }
 0x181   :  { %14471 = vst [vmem:[#allocation135_spill] sm:$0xff] %v11420_v23  ;;  %v103_v23 = vld [vmem:[%s14126_s0 + $0x290] sm:$0xff]  ;;  %14472 = vst [vmem:[#allocation136_spill] sm:$0xff] %v11454_v47 }
 0x182   :  { %4640 = vmatmul.mubr.bf16.gmra.mrb[160].mxu1 %v10440_v53  ;;  %v107_v53 = vld [vmem:[%s14126_s0 + $0x2b0] sm:$0xff] }
 0x183   :  { %3934 = vmatmul.mubr.bf16.gmra.mrb[32].mxu0 %v11414_v28  ;;  %4649 = vmatprep.mubr.bf16.mxu1 %v10444_v56  ;;  %v9742_v28 = vld [vmem:[%s14125_s1 + $0x624] ss:$16 sps:$4 sm:$0xff]   ;;  %v9740_v56 = vld [vmem:[%s14125_s1 + $0x620] ss:$16 sps:$4 sm:$0xff]   ;;  %v11458_v42 = vcombine.high %v103_v23, %v107_v53 }
 0x184   :  { %3943 = vmatprep.mubr.bf16.mxu0 %v11418_v40  ;;  %4176 = vmatprep.subr.bf16.mxu0 %v9742_v28  ;;  %v111_v28 = vld [vmem:[%s14126_s0 + $0x2d0] sm:$0xff] }
 0x185   :  { %v11447_v16 = vpop.f32.mrb[56].mxu1  ;;  %14474 = vst [vmem:[#allocation138_spill] sm:$0xff] %v11458_v42  ;;  %4177 = vmatpush1.bf16.msra.mxu0 %v9740_v56 }
 0x186   :  { %v11452_v40 = vpop.f32.mrb[57].mxu1  ;;  %4178 = vmatprep.subr.bf16.mxu0 %v9745_v9 }
 0x187   :  { %v11456_v26 = vpop.f32.mrb[58].mxu1 }
 0x188   :  { %14473 = vst [vmem:[#allocation137_spill] sm:$0xff] %v11456_v26  ;;  %v11460_v22 = vpop.f32.mrb[59].mxu1 }
 0x189   :  { %14475 = vst [vmem:[#allocation139_spill] sm:$0xff] %v11460_v22  ;;  %4179 = vmatpush1.bf16.msra.mxu0 %v9743_v24  ;;  %v11492_v22 = vcombine.high %v111_v28, %v115_v3  ;;  %v9749_v24 = vld [vmem:[%s14125_s1 + $0x680] ss:$16 sps:$4 sm:$0xff]  }
 0x18a   :  { %4650 = vmatmul.mubr.bf16.gmra.mrb[164].mxu1 %v10482_v8  ;;  %v9746_v8 = vld [vmem:[%s14125_s1 + $0x660] ss:$16 sps:$4 sm:$0xff]   ;;  %4180 = vmatprep.subr.bf16.mxu0 %v9748_v55  ;;  %v9757_v55 = vld [vmem:[%s14125_s1 + $0x6a4] ss:$16 sps:$4 sm:$0xff]  }
 0x18b   :  { %3944 = vmatmul.mubr.bf16.gmra.mrb[36].mxu0 %v11454_v47  ;;  %4659 = vmatprep.mubr.bf16.mxu1 %v10486_v18  ;;  %14480 = vst [vmem:[#allocation144_spill] sm:$0xff] %v11492_v22 }
 0x18c   :  { %3953 = vmatprep.mubr.bf16.mxu0 %v11458_v42  ;;  %v11488_v42 = vcombine.low %v103_v23, %v107_v53  ;;  %v9752_v23 = vld [vmem:[%s14125_s1 + $0x3a8] ss:$16 sps:$4 sm:$0xff]   ;;  %v9754_v53 = vld [vmem:[%s14125_s1 + $0x3ac] ss:$16 sps:$4 sm:$0xff]  }
 0x18d   :  { %v11481_v56 = vpop.f32.mrb[60].mxu1  ;;  %4181 = vmatpush1.bf16.msra.mxu0 %v9746_v8  ;;  %v123_v8 = vld [vmem:[%s14126_s0 + $0x330] sm:$0xff]  ;;  %4906 = vmatprep.subr.bf16.mxu1 %v9754_v53 }
 0x18e   :  { %14476 = vst [vmem:[#allocation140_spill] sm:$0xff] %v11481_v56  ;;  %v11486_v18 = vpop.f32.mrb[61].mxu1  ;;  %14478 = vst [vmem:[#allocation142_spill] sm:$0xff] %v11488_v42  ;;  %v9751_v56 = vld [vmem:[%s14125_s1 + $0x684] ss:$16 sps:$4 sm:$0xff]   ;;  %4907 = vmatpush1.bf16.msra.mxu1 %v9752_v23 }
 0x18f   :  { %14477 = vst [vmem:[#allocation141_spill] sm:$0xff] %v11486_v18  ;;  %v11490_v47 = vpop.f32.mrb[62].mxu1  ;;  %4182 = vmatprep.subr.bf16.mxu0 %v9751_v56  ;;  %v9760_v56 = vld [vmem:[%s14125_s1 + $0x6c4] ss:$16 sps:$4 sm:$0xff]  }
 0x190   :  { %14479 = vst [vmem:[#allocation143_spill] sm:$0xff] %v11490_v47  ;;  %v11494_v9 = vpop.f32.mrb[63].mxu1  ;;  %v131_v23 = vld [vmem:[%s14126_s0 + $0x370] sm:$0xff] }
 0x191   :  { %14481 = vst [vmem:[#allocation145_spill] sm:$0xff] %v11494_v9  ;;  %4183 = vmatpush1.bf16.msra.mxu0 %v9749_v24  ;;  %v11528_v9 = vcombine.low %v111_v28, %v115_v3  ;;  %v9758_v24 = vld [vmem:[%s14125_s1 + $0x6c0] ss:$16 sps:$4 sm:$0xff]   ;;  %v9763_v28 = vld [vmem:[%s14125_s1 + $0x6e4] ss:$16 sps:$4 sm:$0xff]  }
 0x192   :  { %4660 = vmatmul.mubr.bf16.gmra.mrb[168].mxu1 %v10518_v44  ;;  %v119_v44 = vld [vmem:[%s14126_s0 + $0x310] sm:$0xff]  ;;  %4184 = vmatprep.subr.bf16.mxu0 %v9757_v55 }
 0x193   :  { %3954 = vmatmul.mubr.bf16.gmra.mrb[40].mxu0 %v11488_v42  ;;  %4669 = vmatprep.mubr.bf16.mxu1 %v10522_v46  ;;  %v9755_v46 = vld [vmem:[%s14125_s1 + $0x6a0] ss:$16 sps:$4 sm:$0xff]   ;;  %14482 = vst [vmem:[#allocation146_spill] sm:$0xff] %v11528_v9  ;;  %v11532_v18 = vcombine.high %v119_v44, %v123_v8 }
 0x194   :  { %3963 = vmatprep.mubr.bf16.mxu0 %v11492_v22  ;;  %v127_v3 = vld [vmem:[%s14126_s0 + $0x350] sm:$0xff] }
 0x195   :  { %v11521_v42 = vpop.f32.mrb[64].mxu1  ;;  %14483 = vst [vmem:[#allocation147_spill] sm:$0xff] %v11532_v18  ;;  %4185 = vmatpush1.bf16.msra.mxu0 %v9755_v46  ;;  %v11562_v46 = vcombine.low %v119_v44, %v123_v8  ;;  %v9767_v44 = vld [vmem:[%s14125_s1 + $0x3c8] ss:$16 sps:$4 sm:$0xff]   ;;  %v9769_v8 = vld [vmem:[%s14125_s1 + $0x3cc] ss:$16 sps:$4 sm:$0xff]  }
 0x196   :  { %v11526_v22 = vpop.f32.mrb[65].mxu1  ;;  %4186 = vmatprep.subr.bf16.mxu0 %v9760_v56  ;;  %v9766_v56 = vld [vmem:[%s14125_s1 + $0x704] ss:$16 sps:$4 sm:$0xff]   ;;  %4908 = vmatprep.subr.bf16.mxu1 %v9769_v8 }
 0x197   :  { %v11530_v47 = vpop.f32.mrb[66].mxu1  ;;  %14486 = vst [vmem:[#allocation150_spill] sm:$0xff] %v11562_v46  ;;  %4909 = vmatpush1.bf16.msra.mxu1 %v9767_v44  ;;  %v147_v44 = vld [vmem:[%s14126_s0 + $0x3f0] sm:$0xff] }
 0x198   :  { %v11534_v26 = vpop.f32.mrb[67].mxu1 }
 0x199   :  { %4187 = vmatpush1.bf16.msra.mxu0 %v9758_v24  ;;  %v9764_v24 = vld [vmem:[%s14125_s1 + $0x700] ss:$16 sps:$4 sm:$0xff]  }
 0x19a   :  { %4670 = vmatmul.mubr.bf16.gmra.mrb[172].mxu1 %v10560_v20  ;;  %v9761_v20 = vld [vmem:[%s14125_s1 + $0x6e0] ss:$16 sps:$4 sm:$0xff]   ;;  %4188 = vmatprep.subr.bf16.mxu0 %v9763_v28  ;;  %v9772_v28 = vld [vmem:[%s14125_s1 + $0x724] ss:$16 sps:$4 sm:$0xff]  }
 0x19b   :  { %3964 = vmatmul.mubr.bf16.gmra.mrb[44].mxu0 %v11528_v9  ;;  %4679 = vmatprep.mubr.bf16.mxu1 %v10564_v32 }
 0x19c   :  { %3973 = vmatprep.mubr.bf16.mxu0 %v11532_v18  ;;  %v11566_v18 = vcombine.high %v127_v3, %v131_v23 }
 0x19d   :  { %v11555_v53 = vpop.f32.mrb[68].mxu1  ;;  %4189 = vmatpush1.bf16.msra.mxu0 %v9761_v20  ;;  %v139_v20 = vld [vmem:[%s14126_s0 + $0x3b0] sm:$0xff] }
 0x19e   :  { %14484 = vst [vmem:[#allocation148_spill] sm:$0xff] %v11555_v53  ;;  %v11560_v55 = vpop.f32.mrb[69].mxu1  ;;  %14488 = vst [vmem:[#allocation152_spill] sm:$0xff] %v11566_v18  ;;  %4190 = vmatprep.subr.bf16.mxu0 %v9766_v56  ;;  %v9775_v56 = vld [vmem:[%s14125_s1 + $0x744] ss:$16 sps:$4 sm:$0xff]  }
 0x19f   :  { %14485 = vst [vmem:[#allocation149_spill] sm:$0xff] %v11560_v55  ;;  %v11564_v32 = vpop.f32.mrb[70].mxu1 }
 0x1a0   :  { %14487 = vst [vmem:[#allocation151_spill] sm:$0xff] %v11564_v32  ;;  %v11568_v9 = vpop.f32.mrb[71].mxu1 }
 0x1a1   :  { %14489 = vst [vmem:[#allocation153_spill] sm:$0xff] %v11568_v9  ;;  %4191 = vmatpush1.bf16.msra.mxu0 %v9764_v24  ;;  %v11602_v9 = vcombine.low %v127_v3, %v131_v23  ;;  %v9773_v24 = vld [vmem:[%s14125_s1 + $0x740] ss:$16 sps:$4 sm:$0xff]   ;;  %v9778_v3 = vld [vmem:[%s14125_s1 + $0x764] ss:$16 sps:$4 sm:$0xff]  }
 0x1a2   :  { %4680 = vmatmul.mubr.bf16.gmra.mrb[176].mxu1 %v10596_v6  ;;  %v135_v6 = vld [vmem:[%s14126_s0 + $0x390] sm:$0xff]  ;;  %4192 = vmatprep.subr.bf16.mxu0 %v9772_v28 }
 0x1a3   :  { %3974 = vmatmul.mubr.bf16.gmra.mrb[48].mxu0 %v11562_v46  ;;  %4689 = vmatprep.mubr.bf16.mxu1 %v10600_v21  ;;  %v9770_v21 = vld [vmem:[%s14125_s1 + $0x720] ss:$16 sps:$4 sm:$0xff]   ;;  %14490 = vst [vmem:[#allocation154_spill] sm:$0xff] %v11602_v9  ;;  %v11606_v55 = vcombine.high %v135_v6, %v139_v20 }
 0x1a4   :  { %3983 = vmatprep.mubr.bf16.mxu0 %v11566_v18  ;;  %v143_v23 = vld [vmem:[%s14126_s0 + $0x3d0] sm:$0xff] }
 0x1a5   :  { %v11595_v46 = vpop.f32.mrb[72].mxu1  ;;  %14491 = vst [vmem:[#allocation155_spill] sm:$0xff] %v11606_v55  ;;  %4193 = vmatpush1.bf16.msra.mxu0 %v9770_v21  ;;  %v11636_v21 = vcombine.low %v135_v6, %v139_v20  ;;  %v9782_v6 = vld [vmem:[%s14125_s1 + $0x3e8] ss:$16 sps:$4 sm:$0xff]   ;;  %v9784_v20 = vld [vmem:[%s14125_s1 + $0x3ec] ss:$16 sps:$4 sm:$0xff]  }
 0x1a6   :  { %v11600_v18 = vpop.f32.mrb[73].mxu1  ;;  %4194 = vmatprep.subr.bf16.mxu0 %v9775_v56  ;;  %v9781_v56 = vld [vmem:[%s14125_s1 + $0x784] ss:$16 sps:$4 sm:$0xff]   ;;  %4910 = vmatprep.subr.bf16.mxu1 %v9784_v20 }
 0x1a7   :  { %v11604_v32 = vpop.f32.mrb[74].mxu1  ;;  %14494 = vst [vmem:[#allocation158_spill] sm:$0xff] %v11636_v21  ;;  %4911 = vmatpush1.bf16.msra.mxu1 %v9782_v6  ;;  %v163_v6 = vld [vmem:[%s14126_s0 + $0x470] sm:$0xff] }
 0x1a8   :  { %v11608_v53 = vpop.f32.mrb[75].mxu1 }
 0x1a9   :  { %4195 = vmatpush1.bf16.msra.mxu0 %v9773_v24  ;;  %v9779_v24 = vld [vmem:[%s14125_s1 + $0x780] ss:$16 sps:$4 sm:$0xff]  }
 0x1aa   :  { %4690 = vmatmul.mubr.bf16.gmra.mrb[180].mxu1 %v10638_v37  ;;  %v9776_v37 = vld [vmem:[%s14125_s1 + $0x760] ss:$16 sps:$4 sm:$0xff]   ;;  %4196 = vmatprep.subr.bf16.mxu0 %v9778_v3  ;;  %v9787_v3 = vld [vmem:[%s14125_s1 + $0x7a4] ss:$16 sps:$4 sm:$0xff]  }
 0x1ab   :  { %3984 = vmatmul.mubr.bf16.gmra.mrb[52].mxu0 %v11602_v9  ;;  %4699 = vmatprep.mubr.bf16.mxu1 %v10642_v19 }
 0x1ac   :  { %3993 = vmatprep.mubr.bf16.mxu0 %v11606_v55  ;;  %v11640_v55 = vcombine.high %v143_v23, %v147_v44 }
 0x1ad   :  { %v11629_v8 = vpop.f32.mrb[76].mxu1  ;;  %4197 = vmatpush1.bf16.msra.mxu0 %v9776_v37  ;;  %v155_v37 = vld [vmem:[%s14126_s0 + $0x430] sm:$0xff] }
 0x1ae   :  { %14492 = vst [vmem:[#allocation156_spill] sm:$0xff] %v11629_v8  ;;  %v11634_v28 = vpop.f32.mrb[77].mxu1  ;;  %14496 = vst [vmem:[#allocation160_spill] sm:$0xff] %v11640_v55  ;;  %4198 = vmatprep.subr.bf16.mxu0 %v9781_v56  ;;  %v9790_v56 = vld [vmem:[%s14125_s1 + $0x7c4] ss:$16 sps:$4 sm:$0xff]  }
 0x1af   :  { %14493 = vst [vmem:[#allocation157_spill] sm:$0xff] %v11634_v28  ;;  %v11638_v19 = vpop.f32.mrb[78].mxu1 }
 0x1b0   :  { %14495 = vst [vmem:[#allocation159_spill] sm:$0xff] %v11638_v19  ;;  %v11642_v9 = vpop.f32.mrb[79].mxu1 }
 0x1b1   :  { %14497 = vst [vmem:[#allocation161_spill] sm:$0xff] %v11642_v9  ;;  %4199 = vmatpush1.bf16.msra.mxu0 %v9779_v24  ;;  %v11676_v9 = vcombine.low %v143_v23, %v147_v44  ;;  %v9788_v24 = vld [vmem:[%s14125_s1 + $0x7c0] ss:$16 sps:$4 sm:$0xff]   ;;  %v9793_v23 = vld [vmem:[%s14125_s1 + $0x7e4] ss:$16 sps:$4 sm:$0xff]  }
 0x1b2   :  { %4700 = vmatmul.mubr.bf16.gmra.mrb[184].mxu1 %v10674_v60  ;;  %v151_v60 = vld [vmem:[%s14126_s0 + $0x410] sm:$0xff]  ;;  %4200 = vmatprep.subr.bf16.mxu0 %v9787_v3 }
 0x1b3   :  { %3994 = vmatmul.mubr.bf16.gmra.mrb[56].mxu0 %v11636_v21  ;;  %4709 = vmatprep.mubr.bf16.mxu1 %v10678_v13  ;;  %v9785_v13 = vld [vmem:[%s14125_s1 + $0x7a0] ss:$16 sps:$4 sm:$0xff]   ;;  %14500 = vst [vmem:[#allocation164_spill] sm:$0xff] %v11676_v9  ;;  %v11680_v28 = vcombine.high %v151_v60, %v155_v37 }
 0x1b4   :  { %4003 = vmatprep.mubr.bf16.mxu0 %v11640_v55  ;;  %v159_v44 = vld [vmem:[%s14126_s0 + $0x450] sm:$0xff] }
 0x1b5   :  { %v11669_v21 = vpop.f32.mrb[80].mxu1  ;;  %14502 = vst [vmem:[#allocation166_spill] sm:$0xff] %v11680_v28  ;;  %4201 = vmatpush1.bf16.msra.mxu0 %v9785_v13  ;;  %v11710_v13 = vcombine.low %v151_v60, %v155_v37  ;;  %v167_v60 = vld [vmem:[%s14126_s0 + $0x490] sm:$0xff] }
 0x1b6   :  { %14498 = vst [vmem:[#allocation162_spill] sm:$0xff] %v11669_v21  ;;  %v11674_v55 = vpop.f32.mrb[81].mxu1  ;;  %4202 = vmatprep.subr.bf16.mxu0 %v9790_v56  ;;  %v9796_v56 = vld [vmem:[%s14125_s1 + $0x40c] ss:$16 sps:$4 sm:$0xff]   ;;  %v171_v37 = vld [vmem:[%s14126_s0 + $0x4b0] sm:$0xff] }
 0x1b7   :  { %14499 = vst [vmem:[#allocation163_spill] sm:$0xff] %v11674_v55  ;;  %v11678_v19 = vpop.f32.mrb[82].mxu1  ;;  %14506 = vst [vmem:[#allocation170_spill] sm:$0xff] %v11710_v13  ;;  %5233 = vmatprep.subr.bf16.mxu1 %v9796_v56  ;;  %v175_v56 = vld [vmem:[%s14126_s0 + $0x4d0] sm:$0xff] }
 0x1b8   :  { %14501 = vst [vmem:[#allocation165_spill] sm:$0xff] %v11678_v19  ;;  %v11682_v8 = vpop.f32.mrb[83].mxu1 }
 0x1b9   :  { %14503 = vst [vmem:[#allocation167_spill] sm:$0xff] %v11682_v8  ;;  %4203 = vmatpush1.bf16.msra.mxu0 %v9788_v24 }
 0x1ba   :  { %4710 = vmatmul.mubr.bf16.gmra.mrb[188].mxu1 %v10716_v57  ;;  %v9791_v57 = vld [vmem:[%s14125_s1 + $0x7e0] ss:$16 sps:$4 sm:$0xff]   ;;  %4204 = vmatprep.subr.bf16.mxu0 %v9793_v23  ;;  %v11735_v23 = vcombine.low %v159_v44, %v163_v6 }
 0x1bb   :  { %4004 = vmatmul.mubr.bf16.gmra.mrb[60].mxu0 %v11676_v9  ;;  %4719 = vmatprep.mubr.bf16.mxu1 %v10720_v43 }
 0x1bc   :  { %4013 = vmatprep.mubr.bf16.mxu0 %v11680_v28  ;;  %v11714_v28 = vcombine.high %v159_v44, %v163_v6  ;;  %14512 = vst [vmem:[#allocation176_spill] sm:$0xff] %v11735_v23  ;;  %v179_v44 = vld [vmem:[%s14126_s0 + $0x4f0] sm:$0xff] }
 0x1bd   :  { %v11703_v20 = vpop.f32.mrb[84].mxu1  ;;  %4205 = vmatpush1.bf16.msra.mxu0 %v9791_v57 }
 0x1be   :  { %14504 = vst [vmem:[#allocation168_spill] sm:$0xff] %v11703_v20  ;;  %v11708_v3 = vpop.f32.mrb[85].mxu1  ;;  %14508 = vst [vmem:[#allocation172_spill] sm:$0xff] %v11714_v28 }
 0x1bf   :  { %14505 = vst [vmem:[#allocation169_spill] sm:$0xff] %v11708_v3  ;;  %v11712_v43 = vpop.f32.mrb[86].mxu1 }
 0x1c0   :  { %14507 = vst [vmem:[#allocation171_spill] sm:$0xff] %v11712_v43  ;;  %v11716_v9 = vpop.f32.mrb[87].mxu1 }
 0x1c1   :  { %14509 = vst [vmem:[#allocation173_spill] sm:$0xff] %v11716_v9 }
 0x1c2   :  { %4720 = vmatmul.mubr.bf16.gmra.mrb[192].mxu1 %v10752_v2 }
 0x1c3   :  { %4014 = vmatmul.mubr.bf16.gmra.mrb[64].mxu0 %v11710_v13  ;;  %4729 = vmatprep.mubr.bf16.mxu1 %v10756_v41 }
 0x1c4   :  { %4023 = vmatprep.mubr.bf16.mxu0 %v11714_v28  ;;  %v11739_v28 = vcombine.high %v167_v60, %v171_v37 }
 0x1c5   :  { %v11731_v24 = vpop.f32.mrb[88].mxu1 }
 0x1c6   :  { %14510 = vst [vmem:[#allocation174_spill] sm:$0xff] %v11731_v24  ;;  %v11733_v2 = vpop.f32.mrb[89].mxu1  ;;  %14514 = vst [vmem:[#allocation178_spill] sm:$0xff] %v11739_v28 }
 0x1c7   :  { %14511 = vst [vmem:[#allocation175_spill] sm:$0xff] %v11733_v2  ;;  %v11737_v57 = vpop.f32.mrb[90].mxu1 }
 0x1c8   :  { %14513 = vst [vmem:[#allocation177_spill] sm:$0xff] %v11737_v57  ;;  %v11741_v41 = vpop.f32.mrb[91].mxu1 }
 0x1c9   :  { %14515 = vst [vmem:[#allocation179_spill] sm:$0xff] %v11741_v41  ;;  %v11757_v41 = vcombine.low %v167_v60, %v171_v37  ;;  %v187_v60 = vld [vmem:[%s14126_s0 + $0x530] sm:$0xff] }
 0x1ca   :  { %4730 = vmatmul.mubr.bf16.gmra.mrb[196].mxu1 %v10779_v59  ;;  %v11761_v59 = vcombine.high %v175_v56, %v179_v44 }
 0x1cb   :  { %4024 = vmatmul.mubr.bf16.gmra.mrb[68].mxu0 %v11735_v23  ;;  %4739 = vmatprep.mubr.bf16.mxu1 %v10783_v63  ;;  %14518 = vst [vmem:[#allocation182_spill] sm:$0xff] %v11757_v41  ;;  %v183_v63 = vld [vmem:[%s14126_s0 + $0x510] sm:$0xff] }
 0x1cc   :  { %4033 = vmatprep.mubr.bf16.mxu0 %v11739_v28  ;;  %14520 = vst [vmem:[#allocation184_spill] sm:$0xff] %v11761_v59 }
 0x1cd   :  { %v11753_v6 = vpop.f32.mrb[92].mxu1 }
 0x1ce   :  { %14516 = vst [vmem:[#allocation180_spill] sm:$0xff] %v11753_v6  ;;  %v11755_v57 = vpop.f32.mrb[93].mxu1 }
 0x1cf   :  { %14517 = vst [vmem:[#allocation181_spill] sm:$0xff] %v11755_v57  ;;  %v11759_v23 = vpop.f32.mrb[94].mxu1 }
 0x1d0   :  { %14519 = vst [vmem:[#allocation183_spill] sm:$0xff] %v11759_v23  ;;  %v11763_v28 = vpop.f32.mrb[95].mxu1 }
 0x1d1   :  { %14521 = vst [vmem:[#allocation185_spill] sm:$0xff] %v11763_v28  ;;  %v11779_v28 = vcombine.low %v175_v56, %v179_v44  ;;  %v195_v56 = vld [vmem:[%s14126_s0 + $0x570] sm:$0xff] }
 0x1d2   :  { %4740 = vmatmul.mubr.bf16.gmra.mrb[200].mxu1 %v10803_v31  ;;  %v11783_v31 = vcombine.high %v183_v63, %v187_v60 }
 0x1d3   :  { %4034 = vmatmul.mubr.bf16.gmra.mrb[72].mxu0 %v11757_v41  ;;  %4749 = vmatprep.mubr.bf16.mxu1 %v10807_v54  ;;  %14524 = vst [vmem:[#allocation188_spill] sm:$0xff] %v11779_v28  ;;  %v191_v54 = vld [vmem:[%s14126_s0 + $0x550] sm:$0xff] }
 0x1d4   :  { %4043 = vmatprep.mubr.bf16.mxu0 %v11761_v59  ;;  %14526 = vst [vmem:[#allocation190_spill] sm:$0xff] %v11783_v31 }
 0x1d5   :  { %v11775_v37 = vpop.f32.mrb[96].mxu1 }
 0x1d6   :  { %14522 = vst [vmem:[#allocation186_spill] sm:$0xff] %v11775_v37  ;;  %v11777_v23 = vpop.f32.mrb[97].mxu1 }
 0x1d7   :  { %14523 = vst [vmem:[#allocation187_spill] sm:$0xff] %v11777_v23  ;;  %v11781_v41 = vpop.f32.mrb[98].mxu1 }
 0x1d8   :  { %14525 = vst [vmem:[#allocation189_spill] sm:$0xff] %v11781_v41  ;;  %v11785_v59 = vpop.f32.mrb[99].mxu1 }
 0x1d9   :  { %14527 = vst [vmem:[#allocation191_spill] sm:$0xff] %v11785_v59  ;;  %v11801_v59 = vcombine.low %v183_v63, %v187_v60  ;;  %v203_v63 = vld [vmem:[%s14126_s0 + $0x5b0] sm:$0xff] }
 0x1da   :  { %4750 = vmatmul.mubr.bf16.gmra.mrb[204].mxu1 %v10827_v7  ;;  %v11805_v7 = vcombine.high %v191_v54, %v195_v56 }
 0x1db   :  { %4044 = vmatmul.mubr.bf16.gmra.mrb[76].mxu0 %v11779_v28  ;;  %4759 = vmatprep.mubr.bf16.mxu1 %v10831_v5  ;;  %14530 = vst [vmem:[#allocation194_spill] sm:$0xff] %v11801_v59  ;;  %v199_v5 = vld [vmem:[%s14126_s0 + $0x590] sm:$0xff] }
 0x1dc   :  { %4053 = vmatprep.mubr.bf16.mxu0 %v11783_v31  ;;  %14532 = vst [vmem:[#allocation196_spill] sm:$0xff] %v11805_v7 }
 0x1dd   :  { %v11797_v44 = vpop.f32.mrb[100].mxu1 }
 0x1de   :  { %14528 = vst [vmem:[#allocation192_spill] sm:$0xff] %v11797_v44  ;;  %v11799_v41 = vpop.f32.mrb[101].mxu1 }
 0x1df   :  { %14529 = vst [vmem:[#allocation193_spill] sm:$0xff] %v11799_v41  ;;  %v11803_v28 = vpop.f32.mrb[102].mxu1 }
 0x1e0   :  { %14531 = vst [vmem:[#allocation195_spill] sm:$0xff] %v11803_v28  ;;  %v11807_v31 = vpop.f32.mrb[103].mxu1 }
 0x1e1   :  { %14533 = vst [vmem:[#allocation197_spill] sm:$0xff] %v11807_v31  ;;  %v11823_v31 = vcombine.low %v191_v54, %v195_v56  ;;  %v211_v54 = vld [vmem:[%s14126_s0 + $0x5f0] sm:$0xff] }
 0x1e2   :  { %4760 = vmatmul.mubr.bf16.gmra.mrb[208].mxu1 %v10851_v30  ;;  %v11827_v30 = vcombine.high %v199_v5, %v203_v63 }
 0x1e3   :  { %4054 = vmatmul.mubr.bf16.gmra.mrb[80].mxu0 %v11801_v59  ;;  %4769 = vmatprep.mubr.bf16.mxu1 %v10855_v27  ;;  %14536 = vst [vmem:[#allocation200_spill] sm:$0xff] %v11823_v31  ;;  %v207_v27 = vld [vmem:[%s14126_s0 + $0x5d0] sm:$0xff] }
 0x1e4   :  { %4063 = vmatprep.mubr.bf16.mxu0 %v11805_v7  ;;  %14538 = vst [vmem:[#allocation202_spill] sm:$0xff] %v11827_v30 }
 0x1e5   :  { %v11819_v60 = vpop.f32.mrb[104].mxu1 }
 0x1e6   :  { %14534 = vst [vmem:[#allocation198_spill] sm:$0xff] %v11819_v60  ;;  %v11821_v28 = vpop.f32.mrb[105].mxu1 }
 0x1e7   :  { %14535 = vst [vmem:[#allocation199_spill] sm:$0xff] %v11821_v28  ;;  %v11825_v59 = vpop.f32.mrb[106].mxu1 }
 0x1e8   :  { %14537 = vst [vmem:[#allocation201_spill] sm:$0xff] %v11825_v59  ;;  %v11829_v7 = vpop.f32.mrb[107].mxu1 }
 0x1e9   :  { %14539 = vst [vmem:[#allocation203_spill] sm:$0xff] %v11829_v7  ;;  %v11845_v7 = vcombine.low %v199_v5, %v203_v63  ;;  %v219_v5 = vld [vmem:[%s14126_s0 + $0x630] sm:$0xff] }
 0x1ea   :  { %4770 = vmatmul.mubr.bf16.gmra.mrb[212].mxu1 %v10875_v34  ;;  %v11849_v34 = vcombine.high %v207_v27, %v211_v54 }
 0x1eb   :  { %4064 = vmatmul.mubr.bf16.gmra.mrb[84].mxu0 %v11823_v31  ;;  %4779 = vmatprep.mubr.bf16.mxu1 %v10879_v10  ;;  %14542 = vst [vmem:[#allocation206_spill] sm:$0xff] %v11845_v7  ;;  %v215_v10 = vld [vmem:[%s14126_s0 + $0x610] sm:$0xff] }
 0x1ec   :  { %4073 = vmatprep.mubr.bf16.mxu0 %v11827_v30  ;;  %14544 = vst [vmem:[#allocation208_spill] sm:$0xff] %v11849_v34 }
 0x1ed   :  { %v11841_v56 = vpop.f32.mrb[108].mxu1 }
 0x1ee   :  { %14540 = vst [vmem:[#allocation204_spill] sm:$0xff] %v11841_v56  ;;  %v11843_v59 = vpop.f32.mrb[109].mxu1 }
 0x1ef   :  { %14541 = vst [vmem:[#allocation205_spill] sm:$0xff] %v11843_v59  ;;  %v11847_v31 = vpop.f32.mrb[110].mxu1 }
 0x1f0   :  { %14543 = vst [vmem:[#allocation207_spill] sm:$0xff] %v11847_v31  ;;  %v11851_v30 = vpop.f32.mrb[111].mxu1 }
 0x1f1   :  { %14545 = vst [vmem:[#allocation209_spill] sm:$0xff] %v11851_v30  ;;  %v11867_v30 = vcombine.low %v207_v27, %v211_v54  ;;  %v227_v27 = vld [vmem:[%s14126_s0 + $0x670] sm:$0xff] }
 0x1f2   :  { %4780 = vmatmul.mubr.bf16.gmra.mrb[216].mxu1 %v10899_v49  ;;  %v11871_v49 = vcombine.high %v215_v10, %v219_v5 }
 0x1f3   :  { %4074 = vmatmul.mubr.bf16.gmra.mrb[88].mxu0 %v11845_v7  ;;  %4789 = vmatprep.mubr.bf16.mxu1 %v10903_v62  ;;  %14548 = vst [vmem:[#allocation212_spill] sm:$0xff] %v11867_v30  ;;  %v14552_v62 = vld [vmem:[#allocation50_spill] sm:$0xff] }
 0x1f4   :  { %4083 = vmatprep.mubr.bf16.mxu0 %v11849_v34  ;;  %14550 = vst [vmem:[#allocation214_spill] sm:$0xff] %v11871_v49 }
 0x1f5   :  { %v11863_v63 = vpop.f32.mrb[112].mxu1 }
 0x1f6   :  { %14546 = vst [vmem:[#allocation210_spill] sm:$0xff] %v11863_v63  ;;  %v11865_v31 = vpop.f32.mrb[113].mxu1  ;;  %v14560_v63 = vld [vmem:[#allocation54_spill] sm:$0xff] }
 0x1f7   :  { %14547 = vst [vmem:[#allocation211_spill] sm:$0xff] %v11865_v31  ;;  %v11869_v7 = vpop.f32.mrb[114].mxu1  ;;  %v223_v31 = vld [vmem:[%s14126_s0 + $0x650] sm:$0xff] }
 0x1f8   :  { %14549 = vst [vmem:[#allocation213_spill] sm:$0xff] %v11869_v7  ;;  %v11873_v34 = vpop.f32.mrb[115].mxu1 }
 0x1f9   :  { %14551 = vst [vmem:[#allocation215_spill] sm:$0xff] %v11873_v34  ;;  %v11889_v34 = vcombine.low %v215_v10, %v219_v5  ;;  %v235_v10 = vld [vmem:[%s14126_s0 + $0x6b0] sm:$0xff] }
 0x1fa   :  { %4790 = vmatmul.mubr.bf16.gmra.mrb[220].mxu1 %v10923_v4  ;;  %v11893_v4 = vcombine.high %v223_v31, %v227_v27 }
 0x1fb   :  { %4084 = vmatmul.mubr.bf16.gmra.mrb[92].mxu0 %v11867_v30  ;;  %4799 = vmatprep.mubr.bf16.mxu1 %v14552_v62  ;;  %14555 = vst [vmem:[#allocation217_spill] sm:$0xff] %v11889_v34  ;;  %v14559_v62 = vld [vmem:[#allocation52_spill] sm:$0xff] }
 0x1fc   :  { %4093 = vmatprep.mubr.bf16.mxu0 %v11871_v49  ;;  %14557 = vst [vmem:[#allocation219_spill] sm:$0xff] %v11893_v4 }
 0x1fd   :  { %v11885_v54 = vpop.f32.mrb[116].mxu1 }
 0x1fe   :  { %14553 = vst [vmem:[#allocation50_spill] sm:$0xff] %v11885_v54  ;;  %v11887_v7 = vpop.f32.mrb[117].mxu1  ;;  %v14568_v54 = vld [vmem:[#allocation58_spill] sm:$0xff] }
 0x1ff   :  { %14554 = vst [vmem:[#allocation216_spill] sm:$0xff] %v11887_v7  ;;  %v11891_v30 = vpop.f32.mrb[118].mxu1  ;;  %v231_v7 = vld [vmem:[%s14126_s0 + $0x690] sm:$0xff] }
 0x200   :  { %14556 = vst [vmem:[#allocation218_spill] sm:$0xff] %v11891_v30  ;;  %v11895_v49 = vpop.f32.mrb[119].mxu1 }
 0x201   :  { %14558 = vst [vmem:[#allocation220_spill] sm:$0xff] %v11895_v49  ;;  %v11911_v49 = vcombine.low %v223_v31, %v227_v27  ;;  %v243_v31 = vld [vmem:[%s14126_s0 + $0x6f0] sm:$0xff] }
 0x202   :  { %4800 = vmatmul.mubr.bf16.gmra.mrb[224].mxu1 %v14559_v62  ;;  %v11915_v62 = vcombine.high %v231_v7, %v235_v10 }
 0x203   :  { %4094 = vmatmul.mubr.bf16.gmra.mrb[96].mxu0 %v11889_v34  ;;  %4809 = vmatprep.mubr.bf16.mxu1 %v14560_v63  ;;  %14563 = vst [vmem:[#allocation221_spill] sm:$0xff] %v11911_v49  ;;  %v14567_v63 = vld [vmem:[#allocation56_spill] sm:$0xff] }
 0x204   :  { %4103 = vmatprep.mubr.bf16.mxu0 %v11893_v4  ;;  %14565 = vst [vmem:[#allocation223_spill] sm:$0xff] %v11915_v62 }
 0x205   :  { %v11907_v5 = vpop.f32.mrb[120].mxu1 }
 0x206   :  { %14561 = vst [vmem:[#allocation52_spill] sm:$0xff] %v11907_v5  ;;  %v11909_v30 = vpop.f32.mrb[121].mxu1  ;;  %v14576_v5 = vld [vmem:[#allocation62_spill] sm:$0xff] }
 0x207   :  { %14562 = vst [vmem:[#allocation54_spill] sm:$0xff] %v11909_v30  ;;  %v11913_v34 = vpop.f32.mrb[122].mxu1  ;;  %v239_v30 = vld [vmem:[%s14126_s0 + $0x6d0] sm:$0xff] }
 0x208   :  { %14564 = vst [vmem:[#allocation222_spill] sm:$0xff] %v11913_v34  ;;  %v11917_v4 = vpop.f32.mrb[123].mxu1 }
 0x209   :  { %14566 = vst [vmem:[#allocation224_spill] sm:$0xff] %v11917_v4  ;;  %v11933_v4 = vcombine.low %v231_v7, %v235_v10  ;;  %v251_v7 = vld [vmem:[%s14126_s0 + $0x730] sm:$0xff]  ;;  %v11951_v10 = vcombine.low %v239_v30, %v243_v31 }
 0x20a   :  { %4810 = vmatmul.mubr.bf16.gmra.mrb[228].mxu1 %v14567_v63  ;;  %v11937_v63 = vcombine.high %v239_v30, %v243_v31 }
 0x20b   :  { %4104 = vmatmul.mubr.bf16.gmra.mrb[100].mxu0 %v11911_v49  ;;  %4819 = vmatprep.mubr.bf16.mxu1 %v14568_v54  ;;  %14571 = vst [vmem:[#allocation225_spill] sm:$0xff] %v11933_v4  ;;  %v14575_v54 = vld [vmem:[#allocation60_spill] sm:$0xff] }
 0x20c   :  { %4113 = vmatprep.mubr.bf16.mxu0 %v11915_v62  ;;  %14573 = vst [vmem:[#allocation227_spill] sm:$0xff] %v11937_v63  ;;  %14577 = vst [vmem:[#allocation60_spill] sm:$0xff] %v11951_v10 }
 0x20d   :  { %v11929_v27 = vpop.f32.mrb[124].mxu1 }
 0x20e   :  { %14569 = vst [vmem:[#allocation56_spill] sm:$0xff] %v11929_v27  ;;  %v11931_v34 = vpop.f32.mrb[125].mxu1  ;;  %v14703_v27 = vld [vmem:[#allocation64_spill] sm:$0xff] }
 0x20f   :  { %14570 = vst [vmem:[#allocation58_spill] sm:$0xff] %v11931_v34  ;;  %v11935_v49 = vpop.f32.mrb[126].mxu1  ;;  %v247_v34 = vld [vmem:[%s14126_s0 + $0x710] sm:$0xff] }
 0x210   :  { %14572 = vst [vmem:[#allocation226_spill] sm:$0xff] %v11935_v49  ;;  %v11939_v62 = vpop.f32.mrb[127].mxu1  ;;  %v11953_v49 = vcombine.high %v247_v34, %v251_v7  ;;  %v11965_v30 = vcombine.low %v247_v34, %v251_v7 }
 0x211   :  { %14574 = vst [vmem:[#allocation228_spill] sm:$0xff] %v11939_v62  ;;  %v14702_v62 = vld [vmem:[#allocation63_spill] sm:$0xff] }
 0x212   :  { %4820 = vmatmul.mubr.bf16.gmra.mrb[232].mxu1 %v14575_v54  ;;  %14578 = vst [vmem:[#allocation62_spill] sm:$0xff] %v11953_v49  ;;  %v14580_v54 = vld [vmem:[#allocation69_spill] sm:$0xff] }
 0x213   :  { %4114 = vmatmul.mubr.bf16.gmra.mrb[104].mxu0 %v11933_v4  ;;  %4829 = vmatprep.mubr.bf16.mxu1 %v14576_v5  ;;  %v14579_v4 = vld [vmem:[#allocation66_spill] sm:$0xff]  ;;  %v255_v5 = vld [vmem:[%s14126_s0 + $0x750] sm:$0xff] }
 0x214   :  { %4123 = vmatprep.mubr.bf16.mxu0 %v11937_v63  ;;  %v259_v63 = vld [vmem:[%s14126_s0 + $0x770] sm:$0xff]  ;;  %14581 = vst [vmem:[#allocation66_spill] sm:$0xff] %v11965_v30 }
 0x215   :  { %v11967_v31 = vcombine.high %v255_v5, %v259_v63  ;;  %v11979_v34 = vcombine.low %v255_v5, %v259_v63 }
 0x217   :  { %14582 = vst [vmem:[#allocation69_spill] sm:$0xff] %v11967_v31 }
 0x21a   :  { %4830 = vmatmul.mubr.bf16.gmra.mrb[236].mxu1 %v14579_v4  ;;  %v14584_v4 = vld [vmem:[#allocation77_spill] sm:$0xff] }
 0x21b   :  { %4124 = vmatmul.mubr.bf16.gmra.mrb[108].mxu0 %v11951_v10  ;;  %4839 = vmatprep.mubr.bf16.mxu1 %v14580_v54  ;;  %v14583_v10 = vld [vmem:[#allocation74_spill] sm:$0xff]  ;;  %v263_v54 = vld [vmem:[%s14126_s0 + $0x790] sm:$0xff] }
 0x21c   :  { %4133 = vmatprep.mubr.bf16.mxu0 %v11953_v49  ;;  %v267_v49 = vld [vmem:[%s14126_s0 + $0x7b0] sm:$0xff]  ;;  %14585 = vst [vmem:[#allocation74_spill] sm:$0xff] %v11979_v34 }
 0x21d   :  { %v11981_v7 = vcombine.high %v263_v54, %v267_v49  ;;  %v11993_v63 = vcombine.low %v263_v54, %v267_v49 }
 0x21f   :  { %14586 = vst [vmem:[#allocation77_spill] sm:$0xff] %v11981_v7 }
 0x222   :  { %4840 = vmatmul.mubr.bf16.gmra.mrb[240].mxu1 %v14583_v10  ;;  %v14588_v10 = vld [vmem:[#allocation85_spill] sm:$0xff] }
 0x223   :  { %4134 = vmatmul.mubr.bf16.gmra.mrb[112].mxu0 %v11965_v30  ;;  %4849 = vmatprep.mubr.bf16.mxu1 %v14584_v4  ;;  %v14587_v30 = vld [vmem:[#allocation82_spill] sm:$0xff]  ;;  %v271_v4 = vld [vmem:[%s14126_s0 + $0x7d0] sm:$0xff] }
 0x224   :  { %4143 = vmatprep.mubr.bf16.mxu0 %v11967_v31  ;;  %v275_v31 = vld [vmem:[%s14126_s0 + $0x7f0] sm:$0xff]  ;;  %14589 = vst [vmem:[#allocation82_spill] sm:$0xff] %v11993_v63 }
 0x225   :  { %v11995_v5 = vcombine.high %v271_v4, %v275_v31  ;;  %v12007_v49 = vcombine.low %v271_v4, %v275_v31  ;;  %v9794_v4 = vld [vmem:[%s14125_s1 + $0x408] ss:$16 sps:$4 sm:$0xff]  }
 0x227   :  { %14590 = vst [vmem:[#allocation85_spill] sm:$0xff] %v11995_v5  ;;  %14591 = vst [vmem:[#allocation229_spill] sm:$0xff] %v12007_v49 }
 0x22a   :  { %4850 = vmatmul.mubr.bf16.gmra.mrb[244].mxu1 %v14587_v30  ;;  %v24_v30 = vld [vmem:[%s14126_s0 + $0x18] sm:$0xff] }
 0x22b   :  { %4144 = vmatmul.mubr.bf16.gmra.mrb[116].mxu0 %v11979_v34  ;;  %4859 = vmatprep.mubr.bf16.mxu1 %v14588_v10  ;;  %v28_v10 = vld [vmem:[%s14126_s0 + $0x38] sm:$0xff] }
 0x22c   :  { %4153 = vmatprep.mubr.bf16.mxu0 %v11981_v7  ;;  %v12009_v54 = vcombine.high %v24_v30, %v28_v10  ;;  %v12021_v31 = vcombine.low %v24_v30, %v28_v10  ;;  %v9797_v30 = vld [vmem:[%s14125_s1 + $0x428] ss:$16 sps:$4 sm:$0xff]   ;;  %v14597_v10 = vld [vmem:[#allocation4_spill] sm:$0xff] }
 0x22d   :  { %v14632_v7 = vld [vmem:[#allocation21_spill] sm:$0xff] }
 0x22e   :  { %14592 = vst [vmem:[#allocation230_spill] sm:$0xff] %v12009_v54 }
 0x232   :  { %4860 = vmatmul.mubr.bf16.gmra.mrb[248].mxu1 %v11119_v29  ;;  %v14593_v29 = vld [vmem:[#allocation2_spill] sm:$0xff] }
 0x233   :  { %4154 = vmatmul.mubr.bf16.gmra.mrb[120].mxu0 %v11993_v63  ;;  %4869 = vmatprep.mubr.bf16.mxu1 %v11125_v58  ;;  %v32_v58 = vld [vmem:[%s14126_s0 + $0x58] sm:$0xff]  ;;  %14594 = vst [vmem:[#allocation2_spill] sm:$0xff] %v12021_v31 }
 0x234   :  { %4163 = vmatprep.mubr.bf16.mxu0 %v11995_v5  ;;  %v36_v5 = vld [vmem:[%s14126_s0 + $0x78] sm:$0xff] }
 0x235   :  { %v44_v63 = vld [vmem:[%s14126_s0 + $0xb8] sm:$0xff] }
 0x23a   :  { %4870 = vmatmul.mubr.bf16.gmra.mrb[252].mxu1 %v11145_v36  ;;  %v9799_v36 = vld [vmem:[%s14125_s1 + $0x42c] ss:$16 sps:$4 sm:$0xff]  }
 0x23b   :  { %4164 = vmatmul.mubr.bf16.gmra.mrb[124].mxu0 %v12007_v49  ;;  %4912 = vmatprep.mubr.bf16.mxu1 %v14593_v29  ;;  %v12026_v49 = vcombine.high %v32_v58, %v36_v5  ;;  %v14596_v29 = vld [vmem:[#allocation3_spill] sm:$0xff] }
 0x23c   :  { %4206 = vmatprep.mubr.bf16.mxu0 %v12009_v54  ;;  %v40_v54 = vld [vmem:[%s14126_s0 + $0x98] sm:$0xff] }
 0x23d   :  { %14595 = vst [vmem:[#allocation231_spill] sm:$0xff] %v12026_v49 }
 0x242   :  { %4913 = vmatmul.mubr.bf16.vlgmr.msra.gmra.mrb[128].mxu1 %v14596_v29  ;;  %v12047_v29 = vcombine.low %v32_v58, %v36_v5  ;;  %v14601_v5 = vld [vmem:[#allocation6_spill] sm:$0xff]  ;;  %v48_v58 = vld [vmem:[%s14126_s0 + $0xd8] sm:$0xff] }
 0x243   :  { %4207 = vmatmul.mubr.bf16.vlgmr.msra.gmra.mrb[0].mxu0 %v12021_v31  ;;  %5234 = vmatpush1.bf16.msra.mxu1 %v9794_v4  ;;  %v9802_v4 = vld [vmem:[%s14125_s1 + $0x44c] ss:$16 sps:$4 sm:$0xff]  }
 0x244   :  { %4216 = vmatprep.mubr.bf16.mxu0 %v12026_v49  ;;  %4922 = vmatprep.mubr.bf16.mxu1 %v14597_v10  ;;  %14598 = vst [vmem:[#allocation3_spill] sm:$0xff] %v12047_v29  ;;  %v12049_v49 = vcombine.high %v40_v54, %v44_v63  ;;  %v9800_v10 = vld [vmem:[%s14125_s1 + $0x448] ss:$16 sps:$4 sm:$0xff]   ;;  %v9805_v31 = vld [vmem:[%s14125_s1 + $0x46c] ss:$16 sps:$4 sm:$0xff]  }
 0x245   :  { %5235 = vmatprep.subr.bf16.mxu1 %v9799_v36  ;;  %v14600_v36 = vld [vmem:[#allocation5_spill] sm:$0xff] }
 0x246   :  { %14599 = vst [vmem:[#allocation4_spill] sm:$0xff] %v12049_v49 }
 0x247   :  { %5236 = vmatpush1.bf16.msra.mxu1 %v9797_v30  ;;  %v52_v30 = vld [vmem:[%s14126_s0 + $0xf8] sm:$0xff] }
 0x248   :  { %5237 = vmatprep.subr.bf16.mxu1 %v9802_v4  ;;  %v9803_v4 = vld [vmem:[%s14125_s1 + $0x468] ss:$16 sps:$4 sm:$0xff]  }
 0x24a   :  { %4923 = vmatmul.mubr.bf16.gmra.mrb[132].mxu1 %v14600_v36  ;;  %v9808_v36 = vld [vmem:[%s14125_s1 + $0x48c] ss:$16 sps:$4 sm:$0xff]  }
 0x24b   :  { %4217 = vmatmul.mubr.bf16.gmra.mrb[4].mxu0 %v12047_v29  ;;  %4932 = vmatprep.mubr.bf16.mxu1 %v14601_v5  ;;  %v12075_v5 = vcombine.high %v48_v58, %v52_v30  ;;  %v9806_v29 = vld [vmem:[%s14125_s1 + $0x488] ss:$16 sps:$4 sm:$0xff]  }
 0x24c   :  { %4226 = vmatprep.mubr.bf16.mxu0 %v12049_v49  ;;  %5238 = vmatpush1.bf16.msra.mxu1 %v9800_v10  ;;  %v12073_v49 = vcombine.low %v40_v54, %v44_v63  ;;  %v9811_v10 = vld [vmem:[%s14125_s1 + $0x4ac] ss:$16 sps:$4 sm:$0xff]   ;;  %v14605_v63 = vld [vmem:[#allocation8_spill] sm:$0xff] }
 0x24d   :  { %5239 = vmatprep.subr.bf16.mxu1 %v9805_v31  ;;  %14603 = vst [vmem:[#allocation6_spill] sm:$0xff] %v12075_v5  ;;  %v14604_v31 = vld [vmem:[#allocation7_spill] sm:$0xff]  ;;  %v56_v54 = vld [vmem:[%s14126_s0 + $0x118] sm:$0xff] }
 0x24e   :  { %14602 = vst [vmem:[#allocation5_spill] sm:$0xff] %v12073_v49 }
 0x250   :  { %5240 = vmatpush1.bf16.msra.mxu1 %v9803_v4  ;;  %v60_v4 = vld [vmem:[%s14126_s0 + $0x138] sm:$0xff] }
 0x251   :  { %5241 = vmatprep.subr.bf16.mxu1 %v9808_v36  ;;  %v9809_v36 = vld [vmem:[%s14125_s1 + $0x4a8] ss:$16 sps:$4 sm:$0xff]  }
 0x252   :  { %4933 = vmatmul.mubr.bf16.gmra.mrb[136].mxu1 %v14604_v31  ;;  %v9814_v31 = vld [vmem:[%s14125_s1 + $0x4cc] ss:$16 sps:$4 sm:$0xff]  }
 0x253   :  { %4227 = vmatmul.mubr.bf16.gmra.mrb[8].mxu0 %v12073_v49  ;;  %4942 = vmatprep.mubr.bf16.mxu1 %v14605_v63  ;;  %v12101_v63 = vcombine.high %v56_v54, %v60_v4  ;;  %v9812_v49 = vld [vmem:[%s14125_s1 + $0x4c8] ss:$16 sps:$4 sm:$0xff]  }
 0x254   :  { %4236 = vmatprep.mubr.bf16.mxu0 %v12075_v5  ;;  %5242 = vmatpush1.bf16.msra.mxu1 %v9806_v29  ;;  %v12099_v5 = vcombine.low %v48_v58, %v52_v30  ;;  %v9817_v29 = vld [vmem:[%s14125_s1 + $0x4ec] ss:$16 sps:$4 sm:$0xff]   ;;  %v14609_v58 = vld [vmem:[#allocation10_spill] sm:$0xff] }
 0x255   :  { %5243 = vmatprep.subr.bf16.mxu1 %v9811_v10  ;;  %14607 = vst [vmem:[#allocation8_spill] sm:$0xff] %v12101_v63  ;;  %v14608_v10 = vld [vmem:[#allocation9_spill] sm:$0xff] }
 0x256   :  { %14606 = vst [vmem:[#allocation7_spill] sm:$0xff] %v12099_v5  ;;  %v64_v30 = vld [vmem:[%s14126_s0 + $0x158] sm:$0xff] }
 0x258   :  { %5244 = vmatpush1.bf16.msra.mxu1 %v9809_v36  ;;  %v68_v36 = vld [vmem:[%s14126_s0 + $0x178] sm:$0xff] }
 0x259   :  { %5245 = vmatprep.subr.bf16.mxu1 %v9814_v31  ;;  %v9815_v31 = vld [vmem:[%s14125_s1 + $0x4e8] ss:$16 sps:$4 sm:$0xff]  }
 0x25a   :  { %4943 = vmatmul.mubr.bf16.gmra.mrb[140].mxu1 %v14608_v10  ;;  %v9820_v10 = vld [vmem:[%s14125_s1 + $0x50c] ss:$16 sps:$4 sm:$0xff]  }
 0x25b   :  { %4237 = vmatmul.mubr.bf16.gmra.mrb[12].mxu0 %v12099_v5  ;;  %4952 = vmatprep.mubr.bf16.mxu1 %v14609_v58  ;;  %v12127_v58 = vcombine.high %v64_v30, %v68_v36  ;;  %v9818_v5 = vld [vmem:[%s14125_s1 + $0x508] ss:$16 sps:$4 sm:$0xff]  }
 0x25c   :  { %4246 = vmatprep.mubr.bf16.mxu0 %v12101_v63  ;;  %5246 = vmatpush1.bf16.msra.mxu1 %v9812_v49  ;;  %v12125_v63 = vcombine.low %v56_v54, %v60_v4  ;;  %v9823_v49 = vld [vmem:[%s14125_s1 + $0x52c] ss:$16 sps:$4 sm:$0xff]   ;;  %v14613_v54 = vld [vmem:[#allocation12_spill] sm:$0xff] }
 0x25d   :  { %5247 = vmatprep.subr.bf16.mxu1 %v9817_v29  ;;  %14611 = vst [vmem:[#allocation10_spill] sm:$0xff] %v12127_v58  ;;  %v14612_v29 = vld [vmem:[#allocation11_spill] sm:$0xff]  ;;  %v72_v4 = vld [vmem:[%s14126_s0 + $0x198] sm:$0xff] }
 0x25e   :  { %14610 = vst [vmem:[#allocation9_spill] sm:$0xff] %v12125_v63 }
 0x260   :  { %5248 = vmatpush1.bf16.msra.mxu1 %v9815_v31  ;;  %v76_v31 = vld [vmem:[%s14126_s0 + $0x1b8] sm:$0xff] }
 0x261   :  { %5249 = vmatprep.subr.bf16.mxu1 %v9820_v10  ;;  %v9821_v10 = vld [vmem:[%s14125_s1 + $0x528] ss:$16 sps:$4 sm:$0xff]  }
 0x262   :  { %4953 = vmatmul.mubr.bf16.gmra.mrb[144].mxu1 %v14612_v29  ;;  %v9826_v29 = vld [vmem:[%s14125_s1 + $0x54c] ss:$16 sps:$4 sm:$0xff]  }
 0x263   :  { %4247 = vmatmul.mubr.bf16.gmra.mrb[16].mxu0 %v12125_v63  ;;  %4962 = vmatprep.mubr.bf16.mxu1 %v14613_v54  ;;  %v12153_v54 = vcombine.high %v72_v4, %v76_v31  ;;  %v9824_v63 = vld [vmem:[%s14125_s1 + $0x548] ss:$16 sps:$4 sm:$0xff]  }
 0x264   :  { %4256 = vmatprep.mubr.bf16.mxu0 %v12127_v58  ;;  %5250 = vmatpush1.bf16.msra.mxu1 %v9818_v5  ;;  %v12151_v58 = vcombine.low %v64_v30, %v68_v36  ;;  %v14616_v5 = vld [vmem:[#allocation13_spill] sm:$0xff] }
 0x265   :  { %5251 = vmatprep.subr.bf16.mxu1 %v9823_v49  ;;  %14615 = vst [vmem:[#allocation12_spill] sm:$0xff] %v12153_v54  ;;  %v14617_v49 = vld [vmem:[#allocation14_spill] sm:$0xff]  ;;  %v80_v30 = vld [vmem:[%s14126_s0 + $0x1d8] sm:$0xff] }
 0x266   :  { %14614 = vst [vmem:[#allocation11_spill] sm:$0xff] %v12151_v58  ;;  %v84_v36 = vld [vmem:[%s14126_s0 + $0x1f8] sm:$0xff] }
 0x268   :  { %5252 = vmatpush1.bf16.msra.mxu1 %v9821_v10  ;;  %v12168_v10 = vcombine.low %v72_v4, %v76_v31  ;;  %v92_v4 = vld [vmem:[%s14126_s0 + $0x238] sm:$0xff]  ;;  %v12188_v31 = vcombine.low %v80_v30, %v84_v36 }
 0x269   :  { %5253 = vmatprep.subr.bf16.mxu1 %v9826_v29  ;;  %v12170_v29 = vcombine.high %v80_v30, %v84_v36 }
 0x26a   :  { %4963 = vmatmul.mubr.bf16.gmra.mrb[148].mxu1 %v14616_v5  ;;  %14618 = vst [vmem:[#allocation13_spill] sm:$0xff] %v12168_v10  ;;  %v14620_v5 = vld [vmem:[#allocation15_spill] sm:$0xff] }
 0x26b   :  { %4257 = vmatmul.mubr.bf16.gmra.mrb[20].mxu0 %v12151_v58  ;;  %4972 = vmatprep.mubr.bf16.mxu1 %v14617_v49  ;;  %14619 = vst [vmem:[#allocation14_spill] sm:$0xff] %v12170_v29  ;;  %v9827_v49 = vld [vmem:[%s14125_s1 + $0x568] ss:$16 sps:$4 sm:$0xff]   ;;  %v14621_v58 = vld [vmem:[#allocation16_spill] sm:$0xff]  ;;  %14622 = vst [vmem:[#allocation15_spill] sm:$0xff] %v12188_v31 }
 0x26c   :  { %4266 = vmatprep.mubr.bf16.mxu0 %v12153_v54  ;;  %5254 = vmatpush1.bf16.msra.mxu1 %v9824_v63  ;;  %v9829_v54 = vld [vmem:[%s14125_s1 + $0x56c] ss:$16 sps:$4 sm:$0xff]  }
 0x26d   :  { %v88_v63 = vld [vmem:[%s14126_s0 + $0x218] sm:$0xff]  ;;  %5255 = vmatprep.subr.bf16.mxu1 %v9829_v54 }
 0x26e   :  { %v100_v54 = vld [vmem:[%s14126_s0 + $0x278] sm:$0xff]  ;;  %v12202_v30 = vcombine.low %v88_v63, %v92_v4 }
 0x270   :  { %5256 = vmatpush1.bf16.msra.mxu1 %v9827_v49  ;;  %v14628_v49 = vld [vmem:[#allocation19_spill] sm:$0xff] }
 0x272   :  { %4973 = vmatmul.mubr.bf16.gmra.mrb[152].mxu1 %v14620_v5  ;;  %v12190_v5 = vcombine.high %v88_v63, %v92_v4  ;;  %v14629_v63 = vld [vmem:[#allocation20_spill] sm:$0xff]  ;;  %v104_v4 = vld [vmem:[%s14126_s0 + $0x298] sm:$0xff] }
 0x273   :  { %4267 = vmatmul.mubr.bf16.gmra.mrb[24].mxu0 %v12168_v10  ;;  %4982 = vmatprep.mubr.bf16.mxu1 %v14621_v58  ;;  %v14624_v10 = vld [vmem:[#allocation17_spill] sm:$0xff]  ;;  %v14625_v58 = vld [vmem:[#allocation18_spill] sm:$0xff] }
 0x274   :  { %4276 = vmatprep.mubr.bf16.mxu0 %v12170_v29  ;;  %14623 = vst [vmem:[#allocation16_spill] sm:$0xff] %v12190_v5  ;;  %v96_v29 = vld [vmem:[%s14126_s0 + $0x258] sm:$0xff]  ;;  %14626 = vst [vmem:[#allocation17_spill] sm:$0xff] %v12202_v30 }
 0x275   :  { %v12204_v36 = vcombine.high %v96_v29, %v100_v54 }
 0x277   :  { %14627 = vst [vmem:[#allocation18_spill] sm:$0xff] %v12204_v36 }
 0x27a   :  { %4983 = vmatmul.mubr.bf16.gmra.mrb[156].mxu1 %v14624_v10  ;;  %v9833_v10 = vld [vmem:[%s14127_s3] sm:$0xff]  }
 0x27b   :  { %4277 = vmatmul.mubr.bf16.gmra.mrb[28].mxu0 %v12188_v31  ;;  %4992 = vmatprep.mubr.bf16.mxu1 %v14625_v58  ;;  %v9830_v58 = vld [vmem:[%s14125_s1 + $0x588] ss:$16 sps:$4 sm:$0xff]  }
 0x27c   :  { %4286 = vmatprep.mubr.bf16.mxu0 %v12190_v5  ;;  %v9832_v5 = vld [vmem:[%s14125_s1 + $0x58c] ss:$16 sps:$4 sm:$0xff]  }
 0x27d   :  { %5257 = vmatprep.subr.bf16.mxu1 %v9832_v5  ;;  %v9834_v31 = vld [vmem:[%s14127_s3 + $0x8] sm:$0xff]   ;;  %v9835_v5 = vld [vmem:[%s14127_s3 + $0x10] sm:$0xff]  }
 0x27e   :  { %5258 = vmatpush1.bf16.msra.mxu1 %v9830_v58  ;;  %v112_v58 = vld [vmem:[%s14126_s0 + $0x2d8] sm:$0xff] }
 0x282   :  { %4993 = vmatmul.mubr.bf16.gmra.mrb[160].mxu1 %v14628_v49  ;;  %v108_v49 = vld [vmem:[%s14126_s0 + $0x2b8] sm:$0xff] }
 0x283   :  { %4287 = vmatmul.mubr.bf16.gmra.mrb[32].mxu0 %v12202_v30  ;;  %5002 = vmatprep.mubr.bf16.mxu1 %v14629_v63  ;;  %v14303_v30 = vmov 0   ;;  %v12232_v63 = vcombine.high %v104_v4, %v108_v49 }
 0x284   :  { %4296 = vmatprep.mubr.bf16.mxu0 %v12204_v36  ;;  %7098 = vmatprep.subr.bf16.mxu0 %v14303_v30  ;;  %v12229_v36 = vcombine.low %v96_v29, %v100_v54  ;;  %v116_v29 = vld [vmem:[%s14126_s0 + $0x2f8] sm:$0xff]  ;;  %v14633_v54 = vld [vmem:[#allocation22_spill] sm:$0xff] }
 0x285   :  { %7099 = vmatpush1.bf16.msra.mxu0 %v9833_v10  ;;  %14631 = vst [vmem:[#allocation20_spill] sm:$0xff] %v12232_v63  ;;  %v12254_v10 = vcombine.high %v112_v58, %v116_v29 }
 0x286   :  { %14630 = vst [vmem:[#allocation19_spill] sm:$0xff] %v12229_v36  ;;  %7100 = vmatprep.subr.bf16.mxu0 %v14303_v30 }
 0x287   :  { %14635 = vst [vmem:[#allocation22_spill] sm:$0xff] %v12254_v10 }
 0x289   :  { %7101 = vmatpush1.bf16.msra.mxu0 %v9834_v31  ;;  %v9836_v31 = vld [vmem:[%s14127_s3 + $0x18] sm:$0xff]  }
 0x28a   :  { %5003 = vmatmul.mubr.bf16.gmra.mrb[164].mxu1 %v14632_v7  ;;  %7102 = vmatprep.subr.bf16.mxu0 %v14303_v30  ;;  %v12251_v7 = vcombine.low %v104_v4, %v108_v49  ;;  %v124_v4 = vld [vmem:[%s14126_s0 + $0x338] sm:$0xff] }
 0x28b   :  { %4297 = vmatmul.mubr.bf16.gmra.mrb[36].mxu0 %v12229_v36  ;;  %5012 = vmatprep.mubr.bf16.mxu1 %v14633_v54  ;;  %v14636_v54 = vld [vmem:[#allocation23_spill] sm:$0xff]  ;;  %v120_v36 = vld [vmem:[%s14126_s0 + $0x318] sm:$0xff] }
 0x28c   :  { %4306 = vmatprep.mubr.bf16.mxu0 %v12232_v63  ;;  %14634 = vst [vmem:[#allocation21_spill] sm:$0xff] %v12251_v7  ;;  %v9840_v63 = vld [vmem:[%s14127_s3 + $0x20] sm:$0xff]   ;;  %v9837_v49 = vld [vmem:[%s14125_s1 + $0x5a8] ss:$16 sps:$4 sm:$0xff]   ;;  %v12282_v34 = vcombine.high %v120_v36, %v124_v4 }
 0x28d   :  { %7103 = vmatpush1.bf16.msra.mxu0 %v9835_v5  ;;  %v9839_v5 = vld [vmem:[%s14125_s1 + $0x5ac] ss:$16 sps:$4 sm:$0xff]  }
 0x28e   :  { %7104 = vmatprep.subr.bf16.mxu0 %v14303_v30  ;;  %5259 = vmatprep.subr.bf16.mxu1 %v9839_v5  ;;  %v14640_v5 = vld [vmem:[#allocation25_spill] sm:$0xff] }
 0x28f   :  { %5260 = vmatpush1.bf16.msra.mxu1 %v9837_v49  ;;  %v9843_v49 = vld [vmem:[%s14127_s3 + $0x38] sm:$0xff]  }
 0x291   :  { %7105 = vmatpush1.bf16.msra.mxu0 %v9836_v31  ;;  %v14637_v31 = vld [vmem:[#allocation24_spill] sm:$0xff] }
 0x292   :  { %5013 = vmatmul.mubr.bf16.gmra.mrb[168].mxu1 %v14636_v54  ;;  %7106 = vmatprep.subr.bf16.mxu0 %v14303_v30  ;;  %v9841_v54 = vld [vmem:[%s14127_s3 + $0x28] sm:$0xff]   ;;  %14639 = vst [vmem:[#allocation24_spill] sm:$0xff] %v12282_v34 }
 0x293   :  { %4307 = vmatmul.mubr.bf16.gmra.mrb[40].mxu0 %v12251_v7  ;;  %5022 = vmatprep.mubr.bf16.mxu1 %v14637_v31  ;;  %v12279_v7 = vcombine.low %v112_v58, %v116_v29  ;;  %v9842_v31 = vld [vmem:[%s14127_s3 + $0x30] sm:$0xff]   ;;  %v128_v58 = vld [vmem:[%s14126_s0 + $0x358] sm:$0xff] }
 0x294   :  { %4316 = vmatprep.mubr.bf16.mxu0 %v12254_v10  ;;  %v132_v29 = vld [vmem:[%s14126_s0 + $0x378] sm:$0xff] }
 0x295   :  { %7107 = vmatpush1.bf16.msra.mxu0 %v9840_v63  ;;  %14638 = vst [vmem:[#allocation23_spill] sm:$0xff] %v12279_v7  ;;  %v14641_v63 = vld [vmem:[#allocation26_spill] sm:$0xff]  ;;  %v14701_v10 = vld [vmem:[#allocation61_spill] sm:$0xff] }
 0x296   :  { %7108 = vmatprep.subr.bf16.mxu0 %v14303_v30 }
 0x299   :  { %7109 = vmatpush1.bf16.msra.mxu0 %v9841_v54  ;;  %v12301_v54 = vcombine.low %v120_v36, %v124_v4  ;;  %v9844_v36 = vld [vmem:[%s14125_s1 + $0x5c8] ss:$16 sps:$4 sm:$0xff]   ;;  %v9846_v4 = vld [vmem:[%s14125_s1 + $0x5cc] ss:$16 sps:$4 sm:$0xff]  }
 0x29a   :  { %5023 = vmatmul.mubr.bf16.gmra.mrb[172].mxu1 %v14640_v5  ;;  %7110 = vmatprep.subr.bf16.mxu0 %v14303_v30  ;;  %v12304_v5 = vcombine.high %v128_v58, %v132_v29 }
 0x29b   :  { %4317 = vmatmul.mubr.bf16.gmra.mrb[44].mxu0 %v12279_v7  ;;  %5032 = vmatprep.mubr.bf16.mxu1 %v14641_v63  ;;  %14642 = vst [vmem:[#allocation25_spill] sm:$0xff] %v12301_v54  ;;  %v9847_v63 = vld [vmem:[%s14127_s3 + $0x40] sm:$0xff]   ;;  %v9849_v7 = vld [vmem:[%s14127_s3 + $0x50] sm:$0xff]  }
 0x29c   :  { %4326 = vmatprep.mubr.bf16.mxu0 %v12282_v34  ;;  %14643 = vst [vmem:[#allocation26_spill] sm:$0xff] %v12304_v5  ;;  %v14644_v34 = vld [vmem:[#allocation27_spill] sm:$0xff]  ;;  %5261 = vmatprep.subr.bf16.mxu1 %v9846_v4  ;;  %v14648_v4 = vld [vmem:[#allocation29_spill] sm:$0xff] }
 0x29d   :  { %7111 = vmatpush1.bf16.msra.mxu0 %v9842_v31  ;;  %v14645_v31 = vld [vmem:[#allocation28_spill] sm:$0xff]  ;;  %5262 = vmatpush1.bf16.msra.mxu1 %v9844_v36  ;;  %v9850_v36 = vld [vmem:[%s14127_s3 + $0x58] sm:$0xff]  }
 0x29e   :  { %7112 = vmatprep.subr.bf16.mxu0 %v14303_v30 }
 0x2a1   :  { %7113 = vmatpush1.bf16.msra.mxu0 %v9843_v49  ;;  %v136_v49 = vld [vmem:[%s14126_s0 + $0x398] sm:$0xff] }
 0x2a2   :  { %5033 = vmatmul.mubr.bf16.gmra.mrb[176].mxu1 %v14644_v34  ;;  %v140_v34 = vld [vmem:[%s14126_s0 + $0x3b8] sm:$0xff]  ;;  %7114 = vmatprep.subr.bf16.mxu0 %v14303_v30 }
 0x2a3   :  { %4327 = vmatmul.mubr.bf16.gmra.mrb[48].mxu0 %v12301_v54  ;;  %5042 = vmatprep.mubr.bf16.mxu1 %v14645_v31  ;;  %v9848_v31 = vld [vmem:[%s14127_s3 + $0x48] sm:$0xff]   ;;  %v12332_v54 = vcombine.high %v136_v49, %v140_v34 }
 0x2a4   :  { %4336 = vmatprep.mubr.bf16.mxu0 %v12304_v5  ;;  %v12329_v5 = vcombine.low %v128_v58, %v132_v29  ;;  %v144_v58 = vld [vmem:[%s14126_s0 + $0x3d8] sm:$0xff] }
 0x2a5   :  { %7115 = vmatpush1.bf16.msra.mxu0 %v9847_v63  ;;  %14647 = vst [vmem:[#allocation28_spill] sm:$0xff] %v12332_v54  ;;  %v14649_v63 = vld [vmem:[#allocation30_spill] sm:$0xff]  ;;  %v148_v29 = vld [vmem:[%s14126_s0 + $0x3f8] sm:$0xff] }
 0x2a6   :  { %14646 = vst [vmem:[#allocation27_spill] sm:$0xff] %v12329_v5  ;;  %7116 = vmatprep.subr.bf16.mxu0 %v14303_v30 }
 0x2a9   :  { %7117 = vmatpush1.bf16.msra.mxu0 %v9848_v31  ;;  %v12351_v31 = vcombine.low %v136_v49, %v140_v34  ;;  %v9851_v49 = vld [vmem:[%s14125_s1 + $0x5e8] ss:$16 sps:$4 sm:$0xff]   ;;  %v9853_v34 = vld [vmem:[%s14125_s1 + $0x5ec] ss:$16 sps:$4 sm:$0xff]  }
 0x2aa   :  { %5043 = vmatmul.mubr.bf16.gmra.mrb[180].mxu1 %v14648_v4  ;;  %7118 = vmatprep.subr.bf16.mxu0 %v14303_v30  ;;  %v12354_v4 = vcombine.high %v144_v58, %v148_v29 }
 0x2ab   :  { %4337 = vmatmul.mubr.bf16.gmra.mrb[52].mxu0 %v12329_v5  ;;  %5052 = vmatprep.mubr.bf16.mxu1 %v14649_v63  ;;  %14650 = vst [vmem:[#allocation29_spill] sm:$0xff] %v12351_v31  ;;  %v9854_v63 = vld [vmem:[%s14127_s3 + $0x60] sm:$0xff]   ;;  %v9856_v5 = vld [vmem:[%s14127_s3 + $0x70] sm:$0xff]  }
 0x2ac   :  { %4346 = vmatprep.mubr.bf16.mxu0 %v12332_v54  ;;  %14651 = vst [vmem:[#allocation30_spill] sm:$0xff] %v12354_v4  ;;  %v14652_v54 = vld [vmem:[#allocation31_spill] sm:$0xff]  ;;  %5263 = vmatprep.subr.bf16.mxu1 %v9853_v34  ;;  %v14656_v34 = vld [vmem:[#allocation33_spill] sm:$0xff] }
 0x2ad   :  { %7119 = vmatpush1.bf16.msra.mxu0 %v9849_v7  ;;  %v14653_v7 = vld [vmem:[#allocation32_spill] sm:$0xff]  ;;  %5264 = vmatpush1.bf16.msra.mxu1 %v9851_v49  ;;  %v9857_v49 = vld [vmem:[%s14127_s3 + $0x78] sm:$0xff]  }
 0x2ae   :  { %7120 = vmatprep.subr.bf16.mxu0 %v14303_v30 }
 0x2b1   :  { %7121 = vmatpush1.bf16.msra.mxu0 %v9850_v36  ;;  %v152_v36 = vld [vmem:[%s14126_s0 + $0x418] sm:$0xff] }
 0x2b2   :  { %5053 = vmatmul.mubr.bf16.gmra.mrb[184].mxu1 %v14652_v54  ;;  %v156_v54 = vld [vmem:[%s14126_s0 + $0x438] sm:$0xff]  ;;  %7122 = vmatprep.subr.bf16.mxu0 %v14303_v30 }
 0x2b3   :  { %4347 = vmatmul.mubr.bf16.gmra.mrb[56].mxu0 %v12351_v31  ;;  %5062 = vmatprep.mubr.bf16.mxu1 %v14653_v7  ;;  %v9855_v7 = vld [vmem:[%s14127_s3 + $0x68] sm:$0xff]   ;;  %v12382_v31 = vcombine.high %v152_v36, %v156_v54 }
 0x2b4   :  { %4356 = vmatprep.mubr.bf16.mxu0 %v12354_v4  ;;  %v12379_v4 = vcombine.low %v144_v58, %v148_v29  ;;  %v160_v58 = vld [vmem:[%s14126_s0 + $0x458] sm:$0xff] }
 0x2b5   :  { %7123 = vmatpush1.bf16.msra.mxu0 %v9854_v63  ;;  %14655 = vst [vmem:[#allocation32_spill] sm:$0xff] %v12382_v31  ;;  %v14657_v63 = vld [vmem:[#allocation34_spill] sm:$0xff]  ;;  %v164_v29 = vld [vmem:[%s14126_s0 + $0x478] sm:$0xff] }
 0x2b6   :  { %14654 = vst [vmem:[#allocation31_spill] sm:$0xff] %v12379_v4  ;;  %7124 = vmatprep.subr.bf16.mxu0 %v14303_v30 }
 0x2b9   :  { %7125 = vmatpush1.bf16.msra.mxu0 %v9855_v7  ;;  %v12401_v7 = vcombine.low %v152_v36, %v156_v54  ;;  %v168_v36 = vld [vmem:[%s14126_s0 + $0x498] sm:$0xff] }
 0x2ba   :  { %5063 = vmatmul.mubr.bf16.gmra.mrb[188].mxu1 %v14656_v34  ;;  %7126 = vmatprep.subr.bf16.mxu0 %v14303_v30  ;;  %v12404_v34 = vcombine.high %v160_v58, %v164_v29  ;;  %v172_v54 = vld [vmem:[%s14126_s0 + $0x4b8] sm:$0xff] }
 0x2bb   :  { %4357 = vmatmul.mubr.bf16.gmra.mrb[60].mxu0 %v12379_v4  ;;  %5072 = vmatprep.mubr.bf16.mxu1 %v14657_v63  ;;  %14658 = vst [vmem:[#allocation33_spill] sm:$0xff] %v12401_v7  ;;  %v14660_v63 = vld [vmem:[#allocation35_spill] sm:$0xff]  ;;  %v240_v4 = vld [vmem:[%s14126_s0 + $0x6d8] sm:$0xff] }
 0x2bc   :  { %4366 = vmatprep.mubr.bf16.mxu0 %v12382_v31  ;;  %14659 = vst [vmem:[#allocation34_spill] sm:$0xff] %v12404_v34  ;;  %v14661_v31 = vld [vmem:[#allocation36_spill] sm:$0xff] }
 0x2bd   :  { %7127 = vmatpush1.bf16.msra.mxu0 %v9856_v5  ;;  %v9860_v5 = vld [vmem:[%s14125_s1 + $0x60c] ss:$16 sps:$4 sm:$0xff]  }
 0x2be   :  { %7128 = vmatprep.subr.bf16.mxu0 %v14303_v30  ;;  %5586 = vmatprep.subr.bf16.mxu1 %v9860_v5  ;;  %v180_v5 = vld [vmem:[%s14126_s0 + $0x4f8] sm:$0xff] }
 0x2c1   :  { %7129 = vmatpush1.bf16.msra.mxu0 %v9857_v49  ;;  %v12420_v49 = vcombine.low %v160_v58, %v164_v29  ;;  %v12434_v58 = vcombine.low %v168_v36, %v172_v54 }
 0x2c2   :  { %5073 = vmatmul.mubr.bf16.gmra.mrb[192].mxu1 %v14660_v63  ;;  %7387 = vmatprep.subr.bf16.mxu0 %v14303_v30  ;;  %v12422_v63 = vcombine.high %v168_v36, %v172_v54  ;;  %v14668_v30 = vld [vmem:[#allocation39_spill] sm:$0xff] }
 0x2c3   :  { %4367 = vmatmul.mubr.bf16.gmra.mrb[64].mxu0 %v12401_v7  ;;  %5082 = vmatprep.mubr.bf16.mxu1 %v14661_v31  ;;  %14662 = vst [vmem:[#allocation35_spill] sm:$0xff] %v12420_v49  ;;  %v14664_v31 = vld [vmem:[#allocation37_spill] sm:$0xff] }
 0x2c4   :  { %4376 = vmatprep.mubr.bf16.mxu0 %v12404_v34  ;;  %14663 = vst [vmem:[#allocation36_spill] sm:$0xff] %v12422_v63  ;;  %v14665_v34 = vld [vmem:[#allocation38_spill] sm:$0xff]  ;;  %v176_v7 = vld [vmem:[%s14126_s0 + $0x4d8] sm:$0xff]  ;;  %14666 = vst [vmem:[#allocation37_spill] sm:$0xff] %v12434_v58 }
 0x2c5   :  { %v12436_v29 = vcombine.high %v176_v7, %v180_v5  ;;  %v12448_v36 = vcombine.low %v176_v7, %v180_v5 }
 0x2c7   :  { %14667 = vst [vmem:[#allocation38_spill] sm:$0xff] %v12436_v29  ;;  %14670 = vst [vmem:[#allocation39_spill] sm:$0xff] %v12448_v36 }
 0x2ca   :  { %5083 = vmatmul.mubr.bf16.gmra.mrb[196].mxu1 %v14664_v31  ;;  %v14669_v31 = vld [vmem:[#allocation40_spill] sm:$0xff] }
 0x2cb   :  { %4377 = vmatmul.mubr.bf16.gmra.mrb[68].mxu0 %v12420_v49  ;;  %5092 = vmatprep.mubr.bf16.mxu1 %v14665_v34  ;;  %v184_v34 = vld [vmem:[%s14126_s0 + $0x518] sm:$0xff] }
 0x2cc   :  { %4386 = vmatprep.mubr.bf16.mxu0 %v12422_v63  ;;  %v188_v63 = vld [vmem:[%s14126_s0 + $0x538] sm:$0xff] }
 0x2cd   :  { %v12450_v54 = vcombine.high %v184_v34, %v188_v63  ;;  %v12462_v7 = vcombine.low %v184_v34, %v188_v63 }
 0x2cf   :  { %14671 = vst [vmem:[#allocation40_spill] sm:$0xff] %v12450_v54 }
 0x2d2   :  { %5093 = vmatmul.mubr.bf16.gmra.mrb[200].mxu1 %v14668_v30  ;;  %v14673_v30 = vld [vmem:[#allocation42_spill] sm:$0xff] }
 0x2d3   :  { %4387 = vmatmul.mubr.bf16.gmra.mrb[72].mxu0 %v12434_v58  ;;  %5102 = vmatprep.mubr.bf16.mxu1 %v14669_v31  ;;  %v14672_v58 = vld [vmem:[#allocation41_spill] sm:$0xff] }
 0x2d4   :  { %4396 = vmatprep.mubr.bf16.mxu0 %v12436_v29  ;;  %v192_v31 = vld [vmem:[%s14126_s0 + $0x558] sm:$0xff]  ;;  %14674 = vst [vmem:[#allocation41_spill] sm:$0xff] %v12462_v7 }
 0x2d5   :  { %v196_v29 = vld [vmem:[%s14126_s0 + $0x578] sm:$0xff] }
 0x2d6   :  { %v12464_v5 = vcombine.high %v192_v31, %v196_v29  ;;  %v12476_v63 = vcombine.low %v192_v31, %v196_v29 }
 0x2d8   :  { %14675 = vst [vmem:[#allocation42_spill] sm:$0xff] %v12464_v5 }
 0x2da   :  { %5103 = vmatmul.mubr.bf16.gmra.mrb[204].mxu1 %v14672_v58  ;;  %v14677_v58 = vld [vmem:[#allocation44_spill] sm:$0xff] }
 0x2db   :  { %4397 = vmatmul.mubr.bf16.gmra.mrb[76].mxu0 %v12448_v36  ;;  %5112 = vmatprep.mubr.bf16.mxu1 %v14673_v30  ;;  %v14676_v36 = vld [vmem:[#allocation43_spill] sm:$0xff]  ;;  %v200_v30 = vld [vmem:[%s14126_s0 + $0x598] sm:$0xff] }
 0x2dc   :  { %4406 = vmatprep.mubr.bf16.mxu0 %v12450_v54  ;;  %v204_v54 = vld [vmem:[%s14126_s0 + $0x5b8] sm:$0xff]  ;;  %14678 = vst [vmem:[#allocation43_spill] sm:$0xff] %v12476_v63 }
 0x2dd   :  { %v12478_v34 = vcombine.high %v200_v30, %v204_v54  ;;  %v12490_v29 = vcombine.low %v200_v30, %v204_v54 }
 0x2df   :  { %14679 = vst [vmem:[#allocation44_spill] sm:$0xff] %v12478_v34 }
 0x2e2   :  { %5113 = vmatmul.mubr.bf16.gmra.mrb[208].mxu1 %v14676_v36  ;;  %v14681_v36 = vld [vmem:[#allocation46_spill] sm:$0xff] }
 0x2e3   :  { %4407 = vmatmul.mubr.bf16.gmra.mrb[80].mxu0 %v12462_v7  ;;  %5122 = vmatprep.mubr.bf16.mxu1 %v14677_v58  ;;  %v14680_v7 = vld [vmem:[#allocation45_spill] sm:$0xff] }
 0x2e4   :  { %4416 = vmatprep.mubr.bf16.mxu0 %v12464_v5  ;;  %v208_v58 = vld [vmem:[%s14126_s0 + $0x5d8] sm:$0xff]  ;;  %14682 = vst [vmem:[#allocation45_spill] sm:$0xff] %v12490_v29 }
 0x2e5   :  { %v212_v5 = vld [vmem:[%s14126_s0 + $0x5f8] sm:$0xff] }
 0x2e6   :  { %v12492_v31 = vcombine.high %v208_v58, %v212_v5  ;;  %v12504_v54 = vcombine.low %v208_v58, %v212_v5 }
 0x2e8   :  { %14683 = vst [vmem:[#allocation46_spill] sm:$0xff] %v12492_v31 }
 0x2ea   :  { %5123 = vmatmul.mubr.bf16.gmra.mrb[212].mxu1 %v14680_v7  ;;  %v14685_v7 = vld [vmem:[#allocation48_spill] sm:$0xff] }
 0x2eb   :  { %4417 = vmatmul.mubr.bf16.gmra.mrb[84].mxu0 %v12476_v63  ;;  %5132 = vmatprep.mubr.bf16.mxu1 %v14681_v36  ;;  %v14684_v63 = vld [vmem:[#allocation47_spill] sm:$0xff]  ;;  %v216_v36 = vld [vmem:[%s14126_s0 + $0x618] sm:$0xff] }
 0x2ec   :  { %4426 = vmatprep.mubr.bf16.mxu0 %v12478_v34  ;;  %v220_v34 = vld [vmem:[%s14126_s0 + $0x638] sm:$0xff]  ;;  %14686 = vst [vmem:[#allocation47_spill] sm:$0xff] %v12504_v54 }
 0x2ed   :  { %v12506_v30 = vcombine.high %v216_v36, %v220_v34  ;;  %v12518_v5 = vcombine.low %v216_v36, %v220_v34  ;;  %v236_v34 = vld [vmem:[%s14126_s0 + $0x6b8] sm:$0xff] }
 0x2ef   :  { %14687 = vst [vmem:[#allocation48_spill] sm:$0xff] %v12506_v30 }
 0x2f2   :  { %5133 = vmatmul.mubr.bf16.gmra.mrb[216].mxu1 %v14684_v63  ;;  %v14689_v63 = vld [vmem:[#allocation51_spill] sm:$0xff] }
 0x2f3   :  { %4427 = vmatmul.mubr.bf16.gmra.mrb[88].mxu0 %v12490_v29  ;;  %5142 = vmatprep.mubr.bf16.mxu1 %v14685_v7  ;;  %v14688_v29 = vld [vmem:[#allocation49_spill] sm:$0xff] }
 0x2f4   :  { %4436 = vmatprep.mubr.bf16.mxu0 %v12492_v31  ;;  %v224_v7 = vld [vmem:[%s14126_s0 + $0x658] sm:$0xff]  ;;  %14690 = vst [vmem:[#allocation49_spill] sm:$0xff] %v12518_v5 }
 0x2f5   :  { %v228_v31 = vld [vmem:[%s14126_s0 + $0x678] sm:$0xff] }
 0x2f6   :  { %v12520_v58 = vcombine.high %v224_v7, %v228_v31  ;;  %v12532_v36 = vcombine.low %v224_v7, %v228_v31  ;;  %v244_v31 = vld [vmem:[%s14126_s0 + $0x6f8] sm:$0xff]  ;;  %v533_v7 = vld [vmem:[%s14128_s2] sm:$0xf] }
 0x2f8   :  { %14691 = vst [vmem:[#allocation51_spill] sm:$0xff] %v12520_v58 }
 0x2fa   :  { %5143 = vmatmul.mubr.bf16.gmra.mrb[220].mxu1 %v14688_v29  ;;  %v14693_v29 = vld [vmem:[#allocation55_spill] sm:$0xff] }
 0x2fb   :  { %4437 = vmatmul.mubr.bf16.gmra.mrb[92].mxu0 %v12504_v54  ;;  %5152 = vmatprep.mubr.bf16.mxu1 %v14689_v63  ;;  %v14692_v54 = vld [vmem:[#allocation53_spill] sm:$0xff]  ;;  %v535_v63 = vlaneseq }
 0x2fc   :  { %4446 = vmatprep.mubr.bf16.mxu0 %v12506_v30  ;;  %v232_v30 = vld [vmem:[%s14126_s0 + $0x698] sm:$0xff]  ;;  %14694 = vst [vmem:[#allocation53_spill] sm:$0xff] %v12532_v36 }
 0x2fd   :  { %v12534_v49 = vcombine.high %v232_v30, %v236_v34 }
 0x2ff   :  { %14695 = vst [vmem:[#allocation55_spill] sm:$0xff] %v12534_v49 }
 0x302   :  { %5153 = vmatmul.mubr.bf16.gmra.mrb[224].mxu1 %v14692_v54  ;;  %v14697_v54 = vld [vmem:[#allocation57_spill] sm:$0xff] }
 0x303   :  { %4447 = vmatmul.mubr.bf16.gmra.mrb[96].mxu0 %v12518_v5  ;;  %5162 = vmatprep.mubr.bf16.mxu1 %v14693_v29  ;;  %v12536_v5 = vshrl.u32 %v535_v63, 7  ;;  %v14698_v29 = vld [vmem:[#allocation59_spill] sm:$0xff] }
 0x304   :  { %4456 = vmatprep.mubr.bf16.mxu0 %v12520_v58 }
 0x305   :  { %14696 = vst [vmem:[#allocation232_spill] sm:$0xff] %v12536_v5  ;;  %v537_v58 = vsub.s32 0, %v12536_v5  ;;  %v541_v63 = vsub.s32 1, %v12536_v5  ;;  %v12577_v5 = vcombine.low %v240_v4, %v244_v31 }
 0x307   :  { %14706 = vst [vmem:[#allocation61_spill] sm:$0xff] %v12577_v5 }
 0x30a   :  { %5163 = vmatmul.mubr.bf16.gmra.mrb[228].mxu1 %v14697_v54  ;;  %v12553_v54 = vcombine.low %v232_v30, %v236_v34  ;;  %v248_v30 = vld [vmem:[%s14126_s0 + $0x718] sm:$0xff] }
 0x30b   :  { %4457 = vmatmul.mubr.bf16.gmra.mrb[100].mxu0 %v12532_v36  ;;  %5172 = vmatprep.mubr.bf16.mxu1 %v14698_v29  ;;  %v12557_v29 = vrot.slane %v533_v7, %v537_v58  ;;  %v12559_v36 = vrot.slane %v533_v7, %v541_v63  ;;  %v252_v58 = vld [vmem:[%s14126_s0 + $0x738] sm:$0xff] }
 0x30c   :  { %4466 = vmatprep.mubr.bf16.mxu0 %v12534_v49  ;;  %14699 = vst [vmem:[#allocation57_spill] sm:$0xff] %v12553_v54  ;;  %v12555_v49 = vcombine.high %v240_v4, %v244_v31  ;;  %v14704_v34 = vld [vmem:[#allocation65_spill] sm:$0xff]  ;;  %v12581_v41 = vcombine.high %v248_v30, %v252_v58  ;;  %v14710_v31 = vld [vmem:[#allocation70_spill] sm:$0xff] }
 0x30d   :  { %v3150_v59 = vadd.f32 %v14703_v27, %v12557_v29  ;;  %v3152_v7 = vadd.f32 %v14704_v34, %v12559_v36  ;;  %v14707_v27 = vld [vmem:[#allocation71_spill] sm:$0xff] }
 0x30e   :  { %14700 = vst [vmem:[#allocation59_spill] sm:$0xff] %v12555_v49  ;;  %v3156_v56 = vadd.f32 %v14707_v27, %v12559_v36  ;;  %14708 = vst [vmem:[#allocation63_spill] sm:$0xff] %v12581_v41 }
 0x312   :  { %5173 = vmatmul.mubr.bf16.gmra.mrb[232].mxu1 %v14701_v10  ;;  %v14705_v10 = vld [vmem:[#allocation68_spill] sm:$0xff] }
 0x313   :  { %4467 = vmatmul.mubr.bf16.gmra.mrb[104].mxu0 %v12553_v54  ;;  %5182 = vmatprep.mubr.bf16.mxu1 %v14702_v62 }
 0x314   :  { %4476 = vmatprep.mubr.bf16.mxu0 %v12555_v49  ;;  %v3154_v49 = vadd.f32 %v14705_v10, %v12557_v29 }
 0x316   :  { %v4208_v63 = vpop.f32.mrb[0].mxu0 }
 0x317   :  { %v8290_v54 = vadd.f32 %v4208_v63, %v3150_v59  ;;  %v4210_v62 = vpop.f32.mrb[1].mxu0  ;;  %v14709_v59 = vld [vmem:[#allocation67_spill] sm:$0xff] }
 0x318   :  { %v8292_v28 = vadd.f32 %v4210_v62, %v3152_v7  ;;  %v4212_v60 = vpop.f32.mrb[2].mxu0  ;;  %v14711_v7 = vld [vmem:[#allocation72_spill] sm:$0xff]  ;;  %v14712_v62 = vld [vmem:[#allocation73_spill] sm:$0xff] }
 0x319   :  { %v6195_v44 = vmul.f32 0.01, %v8290_v54  ;;  %v8294_v23 = vadd.f32 %v4212_v60, %v3154_v49  ;;  %v4214_v37 = vpop.f32.mrb[3].mxu0  ;;  %vm5939_vm0 = vcmp.gt.f32.partialorder %v8290_v54, 0.0  ;;  %v3160_v60 = vadd.f32 %v14711_v7, %v12557_v29 }
 0x31a   :  { %v6196_v34 = vmul.f32 0.01, %v8292_v28  ;;  %v8296_v57 = vadd.f32 %v4214_v37, %v3156_v56  ;;  %vm5940_vm1 = vcmp.gt.f32.partialorder %v8292_v28, 0.0  ;;  %5183 = vmatmul.mubr.bf16.gmra.mrb[236].mxu1 %v14709_v59  ;;  %v256_v37 = vld [vmem:[%s14126_s0 + $0x758] sm:$0xff]  ;;  %v3162_v27 = vadd.f32 %v14712_v62, %v12559_v36  ;;  %v14715_v62 = vld [vmem:[#allocation79_spill] sm:$0xff] }
 0x31b   :  { %vm5943_vm2 = vcmp.gt.f32.partialorder %v8294_v23, 0.0  ;;  %v6199_v10 = vmul.f32 0.01, %v8294_v23  ;;  %4477 = vmatmul.mubr.bf16.gmra.mrb[108].mxu0 %v12577_v5  ;;  %5192 = vmatprep.mubr.bf16.mxu1 %v14710_v31  ;;  %v12589_v49 = vsel %vm5939_vm0, %v8290_v54, %v6195_v44  ;;  %v260_v56 = vld [vmem:[%s14126_s0 + $0x778] sm:$0xff]  ;;  %v14713_v54 = vld [vmem:[#allocation76_spill] sm:$0xff]  ;;  %v12610_v5 = vcombine.low %v248_v30, %v252_v58  ;;  %v14717_v58 = vld [vmem:[#allocation75_spill] sm:$0xff] }
 0x31c   :  { %vm5944_vm3 = vcmp.gt.f32.partialorder %v8296_v57, 0.0  ;;  %v6200_v4 = vmul.f32 0.01, %v8296_v57  ;;  %4486 = vmatprep.mubr.bf16.mxu0 %v12581_v41  ;;  %v12604_v44 = vsel %vm5940_vm1, %v8292_v28, %v6196_v34  ;;  %v3166_v2 = vadd.f32 %v14715_v62, %v12559_v36 }
 0x31d   :  { %v12591_v63 = vsel %vm5943_vm2, %v8294_v23, %v6199_v10  ;;  %v3164_v10 = vadd.f32 %v14713_v54, %v12557_v29  ;;  %14714 = vst [vmem:[#allocation64_spill] sm:$0xff] %v12610_v5  ;;  %v12616_v13 = vcombine.high %v256_v37, %v260_v56 }
 0x31e   :  { %v4218_v31 = vpop.f32.mrb[4].mxu0  ;;  %v12606_v23 = vsel %vm5944_vm3, %v8296_v57, %v6200_v4 }
 0x31f   :  { %v8298_v7 = vadd.f32 %v4218_v31, %v3160_v60  ;;  %v4220_v41 = vpop.f32.mrb[5].mxu0  ;;  %14716 = vst [vmem:[#allocation65_spill] sm:$0xff] %v12616_v13  ;;  %v268_v31 = vld [vmem:[%s14126_s0 + $0x7b8] sm:$0xff] }
 0x320   :  { %v8300_v59 = vadd.f32 %v4220_v41, %v3162_v27  ;;  %v4222_v24 = vpop.f32.mrb[6].mxu0  ;;  %v14718_v41 = vld [vmem:[#allocation78_spill] sm:$0xff]  ;;  %v14719_v27 = vld [vmem:[#allocation80_spill] sm:$0xff] }
 0x321   :  { %v6203_v28 = vmul.f32 0.01, %v8298_v7  ;;  %v8302_v57 = vadd.f32 %v4222_v24, %v3164_v10  ;;  %v4224_v34 = vpop.f32.mrb[7].mxu0  ;;  %vm5947_vm4 = vcmp.gt.f32.partialorder %v8298_v7, 0.0  ;;  %v3170_v24 = vadd.f32 %v14719_v27, %v12557_v29 }
 0x322   :  { %v6204_v4 = vmul.f32 0.01, %v8300_v59  ;;  %v8304_v54 = vadd.f32 %v4224_v34, %v3166_v2  ;;  %vm5948_vm5 = vcmp.gt.f32.partialorder %v8300_v59, 0.0  ;;  %5193 = vmatmul.mubr.bf16.gmra.mrb[240].mxu1 %v14717_v58  ;;  %v264_v2 = vld [vmem:[%s14126_s0 + $0x798] sm:$0xff] }
 0x323   :  { %vm5951_vm6 = vcmp.gt.f32.partialorder %v8302_v57, 0.0  ;;  %v6207_v30 = vmul.f32 0.01, %v8302_v57  ;;  %4487 = vmatmul.mubr.bf16.gmra.mrb[112].mxu0 %v12610_v5  ;;  %5202 = vmatprep.mubr.bf16.mxu1 %v14718_v41  ;;  %v12630_v10 = vsel %vm5947_vm4, %v8298_v7, %v6203_v28  ;;  %v14720_v34 = vld [vmem:[#allocation81_spill] sm:$0xff]  ;;  %v14721_v5 = vld [vmem:[#allocation84_spill] sm:$0xff]  ;;  %v12645_v28 = vcombine.low %v256_v37, %v260_v56  ;;  %v14725_v37 = vld [vmem:[#allocation83_spill] sm:$0xff] }
 0x324   :  { %vm5952_vm7 = vcmp.gt.f32.partialorder %v8304_v54, 0.0  ;;  %v6208_v60 = vmul.f32 0.01, %v8304_v54  ;;  %4496 = vmatprep.mubr.bf16.mxu0 %v12616_v13  ;;  %v3172_v58 = vadd.f32 %v14720_v34, %v12559_v36  ;;  %v12637_v41 = vsel %vm5948_vm5, %v8300_v59, %v6204_v4 }
 0x325   :  { %v12632_v62 = vsel %vm5951_vm6, %v8302_v57, %v6207_v30  ;;  %v3174_v9 = vadd.f32 %v14721_v5, %v12557_v29  ;;  %14722 = vst [vmem:[#allocation68_spill] sm:$0xff] %v12645_v28  ;;  %v14723_v30 = vld [vmem:[#allocation87_spill] sm:$0xff] }
 0x326   :  { %v4228_v6 = vpop.f32.mrb[8].mxu0  ;;  %v12639_v27 = vsel %vm5952_vm7, %v8304_v54, %v6208_v60  ;;  %v3176_v34 = vadd.f32 %v14723_v30, %v12559_v36  ;;  %v12651_v54 = vcombine.high %v264_v2, %v268_v31 }
 0x327   :  { %v8306_v43 = vadd.f32 %v4228_v6, %v3170_v24  ;;  %v4230_v7 = vpop.f32.mrb[9].mxu0  ;;  %v14726_v24 = vld [vmem:[#allocation86_spill] sm:$0xff] }
 0x328   :  { %v8308_v59 = vadd.f32 %v4230_v7, %v3172_v58  ;;  %v4232_v4 = vpop.f32.mrb[10].mxu0  ;;  %14724 = vst [vmem:[#allocation71_spill] sm:$0xff] %v12651_v54  ;;  %v276_v58 = vld [vmem:[%s14126_s0 + $0x7f8] sm:$0xff] }
 0x329   :  { %v6211_v60 = vmul.f32 0.01, %v8306_v43  ;;  %v8310_v3 = vadd.f32 %v4232_v4, %v3174_v9  ;;  %v4234_v13 = vpop.f32.mrb[11].mxu0  ;;  %vm5955_vm8 = vcmp.gt.f32.partialorder %v8306_v43, 0.0  ;;  %v3180_v9 = vadd.f32 %v11115_v33, %v12557_v29 }
 0x32a   :  { %v6212_v20 = vmul.f32 0.01, %v8308_v59  ;;  %v8312_v5 = vadd.f32 %v4234_v13, %v3176_v34  ;;  %vm5956_vm9 = vcmp.gt.f32.partialorder %v8308_v59, 0.0  ;;  %5203 = vmatmul.mubr.bf16.gmra.mrb[244].mxu1 %v14725_v37  ;;  %v272_v13 = vld [vmem:[%s14126_s0 + $0x7d8] sm:$0xff]  ;;  %v14727_v34 = vld [vmem:[#allocation88_spill] sm:$0xff] }
 0x32b   :  { %vm5959_vm10 = vcmp.gt.f32.partialorder %v8310_v3, 0.0  ;;  %v6215_v6 = vmul.f32 0.01, %v8310_v3  ;;  %4497 = vmatmul.mubr.bf16.gmra.mrb[116].mxu0 %v12645_v28  ;;  %5212 = vmatprep.mubr.bf16.mxu1 %v14726_v24  ;;  %v12665_v7 = vsel %vm5955_vm8, %v8306_v43, %v6211_v60  ;;  %v3182_v4 = vadd.f32 %v14727_v34, %v12559_v36 }
 0x32c   :  { %vm5960_vm11 = vcmp.gt.f32.partialorder %v8312_v5, 0.0  ;;  %v6216_v56 = vmul.f32 0.01, %v8312_v5  ;;  %4506 = vmatprep.mubr.bf16.mxu0 %v12651_v54  ;;  %v12672_v24 = vsel %vm5956_vm9, %v8308_v59, %v6212_v20  ;;  %v14728_v54 = vld [vmem:[#allocation90_spill] sm:$0xff]  ;;  %v12680_v60 = vcombine.low %v264_v2, %v268_v31  ;;  %v14732_v31 = vld [vmem:[#allocation89_spill] sm:$0xff] }
 0x32d   :  { %v12667_v30 = vsel %vm5959_vm10, %v8310_v3, %v6215_v6  ;;  %v3184_v28 = vadd.f32 %v14728_v54, %v12557_v29  ;;  %v14730_v6 = vld [vmem:[#allocation92_spill] sm:$0xff] }
 0x32e   :  { %v4238_v37 = vpop.f32.mrb[12].mxu0  ;;  %v12674_v33 = vsel %vm5960_vm11, %v8312_v5, %v6216_v56  ;;  %14729 = vst [vmem:[#allocation67_spill] sm:$0xff] %v12680_v60  ;;  %v3186_v34 = vadd.f32 %v14730_v6, %v12559_v36  ;;  %v12686_v5 = vcombine.high %v272_v13, %v276_v58 }
 0x32f   :  { %v8314_v8 = vadd.f32 %v4238_v37, %v3180_v9  ;;  %v4240_v43 = vpop.f32.mrb[13].mxu0 }
 0x330   :  { %v8316_v20 = vadd.f32 %v4240_v43, %v3182_v4  ;;  %v4242_v59 = vpop.f32.mrb[14].mxu0  ;;  %14731 = vst [vmem:[#allocation70_spill] sm:$0xff] %v12686_v5  ;;  %v14733_v4 = vld [vmem:[#allocation91_spill] sm:$0xff] }
 0x331   :  { %v6219_v56 = vmul.f32 0.01, %v8314_v8  ;;  %v8318_v19 = vadd.f32 %v4242_v59, %v3184_v28  ;;  %v4244_v57 = vpop.f32.mrb[15].mxu0  ;;  %vm5963_vm12 = vcmp.gt.f32.partialorder %v8314_v8, 0.0  ;;  %v3190_v28 = vadd.f32 %v11141_v39, %v12557_v29 }
 0x332   :  { %v6220_v55 = vmul.f32 0.01, %v8316_v20  ;;  %v8320_v54 = vadd.f32 %v4244_v57, %v3186_v34  ;;  %vm5964_vm13 = vcmp.gt.f32.partialorder %v8316_v20, 0.0  ;;  %5213 = vmatmul.mubr.bf16.gmra.mrb[248].mxu1 %v14732_v31  ;;  %v14734_v57 = vld [vmem:[#allocation93_spill] sm:$0xff] }
 0x333   :  { %vm5967_vm14 = vcmp.gt.f32.partialorder %v8318_v19, 0.0  ;;  %v6223_v2 = vmul.f32 0.01, %v8318_v19  ;;  %4507 = vmatmul.mubr.bf16.gmra.mrb[120].mxu0 %v12680_v60  ;;  %5222 = vmatprep.mubr.bf16.mxu1 %v14733_v4  ;;  %v12694_v37 = vsel %vm5963_vm12, %v8314_v8, %v6219_v56  ;;  %v3192_v6 = vadd.f32 %v14734_v57, %v12559_v36  ;;  %v14735_v4 = vld [vmem:[#allocation95_spill] sm:$0xff]  ;;  %v14736_v56 = vld [vmem:[#allocation97_spill] sm:$0xff] }
 0x334   :  { %vm5968_vm15 = vcmp.gt.f32.partialorder %v8320_v54, 0.0  ;;  %v6224_v9 = vmul.f32 0.01, %v8320_v54  ;;  %4516 = vmatprep.mubr.bf16.mxu0 %v12686_v5  ;;  %v12700_v59 = vsel %vm5964_vm13, %v8316_v20, %v6220_v55  ;;  %v3194_v5 = vadd.f32 %v14735_v4, %v12557_v29 }
 0x335   :  { %v12696_v43 = vsel %vm5967_vm14, %v8318_v19, %v6223_v2  ;;  %v12708_v8 = vcombine.low %v272_v13, %v276_v58  ;;  %v3196_v2 = vadd.f32 %v14736_v56, %v12559_v36  ;;  %v14737_v13 = vld [vmem:[#allocation94_spill] sm:$0xff] }
 0x336   :  { %v4248_v34 = vpop.f32.mrb[16].mxu0  ;;  %v12702_v31 = vsel %vm5968_vm15, %v8320_v54, %v6224_v9  ;;  %v14740_v56 = vld [vmem:[#allocation98_spill] sm:$0xff] }
 0x337   :  { %v8322_v60 = vadd.f32 %v4248_v34, %v3190_v28  ;;  %v4250_v39 = vpop.f32.mrb[17].mxu0  ;;  %v6720_v19 = vpack.c.bf16 %v12702_v31, %v12700_v59  ;;  %v14738_v34 = vpack.c.bf16 %v12606_v23, %v12604_v44  ;;  %v14741_v23 = vld [vmem:[#allocation100_spill] sm:$0xff] }
 0x338   :  { %v8324_v55 = vadd.f32 %v4250_v39, %v3192_v6  ;;  %v4252_v20 = vpop.f32.mrb[18].mxu0  ;;  %v14739_v6 = vld [vmem:[#allocation96_spill] sm:$0xff] }
 0x339   :  { %v6227_v54 = vmul.f32 0.01, %v8322_v60  ;;  %v8326_v9 = vadd.f32 %v4252_v20, %v3194_v5  ;;  %v4254_v57 = vpop.f32.mrb[19].mxu0  ;;  %vm5971_vm0 = vcmp.gt.f32.partialorder %v8322_v60, 0.0  ;;  %v3200_v5 = vadd.f32 %v11165_v51, %v12557_v29 }
 0x33a   :  { %v6228_v3 = vmul.f32 0.01, %v8324_v55  ;;  %v8328_v21 = vadd.f32 %v4254_v57, %v3196_v2  ;;  %vm5972_vm1 = vcmp.gt.f32.partialorder %v8324_v55, 0.0  ;;  %5223 = vmatmul.mubr.bf16.gmra.mrb[252].mxu1 %v14737_v13  ;;  %v3202_v2 = vadd.f32 %v14740_v56, %v12559_v36 }
 0x33b   :  { %vm5975_vm2 = vcmp.gt.f32.partialorder %v8326_v9, 0.0  ;;  %v6231_v28 = vmul.f32 0.01, %v8326_v9  ;;  %4517 = vmatmul.mubr.bf16.gmra.mrb[124].mxu0 %v12708_v8  ;;  %5265 = vmatprep.mubr.bf16.mxu1 %v14739_v6  ;;  %v12722_v4 = vsel %vm5971_vm0, %v8322_v60, %v6227_v54  ;;  %v14742_v54 = vld [vmem:[#allocation102_spill] sm:$0xff]  ;;  %v14747_v60 = vld [vmem:[#allocation101_spill] sm:$0xff] }
 0x33c   :  { %vm5976_vm3 = vcmp.gt.f32.partialorder %v8328_v21, 0.0  ;;  %v6232_v58 = vmul.f32 0.01, %v8328_v21  ;;  %7130 = vmatprep.mubr.bf16.mxu0 %v14738_v34  ;;  %v12728_v57 = vsel %vm5972_vm1, %v8324_v55, %v6228_v3  ;;  %v3204_v34 = vadd.f32 %v14741_v23, %v12557_v29 }
 0x33d   :  { %v12724_v39 = vsel %vm5975_vm2, %v8326_v9, %v6231_v28  ;;  %v3206_v9 = vadd.f32 %v14742_v54, %v12559_v36  ;;  %v14743_v54 = vld [vmem:[#allocation99_spill] sm:$0xff] }
 0x33e   :  { %v4258_v20 = vpop.f32.mrb[20].mxu0  ;;  %v12730_v13 = vsel %vm5976_vm3, %v8328_v21, %v6232_v58  ;;  %v9858_v21 = vld [vmem:[%s14125_s1 + $0x608] ss:$16 sps:$4 sm:$0xff]  }
 0x33f   :  { %v8330_v6 = vadd.f32 %v4258_v20, %v3200_v5  ;;  %v4260_v51 = vpop.f32.mrb[21].mxu0  ;;  %v9863_v5 = vld [vmem:[%s14125_s1 + $0x62c] ss:$16 sps:$4 sm:$0xff]  }
 0x340   :  { %v8332_v28 = vadd.f32 %v4260_v51, %v3202_v2  ;;  %v4262_v56 = vpop.f32.mrb[22].mxu0  ;;  %v14744_v2 = vpack.c.bf16 %v12591_v63, %v12589_v49  ;;  %v9866_v49 = vld [vmem:[%s14125_s1 + $0x64c] ss:$16 sps:$4 sm:$0xff]  }
 0x341   :  { %v6235_v3 = vmul.f32 0.01, %v8330_v6  ;;  %v8334_v55 = vadd.f32 %v4262_v56, %v3204_v34  ;;  %v4264_v58 = vpop.f32.mrb[23].mxu0  ;;  %vm5979_vm4 = vcmp.gt.f32.partialorder %v8330_v6, 0.0  ;;  %v14745_v34 = vpack.c.bf16 %v12639_v27, %v12637_v41  ;;  %v14746_v56 = vld [vmem:[#allocation103_spill] sm:$0xff] }
 0x342   :  { %v6236_v20 = vmul.f32 0.01, %v8332_v28  ;;  %v8336_v23 = vadd.f32 %v4264_v58, %v3206_v9  ;;  %vm5980_vm5 = vcmp.gt.f32.partialorder %v8332_v28, 0.0  ;;  %5266 = vmatmul.mubr.bf16.vlgmr.msra.gmra.mrb[128].mxu1 %v14743_v54  ;;  %v9861_v9 = vld [vmem:[%s14125_s1 + $0x628] ss:$16 sps:$4 sm:$0xff]   ;;  %v3210_v58 = vadd.f32 %v14746_v56, %v12557_v29 }
 0x343   :  { %vm5983_vm6 = vcmp.gt.f32.partialorder %v8334_v55, 0.0  ;;  %v6239_v44 = vmul.f32 0.01, %v8334_v55  ;;  %7131 = vmatmul.mubr.bf16.vlgmr.msra.gmra.mrb[128].mxu0 %v14744_v2  ;;  %5587 = vmatpush1.bf16.msra.mxu1 %v9858_v21  ;;  %v12763_v63 = vsel %vm5979_vm4, %v8330_v6, %v6235_v3  ;;  %v3212_v41 = vadd.f32 %v11201_v45, %v12559_v36  ;;  %v14748_v3 = vld [vmem:[#allocation106_spill] sm:$0xff] }
 0x344   :  { %vm5984_vm7 = vcmp.gt.f32.partialorder %v8336_v23, 0.0  ;;  %v6240_v51 = vmul.f32 0.01, %v8336_v23  ;;  %7138 = vmatprep.mubr.bf16.mxu0 %v14745_v34  ;;  %5275 = vmatprep.mubr.bf16.mxu1 %v14747_v60  ;;  %v12770_v54 = vsel %vm5980_vm5, %v8332_v28, %v6236_v20  ;;  %v3216_v45 = vadd.f32 %v14748_v3, %v12559_v36  ;;  %v14752_v3 = vld [vmem:[#allocation105_spill] sm:$0xff] }
 0x345   :  { %5588 = vmatprep.subr.bf16.mxu1 %v9863_v5  ;;  %v12765_v21 = vsel %vm5983_vm6, %v8334_v55, %v6239_v44  ;;  %v3214_v5 = vadd.f32 %v11205_v14, %v12557_v29 }
 0x346   :  { %v4268_v27 = vpop.f32.mrb[24].mxu0  ;;  %v12772_v2 = vsel %vm5984_vm7, %v8336_v23, %v6240_v51  ;;  %v6727_v60 = vpack.c.bf16 %v12765_v21, %v12763_v63  ;;  %v9864_v51 = vld [vmem:[%s14125_s1 + $0x648] ss:$16 sps:$4 sm:$0xff]  }
 0x347   :  { %v8338_v34 = vadd.f32 %v4268_v27, %v3210_v58  ;;  %v4270_v6 = vpop.f32.mrb[25].mxu0  ;;  %v6728_v44 = vpack.c.bf16 %v12772_v2, %v12770_v54  ;;  %5589 = vmatpush1.bf16.msra.mxu1 %v9861_v9  ;;  %v9869_v27 = vld [vmem:[%s14125_s1 + $0x66c] ss:$16 sps:$4 sm:$0xff]   ;;  %v14750_v9 = vpack.c.bf16 %v12632_v62, %v12630_v10  ;;  %v3222_v62 = vadd.f32 %v11235_v25, %v12559_v36 }
 0x348   :  { %v8340_v55 = vadd.f32 %v4270_v6, %v3212_v41  ;;  %v4272_v56 = vpop.f32.mrb[26].mxu0  ;;  %5590 = vmatprep.subr.bf16.mxu1 %v9866_v49  ;;  %v14749_v6 = vld [vmem:[#allocation104_spill] sm:$0xff]  ;;  %v14751_v49 = vpack.c.bf16 %v12674_v33, %v12672_v24 }
 0x349   :  { %v6243_v28 = vmul.f32 0.01, %v8338_v34  ;;  %v8342_v20 = vadd.f32 %v4272_v56, %v3214_v5  ;;  %v4274_v23 = vpop.f32.mrb[27].mxu0  ;;  %vm5987_vm8 = vcmp.gt.f32.partialorder %v8338_v34, 0.0 }
 0x34a   :  { %v6244_v14 = vmul.f32 0.01, %v8340_v55  ;;  %v8344_v58 = vadd.f32 %v4274_v23, %v3216_v45  ;;  %vm5988_vm9 = vcmp.gt.f32.partialorder %v8340_v55, 0.0  ;;  %5276 = vmatmul.mubr.bf16.gmra.mrb[132].mxu1 %v14749_v6  ;;  %v14753_v45 = vld [vmem:[#allocation107_spill] sm:$0xff] }
 0x34b   :  { %vm5991_vm10 = vcmp.gt.f32.partialorder %v8342_v20, 0.0  ;;  %v6247_v41 = vmul.f32 0.01, %v8342_v20  ;;  %7139 = vmatmul.mubr.bf16.gmra.mrb[132].mxu0 %v14750_v9  ;;  %5285 = vmatprep.mubr.bf16.mxu1 %v14752_v3  ;;  %v3220_v56 = vadd.f32 %v14753_v45, %v12557_v29  ;;  %v9867_v23 = vld [vmem:[%s14125_s1 + $0x668] ss:$16 sps:$4 sm:$0xff]   ;;  %v12802_v6 = vsel %vm5987_vm8, %v8338_v34, %v6243_v28 }
 0x34c   :  { %vm5992_vm11 = vcmp.gt.f32.partialorder %v8344_v58, 0.0  ;;  %v6248_v5 = vmul.f32 0.01, %v8344_v58  ;;  %7146 = vmatprep.mubr.bf16.mxu0 %v14751_v49  ;;  %5591 = vmatpush1.bf16.msra.mxu1 %v9864_v51  ;;  %v12809_v33 = vsel %vm5988_vm9, %v8340_v55, %v6244_v14  ;;  %v9872_v34 = vld [vmem:[%s14125_s1 + $0x68c] ss:$16 sps:$4 sm:$0xff]   ;;  %v3224_v28 = vadd.f32 %v11239_v12, %v12557_v29  ;;  %v14754_v55 = vld [vmem:[#allocation110_spill] sm:$0xff] }
 0x34d   :  { %v12804_v10 = vsel %vm5991_vm10, %v8342_v20, %v6247_v41  ;;  %5592 = vmatprep.subr.bf16.mxu1 %v9869_v27  ;;  %v3226_v14 = vadd.f32 %v14754_v55, %v12559_v36  ;;  %v9870_v45 = vld [vmem:[%s14125_s1 + $0x688] ss:$16 sps:$4 sm:$0xff]  }
 0x34e   :  { %v4278_v24 = vpop.f32.mrb[28].mxu0  ;;  %v12811_v9 = vsel %vm5992_vm11, %v8344_v58, %v6248_v5  ;;  %v6731_v51 = vpack.c.bf16 %v12804_v10, %v12802_v6  ;;  %v14758_v55 = vld [vmem:[#allocation111_spill] sm:$0xff]  ;;  %v3272_v10 = vadd.f32 %v11390_v61, %v12559_v36  ;;  %v14777_v61 = vld [vmem:[#allocation129_spill] sm:$0xff] }
 0x34f   :  { %v8346_v20 = vadd.f32 %v4278_v24, %v3220_v56  ;;  %v4280_v41 = vpop.f32.mrb[29].mxu0  ;;  %v6732_v25 = vpack.c.bf16 %v12811_v9, %v12809_v33  ;;  %v9875_v24 = vld [vmem:[%s14125_s1 + $0x6ac] ss:$16 sps:$4 sm:$0xff]  }
 0x350   :  { %v8348_v58 = vadd.f32 %v4280_v41, %v3222_v62  ;;  %v4282_v27 = vpop.f32.mrb[30].mxu0  ;;  %5593 = vmatpush1.bf16.msra.mxu1 %v9867_v23  ;;  %v14755_v41 = vld [vmem:[#allocation108_spill] sm:$0xff]  ;;  %v14756_v23 = vpack.c.bf16 %v12667_v30, %v12665_v7  ;;  %v9873_v7 = vld [vmem:[%s14125_s1 + $0x6a8] ss:$16 sps:$4 sm:$0xff]   ;;  %v3232_v30 = vadd.f32 %v11269_v38, %v12559_v36  ;;  %v9893_v6 = vld [vmem:[%s14125_s1 + $0x76c] ss:$16 sps:$4 sm:$0xff]  }
 0x351   :  { %v6251_v5 = vmul.f32 0.01, %v8346_v20  ;;  %v8350_v49 = vadd.f32 %v4282_v27, %v3224_v28  ;;  %v4284_v3 = vpop.f32.mrb[31].mxu0  ;;  %vm5995_vm12 = vcmp.gt.f32.partialorder %v8346_v20, 0.0  ;;  %5594 = vmatprep.subr.bf16.mxu1 %v9872_v34  ;;  %v14757_v34 = vld [vmem:[#allocation109_spill] sm:$0xff]  ;;  %v14772_v9 = vld [vmem:[#allocation123_spill] sm:$0xff] }
 0x352   :  { %v6252_v12 = vmul.f32 0.01, %v8348_v58  ;;  %v8352_v56 = vadd.f32 %v4284_v3, %v3226_v14  ;;  %vm5996_vm13 = vcmp.gt.f32.partialorder %v8348_v58, 0.0  ;;  %5286 = vmatmul.mubr.bf16.gmra.mrb[136].mxu1 %v14755_v41  ;;  %v3230_v14 = vadd.f32 %v14758_v55, %v12557_v29 }
 0x353   :  { %vm5999_vm14 = vcmp.gt.f32.partialorder %v8350_v49, 0.0  ;;  %v6255_v62 = vmul.f32 0.01, %v8350_v49  ;;  %7147 = vmatmul.mubr.bf16.gmra.mrb[136].mxu0 %v14756_v23  ;;  %5295 = vmatprep.mubr.bf16.mxu1 %v14757_v34  ;;  %v12840_v27 = vsel %vm5995_vm12, %v8346_v20, %v6251_v5  ;;  %v9878_v20 = vld [vmem:[%s14125_s1 + $0x6cc] ss:$16 sps:$4 sm:$0xff]   ;;  %v3234_v5 = vadd.f32 %v11273_v48, %v12557_v29 }
 0x354   :  { %vm6000_vm15 = vcmp.gt.f32.partialorder %v8352_v56, 0.0  ;;  %v6256_v28 = vmul.f32 0.01, %v8352_v56  ;;  %7154 = vmatprep.mubr.bf16.mxu0 %v6720_v19  ;;  %5595 = vmatpush1.bf16.msra.mxu1 %v9870_v45  ;;  %v12850_v59 = vsel %vm5996_vm13, %v8348_v58, %v6252_v12  ;;  %v14759_v58 = vld [vmem:[#allocation114_spill] sm:$0xff]  ;;  %v9876_v34 = vld [vmem:[%s14125_s1 + $0x6c8] ss:$16 sps:$4 sm:$0xff]  }
 0x355   :  { %v12842_v3 = vsel %vm5999_vm14, %v8350_v49, %v6255_v62  ;;  %5596 = vmatprep.subr.bf16.mxu1 %v9875_v24  ;;  %v3236_v12 = vadd.f32 %v14759_v58, %v12559_v36  ;;  %v14764_v58 = vld [vmem:[#allocation115_spill] sm:$0xff] }
 0x356   :  { %v4288_v41 = vpop.f32.mrb[32].mxu0  ;;  %v12852_v31 = vsel %vm6000_vm15, %v8352_v56, %v6256_v28  ;;  %v6735_v19 = vpack.c.bf16 %v12842_v3, %v12840_v27 }
 0x357   :  { %v8354_v49 = vadd.f32 %v4288_v41, %v3230_v14  ;;  %v4290_v45 = vpop.f32.mrb[33].mxu0  ;;  %v6736_v38 = vpack.c.bf16 %v12852_v31, %v12850_v59  ;;  %v9881_v14 = vld [vmem:[%s14125_s1 + $0x6ec] ss:$16 sps:$4 sm:$0xff]   ;;  %v14760_v41 = vld [vmem:[#allocation112_spill] sm:$0xff] }
 0x358   :  { %v8356_v56 = vadd.f32 %v4290_v45, %v3232_v30  ;;  %v4292_v62 = vpop.f32.mrb[34].mxu0  ;;  %5597 = vmatpush1.bf16.msra.mxu1 %v9873_v7  ;;  %v14761_v7 = vpack.c.bf16 %v12696_v43, %v12694_v37  ;;  %v14762_v45 = vpack.c.bf16 %v12730_v13, %v12728_v57  ;;  %v9879_v37 = vld [vmem:[%s14125_s1 + $0x6e8] ss:$16 sps:$4 sm:$0xff]   ;;  %v3242_v43 = vadd.f32 %v11303_v50, %v12559_v36 }
 0x359   :  { %v6259_v23 = vmul.f32 0.01, %v8354_v49  ;;  %v8358_v28 = vadd.f32 %v4292_v62, %v3234_v5  ;;  %v4294_v24 = vpop.f32.mrb[35].mxu0  ;;  %vm6003_vm0 = vcmp.gt.f32.partialorder %v8354_v49, 0.0  ;;  %5598 = vmatprep.subr.bf16.mxu1 %v9878_v20  ;;  %v14763_v20 = vld [vmem:[#allocation113_spill] sm:$0xff] }
 0x35a   :  { %v6260_v48 = vmul.f32 0.01, %v8356_v56  ;;  %v8360_v55 = vadd.f32 %v4294_v24, %v3236_v12  ;;  %vm6004_vm1 = vcmp.gt.f32.partialorder %v8356_v56, 0.0  ;;  %5296 = vmatmul.mubr.bf16.gmra.mrb[140].mxu1 %v14760_v41  ;;  %v3240_v12 = vadd.f32 %v14764_v58, %v12557_v29 }
 0x35b   :  { %vm6007_vm2 = vcmp.gt.f32.partialorder %v8358_v28, 0.0  ;;  %v6263_v30 = vmul.f32 0.01, %v8358_v28  ;;  %7155 = vmatmul.mubr.bf16.gmra.mrb[140].mxu0 %v14761_v7  ;;  %5305 = vmatprep.mubr.bf16.mxu1 %v14763_v20  ;;  %v12881_v62 = vsel %vm6003_vm0, %v8354_v49, %v6259_v23  ;;  %v9884_v23 = vld [vmem:[%s14125_s1 + $0x70c] ss:$16 sps:$4 sm:$0xff]  }
 0x35c   :  { %vm6008_vm3 = vcmp.gt.f32.partialorder %v8360_v55, 0.0  ;;  %v6264_v5 = vmul.f32 0.01, %v8360_v55  ;;  %7162 = vmatprep.mubr.bf16.mxu0 %v14762_v45  ;;  %5599 = vmatpush1.bf16.msra.mxu1 %v9876_v34  ;;  %v12891_v57 = vsel %vm6004_vm1, %v8356_v56, %v6260_v48  ;;  %v14765_v56 = vld [vmem:[#allocation118_spill] sm:$0xff]  ;;  %v9882_v20 = vld [vmem:[%s14125_s1 + $0x708] ss:$16 sps:$4 sm:$0xff]  }
 0x35d   :  { %v12883_v24 = vsel %vm6007_vm2, %v8358_v28, %v6263_v30  ;;  %5600 = vmatprep.subr.bf16.mxu1 %v9881_v14  ;;  %v3244_v28 = vadd.f32 %v11307_v17, %v12557_v29  ;;  %v3246_v48 = vadd.f32 %v14765_v56, %v12559_v36 }
 0x35e   :  { %v4298_v41 = vpop.f32.mrb[36].mxu0  ;;  %v12893_v13 = vsel %vm6008_vm3, %v8360_v55, %v6264_v5  ;;  %v6739_v49 = vpack.c.bf16 %v12883_v24, %v12881_v62  ;;  %v9896_v62 = vld [vmem:[%s14125_s1 + $0x78c] ss:$16 sps:$4 sm:$0xff]   ;;  %v3292_v24 = vadd.f32 %v11452_v40, %v12559_v36 }
 0x35f   :  { %v8362_v34 = vadd.f32 %v4298_v41, %v3240_v12  ;;  %v4300_v30 = vpop.f32.mrb[37].mxu0  ;;  %v6740_v50 = vpack.c.bf16 %v12893_v13, %v12891_v57  ;;  %v9887_v12 = vld [vmem:[%s14125_s1 + $0x72c] ss:$16 sps:$4 sm:$0xff]   ;;  %v14766_v41 = vld [vmem:[#allocation116_spill] sm:$0xff] }
 0x360   :  { %v8364_v55 = vadd.f32 %v4300_v30, %v3242_v43  ;;  %v4302_v7 = vpop.f32.mrb[38].mxu0  ;;  %5601 = vmatpush1.bf16.msra.mxu1 %v9879_v37  ;;  %v14767_v37 = vpack.c.bf16 %v12724_v39, %v12722_v4  ;;  %v14769_v30 = vld [vmem:[#allocation119_spill] sm:$0xff]  ;;  %v3252_v39 = vadd.f32 %v11337_v0, %v12559_v36  ;;  %v14782_v13 = vld [vmem:[#allocation133_spill] sm:$0xff] }
 0x361   :  { %v6267_v5 = vmul.f32 0.01, %v8362_v34  ;;  %v8366_v45 = vadd.f32 %v4302_v7, %v3244_v28  ;;  %v4304_v14 = vpop.f32.mrb[39].mxu0  ;;  %vm6011_vm4 = vcmp.gt.f32.partialorder %v8362_v34, 0.0  ;;  %5602 = vmatprep.subr.bf16.mxu1 %v9884_v23  ;;  %v14768_v23 = vld [vmem:[#allocation117_spill] sm:$0xff]  ;;  %v3250_v56 = vadd.f32 %v14769_v30, %v12557_v29  ;;  %v14770_v30 = vld [vmem:[#allocation120_spill] sm:$0xff] }
 0x362   :  { %v6268_v17 = vmul.f32 0.01, %v8364_v55  ;;  %v8368_v58 = vadd.f32 %v4304_v14, %v3246_v48  ;;  %vm6012_vm5 = vcmp.gt.f32.partialorder %v8364_v55, 0.0  ;;  %5306 = vmatmul.mubr.bf16.gmra.mrb[144].mxu1 %v14766_v41  ;;  %v9885_v4 = vld [vmem:[%s14125_s1 + $0x728] ss:$16 sps:$4 sm:$0xff]  }
 0x363   :  { %vm6015_vm6 = vcmp.gt.f32.partialorder %v8366_v45, 0.0  ;;  %v6271_v43 = vmul.f32 0.01, %v8366_v45  ;;  %7163 = vmatmul.mubr.bf16.gmra.mrb[144].mxu0 %v14767_v37  ;;  %5315 = vmatprep.mubr.bf16.mxu1 %v14768_v23  ;;  %v12922_v48 = vsel %vm6011_vm4, %v8362_v34, %v6267_v5  ;;  %v9890_v34 = vld [vmem:[%s14125_s1 + $0x74c] ss:$16 sps:$4 sm:$0xff]   ;;  %v3254_v5 = vadd.f32 %v11341_v1, %v12557_v29 }
 0x364   :  { %vm6016_vm7 = vcmp.gt.f32.partialorder %v8368_v58, 0.0  ;;  %v6272_v28 = vmul.f32 0.01, %v8368_v58  ;;  %7170 = vmatprep.mubr.bf16.mxu0 %v6728_v44  ;;  %5603 = vmatpush1.bf16.msra.mxu1 %v9882_v20  ;;  %v12932_v54 = vsel %vm6012_vm5, %v8364_v55, %v6268_v17  ;;  %v3256_v55 = vadd.f32 %v11345_v35, %v12559_v36  ;;  %v9888_v37 = vld [vmem:[%s14125_s1 + $0x748] ss:$16 sps:$4 sm:$0xff]  }
 0x365   :  { %v12924_v7 = vsel %vm6015_vm6, %v8366_v45, %v6271_v43  ;;  %5604 = vmatprep.subr.bf16.mxu1 %v9887_v12  ;;  %v14787_v40 = vld [vmem:[#allocation139_spill] sm:$0xff] }
 0x366   :  { %v4308_v14 = vpop.f32.mrb[40].mxu0  ;;  %v12934_v2 = vsel %vm6016_vm7, %v8368_v58, %v6272_v28  ;;  %v6743_v44 = vpack.c.bf16 %v12924_v7, %v12922_v48 }
 0x367   :  { %v8370_v45 = vadd.f32 %v4308_v14, %v3250_v56  ;;  %v4310_v20 = vpop.f32.mrb[41].mxu0  ;;  %v6744_v0 = vpack.c.bf16 %v12934_v2, %v12932_v54  ;;  %v3260_v56 = vadd.f32 %v11360_v52, %v12557_v29 }
 0x368   :  { %v8372_v17 = vadd.f32 %v4310_v20, %v3252_v39  ;;  %v4312_v58 = vpop.f32.mrb[42].mxu0  ;;  %5605 = vmatpush1.bf16.msra.mxu1 %v9885_v4 }
 0x369   :  { %v6275_v43 = vmul.f32 0.01, %v8370_v45  ;;  %v8374_v41 = vadd.f32 %v4312_v58, %v3254_v5  ;;  %v4314_v12 = vpop.f32.mrb[43].mxu0  ;;  %vm6019_vm8 = vcmp.gt.f32.partialorder %v8370_v45, 0.0  ;;  %5606 = vmatprep.subr.bf16.mxu1 %v9890_v34 }
 0x36a   :  { %v6276_v1 = vmul.f32 0.01, %v8372_v17  ;;  %v8376_v28 = vadd.f32 %v4314_v12, %v3256_v55  ;;  %vm6020_vm9 = vcmp.gt.f32.partialorder %v8372_v17, 0.0  ;;  %5316 = vmatmul.mubr.bf16.gmra.mrb[148].mxu1 %v11339_v11  ;;  %v14771_v11 = vld [vmem:[#allocation121_spill] sm:$0xff] }
 0x36b   :  { %vm6023_vm10 = vcmp.gt.f32.partialorder %v8374_v41, 0.0  ;;  %v6279_v23 = vmul.f32 0.01, %v8374_v41  ;;  %7171 = vmatmul.mubr.bf16.gmra.mrb[148].mxu0 %v6727_v60  ;;  %5325 = vmatprep.mubr.bf16.mxu1 %v14770_v30  ;;  %v12960_v4 = vsel %vm6019_vm8, %v8370_v45, %v6275_v43  ;;  %v3262_v63 = vadd.f32 %v14771_v11, %v12559_v36  ;;  %v14773_v45 = vld [vmem:[#allocation125_spill] sm:$0xff] }
 0x36c   :  { %vm6024_vm11 = vcmp.gt.f32.partialorder %v8376_v28, 0.0  ;;  %v6280_v35 = vmul.f32 0.01, %v8376_v28  ;;  %7178 = vmatprep.mubr.bf16.mxu0 %v6732_v25  ;;  %5607 = vmatpush1.bf16.msra.mxu1 %v9888_v37  ;;  %v12966_v60 = vsel %vm6020_vm9, %v8372_v17, %v6276_v1  ;;  %v3264_v25 = vadd.f32 %v14772_v9, %v12557_v29  ;;  %v9891_v30 = vld [vmem:[%s14125_s1 + $0x768] ss:$16 sps:$4 sm:$0xff]  }
 0x36d   :  { %v12962_v39 = vsel %vm6023_vm10, %v8374_v41, %v6279_v23  ;;  %v3266_v20 = vadd.f32 %v14773_v45, %v12559_v36  ;;  %5608 = vmatprep.subr.bf16.mxu1 %v9893_v6  ;;  %v14781_v6 = vld [vmem:[#allocation131_spill] sm:$0xff] }
 0x36e   :  { %v4318_v21 = vpop.f32.mrb[44].mxu0  ;;  %v12968_v14 = vsel %vm6024_vm11, %v8376_v28, %v6280_v35  ;;  %v6747_v33 = vpack.c.bf16 %v12962_v39, %v12960_v4  ;;  %v14774_v28 = vld [vmem:[#allocation122_spill] sm:$0xff]  ;;  %v14775_v35 = vld [vmem:[#allocation124_spill] sm:$0xff]  ;;  %v9899_v4 = vld [vmem:[%s14125_s1 + $0x7ac] ss:$16 sps:$4 sm:$0xff]   ;;  %v3312_v39 = vadd.f32 %v11526_v22, %v12559_v36  ;;  %v3316_v22 = vadd.f32 %v11534_v26, %v12559_v36 }
 0x36f   :  { %v8378_v52 = vadd.f32 %v4318_v21, %v3260_v56  ;;  %v4320_v34 = vpop.f32.mrb[45].mxu0  ;;  %v6748_v5 = vpack.c.bf16 %v12968_v14, %v12966_v60  ;;  %v3270_v56 = vadd.f32 %v11388_v15, %v12557_v29  ;;  %v14792_v14 = vld [vmem:[#allocation143_spill] sm:$0xff] }
 0x370   :  { %v8380_v55 = vadd.f32 %v4320_v34, %v3262_v63  ;;  %v4322_v58 = vpop.f32.mrb[46].mxu0  ;;  %v3276_v34 = vadd.f32 %v14777_v61, %v12559_v36  ;;  %5609 = vmatpush1.bf16.msra.mxu1 %v9891_v30 }
 0x371   :  { %v6283_v17 = vmul.f32 0.01, %v8378_v52  ;;  %v8382_v43 = vadd.f32 %v4322_v58, %v3264_v25  ;;  %v4324_v41 = vpop.f32.mrb[47].mxu0  ;;  %vm6027_vm12 = vcmp.gt.f32.partialorder %v8378_v52, 0.0  ;;  %5610 = vmatprep.subr.bf16.mxu1 %v9896_v62 }
 0x372   :  { %v6284_v12 = vmul.f32 0.01, %v8380_v55  ;;  %v8384_v37 = vadd.f32 %v4324_v41, %v3266_v20  ;;  %vm6028_vm13 = vcmp.gt.f32.partialorder %v8380_v55, 0.0  ;;  %5326 = vmatmul.mubr.bf16.gmra.mrb[152].mxu1 %v14774_v28  ;;  %v14779_v28 = vld [vmem:[#allocation128_spill] sm:$0xff] }
 0x373   :  { %vm6031_vm14 = vcmp.gt.f32.partialorder %v8382_v43, 0.0  ;;  %v6287_v1 = vmul.f32 0.01, %v8382_v43  ;;  %7179 = vmatmul.mubr.bf16.gmra.mrb[152].mxu0 %v6731_v51  ;;  %5335 = vmatprep.mubr.bf16.mxu1 %v14775_v35  ;;  %v12991_v11 = vsel %vm6027_vm12, %v8378_v52, %v6283_v17 }
 0x374   :  { %vm6032_vm15 = vcmp.gt.f32.partialorder %v8384_v37, 0.0  ;;  %v6288_v23 = vmul.f32 0.01, %v8384_v37  ;;  %7186 = vmatprep.mubr.bf16.mxu0 %v6736_v38  ;;  %v13001_v59 = vsel %vm6028_vm13, %v8380_v55, %v6284_v12  ;;  %v14776_v38 = vld [vmem:[#allocation127_spill] sm:$0xff] }
 0x375   :  { %v12993_v63 = vsel %vm6031_vm14, %v8382_v43, %v6287_v1  ;;  %v3274_v21 = vadd.f32 %v14776_v38, %v12557_v29 }
 0x376   :  { %v4328_v51 = vpop.f32.mrb[48].mxu0  ;;  %v13003_v31 = vsel %vm6032_vm15, %v8384_v37, %v6288_v23  ;;  %v6751_v15 = vpack.c.bf16 %v12993_v63, %v12991_v11  ;;  %v14778_v37 = vld [vmem:[#allocation126_spill] sm:$0xff] }
 0x377   :  { %v8386_v9 = vadd.f32 %v4328_v51, %v3270_v56  ;;  %v4330_v25 = vpop.f32.mrb[49].mxu0  ;;  %v6752_v52 = vpack.c.bf16 %v13003_v31, %v13001_v59  ;;  %v14780_v23 = vld [vmem:[#allocation130_spill] sm:$0xff] }
 0x378   :  { %v8388_v45 = vadd.f32 %v4330_v25, %v3272_v10  ;;  %v4332_v20 = vpop.f32.mrb[50].mxu0  ;;  %v3280_v35 = vadd.f32 %v14780_v23, %v12557_v29  ;;  %v3282_v10 = vadd.f32 %v14781_v6, %v12559_v36 }
 0x379   :  { %v6291_v55 = vmul.f32 0.01, %v8386_v9  ;;  %v8390_v58 = vadd.f32 %v4332_v20, %v3274_v21  ;;  %v4334_v17 = vpop.f32.mrb[51].mxu0  ;;  %vm6035_vm0 = vcmp.gt.f32.partialorder %v8386_v9, 0.0 }
 0x37a   :  { %v6292_v43 = vmul.f32 0.01, %v8388_v45  ;;  %v8392_v41 = vadd.f32 %v4334_v17, %v3276_v34  ;;  %vm6036_vm1 = vcmp.gt.f32.partialorder %v8388_v45, 0.0  ;;  %5336 = vmatmul.mubr.bf16.gmra.mrb[156].mxu1 %v14778_v37  ;;  %v14785_v37 = vld [vmem:[#allocation134_spill] sm:$0xff] }
 0x37b   :  { %vm6039_vm2 = vcmp.gt.f32.partialorder %v8390_v58, 0.0  ;;  %v6295_v12 = vmul.f32 0.01, %v8390_v58  ;;  %7187 = vmatmul.mubr.bf16.gmra.mrb[156].mxu0 %v6735_v19  ;;  %5345 = vmatprep.mubr.bf16.mxu1 %v14779_v28  ;;  %v13023_v30 = vsel %vm6035_vm0, %v8386_v9, %v6291_v55  ;;  %v14783_v9 = vld [vmem:[#allocation135_spill] sm:$0xff]  ;;  %v3290_v28 = vadd.f32 %v11447_v16, %v12557_v29 }
 0x37c   :  { %vm6040_vm3 = vcmp.gt.f32.partialorder %v8392_v41, 0.0  ;;  %v6296_v1 = vmul.f32 0.01, %v8392_v41  ;;  %7194 = vmatprep.mubr.bf16.mxu0 %v6740_v50  ;;  %v13029_v3 = vsel %vm6036_vm1, %v8388_v45, %v6292_v43  ;;  %v3284_v50 = vadd.f32 %v14782_v13, %v12557_v29 }
 0x37d   :  { %v13025_v56 = vsel %vm6039_vm2, %v8390_v58, %v6295_v12  ;;  %v3286_v25 = vadd.f32 %v14783_v9, %v12559_v36 }
 0x37e   :  { %v4338_v27 = vpop.f32.mrb[52].mxu0  ;;  %v13031_v19 = vsel %vm6040_vm3, %v8392_v41, %v6296_v1  ;;  %v6755_v57 = vpack.c.bf16 %v13025_v56, %v13023_v30  ;;  %v14784_v41 = vld [vmem:[#allocation132_spill] sm:$0xff]  ;;  %v9894_v1 = vld [vmem:[%s14125_s1 + $0x788] ss:$16 sps:$4 sm:$0xff]   ;;  %v9902_v30 = vld [vmem:[%s14125_s1 + $0x7cc] ss:$16 sps:$4 sm:$0xff]   ;;  %v3330_v56 = vadd.f32 %v11595_v46, %v12557_v29 }
 0x37f   :  { %v8394_v51 = vadd.f32 %v4338_v27, %v3280_v35  ;;  %v4340_v38 = vpop.f32.mrb[53].mxu0  ;;  %v6756_v21 = vpack.c.bf16 %v13031_v19, %v13029_v3  ;;  %5611 = vmatpush1.bf16.msra.mxu1 %v9894_v1  ;;  %v14791_v1 = vld [vmem:[#allocation141_spill] sm:$0xff]  ;;  %v14800_v19 = vld [vmem:[#allocation151_spill] sm:$0xff]  ;;  %v14804_v46 = vmov 0  }
 0x380   :  { %v8396_v61 = vadd.f32 %v4340_v38, %v3282_v10  ;;  %v4342_v34 = vpop.f32.mrb[54].mxu0  ;;  %5612 = vmatprep.subr.bf16.mxu1 %v9899_v4 }
 0x381   :  { %v6299_v45 = vmul.f32 0.01, %v8394_v51  ;;  %v8398_v20 = vadd.f32 %v4342_v34, %v3284_v50  ;;  %v4344_v55 = vpop.f32.mrb[55].mxu0  ;;  %vm6043_vm4 = vcmp.gt.f32.partialorder %v8394_v51, 0.0  ;;  %v3296_v50 = vadd.f32 %v14787_v40, %v12559_v36 }
 0x382   :  { %v6300_v58 = vmul.f32 0.01, %v8396_v61  ;;  %v8400_v17 = vadd.f32 %v4344_v55, %v3286_v25  ;;  %vm6044_vm5 = vcmp.gt.f32.partialorder %v8396_v61, 0.0  ;;  %5346 = vmatmul.mubr.bf16.gmra.mrb[160].mxu1 %v14784_v41  ;;  %v14788_v55 = vld [vmem:[#allocation136_spill] sm:$0xff] }
 0x383   :  { %vm6047_vm6 = vcmp.gt.f32.partialorder %v8398_v20, 0.0  ;;  %v6303_v43 = vmul.f32 0.01, %v8398_v20  ;;  %7195 = vmatmul.mubr.bf16.gmra.mrb[160].mxu0 %v6739_v49  ;;  %5355 = vmatprep.mubr.bf16.mxu1 %v14785_v37  ;;  %v13054_v23 = vsel %vm6043_vm4, %v8394_v51, %v6299_v45 }
 0x384   :  { %vm6048_vm7 = vcmp.gt.f32.partialorder %v8400_v17, 0.0  ;;  %v6304_v12 = vmul.f32 0.01, %v8400_v17  ;;  %7202 = vmatprep.mubr.bf16.mxu0 %v6744_v0  ;;  %v13064_v54 = vsel %vm6044_vm5, %v8396_v61, %v6300_v58  ;;  %v14786_v0 = vld [vmem:[#allocation137_spill] sm:$0xff] }
 0x385   :  { %v13056_v35 = vsel %vm6047_vm6, %v8398_v20, %v6303_v43  ;;  %v3294_v6 = vadd.f32 %v14786_v0, %v12557_v29  ;;  %v14790_v43 = vld [vmem:[#allocation140_spill] sm:$0xff]  ;;  %v14793_v0 = vld [vmem:[#allocation145_spill] sm:$0xff] }
 0x386   :  { %v4348_v49 = vpop.f32.mrb[56].mxu0  ;;  %v13066_v2 = vsel %vm6048_vm7, %v8400_v17, %v6304_v12  ;;  %v6759_v16 = vpack.c.bf16 %v13056_v35, %v13054_v23  ;;  %v14789_v17 = vld [vmem:[#allocation138_spill] sm:$0xff]  ;;  %v3300_v41 = vadd.f32 %v14790_v43, %v12557_v29 }
 0x387   :  { %v8402_v10 = vadd.f32 %v4348_v49, %v3290_v28  ;;  %v4350_v27 = vpop.f32.mrb[57].mxu0  ;;  %v6760_v13 = vpack.c.bf16 %v13066_v2, %v13064_v54  ;;  %v3302_v28 = vadd.f32 %v14791_v1, %v12559_v36 }
 0x388   :  { %v8404_v51 = vadd.f32 %v4350_v27, %v3292_v24  ;;  %v4352_v38 = vpop.f32.mrb[58].mxu0 }
 0x389   :  { %v6307_v9 = vmul.f32 0.01, %v8402_v10  ;;  %v8406_v25 = vadd.f32 %v4352_v38, %v3294_v6  ;;  %v4354_v61 = vpop.f32.mrb[59].mxu0  ;;  %vm6051_vm8 = vcmp.gt.f32.partialorder %v8402_v10, 0.0  ;;  %v3306_v6 = vadd.f32 %v14793_v0, %v12559_v36 }
 0x38a   :  { %v6308_v34 = vmul.f32 0.01, %v8404_v51  ;;  %v8408_v45 = vadd.f32 %v4354_v61, %v3296_v50  ;;  %vm6052_vm9 = vcmp.gt.f32.partialorder %v8404_v51, 0.0  ;;  %5356 = vmatmul.mubr.bf16.gmra.mrb[164].mxu1 %v14788_v55  ;;  %v14794_v61 = vld [vmem:[#allocation142_spill] sm:$0xff]  ;;  %v3310_v55 = vadd.f32 %v11521_v42, %v12557_v29 }
 0x38b   :  { %vm6055_vm10 = vcmp.gt.f32.partialorder %v8406_v25, 0.0  ;;  %v6311_v20 = vmul.f32 0.01, %v8406_v25  ;;  %7203 = vmatmul.mubr.bf16.gmra.mrb[164].mxu0 %v6743_v44  ;;  %5365 = vmatprep.mubr.bf16.mxu1 %v14789_v17  ;;  %v13086_v12 = vsel %vm6051_vm8, %v8402_v10, %v6307_v9 }
 0x38c   :  { %vm6056_vm11 = vcmp.gt.f32.partialorder %v8408_v45, 0.0  ;;  %v6312_v58 = vmul.f32 0.01, %v8408_v45  ;;  %7210 = vmatprep.mubr.bf16.mxu0 %v6748_v5  ;;  %v13092_v7 = vsel %vm6052_vm9, %v8404_v51, %v6308_v34  ;;  %v3304_v5 = vadd.f32 %v14792_v14, %v12557_v29 }
 0x38d   :  { %v13088_v37 = vsel %vm6055_vm10, %v8406_v25, %v6311_v20  ;;  %v9897_v20 = vld [vmem:[%s14125_s1 + $0x7a8] ss:$16 sps:$4 sm:$0xff]  }
 0x38e   :  { %v4358_v48 = vpop.f32.mrb[60].mxu0  ;;  %v13094_v44 = vsel %vm6056_vm11, %v8408_v45, %v6312_v58  ;;  %v6763_v60 = vpack.c.bf16 %v13088_v37, %v13086_v12  ;;  %v14795_v45 = vld [vmem:[#allocation144_spill] sm:$0xff]  ;;  %5613 = vmatpush1.bf16.msra.mxu1 %v9897_v20  ;;  %v9906_v12 = vld [vmem:[%s14125_s1 + $0x7ec] ss:$16 sps:$4 sm:$0xff]   ;;  %v14813_v37 = vld [vmem:[#allocation162_spill] sm:$0xff] }
 0x38f   :  { %v8410_v62 = vadd.f32 %v4358_v48, %v3300_v41  ;;  %v4360_v24 = vpop.f32.mrb[61].mxu0  ;;  %v6764_v49 = vpack.c.bf16 %v13094_v44, %v13092_v7  ;;  %5614 = vmatprep.subr.bf16.mxu1 %v9902_v30  ;;  %v14809_v44 = vld [vmem:[#allocation159_spill] sm:$0xff] }
 0x390   :  { %v8412_v10 = vadd.f32 %v4360_v24, %v3302_v28  ;;  %v4362_v27 = vpop.f32.mrb[62].mxu0 }
 0x391   :  { %v6315_v40 = vmul.f32 0.01, %v8410_v62  ;;  %v8414_v50 = vadd.f32 %v4362_v27, %v3304_v5  ;;  %v4364_v51 = vpop.f32.mrb[63].mxu0  ;;  %vm6059_vm12 = vcmp.gt.f32.partialorder %v8410_v62, 0.0  ;;  %v14798_v27 = vld [vmem:[#allocation148_spill] sm:$0xff] }
 0x392   :  { %v6316_v38 = vmul.f32 0.01, %v8412_v10  ;;  %v8416_v9 = vadd.f32 %v4364_v51, %v3306_v6  ;;  %vm6060_vm13 = vcmp.gt.f32.partialorder %v8412_v10, 0.0  ;;  %5366 = vmatmul.mubr.bf16.gmra.mrb[168].mxu1 %v14794_v61  ;;  %v14796_v6 = vld [vmem:[#allocation146_spill] sm:$0xff] }
 0x393   :  { %vm6063_vm14 = vcmp.gt.f32.partialorder %v8414_v50, 0.0  ;;  %v6319_v25 = vmul.f32 0.01, %v8414_v50  ;;  %7211 = vmatmul.mubr.bf16.gmra.mrb[168].mxu0 %v6747_v33  ;;  %5375 = vmatprep.mubr.bf16.mxu1 %v14795_v45  ;;  %v13117_v58 = vsel %vm6059_vm12, %v8410_v62, %v6315_v40  ;;  %v3320_v40 = vadd.f32 %v14798_v27, %v12557_v29  ;;  %v14801_v45 = vld [vmem:[#allocation153_spill] sm:$0xff] }
 0x394   :  { %vm6064_vm15 = vcmp.gt.f32.partialorder %v8416_v9, 0.0  ;;  %v6320_v34 = vmul.f32 0.01, %v8416_v9  ;;  %7218 = vmatprep.mubr.bf16.mxu0 %v6752_v52  ;;  %v13127_v59 = vsel %vm6060_vm13, %v8412_v10, %v6316_v38  ;;  %v3314_v52 = vadd.f32 %v11530_v47, %v12557_v29  ;;  %v14797_v10 = vld [vmem:[#allocation147_spill] sm:$0xff]  ;;  %v14799_v38 = vld [vmem:[#allocation149_spill] sm:$0xff] }
 0x395   :  { %v13119_v17 = vsel %vm6063_vm14, %v8414_v50, %v6319_v25  ;;  %v3326_v20 = vadd.f32 %v14801_v45, %v12559_v36  ;;  %v3336_v27 = vadd.f32 %v11608_v53, %v12559_v36  ;;  %v14806_v53 = vld [vmem:[#allocation155_spill] sm:$0xff] }
 0x396   :  { %v4368_v33 = vpop.f32.mrb[64].mxu0  ;;  %v13129_v31 = vsel %vm6064_vm15, %v8416_v9, %v6320_v34  ;;  %v6767_v42 = vpack.c.bf16 %v13119_v17, %v13117_v58  ;;  %v3322_v9 = vadd.f32 %v14799_v38, %v12559_v36 }
 0x397   :  { %v8418_v43 = vadd.f32 %v4368_v33, %v3310_v55  ;;  %v4370_v41 = vpop.f32.mrb[65].mxu0  ;;  %v6768_v1 = vpack.c.bf16 %v13129_v31, %v13127_v59 }
 0x398   :  { %v8420_v28 = vadd.f32 %v4370_v41, %v3312_v39  ;;  %v4372_v48 = vpop.f32.mrb[66].mxu0 }
 0x399   :  { %v6323_v14 = vmul.f32 0.01, %v8418_v43  ;;  %v8422_v5 = vadd.f32 %v4372_v48, %v3314_v52  ;;  %v4374_v62 = vpop.f32.mrb[67].mxu0  ;;  %vm6067_vm0 = vcmp.gt.f32.partialorder %v8418_v43, 0.0  ;;  %v9900_v48 = vld [vmem:[%s14125_s1 + $0x7c8] ss:$16 sps:$4 sm:$0xff]  }
 0x39a   :  { %v6324_v24 = vmul.f32 0.01, %v8420_v28  ;;  %v8424_v0 = vadd.f32 %v4374_v62, %v3316_v22  ;;  %vm6068_vm1 = vcmp.gt.f32.partialorder %v8420_v28, 0.0  ;;  %5376 = vmatmul.mubr.bf16.gmra.mrb[172].mxu1 %v14796_v6  ;;  %v14803_v62 = vld [vmem:[#allocation152_spill] sm:$0xff] }
 0x39b   :  { %vm6071_vm2 = vcmp.gt.f32.partialorder %v8422_v5, 0.0  ;;  %v6327_v47 = vmul.f32 0.01, %v8422_v5  ;;  %7219 = vmatmul.mubr.bf16.gmra.mrb[172].mxu0 %v6751_v15  ;;  %5385 = vmatprep.mubr.bf16.mxu1 %v14797_v10  ;;  %v13149_v50 = vsel %vm6067_vm0, %v8418_v43, %v6323_v14  ;;  %v9903_v14 = vld [vmem:[%s14127_s3 + $0x80] sm:$0xff]  }
 0x39c   :  { %vm6072_vm3 = vcmp.gt.f32.partialorder %v8424_v0, 0.0  ;;  %v6328_v26 = vmul.f32 0.01, %v8424_v0  ;;  %7226 = vmatprep.mubr.bf16.mxu0 %v6756_v21  ;;  %v13155_v63 = vsel %vm6068_vm1, %v8420_v28, %v6324_v24  ;;  %v3324_v21 = vadd.f32 %v14800_v19, %v12557_v29  ;;  %v14802_v28 = vld [vmem:[#allocation150_spill] sm:$0xff]  ;;  %7388 = vmatpush1.bf16.msra.mxu0 %v9903_v14 }
 0x39d   :  { %v13151_v51 = vsel %vm6071_vm2, %v8422_v5, %v6327_v47  ;;  %7389 = vmatprep.subr.bf16.mxu0 %v14804_v46  ;;  %5615 = vmatpush1.bf16.msra.mxu1 %v9900_v48 }
 0x39e   :  { %v4378_v11 = vpop.f32.mrb[68].mxu0  ;;  %v13157_v15 = vsel %vm6072_vm3, %v8424_v0, %v6328_v26  ;;  %v6771_v3 = vpack.c.bf16 %v13151_v51, %v13149_v50  ;;  %5616 = vmatprep.subr.bf16.mxu1 %v9906_v12  ;;  %v14826_v50 = vld [vmem:[#allocation175_spill] sm:$0xff] }
 0x39f   :  { %v8426_v25 = vadd.f32 %v4378_v11, %v3320_v40  ;;  %v4380_v61 = vpop.f32.mrb[69].mxu0  ;;  %v6772_v34 = vpack.c.bf16 %v13157_v15, %v13155_v63  ;;  %v14821_v15 = vld [vmem:[#allocation171_spill] sm:$0xff]  ;;  %v3372_v51 = vadd.f32 %v14826_v50, %v12559_v36 }
 0x3a0   :  { %v8428_v55 = vadd.f32 %v4380_v61, %v3322_v9  ;;  %v4382_v4 = vpop.f32.mrb[70].mxu0  ;;  %v14805_v61 = vld [vmem:[#allocation154_spill] sm:$0xff] }
 0x3a1   :  { %v6331_v39 = vmul.f32 0.01, %v8426_v25  ;;  %v8430_v33 = vadd.f32 %v4382_v4, %v3324_v21  ;;  %v4384_v52 = vpop.f32.mrb[71].mxu0  ;;  %vm6075_vm4 = vcmp.gt.f32.partialorder %v8426_v25, 0.0 }
 0x3a2   :  { %vm6076_vm5 = vcmp.gt.f32.partialorder %v8428_v55, 0.0  ;;  %v6332_v43 = vmul.f32 0.01, %v8428_v55  ;;  %v8432_v41 = vadd.f32 %v4384_v52, %v3326_v20  ;;  %5386 = vmatmul.mubr.bf16.gmra.mrb[176].mxu1 %v14802_v28  ;;  %v14807_v20 = vld [vmem:[#allocation156_spill] sm:$0xff]  ;;  %v14810_v28 = vld [vmem:[#allocation161_spill] sm:$0xff] }
 0x3a3   :  { %vm6079_vm6 = vcmp.gt.f32.partialorder %v8430_v33, 0.0  ;;  %v6335_v22 = vmul.f32 0.01, %v8430_v33  ;;  %7227 = vmatmul.mubr.bf16.gmra.mrb[176].mxu0 %v6755_v57  ;;  %5395 = vmatprep.mubr.bf16.mxu1 %v14803_v62  ;;  %v3332_v57 = vadd.f32 %v11600_v18, %v12559_v36  ;;  %v13189_v24 = vsel %vm6075_vm4, %v8426_v25, %v6331_v39 }
 0x3a4   :  { %vm6080_vm7 = vcmp.gt.f32.partialorder %v8432_v41, 0.0  ;;  %v6336_v5 = vmul.f32 0.01, %v8432_v41  ;;  %7234 = vmatprep.mubr.bf16.mxu0 %v6760_v13  ;;  %v13194_v2 = vsel %vm6076_vm5, %v8428_v55, %v6332_v43  ;;  %v3334_v18 = vadd.f32 %v11604_v32, %v12557_v29 }
 0x3a5   :  { %v13191_v0 = vsel %vm6079_vm6, %v8430_v33, %v6335_v22  ;;  %v3340_v55 = vadd.f32 %v14807_v20, %v12557_v29  ;;  %v14808_v33 = vld [vmem:[#allocation157_spill] sm:$0xff]  ;;  %v3346_v48 = vadd.f32 %v14810_v28, %v12559_v36 }
 0x3a6   :  { %v4388_v54 = vpop.f32.mrb[72].mxu0  ;;  %v13196_v13 = vsel %vm6080_vm7, %v8432_v41, %v6336_v5  ;;  %v6775_v47 = vpack.c.bf16 %v13191_v0, %v13189_v24  ;;  %v3342_v52 = vadd.f32 %v14808_v33, %v12559_v36 }
 0x3a7   :  { %v8434_v6 = vadd.f32 %v4388_v54, %v3330_v56  ;;  %v4390_v26 = vpop.f32.mrb[73].mxu0  ;;  %v6776_v10 = vpack.c.bf16 %v13196_v13, %v13194_v2  ;;  %v14827_v13 = vld [vmem:[#allocation177_spill] sm:$0xff] }
 0x3a8   :  { %v8436_v40 = vadd.f32 %v4390_v26, %v3332_v57  ;;  %v4392_v38 = vpop.f32.mrb[74].mxu0  ;;  %v9904_v26 = vld [vmem:[%s14125_s1 + $0x7e8] ss:$16 sps:$4 sm:$0xff]  }
 0x3a9   :  { %v6339_v9 = vmul.f32 0.01, %v8434_v6  ;;  %v8438_v11 = vadd.f32 %v4392_v38, %v3334_v18  ;;  %v4394_v19 = vpop.f32.mrb[75].mxu0  ;;  %vm6083_vm8 = vcmp.gt.f32.partialorder %v8434_v6, 0.0  ;;  %v14812_v38 = vld [vmem:[#allocation160_spill] sm:$0xff]  ;;  %5617 = vmatpush1.bf16.msra.mxu1 %v9904_v26 }
 0x3aa   :  { %v6340_v21 = vmul.f32 0.01, %v8436_v40  ;;  %v8440_v25 = vadd.f32 %v4394_v19, %v3336_v27  ;;  %vm6084_vm9 = vcmp.gt.f32.partialorder %v8436_v40, 0.0  ;;  %5396 = vmatmul.mubr.bf16.gmra.mrb[180].mxu1 %v14805_v61  ;;  %v9907_v27 = vld [vmem:[%s14127_s3 + $0x88] sm:$0xff]  }
 0x3ab   :  { %vm6087_vm10 = vcmp.gt.f32.partialorder %v8438_v11, 0.0  ;;  %v6343_v32 = vmul.f32 0.01, %v8438_v11  ;;  %7235 = vmatmul.mubr.bf16.gmra.mrb[180].mxu0 %v6759_v16  ;;  %5405 = vmatprep.mubr.bf16.mxu1 %v14806_v53  ;;  %v13217_v4 = vsel %vm6083_vm8, %v8434_v6, %v6339_v9  ;;  %v14811_v6 = vld [vmem:[#allocation158_spill] sm:$0xff]  ;;  %v14814_v9 = vld [vmem:[#allocation163_spill] sm:$0xff] }
 0x3ac   :  { %vm6088_vm11 = vcmp.gt.f32.partialorder %v8440_v25, 0.0  ;;  %v6344_v45 = vmul.f32 0.01, %v8440_v25  ;;  %7242 = vmatprep.mubr.bf16.mxu0 %v6764_v49  ;;  %v13223_v35 = vsel %vm6084_vm9, %v8436_v40, %v6340_v21  ;;  %v3344_v49 = vadd.f32 %v14809_v44, %v12557_v29  ;;  %7390 = vmatpush1.bf16.msra.mxu0 %v9907_v27 }
 0x3ad   :  { %v13219_v39 = vsel %vm6087_vm10, %v8438_v11, %v6343_v32  ;;  %v3352_v11 = vadd.f32 %v14814_v9, %v12559_v36  ;;  %7391 = vmatprep.subr.bf16.mxu0 %v14804_v46  ;;  %v14815_v32 = vld [vmem:[#allocation165_spill] sm:$0xff] }
 0x3ae   :  { %v4398_v23 = vpop.f32.mrb[76].mxu0  ;;  %v13225_v16 = vsel %vm6088_vm11, %v8440_v25, %v6344_v45  ;;  %v6779_v7 = vpack.c.bf16 %v13219_v39, %v13217_v4  ;;  %v3354_v61 = vadd.f32 %v14815_v32, %v12557_v29  ;;  %v14838_v4 = vld [vmem:[#allocation187_spill] sm:$0xff] }
 0x3af   :  { %v8442_v43 = vadd.f32 %v4398_v23, %v3340_v55  ;;  %v4400_v41 = vpop.f32.mrb[77].mxu0  ;;  %v6780_v22 = vpack.c.bf16 %v13225_v16, %v13223_v35  ;;  %v14816_v55 = vld [vmem:[#allocation167_spill] sm:$0xff]  ;;  %v3392_v39 = vadd.f32 %v14838_v4, %v12559_v36 }
 0x3b0   :  { %v8444_v14 = vadd.f32 %v4400_v41, %v3342_v52  ;;  %v4402_v5 = vpop.f32.mrb[78].mxu0  ;;  %v3356_v33 = vadd.f32 %v14816_v55, %v12559_v36  ;;  %v9908_v55 = vld [vmem:[%s14127_s3 + $0x90] sm:$0xff]   ;;  %v14833_v16 = vld [vmem:[#allocation183_spill] sm:$0xff] }
 0x3b1   :  { %v6347_v62 = vmul.f32 0.01, %v8442_v43  ;;  %v8446_v30 = vadd.f32 %v4402_v5, %v3344_v49  ;;  %v4404_v56 = vpop.f32.mrb[79].mxu0  ;;  %vm6091_vm12 = vcmp.gt.f32.partialorder %v8442_v43, 0.0  ;;  %7392 = vmatpush1.bf16.msra.mxu0 %v9908_v55 }
 0x3b2   :  { %vm6092_vm13 = vcmp.gt.f32.partialorder %v8444_v14, 0.0  ;;  %v6348_v57 = vmul.f32 0.01, %v8444_v14  ;;  %v8448_v54 = vadd.f32 %v4404_v56, %v3346_v48  ;;  %5406 = vmatmul.mubr.bf16.gmra.mrb[184].mxu1 %v14811_v6  ;;  %7393 = vmatprep.subr.bf16.mxu0 %v14804_v46 }
 0x3b3   :  { %vm6095_vm14 = vcmp.gt.f32.partialorder %v8446_v30, 0.0  ;;  %v6351_v18 = vmul.f32 0.01, %v8446_v30  ;;  %7243 = vmatmul.mubr.bf16.gmra.mrb[184].mxu0 %v6763_v60  ;;  %5415 = vmatprep.mubr.bf16.mxu1 %v14812_v38  ;;  %v3350_v60 = vadd.f32 %v14813_v37, %v12557_v29  ;;  %v13257_v19 = vsel %vm6091_vm12, %v8442_v43, %v6347_v62  ;;  %v14818_v62 = vld [vmem:[#allocation166_spill] sm:$0xff]  ;;  %v14822_v38 = vld [vmem:[#allocation173_spill] sm:$0xff] }
 0x3b4   :  { %vm6096_vm15 = vcmp.gt.f32.partialorder %v8448_v54, 0.0  ;;  %v6352_v40 = vmul.f32 0.01, %v8448_v54  ;;  %7250 = vmatprep.mubr.bf16.mxu0 %v6768_v1  ;;  %v13262_v31 = vsel %vm6092_vm13, %v8444_v14, %v6348_v57  ;;  %v14817_v14 = vld [vmem:[#allocation164_spill] sm:$0xff]  ;;  %v3366_v12 = vadd.f32 %v14822_v38, %v12559_v36 }
 0x3b5   :  { %v13259_v21 = vsel %vm6095_vm14, %v8446_v30, %v6351_v18  ;;  %v14819_v30 = vld [vmem:[#allocation168_spill] sm:$0xff]  ;;  %v14820_v18 = vld [vmem:[#allocation169_spill] sm:$0xff] }
 0x3b6   :  { %v4408_v59 = vpop.f32.mrb[80].mxu0  ;;  %v13264_v1 = vsel %vm6096_vm15, %v8448_v54, %v6352_v40  ;;  %v6783_v25 = vpack.c.bf16 %v13259_v21, %v13257_v19  ;;  %v3360_v56 = vadd.f32 %v14819_v30, %v12557_v29  ;;  %v3362_v6 = vadd.f32 %v14820_v18, %v12559_v36  ;;  %v14829_v38 = vld [vmem:[#allocation176_spill] sm:$0xff] }
 0x3b7   :  { %v8450_v45 = vadd.f32 %v4408_v59, %v3350_v60  ;;  %v4410_v53 = vpop.f32.mrb[81].mxu0  ;;  %v6784_v20 = vpack.c.bf16 %v13264_v1, %v13262_v31  ;;  %v14839_v1 = vld [vmem:[#allocation189_spill] sm:$0xff] }
 0x3b8   :  { %v8452_v52 = vadd.f32 %v4410_v53, %v3352_v11  ;;  %v4412_v23 = vpop.f32.mrb[82].mxu0  ;;  %v14823_v53 = vld [vmem:[#allocation170_spill] sm:$0xff] }
 0x3b9   :  { %v6355_v44 = vmul.f32 0.01, %v8450_v45  ;;  %v8454_v49 = vadd.f32 %v4412_v23, %v3354_v61  ;;  %v4414_v43 = vpop.f32.mrb[83].mxu0  ;;  %vm6099_vm0 = vcmp.gt.f32.partialorder %v8450_v45, 0.0  ;;  %v14825_v23 = vld [vmem:[#allocation174_spill] sm:$0xff] }
 0x3ba   :  { %v6356_v41 = vmul.f32 0.01, %v8452_v52  ;;  %v8456_v28 = vadd.f32 %v4414_v43, %v3356_v33  ;;  %vm6100_vm1 = vcmp.gt.f32.partialorder %v8452_v52, 0.0  ;;  %5416 = vmatmul.mubr.bf16.gmra.mrb[188].mxu1 %v14817_v14 }
 0x3bb   :  { %vm6103_vm2 = vcmp.gt.f32.partialorder %v8454_v49, 0.0  ;;  %v6359_v48 = vmul.f32 0.01, %v8454_v49  ;;  %7251 = vmatmul.mubr.bf16.gmra.mrb[188].mxu0 %v6767_v42  ;;  %5425 = vmatprep.mubr.bf16.mxu1 %v14818_v62  ;;  %v13285_v57 = vsel %vm6099_vm0, %v8450_v45, %v6355_v44  ;;  %v3370_v44 = vadd.f32 %v14825_v23, %v12557_v29  ;;  %v14828_v62 = vld [vmem:[#allocation179_spill] sm:$0xff] }
 0x3bc   :  { %vm6104_vm3 = vcmp.gt.f32.partialorder %v8456_v28, 0.0  ;;  %v6360_v5 = vmul.f32 0.01, %v8456_v28  ;;  %7258 = vmatprep.mubr.bf16.mxu0 %v6772_v34  ;;  %v13291_v17 = vsel %vm6100_vm1, %v8452_v52, %v6356_v41  ;;  %v3364_v34 = vadd.f32 %v14821_v15, %v12557_v29  ;;  %v14824_v52 = vld [vmem:[#allocation172_spill] sm:$0xff] }
 0x3bd   :  { %v13287_v54 = vsel %vm6103_vm2, %v8454_v49, %v6359_v48  ;;  %v3376_v30 = vadd.f32 %v14828_v62, %v12559_v36  ;;  %v9909_v62 = vld [vmem:[%s14127_s3 + $0x98] sm:$0xff]  }
 0x3be   :  { %v4418_v58 = vpop.f32.mrb[84].mxu0  ;;  %v13293_v42 = vsel %vm6104_vm3, %v8456_v28, %v6360_v5  ;;  %v6787_v63 = vpack.c.bf16 %v13287_v54, %v13285_v57  ;;  %7394 = vmatpush1.bf16.msra.mxu0 %v9909_v62  ;;  %v14850_v57 = vld [vmem:[#allocation199_spill] sm:$0xff] }
 0x3bf   :  { %v8458_v26 = vadd.f32 %v4418_v58, %v3360_v56  ;;  %v4420_v27 = vpop.f32.mrb[85].mxu0  ;;  %v6788_v40 = vpack.c.bf16 %v13293_v42, %v13291_v17  ;;  %7395 = vmatprep.subr.bf16.mxu0 %v14804_v46  ;;  %v14845_v42 = vld [vmem:[#allocation195_spill] sm:$0xff]  ;;  %v3412_v54 = vadd.f32 %v14850_v57, %v12559_v36 }
 0x3c0   :  { %v8460_v37 = vadd.f32 %v4420_v27, %v3362_v6  ;;  %v4422_v60 = vpop.f32.mrb[86].mxu0 }
 0x3c1   :  { %v6363_v9 = vmul.f32 0.01, %v8458_v26  ;;  %v8462_v11 = vadd.f32 %v4422_v60, %v3364_v34  ;;  %v4424_v59 = vpop.f32.mrb[87].mxu0  ;;  %vm6107_vm4 = vcmp.gt.f32.partialorder %v8458_v26, 0.0  ;;  %v14831_v60 = vld [vmem:[#allocation180_spill] sm:$0xff] }
 0x3c2   :  { %v6364_v32 = vmul.f32 0.01, %v8460_v37  ;;  %v8464_v61 = vadd.f32 %v4424_v59, %v3366_v12  ;;  %vm6108_vm5 = vcmp.gt.f32.partialorder %v8460_v37, 0.0  ;;  %5426 = vmatmul.mubr.bf16.gmra.mrb[192].mxu1 %v14823_v53 }
 0x3c3   :  { %vm6111_vm6 = vcmp.gt.f32.partialorder %v8462_v11, 0.0  ;;  %v6367_v45 = vmul.f32 0.01, %v8462_v11  ;;  %7259 = vmatmul.mubr.bf16.gmra.mrb[192].mxu0 %v6771_v3  ;;  %5435 = vmatprep.mubr.bf16.mxu1 %v14824_v52  ;;  %v13316_v49 = vsel %vm6107_vm4, %v8458_v26, %v6363_v9  ;;  %v3380_v9 = vadd.f32 %v14831_v60, %v12557_v29 }
 0x3c4   :  { %vm6112_vm7 = vcmp.gt.f32.partialorder %v8464_v61, 0.0  ;;  %v6368_v33 = vmul.f32 0.01, %v8464_v61  ;;  %7266 = vmatprep.mubr.bf16.mxu0 %v6776_v10  ;;  %v13323_v41 = vsel %vm6108_vm5, %v8460_v37, %v6364_v32  ;;  %v3374_v10 = vadd.f32 %v14827_v13, %v12557_v29  ;;  %v14830_v37 = vld [vmem:[#allocation178_spill] sm:$0xff]  ;;  %v14832_v32 = vld [vmem:[#allocation181_spill] sm:$0xff] }
 0x3c5   :  { %v13318_v43 = vsel %vm6111_vm6, %v8462_v11, %v6367_v45 }
 0x3c6   :  { %v4428_v3 = vpop.f32.mrb[88].mxu0  ;;  %v13325_v28 = vsel %vm6112_vm7, %v8464_v61, %v6368_v33  ;;  %v6791_v2 = vpack.c.bf16 %v13318_v43, %v13316_v49  ;;  %v3382_v61 = vadd.f32 %v14832_v32, %v12559_v36  ;;  %v14834_v33 = vld [vmem:[#allocation185_spill] sm:$0xff] }
 0x3c7   :  { %v8466_v48 = vadd.f32 %v4428_v3, %v3370_v44  ;;  %v4430_v14 = vpop.f32.mrb[89].mxu0  ;;  %v6792_v5 = vpack.c.bf16 %v13325_v28, %v13323_v41  ;;  %v3386_v52 = vadd.f32 %v14834_v33, %v12559_v36  ;;  %v14841_v33 = vld [vmem:[#allocation188_spill] sm:$0xff]  ;;  %v14851_v28 = vld [vmem:[#allocation201_spill] sm:$0xff] }
 0x3c8   :  { %v8468_v56 = vadd.f32 %v4430_v14, %v3372_v51  ;;  %v4432_v18 = vpop.f32.mrb[90].mxu0  ;;  %v14835_v14 = vld [vmem:[#allocation182_spill] sm:$0xff] }
 0x3c9   :  { %v6371_v6 = vmul.f32 0.01, %v8466_v48  ;;  %v8470_v58 = vadd.f32 %v4432_v18, %v3374_v10  ;;  %v4434_v15 = vpop.f32.mrb[91].mxu0  ;;  %vm6115_vm8 = vcmp.gt.f32.partialorder %v8466_v48, 0.0  ;;  %v14837_v18 = vld [vmem:[#allocation186_spill] sm:$0xff] }
 0x3ca   :  { %v6372_v34 = vmul.f32 0.01, %v8468_v56  ;;  %v8472_v26 = vadd.f32 %v4434_v15, %v3376_v30  ;;  %vm6116_vm9 = vcmp.gt.f32.partialorder %v8468_v56, 0.0  ;;  %5436 = vmatmul.mubr.bf16.gmra.mrb[196].mxu1 %v14829_v38 }
 0x3cb   :  { %vm6119_vm10 = vcmp.gt.f32.partialorder %v8470_v58, 0.0  ;;  %v6375_v27 = vmul.f32 0.01, %v8470_v58  ;;  %7267 = vmatmul.mubr.bf16.gmra.mrb[196].mxu0 %v6775_v47  ;;  %5445 = vmatprep.mubr.bf16.mxu1 %v14830_v37  ;;  %v13346_v11 = vsel %vm6115_vm8, %v8466_v48, %v6371_v6  ;;  %v3390_v6 = vadd.f32 %v14837_v18, %v12557_v29  ;;  %v14840_v37 = vld [vmem:[#allocation191_spill] sm:$0xff] }
 0x3cc   :  { %vm6120_vm11 = vcmp.gt.f32.partialorder %v8472_v26, 0.0  ;;  %v6376_v12 = vmul.f32 0.01, %v8472_v26  ;;  %7274 = vmatprep.mubr.bf16.mxu0 %v6780_v22  ;;  %v13352_v0 = vsel %vm6116_vm9, %v8468_v56, %v6372_v34  ;;  %v3384_v22 = vadd.f32 %v14833_v16, %v12557_v29  ;;  %v14836_v56 = vld [vmem:[#allocation184_spill] sm:$0xff] }
 0x3cd   :  { %v13348_v59 = vsel %vm6119_vm10, %v8470_v58, %v6375_v27  ;;  %v3396_v60 = vadd.f32 %v14840_v37, %v12559_v36  ;;  %v9910_v37 = vld [vmem:[%s14127_s3 + $0xa0] sm:$0xff]  }
 0x3ce   :  { %v4438_v24 = vpop.f32.mrb[92].mxu0  ;;  %v13354_v47 = vsel %vm6120_vm11, %v8472_v26, %v6376_v12  ;;  %v6795_v35 = vpack.c.bf16 %v13348_v59, %v13346_v11  ;;  %7396 = vmatpush1.bf16.msra.mxu0 %v9910_v37  ;;  %v14862_v11 = vld [vmem:[#allocation211_spill] sm:$0xff] }
 0x3cf   :  { %v8474_v45 = vadd.f32 %v4438_v24, %v3380_v9  ;;  %v4440_v53 = vpop.f32.mrb[93].mxu0  ;;  %v6796_v55 = vpack.c.bf16 %v13354_v47, %v13352_v0  ;;  %7397 = vmatprep.subr.bf16.mxu0 %v14804_v46  ;;  %v14857_v47 = vld [vmem:[#allocation207_spill] sm:$0xff]  ;;  %v3432_v59 = vadd.f32 %v14862_v11, %v12559_v36 }
 0x3d0   :  { %v8476_v23 = vadd.f32 %v4440_v53, %v3382_v61  ;;  %v4442_v44 = vpop.f32.mrb[94].mxu0 }
 0x3d1   :  { %v6379_v50 = vmul.f32 0.01, %v8474_v45  ;;  %v8478_v51 = vadd.f32 %v4442_v44, %v3384_v22  ;;  %v4444_v3 = vpop.f32.mrb[95].mxu0  ;;  %vm6123_vm12 = vcmp.gt.f32.partialorder %v8474_v45, 0.0  ;;  %v14843_v44 = vld [vmem:[#allocation192_spill] sm:$0xff] }
 0x3d2   :  { %v6380_v13 = vmul.f32 0.01, %v8476_v23  ;;  %v8480_v10 = vadd.f32 %v4444_v3, %v3386_v52  ;;  %vm6124_vm13 = vcmp.gt.f32.partialorder %v8476_v23, 0.0  ;;  %5446 = vmatmul.mubr.bf16.gmra.mrb[200].mxu1 %v14835_v14 }
 0x3d3   :  { %vm6127_vm14 = vcmp.gt.f32.partialorder %v8478_v51, 0.0  ;;  %v6383_v48 = vmul.f32 0.01, %v8478_v51  ;;  %7275 = vmatmul.mubr.bf16.gmra.mrb[200].mxu0 %v6779_v7  ;;  %5455 = vmatprep.mubr.bf16.mxu1 %v14836_v56  ;;  %v13377_v58 = vsel %vm6123_vm12, %v8474_v45, %v6379_v50  ;;  %v3400_v50 = vadd.f32 %v14843_v44, %v12557_v29 }
 0x3d4   :  { %vm6128_vm15 = vcmp.gt.f32.partialorder %v8480_v10, 0.0  ;;  %v6384_v30 = vmul.f32 0.01, %v8480_v10  ;;  %7282 = vmatprep.mubr.bf16.mxu0 %v6784_v20  ;;  %v13384_v34 = vsel %vm6124_vm13, %v8476_v23, %v6380_v13  ;;  %v3394_v20 = vadd.f32 %v14839_v1, %v12557_v29  ;;  %v14842_v23 = vld [vmem:[#allocation190_spill] sm:$0xff]  ;;  %v14844_v13 = vld [vmem:[#allocation193_spill] sm:$0xff] }
 0x3d5   :  { %v13379_v15 = vsel %vm6127_vm14, %v8478_v51, %v6383_v48 }
 0x3d6   :  { %v4448_v7 = vpop.f32.mrb[96].mxu0  ;;  %v13386_v26 = vsel %vm6128_vm15, %v8480_v10, %v6384_v30  ;;  %v6799_v31 = vpack.c.bf16 %v13379_v15, %v13377_v58  ;;  %v3402_v10 = vadd.f32 %v14844_v13, %v12559_v36  ;;  %v14846_v30 = vld [vmem:[#allocation197_spill] sm:$0xff] }
 0x3d7   :  { %v8482_v27 = vadd.f32 %v4448_v7, %v3390_v6  ;;  %v4450_v38 = vpop.f32.mrb[97].mxu0  ;;  %v6800_v12 = vpack.c.bf16 %v13386_v26, %v13384_v34  ;;  %v3406_v56 = vadd.f32 %v14846_v30, %v12559_v36  ;;  %v14853_v30 = vld [vmem:[#allocation200_spill] sm:$0xff]  ;;  %v14863_v26 = vld [vmem:[#allocation213_spill] sm:$0xff] }
 0x3d8   :  { %v8484_v9 = vadd.f32 %v4450_v38, %v3392_v39  ;;  %v4452_v32 = vpop.f32.mrb[98].mxu0  ;;  %v14847_v38 = vld [vmem:[#allocation194_spill] sm:$0xff] }
 0x3d9   :  { %v6387_v61 = vmul.f32 0.01, %v8482_v27  ;;  %v8486_v24 = vadd.f32 %v4452_v32, %v3394_v20  ;;  %v4454_v16 = vpop.f32.mrb[99].mxu0  ;;  %vm6131_vm0 = vcmp.gt.f32.partialorder %v8482_v27, 0.0  ;;  %v14849_v32 = vld [vmem:[#allocation198_spill] sm:$0xff] }
 0x3da   :  { %v6388_v22 = vmul.f32 0.01, %v8484_v9  ;;  %v8488_v45 = vadd.f32 %v4454_v16, %v3396_v60  ;;  %vm6132_vm1 = vcmp.gt.f32.partialorder %v8484_v9, 0.0  ;;  %5456 = vmatmul.mubr.bf16.gmra.mrb[204].mxu1 %v14841_v33 }
 0x3db   :  { %vm6135_vm2 = vcmp.gt.f32.partialorder %v8486_v24, 0.0  ;;  %v6391_v53 = vmul.f32 0.01, %v8486_v24  ;;  %7283 = vmatmul.mubr.bf16.gmra.mrb[204].mxu0 %v6783_v25  ;;  %5465 = vmatprep.mubr.bf16.mxu1 %v14842_v23  ;;  %v13407_v51 = vsel %vm6131_vm0, %v8482_v27, %v6387_v61  ;;  %v3410_v61 = vadd.f32 %v14849_v32, %v12557_v29  ;;  %v14852_v23 = vld [vmem:[#allocation203_spill] sm:$0xff] }
 0x3dc   :  { %vm6136_vm3 = vcmp.gt.f32.partialorder %v8488_v45, 0.0  ;;  %v6392_v52 = vmul.f32 0.01, %v8488_v45  ;;  %7290 = vmatprep.mubr.bf16.mxu0 %v6788_v40  ;;  %v13413_v21 = vsel %vm6132_vm1, %v8484_v9, %v6388_v22  ;;  %v3404_v40 = vadd.f32 %v14845_v42, %v12557_v29  ;;  %v14848_v9 = vld [vmem:[#allocation196_spill] sm:$0xff] }
 0x3dd   :  { %v13409_v3 = vsel %vm6135_vm2, %v8486_v24, %v6391_v53  ;;  %v3416_v44 = vadd.f32 %v14852_v23, %v12559_v36  ;;  %v9911_v23 = vld [vmem:[%s14127_s3 + $0xa8] sm:$0xff]  }
 0x3de   :  { %v4458_v19 = vpop.f32.mrb[100].mxu0  ;;  %v13415_v25 = vsel %vm6136_vm3, %v8488_v45, %v6392_v52  ;;  %v6803_v17 = vpack.c.bf16 %v13409_v3, %v13407_v51  ;;  %7398 = vmatpush1.bf16.msra.mxu0 %v9911_v23  ;;  %v14874_v51 = vld [vmem:[#allocation54_spill] sm:$0xff] }
 0x3df   :  { %v8490_v48 = vadd.f32 %v4458_v19, %v3400_v50  ;;  %v4460_v14 = vpop.f32.mrb[101].mxu0  ;;  %v6804_v62 = vpack.c.bf16 %v13415_v25, %v13413_v21  ;;  %7399 = vmatprep.subr.bf16.mxu0 %v14804_v46  ;;  %v14869_v25 = vld [vmem:[#allocation218_spill] sm:$0xff]  ;;  %v3452_v3 = vadd.f32 %v14874_v51, %v12559_v36 }
 0x3e0   :  { %v8492_v18 = vadd.f32 %v4460_v14, %v3402_v10  ;;  %v4462_v6 = vpop.f32.mrb[102].mxu0 }
 0x3e1   :  { %v6395_v4 = vmul.f32 0.01, %v8490_v48  ;;  %v8494_v39 = vadd.f32 %v4462_v6, %v3404_v40  ;;  %v4464_v7 = vpop.f32.mrb[103].mxu0  ;;  %vm6139_vm4 = vcmp.gt.f32.partialorder %v8490_v48, 0.0  ;;  %v14855_v6 = vld [vmem:[#allocation204_spill] sm:$0xff] }
 0x3e2   :  { %v6396_v1 = vmul.f32 0.01, %v8492_v18  ;;  %v8496_v20 = vadd.f32 %v4464_v7, %v3406_v56  ;;  %vm6140_vm5 = vcmp.gt.f32.partialorder %v8492_v18, 0.0  ;;  %5466 = vmatmul.mubr.bf16.gmra.mrb[208].mxu1 %v14847_v38 }
 0x3e3   :  { %vm6143_vm6 = vcmp.gt.f32.partialorder %v8494_v39, 0.0  ;;  %v6399_v27 = vmul.f32 0.01, %v8494_v39  ;;  %7291 = vmatmul.mubr.bf16.gmra.mrb[208].mxu0 %v6787_v63  ;;  %5475 = vmatprep.mubr.bf16.mxu1 %v14848_v9  ;;  %v13438_v24 = vsel %vm6139_vm4, %v8490_v48, %v6395_v4  ;;  %v3420_v4 = vadd.f32 %v14855_v6, %v12557_v29 }
 0x3e4   :  { %vm6144_vm7 = vcmp.gt.f32.partialorder %v8496_v20, 0.0  ;;  %v6400_v60 = vmul.f32 0.01, %v8496_v20  ;;  %7298 = vmatprep.mubr.bf16.mxu0 %v6792_v5  ;;  %v13445_v22 = vsel %vm6140_vm5, %v8492_v18, %v6396_v1  ;;  %v3414_v5 = vadd.f32 %v14851_v28, %v12557_v29  ;;  %v14854_v18 = vld [vmem:[#allocation202_spill] sm:$0xff]  ;;  %v14856_v1 = vld [vmem:[#allocation205_spill] sm:$0xff] }
 0x3e5   :  { %v13440_v16 = vsel %vm6143_vm6, %v8494_v39, %v6399_v27 }
 0x3e6   :  { %v4468_v63 = vpop.f32.mrb[104].mxu0  ;;  %v13447_v45 = vsel %vm6144_vm7, %v8496_v20, %v6400_v60  ;;  %v6807_v41 = vpack.c.bf16 %v13440_v16, %v13438_v24  ;;  %v3422_v20 = vadd.f32 %v14856_v1, %v12559_v36  ;;  %v14858_v60 = vld [vmem:[#allocation209_spill] sm:$0xff] }
 0x3e7   :  { %v8498_v53 = vadd.f32 %v4468_v63, %v3410_v61  ;;  %v4470_v33 = vpop.f32.mrb[105].mxu0  ;;  %v6808_v52 = vpack.c.bf16 %v13447_v45, %v13445_v22  ;;  %v3426_v9 = vadd.f32 %v14858_v60, %v12559_v36  ;;  %v14865_v60 = vld [vmem:[#allocation212_spill] sm:$0xff]  ;;  %v14875_v45 = vld [vmem:[#allocation222_spill] sm:$0xff] }
 0x3e8   :  { %v8500_v50 = vadd.f32 %v4470_v33, %v3412_v54  ;;  %v4472_v13 = vpop.f32.mrb[106].mxu0  ;;  %v14859_v33 = vld [vmem:[#allocation206_spill] sm:$0xff] }
 0x3e9   :  { %v6403_v10 = vmul.f32 0.01, %v8498_v53  ;;  %v8502_v19 = vadd.f32 %v4472_v13, %v3414_v5  ;;  %v4474_v42 = vpop.f32.mrb[107].mxu0  ;;  %vm6147_vm8 = vcmp.gt.f32.partialorder %v8498_v53, 0.0  ;;  %v14861_v13 = vld [vmem:[#allocation210_spill] sm:$0xff] }
 0x3ea   :  { %v6404_v40 = vmul.f32 0.01, %v8500_v50  ;;  %v8504_v48 = vadd.f32 %v4474_v42, %v3416_v44  ;;  %vm6148_vm9 = vcmp.gt.f32.partialorder %v8500_v50, 0.0  ;;  %5476 = vmatmul.mubr.bf16.gmra.mrb[212].mxu1 %v14853_v30 }
 0x3eb   :  { %vm6151_vm10 = vcmp.gt.f32.partialorder %v8502_v19, 0.0  ;;  %v6407_v14 = vmul.f32 0.01, %v8502_v19  ;;  %7299 = vmatmul.mubr.bf16.gmra.mrb[212].mxu0 %v6791_v2  ;;  %5485 = vmatprep.mubr.bf16.mxu1 %v14854_v18  ;;  %v13468_v39 = vsel %vm6147_vm8, %v8498_v53, %v6403_v10  ;;  %v3430_v10 = vadd.f32 %v14861_v13, %v12557_v29  ;;  %v14864_v18 = vld [vmem:[#allocation215_spill] sm:$0xff] }
 0x3ec   :  { %vm6152_vm11 = vcmp.gt.f32.partialorder %v8504_v48, 0.0  ;;  %v6408_v56 = vmul.f32 0.01, %v8504_v48  ;;  %7306 = vmatprep.mubr.bf16.mxu0 %v6796_v55  ;;  %v13474_v43 = vsel %vm6148_vm9, %v8500_v50, %v6404_v40  ;;  %v3424_v55 = vadd.f32 %v14857_v47, %v12557_v29  ;;  %v14860_v50 = vld [vmem:[#allocation208_spill] sm:$0xff] }
 0x3ed   :  { %v13470_v7 = vsel %vm6151_vm10, %v8502_v19, %v6407_v14  ;;  %v3436_v6 = vadd.f32 %v14864_v18, %v12559_v36  ;;  %v9912_v18 = vld [vmem:[%s14127_s3 + $0xb0] sm:$0xff]  }
 0x3ee   :  { %v4478_v49 = vpop.f32.mrb[108].mxu0  ;;  %v13476_v2 = vsel %vm6152_vm11, %v8504_v48, %v6408_v56  ;;  %v6811_v0 = vpack.c.bf16 %v13470_v7, %v13468_v39  ;;  %7400 = vmatpush1.bf16.msra.mxu0 %v9912_v18  ;;  %v14885_v7 = vld [vmem:[#allocation60_spill] sm:$0xff] }
 0x3ef   :  { %v8506_v27 = vadd.f32 %v4478_v49, %v3420_v4  ;;  %v4480_v38 = vpop.f32.mrb[109].mxu0  ;;  %v6812_v37 = vpack.c.bf16 %v13476_v2, %v13474_v43  ;;  %7401 = vmatprep.subr.bf16.mxu0 %v14804_v46 }
 0x3f0   :  { %v8508_v32 = vadd.f32 %v4480_v38, %v3422_v20  ;;  %v4482_v61 = vpop.f32.mrb[110].mxu0 }
 0x3f1   :  { %v6411_v57 = vmul.f32 0.01, %v8506_v27  ;;  %v8510_v54 = vadd.f32 %v4482_v61, %v3424_v55  ;;  %v4484_v63 = vpop.f32.mrb[111].mxu0  ;;  %vm6155_vm12 = vcmp.gt.f32.partialorder %v8506_v27, 0.0  ;;  %v14867_v61 = vld [vmem:[#allocation50_spill] sm:$0xff] }
 0x3f2   :  { %v6412_v28 = vmul.f32 0.01, %v8508_v32  ;;  %v8512_v5 = vadd.f32 %v4484_v63, %v3426_v9  ;;  %vm6156_vm13 = vcmp.gt.f32.partialorder %v8508_v32, 0.0  ;;  %5486 = vmatmul.mubr.bf16.gmra.mrb[216].mxu1 %v14859_v33 }
 0x3f3   :  { %vm6159_vm14 = vcmp.gt.f32.partialorder %v8510_v54, 0.0  ;;  %v6415_v53 = vmul.f32 0.01, %v8510_v54  ;;  %7307 = vmatmul.mubr.bf16.gmra.mrb[216].mxu0 %v6795_v35  ;;  %5495 = vmatprep.mubr.bf16.mxu1 %v14860_v50  ;;  %v13499_v19 = vsel %vm6155_vm12, %v8506_v27, %v6411_v57  ;;  %v3440_v57 = vadd.f32 %v14867_v61, %v12557_v29 }
 0x3f4   :  { %vm6160_vm15 = vcmp.gt.f32.partialorder %v8512_v5, 0.0  ;;  %v6416_v44 = vmul.f32 0.01, %v8512_v5  ;;  %7314 = vmatprep.mubr.bf16.mxu0 %v6800_v12  ;;  %v13506_v40 = vsel %vm6156_vm13, %v8508_v32, %v6412_v28  ;;  %v3434_v12 = vadd.f32 %v14863_v26, %v12557_v29  ;;  %v14866_v32 = vld [vmem:[#allocation214_spill] sm:$0xff]  ;;  %v14868_v28 = vld [vmem:[#allocation216_spill] sm:$0xff] }
 0x3f5   :  { %v13501_v42 = vsel %vm6159_vm14, %v8510_v54, %v6415_v53 }
 0x3f6   :  { %v4488_v35 = vpop.f32.mrb[112].mxu0  ;;  %v13508_v48 = vsel %vm6160_vm15, %v8512_v5, %v6416_v44  ;;  %v6815_v34 = vpack.c.bf16 %v13501_v42, %v13499_v19  ;;  %v3442_v5 = vadd.f32 %v14868_v28, %v12559_v36  ;;  %v14870_v44 = vld [vmem:[#allocation220_spill] sm:$0xff]  ;;  %v14888_v19 = vld [vmem:[#allocation69_spill] sm:$0xff]  ;;  %v14889_v42 = vld [vmem:[#allocation74_spill] sm:$0xff] }
 0x3f7   :  { %v8514_v14 = vadd.f32 %v4488_v35, %v3430_v10  ;;  %v4490_v30 = vpop.f32.mrb[113].mxu0  ;;  %v6816_v56 = vpack.c.bf16 %v13508_v48, %v13506_v40  ;;  %v3446_v50 = vadd.f32 %v14870_v44, %v12559_v36  ;;  %v14877_v44 = vld [vmem:[#allocation221_spill] sm:$0xff]  ;;  %v14887_v40 = vld [vmem:[#allocation66_spill] sm:$0xff] }
 0x3f8   :  { %v8516_v4 = vadd.f32 %v4490_v30, %v3432_v59  ;;  %v4492_v1 = vpop.f32.mrb[114].mxu0  ;;  %v14871_v30 = vld [vmem:[#allocation217_spill] sm:$0xff]  ;;  %v9914_v48 = vld [vmem:[%s14127_s3 + $0xc0] sm:$0xff]  }
 0x3f9   :  { %v6419_v20 = vmul.f32 0.01, %v8514_v14  ;;  %v8518_v49 = vadd.f32 %v4492_v1, %v3434_v12  ;;  %v4494_v47 = vpop.f32.mrb[115].mxu0  ;;  %vm6163_vm0 = vcmp.gt.f32.partialorder %v8514_v14, 0.0  ;;  %v14873_v1 = vld [vmem:[#allocation52_spill] sm:$0xff] }
 0x3fa   :  { %v6420_v55 = vmul.f32 0.01, %v8516_v4  ;;  %v8520_v27 = vadd.f32 %v4494_v47, %v3436_v6  ;;  %vm6164_vm1 = vcmp.gt.f32.partialorder %v8516_v4, 0.0  ;;  %5496 = vmatmul.mubr.bf16.gmra.mrb[220].mxu1 %v14865_v60 }
 0x3fb   :  { %vm6167_vm2 = vcmp.gt.f32.partialorder %v8518_v49, 0.0  ;;  %v6423_v38 = vmul.f32 0.01, %v8518_v49  ;;  %7315 = vmatmul.mubr.bf16.gmra.mrb[220].mxu0 %v6799_v31  ;;  %5505 = vmatprep.mubr.bf16.mxu1 %v14866_v32  ;;  %v13529_v54 = vsel %vm6163_vm0, %v8514_v14, %v6419_v20  ;;  %v3450_v20 = vadd.f32 %v14873_v1, %v12557_v29  ;;  %v14876_v32 = vld [vmem:[#allocation224_spill] sm:$0xff] }
 0x3fc   :  { %vm6168_vm3 = vcmp.gt.f32.partialorder %v8520_v27, 0.0  ;;  %v6424_v9 = vmul.f32 0.01, %v8520_v27  ;;  %7322 = vmatprep.mubr.bf16.mxu0 %v6804_v62  ;;  %v13535_v15 = vsel %vm6164_vm1, %v8516_v4, %v6420_v55  ;;  %v3444_v62 = vadd.f32 %v14869_v25, %v12557_v29  ;;  %v14872_v4 = vld [vmem:[#allocation219_spill] sm:$0xff] }
 0x3fd   :  { %v13531_v63 = vsel %vm6167_vm2, %v8518_v49, %v6423_v38  ;;  %v3456_v61 = vadd.f32 %v14876_v32, %v12559_v36  ;;  %v14884_v32 = vld [vmem:[#allocation227_spill] sm:$0xff] }
 0x3fe   :  { %v4498_v58 = vpop.f32.mrb[116].mxu0  ;;  %v13537_v31 = vsel %vm6168_vm3, %v8520_v27, %v6424_v9  ;;  %v6819_v21 = vpack.c.bf16 %v13531_v63, %v13529_v54  ;;  %v9915_v54 = vld [vmem:[%s14127_s3 + $0xc8] sm:$0xff]   ;;  %v14892_v63 = vld [vmem:[#allocation85_spill] sm:$0xff] }
 0x3ff   :  { %v8522_v53 = vadd.f32 %v4498_v58, %v3440_v57  ;;  %v4500_v33 = vpop.f32.mrb[117].mxu0  ;;  %v6820_v23 = vpack.c.bf16 %v13537_v31, %v13535_v15  ;;  %v14893_v15 = vld [vmem:[#allocation229_spill] sm:$0xff]  ;;  %v14894_v31 = vld [vmem:[#allocation230_spill] sm:$0xff] }
 0x400   :  { %v8524_v13 = vadd.f32 %v4500_v33, %v3442_v5  ;;  %v4502_v10 = vpop.f32.mrb[118].mxu0 }
 0x401   :  { %v6427_v11 = vmul.f32 0.01, %v8522_v53  ;;  %v8526_v59 = vadd.f32 %v4502_v10, %v3444_v62  ;;  %v4504_v35 = vpop.f32.mrb[119].mxu0  ;;  %vm6171_vm4 = vcmp.gt.f32.partialorder %v8522_v53, 0.0  ;;  %v14879_v10 = vld [vmem:[#allocation56_spill] sm:$0xff] }
 0x402   :  { %v6428_v26 = vmul.f32 0.01, %v8524_v13  ;;  %v8528_v12 = vadd.f32 %v4504_v35, %v3446_v50  ;;  %vm6172_vm5 = vcmp.gt.f32.partialorder %v8524_v13, 0.0  ;;  %5506 = vmatmul.mubr.bf16.gmra.mrb[224].mxu1 %v14871_v30 }
 0x403   :  { %vm6175_vm6 = vcmp.gt.f32.partialorder %v8526_v59, 0.0  ;;  %v6431_v14 = vmul.f32 0.01, %v8526_v59  ;;  %7323 = vmatmul.mubr.bf16.gmra.mrb[224].mxu0 %v6803_v17  ;;  %5515 = vmatprep.mubr.bf16.mxu1 %v14872_v4  ;;  %v13560_v49 = vsel %vm6171_vm4, %v8522_v53, %v6427_v11  ;;  %v3460_v11 = vadd.f32 %v14879_v10, %v12557_v29  ;;  %v14907_v10 = vld [vmem:[#allocation13_spill] sm:$0xff] }
 0x404   :  { %vm6176_vm7 = vcmp.gt.f32.partialorder %v8528_v12, 0.0  ;;  %v6432_v6 = vmul.f32 0.01, %v8528_v12  ;;  %7330 = vmatprep.mubr.bf16.mxu0 %v6808_v52  ;;  %v13567_v55 = vsel %vm6172_vm5, %v8524_v13, %v6428_v26  ;;  %v3454_v52 = vadd.f32 %v14875_v45, %v12557_v29  ;;  %v14878_v13 = vld [vmem:[#allocation223_spill] sm:$0xff]  ;;  %v14880_v26 = vld [vmem:[#allocation58_spill] sm:$0xff] }
 0x405   :  { %v13562_v47 = vsel %vm6175_vm6, %v8526_v59, %v6431_v14 }
 0x406   :  { %v4508_v17 = vpop.f32.mrb[120].mxu0  ;;  %v13569_v27 = vsel %vm6176_vm7, %v8528_v12, %v6432_v6  ;;  %v6823_v22 = vpack.c.bf16 %v13562_v47, %v13560_v49  ;;  %v3462_v12 = vadd.f32 %v14880_v26, %v12559_v36  ;;  %v14896_v49 = vld [vmem:[#allocation231_spill] sm:$0xff]  ;;  %v14910_v26 = vld [vmem:[#allocation16_spill] sm:$0xff] }
 0x407   :  { %v8530_v38 = vadd.f32 %v4508_v17, %v3450_v20  ;;  %v4510_v60 = vpop.f32.mrb[121].mxu0  ;;  %v6824_v9 = vpack.c.bf16 %v13569_v27, %v13567_v55  ;;  %v14897_v47 = vld [vmem:[#allocation3_spill] sm:$0xff]  ;;  %v14898_v55 = vld [vmem:[#allocation4_spill] sm:$0xff]  ;;  %v14899_v27 = vld [vmem:[#allocation5_spill] sm:$0xff] }
 0x408   :  { %v8532_v57 = vadd.f32 %v4510_v60, %v3452_v3  ;;  %v4512_v28 = vpop.f32.mrb[122].mxu0  ;;  %v14883_v60 = vld [vmem:[#allocation225_spill] sm:$0xff] }
 0x409   :  { %v6435_v5 = vmul.f32 0.01, %v8530_v38  ;;  %v8534_v58 = vadd.f32 %v4512_v28, %v3454_v52  ;;  %v4514_v25 = vpop.f32.mrb[123].mxu0  ;;  %vm6179_vm8 = vcmp.gt.f32.partialorder %v8530_v38, 0.0 }
 0x40a   :  { %v6436_v62 = vmul.f32 0.01, %v8532_v57  ;;  %v8536_v53 = vadd.f32 %v4514_v25, %v3456_v61  ;;  %vm6180_vm9 = vcmp.gt.f32.partialorder %v8532_v57, 0.0  ;;  %5516 = vmatmul.mubr.bf16.gmra.mrb[228].mxu1 %v14877_v44  ;;  %v14901_v25 = vld [vmem:[#allocation7_spill] sm:$0xff]  ;;  %v14904_v44 = vld [vmem:[#allocation10_spill] sm:$0xff] }
 0x40b   :  { %vm6183_vm10 = vcmp.gt.f32.partialorder %v8534_v58, 0.0  ;;  %v6439_v33 = vmul.f32 0.01, %v8534_v58  ;;  %7331 = vmatmul.mubr.bf16.gmra.mrb[228].mxu0 %v6807_v41  ;;  %5525 = vmatprep.mubr.bf16.mxu1 %v14878_v13  ;;  %v6691_v59 = vsel %vm6179_vm8, %v8530_v38, %v6435_v5  ;;  %v14881_v41 = vld [vmem:[#allocation226_spill] sm:$0xff]  ;;  %v14906_v13 = vld [vmem:[#allocation12_spill] sm:$0xff] }
 0x40c   :  { %vm6184_vm11 = vcmp.gt.f32.partialorder %v8536_v53, 0.0  ;;  %v6440_v50 = vmul.f32 0.01, %v8536_v53  ;;  %7338 = vmatprep.mubr.bf16.mxu0 %v6812_v37  ;;  %v6692_v30 = vsel %vm6180_vm9, %v8532_v57, %v6436_v62  ;;  %v3464_v18 = vadd.f32 %v14881_v41, %v12557_v29  ;;  %v14882_v37 = vld [vmem:[#allocation228_spill] sm:$0xff]  ;;  %v14915_v41 = vld [vmem:[#allocation21_spill] sm:$0xff] }
 0x40d   :  { %v6695_v35 = vsel %vm6183_vm10, %v8534_v58, %v6439_v33  ;;  %v3466_v4 = vadd.f32 %v14882_v37, %v12559_v36  ;;  %v9913_v36 = vld [vmem:[%s14127_s3 + $0xb8] sm:$0xff]   ;;  %v14902_v62 = vld [vmem:[#allocation8_spill] sm:$0xff]  ;;  %v9918_v33 = vld [vmem:[%s14127_s3 + $0xe0] sm:$0xff]  }
 0x40e   :  { %v4518_v14 = vpop.f32.mrb[124].mxu0  ;;  %v6696_v24 = vsel %vm6184_vm11, %v8536_v53, %v6440_v50  ;;  %v6827_v16 = vpack.c.bf16 %v6695_v35, %v6691_v59  ;;  %7402 = vmatpush1.bf16.msra.mxu0 %v9913_v36  ;;  %v14903_v53 = vld [vmem:[#allocation9_spill] sm:$0xff]  ;;  %v14905_v50 = vld [vmem:[#allocation11_spill] sm:$0xff]  ;;  %v14908_v59 = vld [vmem:[#allocation14_spill] sm:$0xff] }
 0x40f   :  { %v8538_v6 = vadd.f32 %v4518_v14, %v3460_v11  ;;  %v4520_v43 = vpop.f32.mrb[125].mxu0  ;;  %v6828_v2 = vpack.c.bf16 %v6696_v24, %v6692_v30  ;;  %7403 = vmatprep.subr.bf16.mxu0 %v14804_v46  ;;  %v9919_v11 = vld [vmem:[%s14127_s3 + $0xe8] sm:$0xff]   ;;  %v9920_v14 = vld [vmem:[%s14127_s3 + $0xf0] sm:$0xff]   ;;  %v14912_v30 = vld [vmem:[#allocation18_spill] sm:$0xff] }
 0x410   :  { %v8540_v1 = vadd.f32 %v4520_v43, %v3462_v12  ;;  %v4522_v20 = vpop.f32.mrb[126].mxu0  ;;  %v14909_v35 = vld [vmem:[#allocation15_spill] sm:$0xff]  ;;  %v14911_v12 = vld [vmem:[#allocation17_spill] sm:$0xff] }
 0x411   :  { %v6443_v51 = vmul.f32 0.01, %v8538_v6  ;;  %v8542_v3 = vadd.f32 %v4522_v20, %v3464_v18  ;;  %v4524_v17 = vpop.f32.mrb[127].mxu0  ;;  %vm6187_vm12 = vcmp.gt.f32.partialorder %v8538_v6, 0.0  ;;  %v14913_v24 = vld [vmem:[#allocation19_spill] sm:$0xff]  ;;  %v9921_v18 = vld [vmem:[%s14127_s3 + $0xf8] sm:$0xff]  }
 0x412   :  { %v6444_v45 = vmul.f32 0.01, %v8540_v1  ;;  %v8544_v52 = vadd.f32 %v4524_v17, %v3466_v4  ;;  %vm6188_vm13 = vcmp.gt.f32.partialorder %v8540_v1, 0.0  ;;  %5526 = vmatmul.mubr.bf16.gmra.mrb[232].mxu1 %v14883_v60  ;;  %7404 = vmatpush1.bf16.msra.mxu0 %v9914_v48  ;;  %v14917_v43 = vld [vmem:[#allocation23_spill] sm:$0xff]  ;;  %v14919_v37 = vld [vmem:[#allocation25_spill] sm:$0xff]  ;;  %v14926_v17 = vld [vmem:[#allocation32_spill] sm:$0xff] }
 0x413   :  { %vm6191_vm14 = vcmp.gt.f32.partialorder %v8542_v3, 0.0  ;;  %v6447_v38 = vmul.f32 0.01, %v8542_v3  ;;  %7339 = vmatmul.mubr.bf16.gmra.mrb[232].mxu0 %v6811_v0  ;;  %5535 = vmatprep.mubr.bf16.mxu1 %v14884_v32  ;;  %v6699_v61 = vsel %vm6187_vm12, %v8538_v6, %v6443_v51  ;;  %v14886_v0 = vld [vmem:[#allocation62_spill] sm:$0xff]  ;;  %v14921_v4 = vld [vmem:[#allocation27_spill] sm:$0xff]  ;;  %v14923_v20 = vld [vmem:[#allocation29_spill] sm:$0xff] }
 0x414   :  { %vm6192_vm15 = vcmp.gt.f32.partialorder %v8544_v52, 0.0  ;;  %v6448_v29 = vmul.f32 0.01, %v8544_v52  ;;  %7346 = vmatprep.mubr.bf16.mxu0 %v6816_v56  ;;  %v6700_v28 = vsel %vm6188_vm13, %v8540_v1, %v6444_v45  ;;  %7405 = vmatprep.subr.bf16.mxu0 %v14804_v46  ;;  %v14891_v56 = vld [vmem:[#allocation82_spill] sm:$0xff]  ;;  %v14922_v1 = vld [vmem:[#allocation28_spill] sm:$0xff]  ;;  %v14927_v45 = vld [vmem:[#allocation33_spill] sm:$0xff] }
 0x415   :  { %v6703_v57 = vsel %vm6191_vm14, %v8542_v3, %v6447_v38  ;;  %v14916_v6 = vld [vmem:[#allocation22_spill] sm:$0xff]  ;;  %v14925_v3 = vld [vmem:[#allocation31_spill] sm:$0xff]  ;;  %v14930_v60 = vld [vmem:[#allocation36_spill] sm:$0xff] }
 0x416   :  { %v6704_v5 = vsel %vm6192_vm15, %v8544_v52, %v6448_v29  ;;  %v6831_v58 = vpack.c.bf16 %v6703_v57, %v6699_v61  ;;  %7406 = vmatpush1.bf16.msra.mxu0 %v9915_v54  ;;  %v14924_v51 = vld [vmem:[#allocation30_spill] sm:$0xff]  ;;  %v14929_v38 = vld [vmem:[#allocation35_spill] sm:$0xff]  ;;  %v14931_v36 = vld [vmem:[#allocation37_spill] sm:$0xff] }
 0x417   :  { %v6832_v39 = vpack.c.bf16 %v6704_v5, %v6700_v28  ;;  %7407 = vmatprep.subr.bf16.mxu0 %v14804_v46  ;;  %v14928_v52 = vld [vmem:[#allocation34_spill] sm:$0xff]  ;;  %v14933_v32 = vld [vmem:[#allocation39_spill] sm:$0xff]  ;;  %v14934_v61 = vld [vmem:[#allocation40_spill] sm:$0xff] }
 0x418   :  { %v14932_v29 = vld [vmem:[#allocation38_spill] sm:$0xff]  ;;  %v14935_v57 = vld [vmem:[#allocation41_spill] sm:$0xff]  ;;  %v14937_v5 = vld [vmem:[#allocation43_spill] sm:$0xff] }
 0x419   :  { %v14936_v28 = vld [vmem:[#allocation42_spill] sm:$0xff]  ;;  %v14943_v48 = vld [vmem:[#allocation49_spill] sm:$0xff] }
 0x41a   :  { %5536 = vmatmul.mubr.bf16.gmra.mrb[236].mxu1 %v14885_v7  ;;  %v14940_v7 = vld [vmem:[#allocation46_spill] sm:$0xff] }
 0x41b   :  { %7347 = vmatmul.mubr.bf16.gmra.mrb[236].mxu0 %v6815_v34  ;;  %5545 = vmatprep.mubr.bf16.mxu1 %v14886_v0  ;;  %v14890_v34 = vld [vmem:[#allocation77_spill] sm:$0xff]  ;;  %v14941_v0 = vld [vmem:[#allocation47_spill] sm:$0xff] }
 0x41c   :  { %7354 = vmatprep.mubr.bf16.mxu0 %v6820_v23  ;;  %v9916_v23 = vld [vmem:[%s14127_s3 + $0xd0] sm:$0xff]  }
 0x41d   :  { %7408 = vmatpush1.bf16.msra.mxu0 %v9916_v23 }
 0x41e   :  { %7409 = vmatprep.subr.bf16.mxu0 %v14804_v46 }
 0x422   :  { %5546 = vmatmul.mubr.bf16.gmra.mrb[240].mxu1 %v14887_v40  ;;  %v14942_v40 = vld [vmem:[#allocation48_spill] sm:$0xff] }
 0x423   :  { %7355 = vmatmul.mubr.bf16.gmra.mrb[240].mxu0 %v6819_v21  ;;  %5555 = vmatprep.mubr.bf16.mxu1 %v14888_v19  ;;  %v14895_v21 = vld [vmem:[#allocation2_spill] sm:$0xff]  ;;  %v14944_v19 = vld [vmem:[#allocation51_spill] sm:$0xff] }
 0x424   :  { %7362 = vmatprep.mubr.bf16.mxu0 %v6824_v9  ;;  %v14900_v9 = vld [vmem:[#allocation6_spill] sm:$0xff] }
 0x42a   :  { %5556 = vmatmul.mubr.bf16.gmra.mrb[244].mxu1 %v14889_v42  ;;  %v14945_v42 = vld [vmem:[#allocation53_spill] sm:$0xff] }
 0x42b   :  { %7363 = vmatmul.mubr.bf16.gmra.mrb[244].mxu0 %v6823_v22  ;;  %5565 = vmatprep.mubr.bf16.mxu1 %v14890_v34  ;;  %v9917_v22 = vld [vmem:[%s14127_s3 + $0xd8] sm:$0xff]   ;;  %v14946_v34 = vld [vmem:[#allocation55_spill] sm:$0xff] }
 0x42c   :  { %7370 = vmatprep.mubr.bf16.mxu0 %v6828_v2  ;;  %7410 = vmatpush1.bf16.msra.mxu0 %v9917_v22  ;;  %v14918_v2 = vld [vmem:[#allocation24_spill] sm:$0xff] }
 0x42d   :  { %7411 = vmatprep.subr.bf16.mxu0 %v14804_v46 }
 0x430   :  { %7412 = vmatpush1.bf16.msra.mxu0 %v9918_v33 }
 0x431   :  { %7413 = vmatprep.subr.bf16.mxu0 %v14804_v46 }
 0x432   :  { %5566 = vmatmul.mubr.bf16.gmra.mrb[248].mxu1 %v14891_v56  ;;  %v14947_v56 = vld [vmem:[#allocation232_spill] sm:$0xff] }
 0x433   :  { %7371 = vmatmul.mubr.bf16.gmra.mrb[248].mxu0 %v6827_v16  ;;  %5575 = vmatprep.mubr.bf16.mxu1 %v14892_v63  ;;  %v14914_v16 = vld [vmem:[#allocation20_spill] sm:$0xff]  ;;  %v545_v54 = vsub.s32 2, %v14947_v56  ;;  %v549_v63 = vsub.s32 3, %v14947_v56 }
 0x434   :  { %7378 = vmatprep.mubr.bf16.mxu0 %v6832_v39  ;;  %7414 = vmatpush1.bf16.msra.mxu0 %v9919_v11  ;;  %v14939_v39 = vld [vmem:[#allocation45_spill] sm:$0xff]  ;;  %v14951_v11 = vld [vmem:[#allocation63_spill] sm:$0xff] }
 0x435   :  { %7415 = vmatprep.subr.bf16.mxu0 %v14804_v46 }
 0x438   :  { %7416 = vmatpush1.bf16.msra.mxu0 %v9920_v14 }
 0x439   :  { %7417 = vmatprep.subr.bf16.mxu0 %v14804_v46  ;;  %v14920_v46 = vld [vmem:[#allocation26_spill] sm:$0xff] }
 0x43a   :  { %5576 = vmatmul.mubr.bf16.gmra.mrb[252].mxu1 %v14893_v15  ;;  %v14948_v15 = vld [vmem:[#allocation57_spill] sm:$0xff] }
 0x43b   :  { %7379 = vmatmul.mubr.bf16.gmra.mrb[252].mxu0 %v6831_v58  ;;  %5618 = vmatprep.mubr.bf16.mxu1 %v14894_v31  ;;  %v14938_v58 = vld [vmem:[#allocation44_spill] sm:$0xff]  ;;  %v9922_v31 = vld [vmem:[%s14128_s2] sm:$0xf] }
 0x43c   :  { %7418 = vmatpush1.bf16.msra.mxu0 %v9921_v18  ;;  %v13724_v23 = vrot.slane %v9922_v31, %v549_v63 }
 0x442   :  { %5619 = vmatmul.mubr.bf16.vlgmr.msra.gmra.mrb[128].mxu1 %v14895_v21  ;;  %v13722_v21 = vrot.slane %v9922_v31, %v545_v54 }
 0x443   :  { %5628 = vmatprep.mubr.bf16.mxu1 %v14896_v49  ;;  %v14949_v49 = vld [vmem:[#allocation59_spill] sm:$0xff] }
 0x44a   :  { %5629 = vmatmul.mubr.bf16.gmra.mrb[132].mxu1 %v14897_v47 }
 0x44b   :  { %5638 = vmatprep.mubr.bf16.mxu1 %v14898_v55 }
 0x452   :  { %5639 = vmatmul.mubr.bf16.gmra.mrb[136].mxu1 %v14899_v27 }
 0x453   :  { %5648 = vmatprep.mubr.bf16.mxu1 %v14900_v9 }
 0x45a   :  { %5649 = vmatmul.mubr.bf16.gmra.mrb[140].mxu1 %v14901_v25 }
 0x45b   :  { %5658 = vmatprep.mubr.bf16.mxu1 %v14902_v62 }
 0x462   :  { %5659 = vmatmul.mubr.bf16.gmra.mrb[144].mxu1 %v14903_v53 }
 0x463   :  { %5668 = vmatprep.mubr.bf16.mxu1 %v14904_v44 }
 0x46a   :  { %5669 = vmatmul.mubr.bf16.gmra.mrb[148].mxu1 %v14905_v50 }
 0x46b   :  { %5678 = vmatprep.mubr.bf16.mxu1 %v14906_v13  ;;  %v14950_v13 = vld [vmem:[#allocation61_spill] sm:$0xff] }
 0x472   :  { %5679 = vmatmul.mubr.bf16.gmra.mrb[152].mxu1 %v14907_v10 }
 0x473   :  { %5688 = vmatprep.mubr.bf16.mxu1 %v14908_v59 }
 0x47a   :  { %5689 = vmatmul.mubr.bf16.gmra.mrb[156].mxu1 %v14909_v35 }
 0x47b   :  { %5698 = vmatprep.mubr.bf16.mxu1 %v14910_v26 }
 0x482   :  { %5699 = vmatmul.mubr.bf16.gmra.mrb[160].mxu1 %v14911_v12 }
 0x483   :  { %5708 = vmatprep.mubr.bf16.mxu1 %v14912_v30 }
 0x48a   :  { %5709 = vmatmul.mubr.bf16.gmra.mrb[164].mxu1 %v14913_v24 }
 0x48b   :  { %5718 = vmatprep.mubr.bf16.mxu1 %v14914_v16 }
 0x492   :  { %5719 = vmatmul.mubr.bf16.gmra.mrb[168].mxu1 %v14915_v41 }
 0x493   :  { %5728 = vmatprep.mubr.bf16.mxu1 %v14916_v6 }
 0x49a   :  { %5729 = vmatmul.mubr.bf16.gmra.mrb[172].mxu1 %v14917_v43 }
 0x49b   :  { %5738 = vmatprep.mubr.bf16.mxu1 %v14918_v2 }
 0x4a2   :  { %5739 = vmatmul.mubr.bf16.gmra.mrb[176].mxu1 %v14919_v37 }
 0x4a3   :  { %5748 = vmatprep.mubr.bf16.mxu1 %v14920_v46 }
 0x4aa   :  { %5749 = vmatmul.mubr.bf16.gmra.mrb[180].mxu1 %v14921_v4 }
 0x4ab   :  { %5758 = vmatprep.mubr.bf16.mxu1 %v14922_v1 }
 0x4b2   :  { %5759 = vmatmul.mubr.bf16.gmra.mrb[184].mxu1 %v14923_v20  ;;  %v14952_v20 = vld [vmem:[#allocation64_spill] sm:$0xff] }
 0x4b3   :  { %5768 = vmatprep.mubr.bf16.mxu1 %v14924_v51 }
 0x4ba   :  { %5769 = vmatmul.mubr.bf16.gmra.mrb[188].mxu1 %v14925_v3  ;;  %v14953_v3 = vld [vmem:[#allocation65_spill] sm:$0xff] }
 0x4bb   :  { %5778 = vmatprep.mubr.bf16.mxu1 %v14926_v17 }
 0x4c2   :  { %5779 = vmatmul.mubr.bf16.gmra.mrb[192].mxu1 %v14927_v45 }
 0x4c3   :  { %5788 = vmatprep.mubr.bf16.mxu1 %v14928_v52 }
 0x4ca   :  { %5789 = vmatmul.mubr.bf16.gmra.mrb[196].mxu1 %v14929_v38 }
 0x4cb   :  { %5798 = vmatprep.mubr.bf16.mxu1 %v14930_v60 }
 0x4d2   :  { %5799 = vmatmul.mubr.bf16.gmra.mrb[200].mxu1 %v14931_v36 }
 0x4d3   :  { %5808 = vmatprep.mubr.bf16.mxu1 %v14932_v29 }
 0x4da   :  { %5809 = vmatmul.mubr.bf16.gmra.mrb[204].mxu1 %v14933_v32 }
 0x4db   :  { %5818 = vmatprep.mubr.bf16.mxu1 %v14934_v61 }
 0x4e2   :  { %5819 = vmatmul.mubr.bf16.gmra.mrb[208].mxu1 %v14935_v57 }
 0x4e3   :  { %5828 = vmatprep.mubr.bf16.mxu1 %v14936_v28 }
 0x4ea   :  { %5829 = vmatmul.mubr.bf16.gmra.mrb[212].mxu1 %v14937_v5 }
 0x4eb   :  { %5838 = vmatprep.mubr.bf16.mxu1 %v14938_v58 }
 0x4f2   :  { %5839 = vmatmul.mubr.bf16.gmra.mrb[216].mxu1 %v14939_v39 }
 0x4f3   :  { %5848 = vmatprep.mubr.bf16.mxu1 %v14940_v7 }
 0x4fa   :  { %5849 = vmatmul.mubr.bf16.gmra.mrb[220].mxu1 %v14941_v0 }
 0x4fb   :  { %5858 = vmatprep.mubr.bf16.mxu1 %v14942_v40 }
 0x502   :  { %5859 = vmatmul.mubr.bf16.gmra.mrb[224].mxu1 %v14943_v48  ;;  %v14954_v48 = vld [vmem:[#allocation68_spill] sm:$0xff] }
 0x503   :  { %5868 = vmatprep.mubr.bf16.mxu1 %v14944_v19 }
 0x50a   :  { %5869 = vmatmul.mubr.bf16.gmra.mrb[228].mxu1 %v14945_v42  ;;  %v14955_v42 = vld [vmem:[#allocation71_spill] sm:$0xff] }
 0x50b   :  { %5878 = vmatprep.mubr.bf16.mxu1 %v14946_v34 }
 0x512   :  { %5879 = vmatmul.mubr.bf16.gmra.mrb[232].mxu1 %v14948_v15 }
 0x513   :  { %5888 = vmatprep.mubr.bf16.mxu1 %v14949_v49 }
 0x515   :  { %v5620_v47 = vpop.f32.mrb[128].mxu1 }
 0x516   :  { %v8545_v55 = vadd.f32 %v5620_v47, %v13722_v21  ;;  %v5622_v27 = vpop.f32.mrb[129].mxu1 }
 0x517   :  { %v8546_v22 = vadd.f32 %v5622_v27, %v13724_v23  ;;  %v5624_v9 = vpop.f32.mrb[130].mxu1 }
 0x518   :  { %v6197_v25 = vmul.f32 0.01, %v8545_v55  ;;  %v8547_v62 = vadd.f32 %v5624_v9, %v13722_v21  ;;  %v5626_v53 = vpop.f32.mrb[131].mxu1  ;;  %vm5941_vm0 = vcmp.gt.f32.partialorder %v8545_v55, 0.0 }
 0x519   :  { %v6198_v33 = vmul.f32 0.01, %v8546_v22  ;;  %v8548_v44 = vadd.f32 %v5626_v53, %v13724_v23  ;;  %vm5942_vm1 = vcmp.gt.f32.partialorder %v8546_v22, 0.0 }
 0x51a   :  { %vm5945_vm2 = vcmp.gt.f32.partialorder %v8547_v62, 0.0  ;;  %v6201_v50 = vmul.f32 0.01, %v8547_v62  ;;  %5889 = vmatmul.mubr.bf16.gmra.mrb[236].mxu1 %v14950_v13  ;;  %v6453_v59 = vsel %vm5941_vm0, %v8545_v55, %v6197_v25 }
 0x51b   :  { %vm5946_vm3 = vcmp.gt.f32.partialorder %v8548_v44, 0.0  ;;  %v6202_v10 = vmul.f32 0.01, %v8548_v44  ;;  %5898 = vmatprep.mubr.bf16.mxu1 %v14951_v11  ;;  %v6454_v14 = vsel %vm5942_vm1, %v8546_v22, %v6198_v33 }
 0x51c   :  { %v6457_v35 = vsel %vm5945_vm2, %v8547_v62, %v6201_v50  ;;  %v14956_v50 = vld [vmem:[#allocation67_spill] sm:$0xff] }
 0x51d   :  { %v6709_v26 = vpack.c.bf16 %v6457_v35, %v6453_v59  ;;  %v5630_v12 = vpop.f32.mrb[132].mxu1  ;;  %v6458_v30 = vsel %vm5946_vm3, %v8548_v44, %v6202_v10  ;;  %v14957_v10 = vld [vmem:[#allocation70_spill] sm:$0xff] }
 0x51e   :  { %v8549_v24 = vadd.f32 %v5630_v12, %v13722_v21  ;;  %v5632_v16 = vpop.f32.mrb[133].mxu1  ;;  %v6710_v41 = vpack.c.bf16 %v6458_v30, %v6454_v14 }
 0x51f   :  { %v8550_v18 = vadd.f32 %v5632_v16, %v13724_v23  ;;  %v5634_v6 = vpop.f32.mrb[134].mxu1 }
 0x520   :  { %v6205_v43 = vmul.f32 0.01, %v8549_v24  ;;  %v8551_v2 = vadd.f32 %v5634_v6, %v13722_v21  ;;  %v5636_v37 = vpop.f32.mrb[135].mxu1  ;;  %7419 = vmatprep.mubr.bf16.mxu0 %v6710_v41  ;;  %vm5949_vm4 = vcmp.gt.f32.partialorder %v8549_v24, 0.0 }
 0x521   :  { %v6206_v46 = vmul.f32 0.01, %v8550_v18  ;;  %v8552_v4 = vadd.f32 %v5636_v37, %v13724_v23  ;;  %7420 = vmatmul.mubr.bf16.vlgmr.msra.gmra.mrb[128].mxu0 %v6709_v26  ;;  %vm5950_vm5 = vcmp.gt.f32.partialorder %v8550_v18, 0.0 }
 0x522   :  { %vm5953_vm6 = vcmp.gt.f32.partialorder %v8551_v2, 0.0  ;;  %v6209_v1 = vmul.f32 0.01, %v8551_v2  ;;  %5899 = vmatmul.mubr.bf16.gmra.mrb[240].mxu1 %v14952_v20  ;;  %v6461_v17 = vsel %vm5949_vm4, %v8549_v24, %v6205_v43 }
 0x523   :  { %vm5954_vm7 = vcmp.gt.f32.partialorder %v8552_v4, 0.0  ;;  %v6210_v51 = vmul.f32 0.01, %v8552_v4  ;;  %5908 = vmatprep.mubr.bf16.mxu1 %v14953_v3  ;;  %v6462_v38 = vsel %vm5950_vm5, %v8550_v18, %v6206_v46 }
 0x524   :  { %v6465_v45 = vsel %vm5953_vm6, %v8551_v2, %v6209_v1 }
 0x525   :  { %v5640_v52 = vpop.f32.mrb[136].mxu1  ;;  %v6466_v60 = vsel %vm5954_vm7, %v8552_v4, %v6210_v51  ;;  %v6713_v36 = vpack.c.bf16 %v6465_v45, %v6461_v17 }
 0x526   :  { %v8553_v29 = vadd.f32 %v5640_v52, %v13722_v21  ;;  %v5642_v32 = vpop.f32.mrb[137].mxu1  ;;  %v6714_v61 = vpack.c.bf16 %v6466_v60, %v6462_v38 }
 0x527   :  { %v8554_v57 = vadd.f32 %v5642_v32, %v13724_v23  ;;  %v5644_v28 = vpop.f32.mrb[138].mxu1 }
 0x528   :  { %v6213_v5 = vmul.f32 0.01, %v8553_v29  ;;  %v8555_v58 = vadd.f32 %v5644_v28, %v13722_v21  ;;  %v5646_v39 = vpop.f32.mrb[139].mxu1  ;;  %7427 = vmatprep.mubr.bf16.mxu0 %v6714_v61  ;;  %vm5957_vm8 = vcmp.gt.f32.partialorder %v8553_v29, 0.0 }
 0x529   :  { %v6214_v7 = vmul.f32 0.01, %v8554_v57  ;;  %v8556_v0 = vadd.f32 %v5646_v39, %v13724_v23  ;;  %7428 = vmatmul.mubr.bf16.gmra.mrb[132].mxu0 %v6713_v36  ;;  %vm5958_vm9 = vcmp.gt.f32.partialorder %v8554_v57, 0.0 }
 0x52a   :  { %vm5961_vm10 = vcmp.gt.f32.partialorder %v8555_v58, 0.0  ;;  %v6217_v40 = vmul.f32 0.01, %v8555_v58  ;;  %5909 = vmatmul.mubr.bf16.gmra.mrb[244].mxu1 %v14954_v48  ;;  %v6469_v34 = vsel %vm5957_vm8, %v8553_v29, %v6213_v5 }
 0x52b   :  { %vm5962_vm11 = vcmp.gt.f32.partialorder %v8556_v0, 0.0  ;;  %v6218_v19 = vmul.f32 0.01, %v8556_v0  ;;  %5918 = vmatprep.mubr.bf16.mxu1 %v14955_v42  ;;  %v6470_v63 = vsel %vm5958_vm9, %v8554_v57, %v6214_v7 }
 0x52c   :  { %v6473_v56 = vsel %vm5961_vm10, %v8555_v58, %v6217_v40 }
 0x52d   :  { %v5650_v54 = vpop.f32.mrb[140].mxu1  ;;  %v6474_v15 = vsel %vm5962_vm11, %v8556_v0, %v6218_v19  ;;  %v6717_v31 = vpack.c.bf16 %v6473_v56, %v6469_v34 }
 0x52e   :  { %v8557_v49 = vadd.f32 %v5650_v54, %v13722_v21  ;;  %v5652_v47 = vpop.f32.mrb[141].mxu1  ;;  %v6718_v55 = vpack.c.bf16 %v6474_v15, %v6470_v63 }
 0x52f   :  { %v8558_v27 = vadd.f32 %v5652_v47, %v13724_v23  ;;  %v5654_v22 = vpop.f32.mrb[142].mxu1 }
 0x530   :  { %v6221_v9 = vmul.f32 0.01, %v8557_v49  ;;  %v8559_v25 = vadd.f32 %v5654_v22, %v13722_v21  ;;  %v5656_v62 = vpop.f32.mrb[143].mxu1  ;;  %7435 = vmatprep.mubr.bf16.mxu0 %v6718_v55  ;;  %vm5965_vm12 = vcmp.gt.f32.partialorder %v8557_v49, 0.0 }
 0x531   :  { %v6222_v53 = vmul.f32 0.01, %v8558_v27  ;;  %v8560_v33 = vadd.f32 %v5656_v62, %v13724_v23  ;;  %7436 = vmatmul.mubr.bf16.gmra.mrb[136].mxu0 %v6717_v31  ;;  %vm5966_vm13 = vcmp.gt.f32.partialorder %v8558_v27, 0.0 }
 0x532   :  { %vm5969_vm14 = vcmp.gt.f32.partialorder %v8559_v25, 0.0  ;;  %v6225_v44 = vmul.f32 0.01, %v8559_v25  ;;  %5919 = vmatmul.mubr.bf16.gmra.mrb[248].mxu1 %v14956_v50  ;;  %v6477_v11 = vsel %vm5965_vm12, %v8557_v49, %v6221_v9 }
 0x533   :  { %vm5970_vm15 = vcmp.gt.f32.partialorder %v8560_v33, 0.0  ;;  %v6226_v13 = vmul.f32 0.01, %v8560_v33  ;;  %5928 = vmatprep.mubr.bf16.mxu1 %v14957_v10  ;;  %v6478_v26 = vsel %vm5966_vm13, %v8558_v27, %v6222_v53 }
 0x534   :  { %v6481_v59 = vsel %vm5969_vm14, %v8559_v25, %v6225_v44 }
 0x535   :  { %v5660_v35 = vpop.f32.mrb[144].mxu1  ;;  %v6482_v12 = vsel %vm5970_vm15, %v8560_v33, %v6226_v13  ;;  %v6721_v14 = vpack.c.bf16 %v6481_v59, %v6477_v11 }
 0x536   :  { %v8561_v30 = vadd.f32 %v5660_v35, %v13722_v21  ;;  %v5662_v24 = vpop.f32.mrb[145].mxu1  ;;  %v6722_v16 = vpack.c.bf16 %v6482_v12, %v6478_v26 }
 0x537   :  { %v8562_v41 = vadd.f32 %v5662_v24, %v13724_v23  ;;  %v5664_v18 = vpop.f32.mrb[146].mxu1 }
 0x538   :  { %v6229_v6 = vmul.f32 0.01, %v8561_v30  ;;  %v8563_v43 = vadd.f32 %v5664_v18, %v13722_v21  ;;  %v5666_v2 = vpop.f32.mrb[147].mxu1  ;;  %7443 = vmatprep.mubr.bf16.mxu0 %v6722_v16  ;;  %vm5973_vm0 = vcmp.gt.f32.partialorder %v8561_v30, 0.0 }
 0x539   :  { %v6230_v37 = vmul.f32 0.01, %v8562_v41  ;;  %v8564_v46 = vadd.f32 %v5666_v2, %v13724_v23  ;;  %7444 = vmatmul.mubr.bf16.gmra.mrb[140].mxu0 %v6721_v14  ;;  %vm5974_vm1 = vcmp.gt.f32.partialorder %v8562_v41, 0.0 }
 0x53a   :  { %vm5977_vm2 = vcmp.gt.f32.partialorder %v8563_v43, 0.0  ;;  %v6233_v4 = vmul.f32 0.01, %v8563_v43  ;;  %5929 = vmatmul.mubr.bf16.gmra.mrb[252].mxu1 %v12708_v8  ;;  %v6485_v20 = vsel %vm5973_vm0, %v8561_v30, %v6229_v6 }
 0x53b   :  { %vm5978_vm3 = vcmp.gt.f32.partialorder %v8564_v46, 0.0  ;;  %v6234_v1 = vmul.f32 0.01, %v8564_v46  ;;  %v6486_v17 = vsel %vm5974_vm1, %v8562_v41, %v6230_v37 }
 0x53c   :  { %v6489_v51 = vsel %vm5977_vm2, %v8563_v43, %v6233_v4 }
 0x53d   :  { %v5670_v3 = vpop.f32.mrb[148].mxu1  ;;  %v6490_v45 = vsel %vm5978_vm3, %v8564_v46, %v6234_v1  ;;  %v6725_v52 = vpack.c.bf16 %v6489_v51, %v6485_v20 }
 0x53e   :  { %v8565_v38 = vadd.f32 %v5670_v3, %v13722_v21  ;;  %v5672_v60 = vpop.f32.mrb[149].mxu1  ;;  %v6726_v36 = vpack.c.bf16 %v6490_v45, %v6486_v17 }
 0x53f   :  { %v8566_v29 = vadd.f32 %v5672_v60, %v13724_v23  ;;  %v5674_v32 = vpop.f32.mrb[150].mxu1 }
 0x540   :  { %v6237_v61 = vmul.f32 0.01, %v8565_v38  ;;  %v8567_v57 = vadd.f32 %v5674_v32, %v13722_v21  ;;  %v5676_v28 = vpop.f32.mrb[151].mxu1  ;;  %7451 = vmatprep.mubr.bf16.mxu0 %v6726_v36  ;;  %vm5981_vm4 = vcmp.gt.f32.partialorder %v8565_v38, 0.0 }
 0x541   :  { %v6238_v8 = vmul.f32 0.01, %v8566_v29  ;;  %v8568_v5 = vadd.f32 %v5676_v28, %v13724_v23  ;;  %7452 = vmatmul.mubr.bf16.gmra.mrb[144].mxu0 %v6725_v52  ;;  %vm5982_vm5 = vcmp.gt.f32.partialorder %v8566_v29, 0.0 }
 0x542   :  { %vm5985_vm6 = vcmp.gt.f32.partialorder %v8567_v57, 0.0  ;;  %v6241_v58 = vmul.f32 0.01, %v8567_v57  ;;  %v6493_v7 = vsel %vm5981_vm4, %v8565_v38, %v6237_v61 }
 0x543   :  { %vm5986_vm7 = vcmp.gt.f32.partialorder %v8568_v5, 0.0  ;;  %v6242_v39 = vmul.f32 0.01, %v8568_v5  ;;  %v6494_v48 = vsel %vm5982_vm5, %v8566_v29, %v6238_v8 }
 0x544   :  { %v6497_v0 = vsel %vm5985_vm6, %v8567_v57, %v6241_v58 }
 0x545   :  { %v5680_v40 = vpop.f32.mrb[152].mxu1  ;;  %v6498_v19 = vsel %vm5986_vm7, %v8568_v5, %v6242_v39  ;;  %v6729_v42 = vpack.c.bf16 %v6497_v0, %v6493_v7 }
 0x546   :  { %v8569_v34 = vadd.f32 %v5680_v40, %v13722_v21  ;;  %v5682_v56 = vpop.f32.mrb[153].mxu1  ;;  %v6730_v54 = vpack.c.bf16 %v6498_v19, %v6494_v48 }
 0x547   :  { %v8570_v63 = vadd.f32 %v5682_v56, %v13724_v23  ;;  %v5684_v15 = vpop.f32.mrb[154].mxu1 }
 0x548   :  { %v6245_v31 = vmul.f32 0.01, %v8569_v34  ;;  %v8571_v49 = vadd.f32 %v5684_v15, %v13722_v21  ;;  %v5686_v47 = vpop.f32.mrb[155].mxu1  ;;  %7459 = vmatprep.mubr.bf16.mxu0 %v6730_v54  ;;  %vm5989_vm8 = vcmp.gt.f32.partialorder %v8569_v34, 0.0 }
 0x549   :  { %v6246_v55 = vmul.f32 0.01, %v8570_v63  ;;  %v8572_v27 = vadd.f32 %v5686_v47, %v13724_v23  ;;  %7460 = vmatmul.mubr.bf16.gmra.mrb[148].mxu0 %v6729_v42  ;;  %vm5990_vm9 = vcmp.gt.f32.partialorder %v8570_v63, 0.0 }
 0x54a   :  { %vm5993_vm10 = vcmp.gt.f32.partialorder %v8571_v49, 0.0  ;;  %v6249_v22 = vmul.f32 0.01, %v8571_v49  ;;  %v6501_v25 = vsel %vm5989_vm8, %v8569_v34, %v6245_v31 }
 0x54b   :  { %vm5994_vm11 = vcmp.gt.f32.partialorder %v8572_v27, 0.0  ;;  %v6250_v9 = vmul.f32 0.01, %v8572_v27  ;;  %v6502_v33 = vsel %vm5990_vm9, %v8570_v63, %v6246_v55 }
 0x54c   :  { %v6505_v62 = vsel %vm5993_vm10, %v8571_v49, %v6249_v22 }
 0x54d   :  { %v5690_v53 = vpop.f32.mrb[156].mxu1  ;;  %v6506_v44 = vsel %vm5994_vm11, %v8572_v27, %v6250_v9  ;;  %v6733_v50 = vpack.c.bf16 %v6505_v62, %v6501_v25 }
 0x54e   :  { %v8573_v13 = vadd.f32 %v5690_v53, %v13722_v21  ;;  %v5692_v10 = vpop.f32.mrb[157].mxu1  ;;  %v6734_v11 = vpack.c.bf16 %v6506_v44, %v6502_v33 }
 0x54f   :  { %v8574_v59 = vadd.f32 %v5692_v10, %v13724_v23  ;;  %v5694_v35 = vpop.f32.mrb[158].mxu1 }
 0x550   :  { %v6253_v26 = vmul.f32 0.01, %v8573_v13  ;;  %v8575_v12 = vadd.f32 %v5694_v35, %v13722_v21  ;;  %v5696_v14 = vpop.f32.mrb[159].mxu1  ;;  %7467 = vmatprep.mubr.bf16.mxu0 %v6734_v11  ;;  %vm5997_vm12 = vcmp.gt.f32.partialorder %v8573_v13, 0.0 }
 0x551   :  { %v6254_v30 = vmul.f32 0.01, %v8574_v59  ;;  %v8576_v24 = vadd.f32 %v5696_v14, %v13724_v23  ;;  %7468 = vmatmul.mubr.bf16.gmra.mrb[152].mxu0 %v6733_v50  ;;  %vm5998_vm13 = vcmp.gt.f32.partialorder %v8574_v59, 0.0 }
 0x552   :  { %vm6001_vm14 = vcmp.gt.f32.partialorder %v8575_v12, 0.0  ;;  %v6257_v16 = vmul.f32 0.01, %v8575_v12  ;;  %v6509_v18 = vsel %vm5997_vm12, %v8573_v13, %v6253_v26 }
 0x553   :  { %vm6002_vm15 = vcmp.gt.f32.partialorder %v8576_v24, 0.0  ;;  %v6258_v41 = vmul.f32 0.01, %v8576_v24  ;;  %v6510_v2 = vsel %vm5998_vm13, %v8574_v59, %v6254_v30 }
 0x554   :  { %v6513_v6 = vsel %vm6001_vm14, %v8575_v12, %v6257_v16 }
 0x555   :  { %v5700_v43 = vpop.f32.mrb[160].mxu1  ;;  %v6514_v37 = vsel %vm6002_vm15, %v8576_v24, %v6258_v41  ;;  %v6737_v46 = vpack.c.bf16 %v6513_v6, %v6509_v18 }
 0x556   :  { %v8577_v4 = vadd.f32 %v5700_v43, %v13722_v21  ;;  %v5702_v1 = vpop.f32.mrb[161].mxu1  ;;  %v6738_v20 = vpack.c.bf16 %v6514_v37, %v6510_v2 }
 0x557   :  { %v8578_v51 = vadd.f32 %v5702_v1, %v13724_v23  ;;  %v5704_v3 = vpop.f32.mrb[162].mxu1 }
 0x558   :  { %v6261_v17 = vmul.f32 0.01, %v8577_v4  ;;  %v8579_v45 = vadd.f32 %v5704_v3, %v13722_v21  ;;  %v5706_v52 = vpop.f32.mrb[163].mxu1  ;;  %7475 = vmatprep.mubr.bf16.mxu0 %v6738_v20  ;;  %vm6005_vm0 = vcmp.gt.f32.partialorder %v8577_v4, 0.0 }
 0x559   :  { %v6262_v38 = vmul.f32 0.01, %v8578_v51  ;;  %v8580_v60 = vadd.f32 %v5706_v52, %v13724_v23  ;;  %7476 = vmatmul.mubr.bf16.gmra.mrb[156].mxu0 %v6737_v46  ;;  %vm6006_vm1 = vcmp.gt.f32.partialorder %v8578_v51, 0.0 }
 0x55a   :  { %vm6009_vm2 = vcmp.gt.f32.partialorder %v8579_v45, 0.0  ;;  %v6265_v36 = vmul.f32 0.01, %v8579_v45  ;;  %v6517_v32 = vsel %vm6005_vm0, %v8577_v4, %v6261_v17 }
 0x55b   :  { %vm6010_vm3 = vcmp.gt.f32.partialorder %v8580_v60, 0.0  ;;  %v6266_v29 = vmul.f32 0.01, %v8580_v60  ;;  %v6518_v28 = vsel %vm6006_vm1, %v8578_v51, %v6262_v38 }
 0x55c   :  { %v6521_v61 = vsel %vm6009_vm2, %v8579_v45, %v6265_v36 }
 0x55d   :  { %v5710_v57 = vpop.f32.mrb[164].mxu1  ;;  %v6522_v8 = vsel %vm6010_vm3, %v8580_v60, %v6266_v29  ;;  %v6741_v5 = vpack.c.bf16 %v6521_v61, %v6517_v32 }
 0x55e   :  { %v8581_v58 = vadd.f32 %v5710_v57, %v13722_v21  ;;  %v5712_v39 = vpop.f32.mrb[165].mxu1  ;;  %v6742_v7 = vpack.c.bf16 %v6522_v8, %v6518_v28 }
 0x55f   :  { %v8582_v0 = vadd.f32 %v5712_v39, %v13724_v23  ;;  %v5714_v40 = vpop.f32.mrb[166].mxu1 }
 0x560   :  { %v6269_v48 = vmul.f32 0.01, %v8581_v58  ;;  %v8583_v19 = vadd.f32 %v5714_v40, %v13722_v21  ;;  %v5716_v42 = vpop.f32.mrb[167].mxu1  ;;  %7483 = vmatprep.mubr.bf16.mxu0 %v6742_v7  ;;  %vm6013_vm4 = vcmp.gt.f32.partialorder %v8581_v58, 0.0 }
 0x561   :  { %v6270_v34 = vmul.f32 0.01, %v8582_v0  ;;  %v8584_v56 = vadd.f32 %v5716_v42, %v13724_v23  ;;  %7484 = vmatmul.mubr.bf16.gmra.mrb[160].mxu0 %v6741_v5  ;;  %vm6014_vm5 = vcmp.gt.f32.partialorder %v8582_v0, 0.0 }
 0x562   :  { %vm6017_vm6 = vcmp.gt.f32.partialorder %v8583_v19, 0.0  ;;  %v6273_v54 = vmul.f32 0.01, %v8583_v19  ;;  %v6525_v15 = vsel %vm6013_vm4, %v8581_v58, %v6269_v48 }
 0x563   :  { %vm6018_vm7 = vcmp.gt.f32.partialorder %v8584_v56, 0.0  ;;  %v6274_v63 = vmul.f32 0.01, %v8584_v56  ;;  %v6526_v47 = vsel %vm6014_vm5, %v8582_v0, %v6270_v34 }
 0x564   :  { %v6529_v31 = vsel %vm6017_vm6, %v8583_v19, %v6273_v54 }
 0x565   :  { %v5720_v49 = vpop.f32.mrb[168].mxu1  ;;  %v6530_v55 = vsel %vm6018_vm7, %v8584_v56, %v6274_v63  ;;  %v6745_v27 = vpack.c.bf16 %v6529_v31, %v6525_v15 }
 0x566   :  { %v8585_v22 = vadd.f32 %v5720_v49, %v13722_v21  ;;  %v5722_v9 = vpop.f32.mrb[169].mxu1  ;;  %v6746_v25 = vpack.c.bf16 %v6530_v55, %v6526_v47 }
 0x567   :  { %v8586_v62 = vadd.f32 %v5722_v9, %v13724_v23  ;;  %v5724_v53 = vpop.f32.mrb[170].mxu1 }
 0x568   :  { %v6277_v33 = vmul.f32 0.01, %v8585_v22  ;;  %v8587_v44 = vadd.f32 %v5724_v53, %v13722_v21  ;;  %v5726_v50 = vpop.f32.mrb[171].mxu1  ;;  %7491 = vmatprep.mubr.bf16.mxu0 %v6746_v25  ;;  %vm6021_vm8 = vcmp.gt.f32.partialorder %v8585_v22, 0.0 }
 0x569   :  { %v6278_v13 = vmul.f32 0.01, %v8586_v62  ;;  %v8588_v10 = vadd.f32 %v5726_v50, %v13724_v23  ;;  %7492 = vmatmul.mubr.bf16.gmra.mrb[164].mxu0 %v6745_v27  ;;  %vm6022_vm9 = vcmp.gt.f32.partialorder %v8586_v62, 0.0 }
 0x56a   :  { %vm6025_vm10 = vcmp.gt.f32.partialorder %v8587_v44, 0.0  ;;  %v6281_v11 = vmul.f32 0.01, %v8587_v44  ;;  %v6533_v35 = vsel %vm6021_vm8, %v8585_v22, %v6277_v33 }
 0x56b   :  { %vm6026_vm11 = vcmp.gt.f32.partialorder %v8588_v10, 0.0  ;;  %v6282_v59 = vmul.f32 0.01, %v8588_v10  ;;  %v6534_v14 = vsel %vm6022_vm9, %v8586_v62, %v6278_v13 }
 0x56c   :  { %v6537_v26 = vsel %vm6025_vm10, %v8587_v44, %v6281_v11 }
 0x56d   :  { %v5730_v12 = vpop.f32.mrb[172].mxu1  ;;  %v6538_v30 = vsel %vm6026_vm11, %v8588_v10, %v6282_v59  ;;  %v6749_v24 = vpack.c.bf16 %v6537_v26, %v6533_v35 }
 0x56e   :  { %v8589_v16 = vadd.f32 %v5730_v12, %v13722_v21  ;;  %v5732_v41 = vpop.f32.mrb[173].mxu1  ;;  %v6750_v18 = vpack.c.bf16 %v6538_v30, %v6534_v14 }
 0x56f   :  { %v8590_v6 = vadd.f32 %v5732_v41, %v13724_v23  ;;  %v5734_v43 = vpop.f32.mrb[174].mxu1 }
 0x570   :  { %v6285_v2 = vmul.f32 0.01, %v8589_v16  ;;  %v8591_v37 = vadd.f32 %v5734_v43, %v13722_v21  ;;  %v5736_v46 = vpop.f32.mrb[175].mxu1  ;;  %7499 = vmatprep.mubr.bf16.mxu0 %v6750_v18  ;;  %vm6029_vm12 = vcmp.gt.f32.partialorder %v8589_v16, 0.0 }
 0x571   :  { %v6286_v4 = vmul.f32 0.01, %v8590_v6  ;;  %v8592_v1 = vadd.f32 %v5736_v46, %v13724_v23  ;;  %7500 = vmatmul.mubr.bf16.gmra.mrb[168].mxu0 %v6749_v24  ;;  %vm6030_vm13 = vcmp.gt.f32.partialorder %v8590_v6, 0.0 }
 0x572   :  { %vm6033_vm14 = vcmp.gt.f32.partialorder %v8591_v37, 0.0  ;;  %v6289_v20 = vmul.f32 0.01, %v8591_v37  ;;  %v6541_v3 = vsel %vm6029_vm12, %v8589_v16, %v6285_v2 }
 0x573   :  { %vm6034_vm15 = vcmp.gt.f32.partialorder %v8592_v1, 0.0  ;;  %v6290_v51 = vmul.f32 0.01, %v8592_v1  ;;  %v6542_v52 = vsel %vm6030_vm13, %v8590_v6, %v6286_v4 }
 0x574   :  { %v6545_v17 = vsel %vm6033_vm14, %v8591_v37, %v6289_v20 }
 0x575   :  { %v5740_v45 = vpop.f32.mrb[176].mxu1  ;;  %v6546_v38 = vsel %vm6034_vm15, %v8592_v1, %v6290_v51  ;;  %v6753_v60 = vpack.c.bf16 %v6545_v17, %v6541_v3 }
 0x576   :  { %v8593_v36 = vadd.f32 %v5740_v45, %v13722_v21  ;;  %v5742_v29 = vpop.f32.mrb[177].mxu1  ;;  %v6754_v32 = vpack.c.bf16 %v6546_v38, %v6542_v52 }
 0x577   :  { %v8594_v61 = vadd.f32 %v5742_v29, %v13724_v23  ;;  %v5744_v57 = vpop.f32.mrb[178].mxu1 }
 0x578   :  { %v6293_v28 = vmul.f32 0.01, %v8593_v36  ;;  %v8595_v8 = vadd.f32 %v5744_v57, %v13722_v21  ;;  %v5746_v5 = vpop.f32.mrb[179].mxu1  ;;  %7507 = vmatprep.mubr.bf16.mxu0 %v6754_v32  ;;  %vm6037_vm0 = vcmp.gt.f32.partialorder %v8593_v36, 0.0 }
 0x579   :  { %v6294_v58 = vmul.f32 0.01, %v8594_v61  ;;  %v8596_v39 = vadd.f32 %v5746_v5, %v13724_v23  ;;  %7508 = vmatmul.mubr.bf16.gmra.mrb[172].mxu0 %v6753_v60  ;;  %vm6038_vm1 = vcmp.gt.f32.partialorder %v8594_v61, 0.0 }
 0x57a   :  { %vm6041_vm2 = vcmp.gt.f32.partialorder %v8595_v8, 0.0  ;;  %v6297_v7 = vmul.f32 0.01, %v8595_v8  ;;  %v6549_v40 = vsel %vm6037_vm0, %v8593_v36, %v6293_v28 }
 0x57b   :  { %vm6042_vm3 = vcmp.gt.f32.partialorder %v8596_v39, 0.0  ;;  %v6298_v0 = vmul.f32 0.01, %v8596_v39  ;;  %v6550_v42 = vsel %vm6038_vm1, %v8594_v61, %v6294_v58 }
 0x57c   :  { %v6553_v48 = vsel %vm6041_vm2, %v8595_v8, %v6297_v7 }
 0x57d   :  { %v5750_v19 = vpop.f32.mrb[180].mxu1  ;;  %v6554_v34 = vsel %vm6042_vm3, %v8596_v39, %v6298_v0  ;;  %v6757_v56 = vpack.c.bf16 %v6553_v48, %v6549_v40 }
 0x57e   :  { %v8597_v54 = vadd.f32 %v5750_v19, %v13722_v21  ;;  %v5752_v63 = vpop.f32.mrb[181].mxu1  ;;  %v6758_v15 = vpack.c.bf16 %v6554_v34, %v6550_v42 }
 0x57f   :  { %v8598_v31 = vadd.f32 %v5752_v63, %v13724_v23  ;;  %v5754_v49 = vpop.f32.mrb[182].mxu1 }
 0x580   :  { %v6301_v47 = vmul.f32 0.01, %v8597_v54  ;;  %v8599_v55 = vadd.f32 %v5754_v49, %v13722_v21  ;;  %v5756_v27 = vpop.f32.mrb[183].mxu1  ;;  %7515 = vmatprep.mubr.bf16.mxu0 %v6758_v15  ;;  %vm6045_vm4 = vcmp.gt.f32.partialorder %v8597_v54, 0.0 }
 0x581   :  { %v6302_v22 = vmul.f32 0.01, %v8598_v31  ;;  %v8600_v9 = vadd.f32 %v5756_v27, %v13724_v23  ;;  %7516 = vmatmul.mubr.bf16.gmra.mrb[176].mxu0 %v6757_v56  ;;  %vm6046_vm5 = vcmp.gt.f32.partialorder %v8598_v31, 0.0 }
 0x582   :  { %vm6049_vm6 = vcmp.gt.f32.partialorder %v8599_v55, 0.0  ;;  %v6305_v25 = vmul.f32 0.01, %v8599_v55  ;;  %v6557_v53 = vsel %vm6045_vm4, %v8597_v54, %v6301_v47 }
 0x583   :  { %vm6050_vm7 = vcmp.gt.f32.partialorder %v8600_v9, 0.0  ;;  %v6306_v62 = vmul.f32 0.01, %v8600_v9  ;;  %v6558_v50 = vsel %vm6046_vm5, %v8598_v31, %v6302_v22 }
 0x584   :  { %v6561_v33 = vsel %vm6049_vm6, %v8599_v55, %v6305_v25 }
 0x585   :  { %v5760_v44 = vpop.f32.mrb[184].mxu1  ;;  %v6562_v13 = vsel %vm6050_vm7, %v8600_v9, %v6306_v62  ;;  %v6761_v10 = vpack.c.bf16 %v6561_v33, %v6557_v53 }
 0x586   :  { %v8601_v11 = vadd.f32 %v5760_v44, %v13722_v21  ;;  %v5762_v59 = vpop.f32.mrb[185].mxu1  ;;  %v6762_v35 = vpack.c.bf16 %v6562_v13, %v6558_v50 }
 0x587   :  { %v8602_v26 = vadd.f32 %v5762_v59, %v13724_v23  ;;  %v5764_v12 = vpop.f32.mrb[186].mxu1 }
 0x588   :  { %v6309_v14 = vmul.f32 0.01, %v8601_v11  ;;  %v8603_v30 = vadd.f32 %v5764_v12, %v13722_v21  ;;  %v5766_v24 = vpop.f32.mrb[187].mxu1  ;;  %7523 = vmatprep.mubr.bf16.mxu0 %v6762_v35  ;;  %vm6053_vm8 = vcmp.gt.f32.partialorder %v8601_v11, 0.0 }
 0x589   :  { %v6310_v16 = vmul.f32 0.01, %v8602_v26  ;;  %v8604_v41 = vadd.f32 %v5766_v24, %v13724_v23  ;;  %7524 = vmatmul.mubr.bf16.gmra.mrb[180].mxu0 %v6761_v10  ;;  %vm6054_vm9 = vcmp.gt.f32.partialorder %v8602_v26, 0.0 }
 0x58a   :  { %vm6057_vm10 = vcmp.gt.f32.partialorder %v8603_v30, 0.0  ;;  %v6313_v18 = vmul.f32 0.01, %v8603_v30  ;;  %v6565_v43 = vsel %vm6053_vm8, %v8601_v11, %v6309_v14 }
 0x58b   :  { %vm6058_vm11 = vcmp.gt.f32.partialorder %v8604_v41, 0.0  ;;  %v6314_v6 = vmul.f32 0.01, %v8604_v41  ;;  %v6566_v46 = vsel %vm6054_vm9, %v8602_v26, %v6310_v16 }
 0x58c   :  { %v6569_v2 = vsel %vm6057_vm10, %v8603_v30, %v6313_v18 }
 0x58d   :  { %v5770_v37 = vpop.f32.mrb[188].mxu1  ;;  %v6570_v4 = vsel %vm6058_vm11, %v8604_v41, %v6314_v6  ;;  %v6765_v1 = vpack.c.bf16 %v6569_v2, %v6565_v43 }
 0x58e   :  { %v8605_v20 = vadd.f32 %v5770_v37, %v13722_v21  ;;  %v5772_v51 = vpop.f32.mrb[189].mxu1  ;;  %v6766_v3 = vpack.c.bf16 %v6570_v4, %v6566_v46 }
 0x58f   :  { %v8606_v17 = vadd.f32 %v5772_v51, %v13724_v23  ;;  %v5774_v45 = vpop.f32.mrb[190].mxu1 }
 0x590   :  { %v6317_v52 = vmul.f32 0.01, %v8605_v20  ;;  %v8607_v38 = vadd.f32 %v5774_v45, %v13722_v21  ;;  %v5776_v60 = vpop.f32.mrb[191].mxu1  ;;  %7531 = vmatprep.mubr.bf16.mxu0 %v6766_v3  ;;  %vm6061_vm12 = vcmp.gt.f32.partialorder %v8605_v20, 0.0 }
 0x591   :  { %v6318_v36 = vmul.f32 0.01, %v8606_v17  ;;  %v8608_v29 = vadd.f32 %v5776_v60, %v13724_v23  ;;  %7532 = vmatmul.mubr.bf16.gmra.mrb[184].mxu0 %v6765_v1  ;;  %vm6062_vm13 = vcmp.gt.f32.partialorder %v8606_v17, 0.0 }
 0x592   :  { %vm6065_vm14 = vcmp.gt.f32.partialorder %v8607_v38, 0.0  ;;  %v6321_v32 = vmul.f32 0.01, %v8607_v38  ;;  %v6573_v57 = vsel %vm6061_vm12, %v8605_v20, %v6317_v52 }
 0x593   :  { %vm6066_vm15 = vcmp.gt.f32.partialorder %v8608_v29, 0.0  ;;  %v6322_v61 = vmul.f32 0.01, %v8608_v29  ;;  %v6574_v5 = vsel %vm6062_vm13, %v8606_v17, %v6318_v36 }
 0x594   :  { %v6577_v28 = vsel %vm6065_vm14, %v8607_v38, %v6321_v32 }
 0x595   :  { %v5780_v8 = vpop.f32.mrb[192].mxu1  ;;  %v6578_v58 = vsel %vm6066_vm15, %v8608_v29, %v6322_v61  ;;  %v6769_v39 = vpack.c.bf16 %v6577_v28, %v6573_v57 }
 0x596   :  { %v8609_v7 = vadd.f32 %v5780_v8, %v13722_v21  ;;  %v5782_v0 = vpop.f32.mrb[193].mxu1  ;;  %v6770_v40 = vpack.c.bf16 %v6578_v58, %v6574_v5 }
 0x597   :  { %v8610_v48 = vadd.f32 %v5782_v0, %v13724_v23  ;;  %v5784_v19 = vpop.f32.mrb[194].mxu1 }
 0x598   :  { %v6325_v42 = vmul.f32 0.01, %v8609_v7  ;;  %v8611_v34 = vadd.f32 %v5784_v19, %v13722_v21  ;;  %v5786_v56 = vpop.f32.mrb[195].mxu1  ;;  %7539 = vmatprep.mubr.bf16.mxu0 %v6770_v40  ;;  %vm6069_vm0 = vcmp.gt.f32.partialorder %v8609_v7, 0.0 }
 0x599   :  { %v6326_v54 = vmul.f32 0.01, %v8610_v48  ;;  %v8612_v63 = vadd.f32 %v5786_v56, %v13724_v23  ;;  %7540 = vmatmul.mubr.bf16.gmra.mrb[188].mxu0 %v6769_v39  ;;  %vm6070_vm1 = vcmp.gt.f32.partialorder %v8610_v48, 0.0 }
 0x59a   :  { %vm6073_vm2 = vcmp.gt.f32.partialorder %v8611_v34, 0.0  ;;  %v6329_v15 = vmul.f32 0.01, %v8611_v34  ;;  %v6581_v49 = vsel %vm6069_vm0, %v8609_v7, %v6325_v42 }
 0x59b   :  { %vm6074_vm3 = vcmp.gt.f32.partialorder %v8612_v63, 0.0  ;;  %v6330_v31 = vmul.f32 0.01, %v8612_v63  ;;  %v6582_v27 = vsel %vm6070_vm1, %v8610_v48, %v6326_v54 }
 0x59c   :  { %v6585_v47 = vsel %vm6073_vm2, %v8611_v34, %v6329_v15 }
 0x59d   :  { %v5790_v55 = vpop.f32.mrb[196].mxu1  ;;  %v6586_v22 = vsel %vm6074_vm3, %v8612_v63, %v6330_v31  ;;  %v6773_v9 = vpack.c.bf16 %v6585_v47, %v6581_v49 }
 0x59e   :  { %v8613_v25 = vadd.f32 %v5790_v55, %v13722_v21  ;;  %v5792_v62 = vpop.f32.mrb[197].mxu1  ;;  %v6774_v53 = vpack.c.bf16 %v6586_v22, %v6582_v27 }
 0x59f   :  { %v8614_v33 = vadd.f32 %v5792_v62, %v13724_v23  ;;  %v5794_v44 = vpop.f32.mrb[198].mxu1 }
 0x5a0   :  { %v6333_v50 = vmul.f32 0.01, %v8613_v25  ;;  %v8615_v13 = vadd.f32 %v5794_v44, %v13722_v21  ;;  %v5796_v10 = vpop.f32.mrb[199].mxu1  ;;  %7547 = vmatprep.mubr.bf16.mxu0 %v6774_v53  ;;  %vm6077_vm4 = vcmp.gt.f32.partialorder %v8613_v25, 0.0 }
 0x5a1   :  { %v6334_v11 = vmul.f32 0.01, %v8614_v33  ;;  %v8616_v59 = vadd.f32 %v5796_v10, %v13724_v23  ;;  %7548 = vmatmul.mubr.bf16.gmra.mrb[192].mxu0 %v6773_v9  ;;  %vm6078_vm5 = vcmp.gt.f32.partialorder %v8614_v33, 0.0 }
 0x5a2   :  { %vm6081_vm6 = vcmp.gt.f32.partialorder %v8615_v13, 0.0  ;;  %v6337_v35 = vmul.f32 0.01, %v8615_v13  ;;  %v6589_v12 = vsel %vm6077_vm4, %v8613_v25, %v6333_v50 }
 0x5a3   :  { %vm6082_vm7 = vcmp.gt.f32.partialorder %v8616_v59, 0.0  ;;  %v6338_v26 = vmul.f32 0.01, %v8616_v59  ;;  %v6590_v24 = vsel %vm6078_vm5, %v8614_v33, %v6334_v11 }
 0x5a4   :  { %v6593_v14 = vsel %vm6081_vm6, %v8615_v13, %v6337_v35 }
 0x5a5   :  { %v5800_v30 = vpop.f32.mrb[200].mxu1  ;;  %v6594_v16 = vsel %vm6082_vm7, %v8616_v59, %v6338_v26  ;;  %v6777_v41 = vpack.c.bf16 %v6593_v14, %v6589_v12 }
 0x5a6   :  { %v8617_v18 = vadd.f32 %v5800_v30, %v13722_v21  ;;  %v5802_v6 = vpop.f32.mrb[201].mxu1  ;;  %v6778_v43 = vpack.c.bf16 %v6594_v16, %v6590_v24 }
 0x5a7   :  { %v8618_v2 = vadd.f32 %v5802_v6, %v13724_v23  ;;  %v5804_v37 = vpop.f32.mrb[202].mxu1 }
 0x5a8   :  { %v6341_v46 = vmul.f32 0.01, %v8617_v18  ;;  %v8619_v4 = vadd.f32 %v5804_v37, %v13722_v21  ;;  %v5806_v1 = vpop.f32.mrb[203].mxu1  ;;  %7555 = vmatprep.mubr.bf16.mxu0 %v6778_v43  ;;  %vm6085_vm8 = vcmp.gt.f32.partialorder %v8617_v18, 0.0 }
 0x5a9   :  { %v6342_v20 = vmul.f32 0.01, %v8618_v2  ;;  %v8620_v51 = vadd.f32 %v5806_v1, %v13724_v23  ;;  %7556 = vmatmul.mubr.bf16.gmra.mrb[196].mxu0 %v6777_v41  ;;  %vm6086_vm9 = vcmp.gt.f32.partialorder %v8618_v2, 0.0 }
 0x5aa   :  { %vm6089_vm10 = vcmp.gt.f32.partialorder %v8619_v4, 0.0  ;;  %v6345_v3 = vmul.f32 0.01, %v8619_v4  ;;  %v6597_v45 = vsel %vm6085_vm8, %v8617_v18, %v6341_v46 }
 0x5ab   :  { %vm6090_vm11 = vcmp.gt.f32.partialorder %v8620_v51, 0.0  ;;  %v6346_v17 = vmul.f32 0.01, %v8620_v51  ;;  %v6598_v60 = vsel %vm6086_vm9, %v8618_v2, %v6342_v20 }
 0x5ac   :  { %v6601_v52 = vsel %vm6089_vm10, %v8619_v4, %v6345_v3 }
 0x5ad   :  { %v5810_v38 = vpop.f32.mrb[204].mxu1  ;;  %v6602_v36 = vsel %vm6090_vm11, %v8620_v51, %v6346_v17  ;;  %v6781_v29 = vpack.c.bf16 %v6601_v52, %v6597_v45 }
 0x5ae   :  { %v8621_v32 = vadd.f32 %v5810_v38, %v13722_v21  ;;  %v5812_v61 = vpop.f32.mrb[205].mxu1  ;;  %v6782_v57 = vpack.c.bf16 %v6602_v36, %v6598_v60 }
 0x5af   :  { %v8622_v28 = vadd.f32 %v5812_v61, %v13724_v23  ;;  %v5814_v8 = vpop.f32.mrb[206].mxu1 }
 0x5b0   :  { %v6349_v5 = vmul.f32 0.01, %v8621_v32  ;;  %v8623_v58 = vadd.f32 %v5814_v8, %v13722_v21  ;;  %v5816_v39 = vpop.f32.mrb[207].mxu1  ;;  %7563 = vmatprep.mubr.bf16.mxu0 %v6782_v57  ;;  %vm6093_vm12 = vcmp.gt.f32.partialorder %v8621_v32, 0.0 }
 0x5b1   :  { %v6350_v7 = vmul.f32 0.01, %v8622_v28  ;;  %v8624_v0 = vadd.f32 %v5816_v39, %v13724_v23  ;;  %7564 = vmatmul.mubr.bf16.gmra.mrb[200].mxu0 %v6781_v29  ;;  %vm6094_vm13 = vcmp.gt.f32.partialorder %v8622_v28, 0.0 }
 0x5b2   :  { %vm6097_vm14 = vcmp.gt.f32.partialorder %v8623_v58, 0.0  ;;  %v6353_v40 = vmul.f32 0.01, %v8623_v58  ;;  %v6605_v19 = vsel %vm6093_vm12, %v8621_v32, %v6349_v5 }
 0x5b3   :  { %vm6098_vm15 = vcmp.gt.f32.partialorder %v8624_v0, 0.0  ;;  %v6354_v48 = vmul.f32 0.01, %v8624_v0  ;;  %v6606_v56 = vsel %vm6094_vm13, %v8622_v28, %v6350_v7 }
 0x5b4   :  { %v6609_v42 = vsel %vm6097_vm14, %v8623_v58, %v6353_v40 }
 0x5b5   :  { %v5820_v34 = vpop.f32.mrb[208].mxu1  ;;  %v6610_v54 = vsel %vm6098_vm15, %v8624_v0, %v6354_v48  ;;  %v6785_v63 = vpack.c.bf16 %v6609_v42, %v6605_v19 }
 0x5b6   :  { %v8625_v15 = vadd.f32 %v5820_v34, %v13722_v21  ;;  %v5822_v31 = vpop.f32.mrb[209].mxu1  ;;  %v6786_v49 = vpack.c.bf16 %v6610_v54, %v6606_v56 }
 0x5b7   :  { %v8626_v47 = vadd.f32 %v5822_v31, %v13724_v23  ;;  %v5824_v55 = vpop.f32.mrb[210].mxu1 }
 0x5b8   :  { %v6357_v27 = vmul.f32 0.01, %v8625_v15  ;;  %v8627_v22 = vadd.f32 %v5824_v55, %v13722_v21  ;;  %v5826_v9 = vpop.f32.mrb[211].mxu1  ;;  %7571 = vmatprep.mubr.bf16.mxu0 %v6786_v49  ;;  %vm6101_vm0 = vcmp.gt.f32.partialorder %v8625_v15, 0.0 }
 0x5b9   :  { %v6358_v25 = vmul.f32 0.01, %v8626_v47  ;;  %v8628_v62 = vadd.f32 %v5826_v9, %v13724_v23  ;;  %7572 = vmatmul.mubr.bf16.gmra.mrb[204].mxu0 %v6785_v63  ;;  %vm6102_vm1 = vcmp.gt.f32.partialorder %v8626_v47, 0.0 }
 0x5ba   :  { %vm6105_vm2 = vcmp.gt.f32.partialorder %v8627_v22, 0.0  ;;  %v6361_v53 = vmul.f32 0.01, %v8627_v22  ;;  %v6613_v44 = vsel %vm6101_vm0, %v8625_v15, %v6357_v27 }
 0x5bb   :  { %vm6106_vm3 = vcmp.gt.f32.partialorder %v8628_v62, 0.0  ;;  %v6362_v33 = vmul.f32 0.01, %v8628_v62  ;;  %v6614_v10 = vsel %vm6102_vm1, %v8626_v47, %v6358_v25 }
 0x5bc   :  { %v6617_v50 = vsel %vm6105_vm2, %v8627_v22, %v6361_v53 }
 0x5bd   :  { %v5830_v13 = vpop.f32.mrb[212].mxu1  ;;  %v6618_v11 = vsel %vm6106_vm3, %v8628_v62, %v6362_v33  ;;  %v6789_v59 = vpack.c.bf16 %v6617_v50, %v6613_v44 }
 0x5be   :  { %v8629_v35 = vadd.f32 %v5830_v13, %v13722_v21  ;;  %v5832_v26 = vpop.f32.mrb[213].mxu1  ;;  %v6790_v12 = vpack.c.bf16 %v6618_v11, %v6614_v10 }
 0x5bf   :  { %v8630_v14 = vadd.f32 %v5832_v26, %v13724_v23  ;;  %v5834_v30 = vpop.f32.mrb[214].mxu1 }
 0x5c0   :  { %v6365_v24 = vmul.f32 0.01, %v8629_v35  ;;  %v8631_v16 = vadd.f32 %v5834_v30, %v13722_v21  ;;  %v5836_v41 = vpop.f32.mrb[215].mxu1  ;;  %7579 = vmatprep.mubr.bf16.mxu0 %v6790_v12  ;;  %vm6109_vm4 = vcmp.gt.f32.partialorder %v8629_v35, 0.0 }
 0x5c1   :  { %v6366_v18 = vmul.f32 0.01, %v8630_v14  ;;  %v8632_v6 = vadd.f32 %v5836_v41, %v13724_v23  ;;  %7580 = vmatmul.mubr.bf16.gmra.mrb[208].mxu0 %v6789_v59  ;;  %vm6110_vm5 = vcmp.gt.f32.partialorder %v8630_v14, 0.0 }
 0x5c2   :  { %vm6113_vm6 = vcmp.gt.f32.partialorder %v8631_v16, 0.0  ;;  %v6369_v43 = vmul.f32 0.01, %v8631_v16  ;;  %v6621_v37 = vsel %vm6109_vm4, %v8629_v35, %v6365_v24 }
 0x5c3   :  { %vm6114_vm7 = vcmp.gt.f32.partialorder %v8632_v6, 0.0  ;;  %v6370_v2 = vmul.f32 0.01, %v8632_v6  ;;  %v6622_v1 = vsel %vm6110_vm5, %v8630_v14, %v6366_v18 }
 0x5c4   :  { %v6625_v46 = vsel %vm6113_vm6, %v8631_v16, %v6369_v43 }
 0x5c5   :  { %v5840_v4 = vpop.f32.mrb[216].mxu1  ;;  %v6626_v20 = vsel %vm6114_vm7, %v8632_v6, %v6370_v2  ;;  %v6793_v51 = vpack.c.bf16 %v6625_v46, %v6621_v37 }
 0x5c6   :  { %v8633_v3 = vadd.f32 %v5840_v4, %v13722_v21  ;;  %v5842_v17 = vpop.f32.mrb[217].mxu1  ;;  %v6794_v45 = vpack.c.bf16 %v6626_v20, %v6622_v1 }
 0x5c7   :  { %v8634_v52 = vadd.f32 %v5842_v17, %v13724_v23  ;;  %v5844_v38 = vpop.f32.mrb[218].mxu1 }
 0x5c8   :  { %v6373_v60 = vmul.f32 0.01, %v8633_v3  ;;  %v8635_v36 = vadd.f32 %v5844_v38, %v13722_v21  ;;  %v5846_v29 = vpop.f32.mrb[219].mxu1  ;;  %7587 = vmatprep.mubr.bf16.mxu0 %v6794_v45  ;;  %vm6117_vm8 = vcmp.gt.f32.partialorder %v8633_v3, 0.0 }
 0x5c9   :  { %v6374_v32 = vmul.f32 0.01, %v8634_v52  ;;  %v8636_v61 = vadd.f32 %v5846_v29, %v13724_v23  ;;  %7588 = vmatmul.mubr.bf16.gmra.mrb[212].mxu0 %v6793_v51  ;;  %vm6118_vm9 = vcmp.gt.f32.partialorder %v8634_v52, 0.0 }
 0x5ca   :  { %vm6121_vm10 = vcmp.gt.f32.partialorder %v8635_v36, 0.0  ;;  %v6377_v57 = vmul.f32 0.01, %v8635_v36  ;;  %v6629_v8 = vsel %vm6117_vm8, %v8633_v3, %v6373_v60 }
 0x5cb   :  { %vm6122_vm11 = vcmp.gt.f32.partialorder %v8636_v61, 0.0  ;;  %v6378_v28 = vmul.f32 0.01, %v8636_v61  ;;  %v6630_v39 = vsel %vm6118_vm9, %v8634_v52, %v6374_v32 }
 0x5cc   :  { %v6633_v5 = vsel %vm6121_vm10, %v8635_v36, %v6377_v57 }
 0x5cd   :  { %v5850_v58 = vpop.f32.mrb[220].mxu1  ;;  %v6634_v7 = vsel %vm6122_vm11, %v8636_v61, %v6378_v28  ;;  %v6797_v0 = vpack.c.bf16 %v6633_v5, %v6629_v8 }
 0x5ce   :  { %v8637_v40 = vadd.f32 %v5850_v58, %v13722_v21  ;;  %v5852_v48 = vpop.f32.mrb[221].mxu1  ;;  %v6798_v19 = vpack.c.bf16 %v6634_v7, %v6630_v39 }
 0x5cf   :  { %v8638_v42 = vadd.f32 %v5852_v48, %v13724_v23  ;;  %v5854_v34 = vpop.f32.mrb[222].mxu1 }
 0x5d0   :  { %v6381_v56 = vmul.f32 0.01, %v8637_v40  ;;  %v8639_v54 = vadd.f32 %v5854_v34, %v13722_v21  ;;  %v5856_v63 = vpop.f32.mrb[223].mxu1  ;;  %7595 = vmatprep.mubr.bf16.mxu0 %v6798_v19  ;;  %vm6125_vm12 = vcmp.gt.f32.partialorder %v8637_v40, 0.0 }
 0x5d1   :  { %v6382_v15 = vmul.f32 0.01, %v8638_v42  ;;  %v8640_v31 = vadd.f32 %v5856_v63, %v13724_v23  ;;  %7596 = vmatmul.mubr.bf16.gmra.mrb[216].mxu0 %v6797_v0  ;;  %vm6126_vm13 = vcmp.gt.f32.partialorder %v8638_v42, 0.0 }
 0x5d2   :  { %vm6129_vm14 = vcmp.gt.f32.partialorder %v8639_v54, 0.0  ;;  %v6385_v49 = vmul.f32 0.01, %v8639_v54  ;;  %v6637_v55 = vsel %vm6125_vm12, %v8637_v40, %v6381_v56 }
 0x5d3   :  { %vm6130_vm15 = vcmp.gt.f32.partialorder %v8640_v31, 0.0  ;;  %v6386_v47 = vmul.f32 0.01, %v8640_v31  ;;  %v6638_v9 = vsel %vm6126_vm13, %v8638_v42, %v6382_v15 }
 0x5d4   :  { %v6641_v27 = vsel %vm6129_vm14, %v8639_v54, %v6385_v49 }
 0x5d5   :  { %v5860_v22 = vpop.f32.mrb[224].mxu1  ;;  %v6642_v25 = vsel %vm6130_vm15, %v8640_v31, %v6386_v47  ;;  %v6801_v62 = vpack.c.bf16 %v6641_v27, %v6637_v55 }
 0x5d6   :  { %v8641_v53 = vadd.f32 %v5860_v22, %v13722_v21  ;;  %v5862_v33 = vpop.f32.mrb[225].mxu1  ;;  %v6802_v44 = vpack.c.bf16 %v6642_v25, %v6638_v9 }
 0x5d7   :  { %v8642_v50 = vadd.f32 %v5862_v33, %v13724_v23  ;;  %v5864_v13 = vpop.f32.mrb[226].mxu1 }
 0x5d8   :  { %v6389_v10 = vmul.f32 0.01, %v8641_v53  ;;  %v8643_v11 = vadd.f32 %v5864_v13, %v13722_v21  ;;  %v5866_v59 = vpop.f32.mrb[227].mxu1  ;;  %7603 = vmatprep.mubr.bf16.mxu0 %v6802_v44  ;;  %vm6133_vm0 = vcmp.gt.f32.partialorder %v8641_v53, 0.0 }
 0x5d9   :  { %v6390_v35 = vmul.f32 0.01, %v8642_v50  ;;  %v8644_v26 = vadd.f32 %v5866_v59, %v13724_v23  ;;  %7604 = vmatmul.mubr.bf16.gmra.mrb[220].mxu0 %v6801_v62  ;;  %vm6134_vm1 = vcmp.gt.f32.partialorder %v8642_v50, 0.0 }
 0x5da   :  { %vm6137_vm2 = vcmp.gt.f32.partialorder %v8643_v11, 0.0  ;;  %v6393_v12 = vmul.f32 0.01, %v8643_v11  ;;  %v6645_v30 = vsel %vm6133_vm0, %v8641_v53, %v6389_v10 }
 0x5db   :  { %vm6138_vm3 = vcmp.gt.f32.partialorder %v8644_v26, 0.0  ;;  %v6394_v14 = vmul.f32 0.01, %v8644_v26  ;;  %v6646_v41 = vsel %vm6134_vm1, %v8642_v50, %v6390_v35  ;;  %v13851_v50 = vld [vmem:[%s14129_s4] ss:$0 sm:$0xff] }
 0x5dc   :  { %v6649_v24 = vsel %vm6137_vm2, %v8643_v11, %v6393_v12 }
 0x5dd   :  { %v5870_v16 = vpop.f32.mrb[228].mxu1  ;;  %v6650_v18 = vsel %vm6138_vm3, %v8644_v26, %v6394_v14  ;;  %v6805_v6 = vpack.c.bf16 %v6649_v24, %v6645_v30 }
 0x5de   :  { %v8645_v43 = vadd.f32 %v5870_v16, %v13722_v21  ;;  %v5872_v2 = vpop.f32.mrb[229].mxu1  ;;  %v6806_v37 = vpack.c.bf16 %v6650_v18, %v6646_v41 }
 0x5df   :  { %v8646_v46 = vadd.f32 %v5872_v2, %v13724_v23  ;;  %v5874_v4 = vpop.f32.mrb[230].mxu1 }
 0x5e0   :  { %v6397_v1 = vmul.f32 0.01, %v8645_v43  ;;  %v8647_v20 = vadd.f32 %v5874_v4, %v13722_v21  ;;  %v5876_v51 = vpop.f32.mrb[231].mxu1  ;;  %7611 = vmatprep.mubr.bf16.mxu0 %v6806_v37  ;;  %vm6141_vm4 = vcmp.gt.f32.partialorder %v8645_v43, 0.0 }
 0x5e1   :  { %v6398_v3 = vmul.f32 0.01, %v8646_v46  ;;  %v8648_v17 = vadd.f32 %v5876_v51, %v13724_v23  ;;  %7612 = vmatmul.mubr.bf16.gmra.mrb[224].mxu0 %v6805_v6  ;;  %vm6142_vm5 = vcmp.gt.f32.partialorder %v8646_v46, 0.0 }
 0x5e2   :  { %vm6145_vm6 = vcmp.gt.f32.partialorder %v8647_v20, 0.0  ;;  %v6401_v45 = vmul.f32 0.01, %v8647_v20  ;;  %v6653_v38 = vsel %vm6141_vm4, %v8645_v43, %v6397_v1 }
 0x5e3   :  { %vm6146_vm7 = vcmp.gt.f32.partialorder %v8648_v17, 0.0  ;;  %v6402_v52 = vmul.f32 0.01, %v8648_v17  ;;  %v6654_v29 = vsel %vm6142_vm5, %v8646_v46, %v6398_v3 }
 0x5e4   :  { %v6657_v60 = vsel %vm6145_vm6, %v8647_v20, %v6401_v45 }
 0x5e5   :  { %v5880_v36 = vpop.f32.mrb[232].mxu1  ;;  %v6658_v32 = vsel %vm6146_vm7, %v8648_v17, %v6402_v52  ;;  %v6809_v61 = vpack.c.bf16 %v6657_v60, %v6653_v38 }
 0x5e6   :  { %v8649_v57 = vadd.f32 %v5880_v36, %v13722_v21  ;;  %v5882_v28 = vpop.f32.mrb[233].mxu1  ;;  %v6810_v8 = vpack.c.bf16 %v6658_v32, %v6654_v29 }
 0x5e7   :  { %v8650_v5 = vadd.f32 %v5882_v28, %v13724_v23  ;;  %v5884_v58 = vpop.f32.mrb[234].mxu1 }
 0x5e8   :  { %v6405_v39 = vmul.f32 0.01, %v8649_v57  ;;  %v8651_v7 = vadd.f32 %v5884_v58, %v13722_v21  ;;  %v5886_v0 = vpop.f32.mrb[235].mxu1  ;;  %7619 = vmatprep.mubr.bf16.mxu0 %v6810_v8  ;;  %vm6149_vm8 = vcmp.gt.f32.partialorder %v8649_v57, 0.0 }
 0x5e9   :  { %v6406_v40 = vmul.f32 0.01, %v8650_v5  ;;  %v8652_v48 = vadd.f32 %v5886_v0, %v13724_v23  ;;  %7620 = vmatmul.mubr.bf16.gmra.mrb[228].mxu0 %v6809_v61  ;;  %vm6150_vm9 = vcmp.gt.f32.partialorder %v8650_v5, 0.0 }
 0x5ea   :  { %vm6153_vm10 = vcmp.gt.f32.partialorder %v8651_v7, 0.0  ;;  %v6409_v19 = vmul.f32 0.01, %v8651_v7  ;;  %v6661_v34 = vsel %vm6149_vm8, %v8649_v57, %v6405_v39 }
 0x5eb   :  { %vm6154_vm11 = vcmp.gt.f32.partialorder %v8652_v48, 0.0  ;;  %v6410_v42 = vmul.f32 0.01, %v8652_v48  ;;  %v6662_v63 = vsel %vm6150_vm9, %v8650_v5, %v6406_v40 }
 0x5ec   :  { %v6665_v56 = vsel %vm6153_vm10, %v8651_v7, %v6409_v19 }
 0x5ed   :  { %v5890_v54 = vpop.f32.mrb[236].mxu1  ;;  %v6666_v15 = vsel %vm6154_vm11, %v8652_v48, %v6410_v42  ;;  %v6813_v31 = vpack.c.bf16 %v6665_v56, %v6661_v34 }
 0x5ee   :  { %v8653_v49 = vadd.f32 %v5890_v54, %v13722_v21  ;;  %v5892_v47 = vpop.f32.mrb[237].mxu1  ;;  %v6814_v55 = vpack.c.bf16 %v6666_v15, %v6662_v63 }
 0x5ef   :  { %v8654_v27 = vadd.f32 %v5892_v47, %v13724_v23  ;;  %v5894_v22 = vpop.f32.mrb[238].mxu1 }
 0x5f0   :  { %v6413_v9 = vmul.f32 0.01, %v8653_v49  ;;  %v8655_v25 = vadd.f32 %v5894_v22, %v13722_v21  ;;  %v5896_v62 = vpop.f32.mrb[239].mxu1  ;;  %7627 = vmatprep.mubr.bf16.mxu0 %v6814_v55  ;;  %vm6157_vm12 = vcmp.gt.f32.partialorder %v8653_v49, 0.0 }
 0x5f1   :  { %v6414_v53 = vmul.f32 0.01, %v8654_v27  ;;  %v8656_v33 = vadd.f32 %v5896_v62, %v13724_v23  ;;  %7628 = vmatmul.mubr.bf16.gmra.mrb[232].mxu0 %v6813_v31  ;;  %vm6158_vm13 = vcmp.gt.f32.partialorder %v8654_v27, 0.0 }
 0x5f2   :  { %vm6161_vm14 = vcmp.gt.f32.partialorder %v8655_v25, 0.0  ;;  %v6417_v44 = vmul.f32 0.01, %v8655_v25  ;;  %v6669_v11 = vsel %vm6157_vm12, %v8653_v49, %v6413_v9 }
 0x5f3   :  { %vm6162_vm15 = vcmp.gt.f32.partialorder %v8656_v33, 0.0  ;;  %v6418_v13 = vmul.f32 0.01, %v8656_v33  ;;  %v6670_v14 = vsel %vm6158_vm13, %v8654_v27, %v6414_v53 }
 0x5f4   :  { %v7421_v10 = vpop.f32.mrb[128].mxu0  ;;  %v6673_v59 = vsel %vm6161_vm14, %v8655_v25, %v6417_v44 }
 0x5f5   :  { %v8673_v35 = vadd.f32 %v13851_v50, %v7421_v10  ;;  %v5900_v26 = vpop.f32.mrb[240].mxu1  ;;  %v7423_v12 = vpop.f32.mrb[129].mxu0  ;;  %v6674_v30 = vsel %vm6162_vm15, %v8656_v33, %v6418_v13  ;;  %v6817_v24 = vpack.c.bf16 %v6673_v59, %v6669_v11 }
 0x5f6   :  { %v8657_v16 = vadd.f32 %v5900_v26, %v13722_v21  ;;  %v5902_v41 = vpop.f32.mrb[241].mxu1  ;;  %v7424_v18 = vpop.f32.mrb[130].mxu0  ;;  %v6818_v6 = vpack.c.bf16 %v6674_v30, %v6670_v14 }
 0x5f7   :  { %7676 = vst [vmem:[%s14130_s5] sm:$0xff] %v8673_v35  ;;  %v8658_v43 = vadd.f32 %v5902_v41, %v13724_v23  ;;  %v8674_v2 = vadd.f32 %v13851_v50, %v7424_v18  ;;  %v5904_v37 = vpop.f32.mrb[242].mxu1  ;;  %v7426_v46 = vpop.f32.mrb[131].mxu0 }
 0x5f8   :  { %v6421_v4 = vmul.f32 0.01, %v8657_v16  ;;  %v8659_v1 = vadd.f32 %v5904_v37, %v13722_v21  ;;  %v5906_v20 = vpop.f32.mrb[243].mxu1  ;;  %7635 = vmatprep.mubr.bf16.mxu0 %v6818_v6  ;;  %vm6165_vm0 = vcmp.gt.f32.partialorder %v8657_v16, 0.0 }
 0x5f9   :  { %v6422_v51 = vmul.f32 0.01, %v8658_v43  ;;  %7677 = vst [vmem:[%s14130_s5 + $0x8] sm:$0xff] %v8674_v2  ;;  %v8660_v3 = vadd.f32 %v5906_v20, %v13724_v23  ;;  %7636 = vmatmul.mubr.bf16.gmra.mrb[236].mxu0 %v6817_v24  ;;  %vm6166_vm1 = vcmp.gt.f32.partialorder %v8658_v43, 0.0 }
 0x5fa   :  { %vm6169_vm2 = vcmp.gt.f32.partialorder %v8659_v1, 0.0  ;;  %v6425_v17 = vmul.f32 0.01, %v8659_v1  ;;  %v6677_v38 = vsel %vm6165_vm0, %v8657_v16, %v6421_v4 }
 0x5fb   :  { %vm6170_vm3 = vcmp.gt.f32.partialorder %v8660_v3, 0.0  ;;  %v6426_v45 = vmul.f32 0.01, %v8660_v3  ;;  %v6678_v61 = vsel %vm6166_vm1, %v8658_v43, %v6422_v51 }
 0x5fc   :  { %v7429_v52 = vpop.f32.mrb[132].mxu0  ;;  %v6681_v60 = vsel %vm6169_vm2, %v8659_v1, %v6425_v17 }
 0x5fd   :  { %v8675_v36 = vadd.f32 %v13851_v50, %v7429_v52  ;;  %v5910_v29 = vpop.f32.mrb[244].mxu1  ;;  %v7431_v32 = vpop.f32.mrb[133].mxu0  ;;  %v6682_v57 = vsel %vm6170_vm3, %v8660_v3, %v6426_v45  ;;  %v6821_v28 = vpack.c.bf16 %v6681_v60, %v6677_v38 }
 0x5fe   :  { %v8661_v8 = vadd.f32 %v5910_v29, %v13722_v21  ;;  %v5912_v5 = vpop.f32.mrb[245].mxu1  ;;  %v7432_v58 = vpop.f32.mrb[134].mxu0  ;;  %v6822_v39 = vpack.c.bf16 %v6682_v57, %v6678_v61 }
 0x5ff   :  { %7678 = vst [vmem:[%s14130_s5 + $0x10] sm:$0xff] %v8675_v36  ;;  %v8662_v7 = vadd.f32 %v5912_v5, %v13724_v23  ;;  %v8676_v0 = vadd.f32 %v13851_v50, %v7432_v58  ;;  %v5914_v40 = vpop.f32.mrb[246].mxu1  ;;  %v7434_v48 = vpop.f32.mrb[135].mxu0 }
 0x600   :  { %v6429_v19 = vmul.f32 0.01, %v8661_v8  ;;  %v8663_v42 = vadd.f32 %v5914_v40, %v13722_v21  ;;  %v5916_v34 = vpop.f32.mrb[247].mxu1  ;;  %7643 = vmatprep.mubr.bf16.mxu0 %v6822_v39  ;;  %vm6173_vm4 = vcmp.gt.f32.partialorder %v8661_v8, 0.0 }
 0x601   :  { %v6430_v56 = vmul.f32 0.01, %v8662_v7  ;;  %7679 = vst [vmem:[%s14130_s5 + $0x18] sm:$0xff] %v8676_v0  ;;  %v8664_v54 = vadd.f32 %v5916_v34, %v13724_v23  ;;  %7644 = vmatmul.mubr.bf16.gmra.mrb[240].mxu0 %v6821_v28  ;;  %vm6174_vm5 = vcmp.gt.f32.partialorder %v8662_v7, 0.0 }
 0x602   :  { %vm6177_vm6 = vcmp.gt.f32.partialorder %v8663_v42, 0.0  ;;  %v6433_v63 = vmul.f32 0.01, %v8663_v42  ;;  %v6685_v49 = vsel %vm6173_vm4, %v8661_v8, %v6429_v19 }
 0x603   :  { %vm6178_vm7 = vcmp.gt.f32.partialorder %v8664_v54, 0.0  ;;  %v6434_v15 = vmul.f32 0.01, %v8664_v54  ;;  %v6686_v9 = vsel %vm6174_vm5, %v8662_v7, %v6430_v56 }
 0x604   :  { %v7437_v31 = vpop.f32.mrb[136].mxu0  ;;  %v6689_v47 = vsel %vm6177_vm6, %v8663_v42, %v6433_v63 }
 0x605   :  { %v8677_v55 = vadd.f32 %v13851_v50, %v7437_v31  ;;  %v5920_v27 = vpop.f32.mrb[248].mxu1  ;;  %v7439_v22 = vpop.f32.mrb[137].mxu0  ;;  %v6690_v25 = vsel %vm6178_vm7, %v8664_v54, %v6434_v15  ;;  %v6825_v62 = vpack.c.bf16 %v6689_v47, %v6685_v49 }
 0x606   :  { %v8665_v53 = vadd.f32 %v5920_v27, %v13722_v21  ;;  %v5922_v33 = vpop.f32.mrb[249].mxu1  ;;  %v7440_v44 = vpop.f32.mrb[138].mxu0  ;;  %v6826_v13 = vpack.c.bf16 %v6690_v25, %v6686_v9 }
 0x607   :  { %7680 = vst [vmem:[%s14130_s5 + $0x20] sm:$0xff] %v8677_v55  ;;  %v8666_v10 = vadd.f32 %v5922_v33, %v13724_v23  ;;  %v8678_v11 = vadd.f32 %v13851_v50, %v7440_v44  ;;  %v5924_v59 = vpop.f32.mrb[250].mxu1  ;;  %v7442_v35 = vpop.f32.mrb[139].mxu0 }
 0x608   :  { %v6437_v26 = vmul.f32 0.01, %v8665_v53  ;;  %v8667_v12 = vadd.f32 %v5924_v59, %v13722_v21  ;;  %v5926_v14 = vpop.f32.mrb[251].mxu1  ;;  %7651 = vmatprep.mubr.bf16.mxu0 %v6826_v13  ;;  %vm6181_vm8 = vcmp.gt.f32.partialorder %v8665_v53, 0.0 }
 0x609   :  { %v6438_v30 = vmul.f32 0.01, %v8666_v10  ;;  %7681 = vst [vmem:[%s14130_s5 + $0x28] sm:$0xff] %v8678_v11  ;;  %v8668_v24 = vadd.f32 %v5926_v14, %v13724_v23  ;;  %7652 = vmatmul.mubr.bf16.gmra.mrb[244].mxu0 %v6825_v62  ;;  %vm6182_vm9 = vcmp.gt.f32.partialorder %v8666_v10, 0.0 }
 0x60a   :  { %vm6185_vm10 = vcmp.gt.f32.partialorder %v8667_v12, 0.0  ;;  %v6441_v16 = vmul.f32 0.01, %v8667_v12  ;;  %v6693_v6 = vsel %vm6181_vm8, %v8665_v53, %v6437_v26 }
 0x60b   :  { %vm6186_vm11 = vcmp.gt.f32.partialorder %v8668_v24, 0.0  ;;  %v6442_v41 = vmul.f32 0.01, %v8668_v24  ;;  %v6694_v4 = vsel %vm6182_vm9, %v8666_v10, %v6438_v30 }
 0x60c   :  { %v7445_v18 = vpop.f32.mrb[140].mxu0  ;;  %v6697_v43 = vsel %vm6185_vm10, %v8667_v12, %v6441_v16 }
 0x60d   :  { %v8679_v2 = vadd.f32 %v13851_v50, %v7445_v18  ;;  %v5930_v37 = vpop.f32.mrb[252].mxu1  ;;  %v7447_v46 = vpop.f32.mrb[141].mxu0  ;;  %v6698_v1 = vsel %vm6186_vm11, %v8668_v24, %v6442_v41  ;;  %v6829_v20 = vpack.c.bf16 %v6697_v43, %v6693_v6 }
 0x60e   :  { %v8669_v51 = vadd.f32 %v5930_v37, %v13722_v21  ;;  %v5932_v3 = vpop.f32.mrb[253].mxu1  ;;  %v7448_v17 = vpop.f32.mrb[142].mxu0  ;;  %v6830_v45 = vpack.c.bf16 %v6698_v1, %v6694_v4 }
 0x60f   :  { %7682 = vst [vmem:[%s14130_s5 + $0x30] sm:$0xff] %v8679_v2  ;;  %v8670_v52 = vadd.f32 %v5932_v3, %v13724_v23  ;;  %v8680_v38 = vadd.f32 %v13851_v50, %v7448_v17  ;;  %v5934_v60 = vpop.f32.mrb[254].mxu1  ;;  %v7450_v36 = vpop.f32.mrb[143].mxu0 }
 0x610   :  { %v6445_v29 = vmul.f32 0.01, %v8669_v51  ;;  %v8671_v32 = vadd.f32 %v5934_v60, %v13722_v21  ;;  %v5936_v61 = vpop.f32.mrb[255].mxu1  ;;  %7659 = vmatprep.mubr.bf16.mxu0 %v6830_v45  ;;  %vm6189_vm12 = vcmp.gt.f32.partialorder %v8669_v51, 0.0 }
 0x611   :  { %v6446_v57 = vmul.f32 0.01, %v8670_v52  ;;  %7683 = vst [vmem:[%s14130_s5 + $0x38] sm:$0xff] %v8680_v38  ;;  %v8672_v28 = vadd.f32 %v5936_v61, %v13724_v23  ;;  %7660 = vmatmul.mubr.bf16.gmra.mrb[248].mxu0 %v6829_v20  ;;  %vm6190_vm13 = vcmp.gt.f32.partialorder %v8670_v52, 0.0 }
 0x612   :  { %vm6193_vm14 = vcmp.gt.f32.partialorder %v8671_v32, 0.0  ;;  %v6449_v8 = vmul.f32 0.01, %v8671_v32  ;;  %v6701_v39 = vsel %vm6189_vm12, %v8669_v51, %v6445_v29 }
 0x613   :  { %vm6194_vm15 = vcmp.gt.f32.partialorder %v8672_v28, 0.0  ;;  %v6450_v5 = vmul.f32 0.01, %v8672_v28  ;;  %v6702_v40 = vsel %vm6190_vm13, %v8670_v52, %v6446_v57 }
 0x614   :  { %v7453_v58 = vpop.f32.mrb[144].mxu0  ;;  %v6705_v7 = vsel %vm6193_vm14, %v8671_v32, %v6449_v8 }
 0x615   :  { %v8681_v21 = vadd.f32 %v13851_v50, %v7453_v58  ;;  %v7455_v0 = vpop.f32.mrb[145].mxu0  ;;  %v6706_v48 = vsel %vm6194_vm15, %v8672_v28, %v6450_v5  ;;  %v6833_v19 = vpack.c.bf16 %v6705_v7, %v6701_v39 }
 0x616   :  { %v7456_v42 = vpop.f32.mrb[146].mxu0  ;;  %v6834_v34 = vpack.c.bf16 %v6706_v48, %v6702_v40 }
 0x617   :  { %7684 = vst [vmem:[%s14130_s5 + $0x40] sm:$0xff] %v8681_v21  ;;  %v8682_v23 = vadd.f32 %v13851_v50, %v7456_v42  ;;  %v7458_v56 = vpop.f32.mrb[147].mxu0 }
 0x618   :  { %7667 = vmatprep.mubr.bf16.mxu0 %v6834_v34 }
 0x619   :  { %7685 = vst [vmem:[%s14130_s5 + $0x48] sm:$0xff] %v8682_v23  ;;  %7668 = vmatmul.mubr.bf16.gmra.mrb[252].mxu0 %v6833_v19 }
 0x61c   :  { %v7461_v54 = vpop.f32.mrb[148].mxu0 }
 0x61d   :  { %v8683_v63 = vadd.f32 %v13851_v50, %v7461_v54  ;;  %v7463_v15 = vpop.f32.mrb[149].mxu0 }
 0x61e   :  { %v7464_v31 = vpop.f32.mrb[150].mxu0 }
 0x61f   :  { %7686 = vst [vmem:[%s14130_s5 + $0x50] sm:$0xff] %v8683_v63  ;;  %v8684_v49 = vadd.f32 %v13851_v50, %v7464_v31  ;;  %v7466_v47 = vpop.f32.mrb[151].mxu0 }
 0x621   :  { %7687 = vst [vmem:[%s14130_s5 + $0x58] sm:$0xff] %v8684_v49 }
 0x624   :  { %v7469_v55 = vpop.f32.mrb[152].mxu0 }
 0x625   :  { %v8685_v27 = vadd.f32 %v13851_v50, %v7469_v55  ;;  %v7471_v22 = vpop.f32.mrb[153].mxu0 }
 0x626   :  { %v7472_v9 = vpop.f32.mrb[154].mxu0 }
 0x627   :  { %7688 = vst [vmem:[%s14130_s5 + $0x60] sm:$0xff] %v8685_v27  ;;  %v8686_v25 = vadd.f32 %v13851_v50, %v7472_v9  ;;  %v7474_v62 = vpop.f32.mrb[155].mxu0 }
 0x629   :  { %7689 = vst [vmem:[%s14130_s5 + $0x68] sm:$0xff] %v8686_v25 }
 0x62c   :  { %v7477_v53 = vpop.f32.mrb[156].mxu0 }
 0x62d   :  { %v8687_v33 = vadd.f32 %v13851_v50, %v7477_v53  ;;  %v7479_v44 = vpop.f32.mrb[157].mxu0 }
 0x62e   :  { %v7480_v13 = vpop.f32.mrb[158].mxu0 }
 0x62f   :  { %7690 = vst [vmem:[%s14130_s5 + $0x70] sm:$0xff] %v8687_v33  ;;  %v8688_v10 = vadd.f32 %v13851_v50, %v7480_v13  ;;  %v7482_v11 = vpop.f32.mrb[159].mxu0 }
 0x631   :  { %7691 = vst [vmem:[%s14130_s5 + $0x78] sm:$0xff] %v8688_v10 }
 0x634   :  { %v7485_v59 = vpop.f32.mrb[160].mxu0 }
 0x635   :  { %v8689_v35 = vadd.f32 %v13851_v50, %v7485_v59  ;;  %v7487_v26 = vpop.f32.mrb[161].mxu0 }
 0x636   :  { %v7488_v12 = vpop.f32.mrb[162].mxu0 }
 0x637   :  { %7692 = vst [vmem:[%s14130_s5 + $0x80] sm:$0xff] %v8689_v35  ;;  %v8690_v14 = vadd.f32 %v13851_v50, %v7488_v12  ;;  %v7490_v30 = vpop.f32.mrb[163].mxu0 }
 0x639   :  { %7693 = vst [vmem:[%s14130_s5 + $0x88] sm:$0xff] %v8690_v14 }
 0x63c   :  { %v7493_v24 = vpop.f32.mrb[164].mxu0 }
 0x63d   :  { %v8691_v16 = vadd.f32 %v13851_v50, %v7493_v24  ;;  %v7495_v41 = vpop.f32.mrb[165].mxu0 }
 0x63e   :  { %v7496_v18 = vpop.f32.mrb[166].mxu0 }
 0x63f   :  { %7694 = vst [vmem:[%s14130_s5 + $0x90] sm:$0xff] %v8691_v16  ;;  %v8692_v6 = vadd.f32 %v13851_v50, %v7496_v18  ;;  %v7498_v43 = vpop.f32.mrb[167].mxu0 }
 0x641   :  { %7695 = vst [vmem:[%s14130_s5 + $0x98] sm:$0xff] %v8692_v6 }
 0x644   :  { %v7501_v2 = vpop.f32.mrb[168].mxu0 }
 0x645   :  { %v8693_v37 = vadd.f32 %v13851_v50, %v7501_v2  ;;  %v7503_v46 = vpop.f32.mrb[169].mxu0 }
 0x646   :  { %v7504_v4 = vpop.f32.mrb[170].mxu0 }
 0x647   :  { %7696 = vst [vmem:[%s14130_s5 + $0xa0] sm:$0xff] %v8693_v37  ;;  %v8694_v1 = vadd.f32 %v13851_v50, %v7504_v4  ;;  %v7506_v20 = vpop.f32.mrb[171].mxu0 }
 0x649   :  { %7697 = vst [vmem:[%s14130_s5 + $0xa8] sm:$0xff] %v8694_v1 }
 0x64c   :  { %v7509_v51 = vpop.f32.mrb[172].mxu0 }
 0x64d   :  { %v8695_v3 = vadd.f32 %v13851_v50, %v7509_v51  ;;  %v7511_v17 = vpop.f32.mrb[173].mxu0 }
 0x64e   :  { %v7512_v45 = vpop.f32.mrb[174].mxu0 }
 0x64f   :  { %7698 = vst [vmem:[%s14130_s5 + $0xb0] sm:$0xff] %v8695_v3  ;;  %v8696_v52 = vadd.f32 %v13851_v50, %v7512_v45  ;;  %v7514_v38 = vpop.f32.mrb[175].mxu0 }
 0x651   :  { %7699 = vst [vmem:[%s14130_s5 + $0xb8] sm:$0xff] %v8696_v52 }
 0x654   :  { %v7517_v60 = vpop.f32.mrb[176].mxu0 }
 0x655   :  { %v8697_v36 = vadd.f32 %v13851_v50, %v7517_v60  ;;  %v7519_v29 = vpop.f32.mrb[177].mxu0 }
 0x656   :  { %v7520_v32 = vpop.f32.mrb[178].mxu0 }
 0x657   :  { %7700 = vst [vmem:[%s14130_s5 + $0xc0] sm:$0xff] %v8697_v36  ;;  %v8698_v61 = vadd.f32 %v13851_v50, %v7520_v32  ;;  %v7522_v57 = vpop.f32.mrb[179].mxu0 }
 0x659   :  { %7701 = vst [vmem:[%s14130_s5 + $0xc8] sm:$0xff] %v8698_v61 }
 0x65c   :  { %v7525_v28 = vpop.f32.mrb[180].mxu0 }
 0x65d   :  { %v8699_v8 = vadd.f32 %v13851_v50, %v7525_v28  ;;  %v7527_v5 = vpop.f32.mrb[181].mxu0 }
 0x65e   :  { %v7528_v58 = vpop.f32.mrb[182].mxu0 }
 0x65f   :  { %7702 = vst [vmem:[%s14130_s5 + $0xd0] sm:$0xff] %v8699_v8  ;;  %v8700_v39 = vadd.f32 %v13851_v50, %v7528_v58  ;;  %v7530_v7 = vpop.f32.mrb[183].mxu0 }
 0x661   :  { %7703 = vst [vmem:[%s14130_s5 + $0xd8] sm:$0xff] %v8700_v39 }
 0x664   :  { %v7533_v21 = vpop.f32.mrb[184].mxu0 }
 0x665   :  { %v8701_v0 = vadd.f32 %v13851_v50, %v7533_v21  ;;  %v7535_v40 = vpop.f32.mrb[185].mxu0 }
 0x666   :  { %v7536_v48 = vpop.f32.mrb[186].mxu0 }
 0x667   :  { %7704 = vst [vmem:[%s14130_s5 + $0xe0] sm:$0xff] %v8701_v0  ;;  %v8702_v19 = vadd.f32 %v13851_v50, %v7536_v48  ;;  %v7538_v42 = vpop.f32.mrb[187].mxu0 }
 0x669   :  { %7705 = vst [vmem:[%s14130_s5 + $0xe8] sm:$0xff] %v8702_v19 }
 0x66c   :  { %v7541_v34 = vpop.f32.mrb[188].mxu0 }
 0x66d   :  { %v8703_v23 = vadd.f32 %v13851_v50, %v7541_v34  ;;  %v7543_v56 = vpop.f32.mrb[189].mxu0 }
 0x66e   :  { %v7544_v54 = vpop.f32.mrb[190].mxu0 }
 0x66f   :  { %7706 = vst [vmem:[%s14130_s5 + $0xf0] sm:$0xff] %v8703_v23  ;;  %v8704_v63 = vadd.f32 %v13851_v50, %v7544_v54  ;;  %v7546_v15 = vpop.f32.mrb[191].mxu0 }
 0x671   :  { %7707 = vst [vmem:[%s14130_s5 + $0xf8] sm:$0xff] %v8704_v63 }
 0x674   :  { %v7549_v31 = vpop.f32.mrb[192].mxu0 }
 0x675   :  { %v8705_v49 = vadd.f32 %v13851_v50, %v7549_v31  ;;  %v7551_v47 = vpop.f32.mrb[193].mxu0 }
 0x676   :  { %v7552_v55 = vpop.f32.mrb[194].mxu0 }
 0x677   :  { %7708 = vst [vmem:[%s14130_s5 + $0x100] sm:$0xff] %v8705_v49  ;;  %v8706_v27 = vadd.f32 %v13851_v50, %v7552_v55  ;;  %v7554_v22 = vpop.f32.mrb[195].mxu0 }
 0x679   :  { %7709 = vst [vmem:[%s14130_s5 + $0x108] sm:$0xff] %v8706_v27 }
 0x67c   :  { %v7557_v9 = vpop.f32.mrb[196].mxu0 }
 0x67d   :  { %v8707_v25 = vadd.f32 %v13851_v50, %v7557_v9  ;;  %v7559_v62 = vpop.f32.mrb[197].mxu0 }
 0x67e   :  { %v7560_v53 = vpop.f32.mrb[198].mxu0 }
 0x67f   :  { %7710 = vst [vmem:[%s14130_s5 + $0x110] sm:$0xff] %v8707_v25  ;;  %v8708_v33 = vadd.f32 %v13851_v50, %v7560_v53  ;;  %v7562_v44 = vpop.f32.mrb[199].mxu0 }
 0x681   :  { %7711 = vst [vmem:[%s14130_s5 + $0x118] sm:$0xff] %v8708_v33 }
 0x684   :  { %v7565_v13 = vpop.f32.mrb[200].mxu0 }
 0x685   :  { %v8709_v10 = vadd.f32 %v13851_v50, %v7565_v13  ;;  %v7567_v11 = vpop.f32.mrb[201].mxu0 }
 0x686   :  { %v7568_v59 = vpop.f32.mrb[202].mxu0 }
 0x687   :  { %7712 = vst [vmem:[%s14130_s5 + $0x120] sm:$0xff] %v8709_v10  ;;  %v8710_v35 = vadd.f32 %v13851_v50, %v7568_v59  ;;  %v7570_v26 = vpop.f32.mrb[203].mxu0 }
 0x689   :  { %7713 = vst [vmem:[%s14130_s5 + $0x128] sm:$0xff] %v8710_v35 }
 0x68c   :  { %v7573_v12 = vpop.f32.mrb[204].mxu0 }
 0x68d   :  { %v8711_v14 = vadd.f32 %v13851_v50, %v7573_v12  ;;  %v7575_v30 = vpop.f32.mrb[205].mxu0 }
 0x68e   :  { %v7576_v24 = vpop.f32.mrb[206].mxu0 }
 0x68f   :  { %7714 = vst [vmem:[%s14130_s5 + $0x130] sm:$0xff] %v8711_v14  ;;  %v8712_v16 = vadd.f32 %v13851_v50, %v7576_v24  ;;  %v7578_v41 = vpop.f32.mrb[207].mxu0 }
 0x691   :  { %7715 = vst [vmem:[%s14130_s5 + $0x138] sm:$0xff] %v8712_v16 }
 0x694   :  { %v7581_v18 = vpop.f32.mrb[208].mxu0 }
 0x695   :  { %v8713_v6 = vadd.f32 %v13851_v50, %v7581_v18  ;;  %v7583_v43 = vpop.f32.mrb[209].mxu0 }
 0x696   :  { %v7584_v2 = vpop.f32.mrb[210].mxu0 }
 0x697   :  { %7716 = vst [vmem:[%s14130_s5 + $0x140] sm:$0xff] %v8713_v6  ;;  %v8714_v37 = vadd.f32 %v13851_v50, %v7584_v2  ;;  %v7586_v46 = vpop.f32.mrb[211].mxu0 }
 0x699   :  { %7717 = vst [vmem:[%s14130_s5 + $0x148] sm:$0xff] %v8714_v37 }
 0x69c   :  { %v7589_v4 = vpop.f32.mrb[212].mxu0 }
 0x69d   :  { %v8715_v1 = vadd.f32 %v13851_v50, %v7589_v4  ;;  %v7591_v20 = vpop.f32.mrb[213].mxu0 }
 0x69e   :  { %v7592_v51 = vpop.f32.mrb[214].mxu0 }
 0x69f   :  { %7718 = vst [vmem:[%s14130_s5 + $0x150] sm:$0xff] %v8715_v1  ;;  %v8716_v3 = vadd.f32 %v13851_v50, %v7592_v51  ;;  %v7594_v17 = vpop.f32.mrb[215].mxu0 }
 0x6a1   :  { %7719 = vst [vmem:[%s14130_s5 + $0x158] sm:$0xff] %v8716_v3 }
 0x6a4   :  { %v7597_v45 = vpop.f32.mrb[216].mxu0 }
 0x6a5   :  { %v8717_v52 = vadd.f32 %v13851_v50, %v7597_v45  ;;  %v7599_v38 = vpop.f32.mrb[217].mxu0 }
 0x6a6   :  { %v7600_v60 = vpop.f32.mrb[218].mxu0 }
 0x6a7   :  { %7720 = vst [vmem:[%s14130_s5 + $0x160] sm:$0xff] %v8717_v52  ;;  %v8718_v36 = vadd.f32 %v13851_v50, %v7600_v60  ;;  %v7602_v29 = vpop.f32.mrb[219].mxu0 }
 0x6a9   :  { %7721 = vst [vmem:[%s14130_s5 + $0x168] sm:$0xff] %v8718_v36 }
 0x6ac   :  { %v7605_v32 = vpop.f32.mrb[220].mxu0 }
 0x6ad   :  { %v8719_v61 = vadd.f32 %v13851_v50, %v7605_v32  ;;  %v7607_v57 = vpop.f32.mrb[221].mxu0 }
 0x6ae   :  { %v7608_v28 = vpop.f32.mrb[222].mxu0 }
 0x6af   :  { %7722 = vst [vmem:[%s14130_s5 + $0x170] sm:$0xff] %v8719_v61  ;;  %v8720_v8 = vadd.f32 %v13851_v50, %v7608_v28  ;;  %v7610_v5 = vpop.f32.mrb[223].mxu0 }
 0x6b1   :  { %7723 = vst [vmem:[%s14130_s5 + $0x178] sm:$0xff] %v8720_v8 }
 0x6b4   :  { %v7613_v58 = vpop.f32.mrb[224].mxu0 }
 0x6b5   :  { %v8721_v39 = vadd.f32 %v13851_v50, %v7613_v58  ;;  %v7615_v7 = vpop.f32.mrb[225].mxu0 }
 0x6b6   :  { %v7616_v21 = vpop.f32.mrb[226].mxu0 }
 0x6b7   :  { %7724 = vst [vmem:[%s14130_s5 + $0x180] sm:$0xff] %v8721_v39  ;;  %v8722_v0 = vadd.f32 %v13851_v50, %v7616_v21  ;;  %v7618_v40 = vpop.f32.mrb[227].mxu0 }
 0x6b9   :  { %7725 = vst [vmem:[%s14130_s5 + $0x188] sm:$0xff] %v8722_v0 }
 0x6bc   :  { %v7621_v48 = vpop.f32.mrb[228].mxu0 }
 0x6bd   :  { %v8723_v19 = vadd.f32 %v13851_v50, %v7621_v48  ;;  %v7623_v42 = vpop.f32.mrb[229].mxu0 }
 0x6be   :  { %v7624_v34 = vpop.f32.mrb[230].mxu0 }
 0x6bf   :  { %7726 = vst [vmem:[%s14130_s5 + $0x190] sm:$0xff] %v8723_v19  ;;  %v8724_v23 = vadd.f32 %v13851_v50, %v7624_v34  ;;  %v7626_v56 = vpop.f32.mrb[231].mxu0 }
 0x6c1   :  { %7727 = vst [vmem:[%s14130_s5 + $0x198] sm:$0xff] %v8724_v23 }
 0x6c4   :  { %v7629_v54 = vpop.f32.mrb[232].mxu0 }
 0x6c5   :  { %v8725_v63 = vadd.f32 %v13851_v50, %v7629_v54  ;;  %v7631_v15 = vpop.f32.mrb[233].mxu0 }
 0x6c6   :  { %v7632_v31 = vpop.f32.mrb[234].mxu0 }
 0x6c7   :  { %7728 = vst [vmem:[%s14130_s5 + $0x1a0] sm:$0xff] %v8725_v63  ;;  %v8726_v49 = vadd.f32 %v13851_v50, %v7632_v31  ;;  %v7634_v47 = vpop.f32.mrb[235].mxu0 }
 0x6c9   :  { %7729 = vst [vmem:[%s14130_s5 + $0x1a8] sm:$0xff] %v8726_v49 }
 0x6cc   :  { %v7637_v55 = vpop.f32.mrb[236].mxu0 }
 0x6cd   :  { %v8727_v27 = vadd.f32 %v13851_v50, %v7637_v55  ;;  %v7639_v22 = vpop.f32.mrb[237].mxu0 }
 0x6ce   :  { %v7640_v9 = vpop.f32.mrb[238].mxu0 }
 0x6cf   :  { %7730 = vst [vmem:[%s14130_s5 + $0x1b0] sm:$0xff] %v8727_v27  ;;  %v8728_v25 = vadd.f32 %v13851_v50, %v7640_v9  ;;  %v7642_v62 = vpop.f32.mrb[239].mxu0 }
 0x6d1   :  { %7731 = vst [vmem:[%s14130_s5 + $0x1b8] sm:$0xff] %v8728_v25 }
 0x6d4   :  { %v7645_v53 = vpop.f32.mrb[240].mxu0 }
 0x6d5   :  { %v8729_v33 = vadd.f32 %v13851_v50, %v7645_v53  ;;  %v7647_v44 = vpop.f32.mrb[241].mxu0 }
 0x6d6   :  { %v7648_v13 = vpop.f32.mrb[242].mxu0 }
 0x6d7   :  { %7732 = vst [vmem:[%s14130_s5 + $0x1c0] sm:$0xff] %v8729_v33  ;;  %v8730_v10 = vadd.f32 %v13851_v50, %v7648_v13  ;;  %v7650_v11 = vpop.f32.mrb[243].mxu0 }
 0x6d9   :  { %7733 = vst [vmem:[%s14130_s5 + $0x1c8] sm:$0xff] %v8730_v10 }
 0x6dc   :  { %v7653_v59 = vpop.f32.mrb[244].mxu0 }
 0x6dd   :  { %v8731_v35 = vadd.f32 %v13851_v50, %v7653_v59  ;;  %v7655_v26 = vpop.f32.mrb[245].mxu0 }
 0x6de   :  { %v7656_v12 = vpop.f32.mrb[246].mxu0 }
 0x6df   :  { %7734 = vst [vmem:[%s14130_s5 + $0x1d0] sm:$0xff] %v8731_v35  ;;  %v8732_v14 = vadd.f32 %v13851_v50, %v7656_v12  ;;  %v7658_v30 = vpop.f32.mrb[247].mxu0 }
 0x6e1   :  { %7735 = vst [vmem:[%s14130_s5 + $0x1d8] sm:$0xff] %v8732_v14 }
 0x6e4   :  { %v7661_v24 = vpop.f32.mrb[248].mxu0 }
 0x6e5   :  { %v8733_v16 = vadd.f32 %v13851_v50, %v7661_v24  ;;  %v7663_v41 = vpop.f32.mrb[249].mxu0 }
 0x6e6   :  { %v7664_v18 = vpop.f32.mrb[250].mxu0 }
 0x6e7   :  { %7736 = vst [vmem:[%s14130_s5 + $0x1e0] sm:$0xff] %v8733_v16  ;;  %v8734_v6 = vadd.f32 %v13851_v50, %v7664_v18  ;;  %v7666_v43 = vpop.f32.mrb[251].mxu0 }
 0x6e9   :  { %7737 = vst [vmem:[%s14130_s5 + $0x1e8] sm:$0xff] %v8734_v6 }
 0x6ec   :  { %v7669_v2 = vpop.f32.mrb[252].mxu0 }
 0x6ed   :  { %v8735_v37 = vadd.f32 %v13851_v50, %v7669_v2  ;;  %v7671_v46 = vpop.f32.mrb[253].mxu0 }
 0x6ee   :  { %v7672_v4 = vpop.f32.mrb[254].mxu0 }
 0x6ef   :  { %7738 = vst [vmem:[%s14130_s5 + $0x1f0] sm:$0xff] %v8735_v37  ;;  %v8736_v1 = vadd.f32 %v13851_v50, %v7672_v4  ;;  %v7674_v20 = vpop.f32.mrb[255].mxu0 }
 0x6f1   :  { %7739 = vst [vmem:[%s14130_s5 + $0x1f8] sm:$0xff] %v8736_v1 }

</bundles_post_ra>
